<compile_context>
chip_gen: v7x
topology: tpu7x:2x2x1
jax: 0.10.0
libtpu: 0.0.40
codegen_flags: <defaults>
</compile_context>

<pallas_src>
import functools

import jax
import jax.numpy as jnp
from jax.experimental import pallas as pl
from jax.experimental.pallas import tpu as pltpu

KH = KW = 5      # conv kernel size (both convs)
POOL = 5         # max-pool window == stride
C1 = 12          # conv1 out channels
C1P = 16         # conv1 out channels, zero-padded (sublane-aligned tap slabs)
C2 = 64          # conv2 out channels


def _rup(x, m):
    return (x + m - 1) // m * m


# ----------------------------------------------------------------------------
# Kernel 1: fused conv1 -> relu -> conv2 -> relu -> maxpool  (block_b images)
# ----------------------------------------------------------------------------
def _feature_kernel(x_ref, w1_ref, b1_ref, w2_ref, b2_ref, o_ref,
                    a1_ref, p2_ref, acc_ref, *, H, W, B):
    OH1, OW1 = H - KH + 1, W - KW + 1
    OH2, OW2 = OH1 - KH + 1, OW1 - KW + 1
    PH, PW = OH2 // POOL, OW2 // POOL
    L1 = (OH1 - 1) * W + OW1        # flat (stride-W) conv1 output length
    L2 = (OH2 - 1) * W + OW2        # flat (stride-W) conv2 output length

    # Hoist small weight / bias loads out of the per-image loop.
    w1 = w1_ref[...]                # (C1P, 25)  f32
    b1 = b1_ref[...]                # (C1P, 1)   f32
    b2 = b2_ref[...]                # (C2, 1)    f32
    # 64x64 identity, used to transpose the pooled features on the MXU.
    eye = (jax.lax.broadcasted_iota(jnp.int32, (C2, C2), 0) ==
           jax.lax.broadcasted_iota(jnp.int32, (C2, C2), 1)).astype(jnp.bfloat16)

    def one_image(b, carry):
        xrow = x_ref[b]             # (1, H*W) f32  (dynamic leading index)

        # ---- conv1 + relu: 25 shifted full-image FMAs (VPU). Columns with
        # j >= OW1 in each row are wrap-around garbage, never read later.
        acc1 = jnp.broadcast_to(b1, (C1P, L1))
        for ki in range(KH):
            for kj in range(KW):
                t = ki * KW + kj
                off = ki * W + kj
                acc1 = acc1 + w1[:, t:t + 1] * xrow[:, off:off + L1]
        a1_ref[...] = jnp.maximum(acc1, 0.0).astype(jnp.bfloat16)

        # ---- conv2 im2col: 25 shifted (C1P, L2) bf16 slabs -> (400, L2) block
        for ki in range(KH):
            for kj in range(KW):
                t = ki * KW + kj
                off = ki * W + kj
                p2_ref[pl.ds(t * C1P, C1P), :] = a1_ref[:, pl.ds(off, L2)]

        # ---- conv2 + bias + relu: one wide MXU matmul (N = L2 >= 256 lanes)
        acc2 = jnp.dot(w2_ref[...], p2_ref[...],
                       preferred_element_type=jnp.float32)       # (C2, L2) f32
        acc_ref[...] = jnp.maximum(acc2 + b2, 0.0)

        # ---- fused 5x5 / stride-5 max-pool (reads only the valid columns)
        cols = []
        for pi in range(PH):
            base = POOL * pi * W
            band = acc_ref[:, pl.ds(base, OW2)]
            for r in range(1, POOL):
                band = jnp.maximum(band, acc_ref[:, pl.ds(base + r * W, OW2)])
            for pj in range(PW):
                cols.append(jnp.max(band[:, POOL * pj:POOL * pj + POOL],
                                    axis=1, keepdims=True))
        pooled = jnp.concatenate(cols, axis=1).astype(jnp.bfloat16)  # (C2, PH*PW)

        # ---- transpose (C2, PH*PW) -> (PH*PW, C2) via identity matmul so the
        # per-image output rows are 64 lanes wide (lane-dense writeback).
        feats_t = jax.lax.dot_general(pooled, eye, (((0,), (0,)), ((), ())),
                                      preferred_element_type=jnp.float32)
        o_ref[b] = feats_t.astype(o_ref.dtype)
        return carry

    jax.lax.fori_loop(0, B, one_image, 0)


def feature_extractor(x_flat, w1p, b1p, w2p, b2p, *, H, W, block_b):
    """x_flat: (Np, 1, H*W) f32 -> pooled features (Np, PH*PW, C2) bf16."""
    Np = x_flat.shape[0]
    assert Np % block_b == 0
    OH1, OW1 = H - KH + 1, W - KW + 1
    OH2, OW2 = OH1 - KH + 1, OW1 - KW + 1
    assert OH2 % POOL == 0 and OW2 % POOL == 0, "pool must tile conv2 output"
    PH, PW = OH2 // POOL, OW2 // POOL
    PP = PH * PW
    L1 = (OH1 - 1) * W + OW1
    L2 = (OH2 - 1) * W + OW2
    kernel = functools.partial(_feature_kernel, H=H, W=W, B=block_b)
    return pl.pallas_call(
        kernel,
        out_shape=jax.ShapeDtypeStruct((Np, PP, C2), jnp.bfloat16),
        grid=(Np // block_b,),
        in_specs=[
            pl.BlockSpec((block_b, 1, H * W), lambda n: (n, 0, 0)),
            pl.BlockSpec((C1P, KH * KW), lambda n: (0, 0)),
            pl.BlockSpec((C1P, 1), lambda n: (0, 0)),
            pl.BlockSpec((C2, KH * KW * C1P), lambda n: (0, 0)),
            pl.BlockSpec((C2, 1), lambda n: (0, 0)),
        ],
        out_specs=pl.BlockSpec((block_b, PP, C2), lambda n: (n, 0, 0)),
        scratch_shapes=[
            pltpu.VMEM((C1P, L1), jnp.bfloat16),             # conv1 acts (flat)
            pltpu.VMEM((KH * KW * C1P, L2), jnp.bfloat16),   # conv2 im2col block
            pltpu.VMEM((C2, L2), jnp.float32),               # conv2 output (flat)
        ],
        compiler_params=pltpu.CompilerParams(
            dimension_semantics=("parallel",)),
    )(x_flat, w1p, b1p, w2p, b2p)


# ----------------------------------------------------------------------------
# Kernel 2: fused FC head (fc1 -> relu -> fc2 -> relu -> fc3)
# ----------------------------------------------------------------------------
def _fc_head_kernel(x_ref, w1_ref, b1_ref, w2_ref, b2_ref, w3_ref, b3_ref,
                    o_ref):
    x = x_ref[...].astype(jnp.bfloat16)
    h = jnp.dot(x, w1_ref[...], preferred_element_type=jnp.float32) + b1_ref[...]
    h = jnp.maximum(h, 0.0).astype(jnp.bfloat16)
    h = jnp.dot(h, w2_ref[...], preferred_element_type=jnp.float32) + b2_ref[...]
    h = jnp.maximum(h, 0.0).astype(jnp.bfloat16)
    y = jnp.dot(h, w3_ref[...], preferred_element_type=jnp.float32) + b3_ref[...]
    o_ref[...] = y.astype(o_ref.dtype)


def fc_head(feats, w1, b1, w2, b2, w3, b3, *, num_classes):
    """feats: (M, F) bf16; weights (in, out) bf16 (lane-padded); biases f32."""
    M, F = feats.shape
    bm = min(128, M)
    Mp = _rup(M, bm)
    if Mp != M:
        feats = jnp.pad(feats, ((0, Mp - M), (0, 0)))
    H1, H2, O = w1.shape[1], w2.shape[1], w3.shape[1]
    out = pl.pallas_call(
        _fc_head_kernel,
        out_shape=jax.ShapeDtypeStruct((Mp, O), jnp.float32),
        grid=(Mp // bm,),
        in_specs=[
            pl.BlockSpec((bm, F), lambda i: (i, 0)),
            pl.BlockSpec((F, H1), lambda i: (0, 0)),
            pl.BlockSpec((1, H1), lambda i: (0, 0)),
            pl.BlockSpec((H1, H2), lambda i: (0, 0)),
            pl.BlockSpec((1, H2), lambda i: (0, 0)),
            pl.BlockSpec((H2, O), lambda i: (0, 0)),
            pl.BlockSpec((1, O), lambda i: (0, 0)),
        ],
        out_specs=pl.BlockSpec((bm, O), lambda i: (i, 0)),
        compiler_params=pltpu.CompilerParams(
            dimension_semantics=("parallel",)),
    )(feats, w1, b1, w2, b2, w3, b3)
    return out[:M, :num_classes]


# ----------------------------------------------------------------------------
# One-time parameter packing (layout / padding / dtype prep, host side)
# ----------------------------------------------------------------------------
def prepare_params(params, input_shape):
    Cin, H, W = input_shape
    OH2, OW2 = H - 2 * (KH - 1), W - 2 * (KW - 1)
    PP = (OH2 // POOL) * (OW2 // POOL)

    w1 = params["w_conv1"].astype(jnp.float32)               # (12, 1, 5, 5)
    b1 = params["b_conv1"].astype(jnp.float32)
    w2 = params["w_conv2"].astype(jnp.float32)               # (64, 12, 5, 5)
    b2 = params["b_conv2"].astype(jnp.float32)

    # conv1: (co, ki, kj) -> (C1P, 25), zero-padded output channels.
    w1m = jnp.pad(w1.reshape(C1, KH * KW), ((0, C1P - C1), (0, 0)))
    b1m = jnp.pad(b1, (0, C1P - C1)).reshape(C1P, 1)

    # conv2: (co, ci, ki, kj) -> (co, ki, kj, ci[pad 16]) -> (C2, 25*C1P) bf16.
    w2t = jnp.transpose(w2, (0, 2, 3, 1))                    # (64, 5, 5, 12)
    w2t = jnp.pad(w2t, ((0, 0), (0, 0), (0, 0), (0, C1P - C1)))
    w2m = w2t.reshape(C2, KH * KW * C1P).astype(jnp.bfloat16)
    b2m = b2.reshape(C2, 1).astype(jnp.float32)

    # fc1: permute input rows from PyTorch's (c, ph, pw) flatten order to the
    # kernel's (ph*pw, c) order; zero-pad all hidden widths to lane multiples.
    w_fc1 = params["w_fc1"].astype(jnp.float32)              # (C2*PP, 480)
    F, H1 = w_fc1.shape
    H1p = _rup(H1, 128)
    w_fc1 = w_fc1.reshape(C2, PP, H1).transpose(1, 0, 2).reshape(F, H1)
    w_fc1 = jnp.pad(w_fc1, ((0, 0), (0, H1p - H1)))
    b_fc1 = jnp.pad(params["b_fc1"].astype(jnp.float32), (0, H1p - H1))

    w_fc2 = params["w_fc2"].astype(jnp.float32)              # (480, 150)
    H2 = w_fc2.shape[1]
    H2p = _rup(H2, 128)
    w_fc2 = jnp.pad(w_fc2, ((0, H1p - H1), (0, H2p - H2)))
    b_fc2 = jnp.pad(params["b_fc2"].astype(jnp.float32), (0, H2p - H2))

    w_fc3 = params["w_fc3"].astype(jnp.float32)              # (150, classes)
    O = w_fc3.shape[1]
    Op = _rup(O, 128)
    w_fc3 = jnp.pad(w_fc3, ((0, H2p - H2), (0, Op - O)))
    b_fc3 = jnp.pad(params["b_fc3"].astype(jnp.float32), (0, Op - O))

    return {
        "w1": w1m, "b1": b1m, "w2": w2m, "b2": b2m,
        "w_fc1": w_fc1.astype(jnp.bfloat16), "b_fc1": b_fc1.reshape(1, -1),
        "w_fc2": w_fc2.astype(jnp.bfloat16), "b_fc2": b_fc2.reshape(1, -1),
        "w_fc3": w_fc3.astype(jnp.bfloat16), "b_fc3": b_fc3.reshape(1, -1),
    }


# ----------------------------------------------------------------------------
# Forward pass (2 pallas_calls total)
# ----------------------------------------------------------------------------
def cnn_forward(x_nchw, prep, *, block_b=8, num_classes=10):
    N, Cin, H, W = x_nchw.shape
    assert Cin == 1, "module hardcodes nn.Conv2d(1, 12, 5)"
    x = x_nchw.reshape(N, 1, H * W).astype(jnp.float32)       # flat rows (free)
    bb = min(block_b, N)
    Np = _rup(N, bb)
    if Np != N:
        x = jnp.pad(x, ((0, Np - N), (0, 0), (0, 0)))
    feats = feature_extractor(x, prep["w1"], prep["b1"],
                              prep["w2"], prep["b2"],
                              H=H, W=W, block_b=bb)           # (Np, PP, C2) bf16
    feats = feats.reshape(Np, -1)[:N]                         # free bitcast + slice
    return fc_head(feats,
                   prep["w_fc1"], prep["b_fc1"],
                   prep["w_fc2"], prep["b_fc2"],
                   prep["w_fc3"], prep["b_fc3"],
                   num_classes=num_classes)


# ----------------------------------------------------------------------------
# Pure-JAX reference (loose numerical sanity check) + init
# ----------------------------------------------------------------------------
def _reference_forward(x_nchw, params):
    dn = ("NCHW", "OIHW", "NCHW")
    y = jax.lax.conv_general_dilated(x_nchw, params["w_conv1"], (1, 1), "VALID",
                                     dimension_numbers=dn)
    y = jax.nn.relu(y + params["b_conv1"][None, :, None, None])
    y = jax.lax.conv_general_dilated(y, params["w_conv2"], (1, 1), "VALID",
                                     dimension_numbers=dn)
    y = jax.nn.relu(y + params["b_conv2"][None, :, None, None])
    N, C, Hc, Wc = y.shape
    y = y[:, :, :(Hc // POOL) * POOL, :(Wc // POOL) * POOL]
    y = y.reshape(N, C, Hc // POOL, POOL, Wc // POOL, POOL).max(axis=(3, 5))
    y = y.reshape(N, -1)
    y = jax.nn.relu(y @ params["w_fc1"] + params["b_fc1"])
    y = jax.nn.relu(y @ params["w_fc2"] + params["b_fc2"])
    return y @ params["w_fc3"] + params["b_fc3"]


def init_params(key, input_shape=(1, 28, 28), num_classes=10):
    Cin, H, W = input_shape
    h1, w1 = H - 4, W - 4        # conv1 (5x5 valid)
    h2, w2 = h1 - 4, w1 - 4      # conv2 (5x5 valid)
    hp, wp = h2 // POOL, w2 // POOL
    num_flat = C2 * hp * wp

    keys = jax.random.split(key, 10)
    scale = 0.05
    params = {
        "w_conv1": scale * jax.random.normal(keys[0], (C1, Cin, 5, 5), jnp.float32),
        "b_conv1": scale * jax.random.normal(keys[1], (C1,), jnp.float32),
        "w_conv2": scale * jax.random.normal(keys[2], (C2, C1, 5, 5), jnp.float32),
        "b_conv2": scale * jax.random.normal(keys[3], (C2,), jnp.float32),
        "w_fc1": scale * jax.random.normal(keys[4], (num_flat, 480), jnp.float32),
        "b_fc1": scale * jax.random.normal(keys[5], (480,), jnp.float32),
        "w_fc2": scale * jax.random.normal(keys[6], (480, 150), jnp.float32),
        "b_fc2": scale * jax.random.normal(keys[7], (150,), jnp.float32),
        "w_fc3": scale * jax.random.normal(keys[8], (150, num_classes), jnp.float32),
        "b_fc3": scale * jax.random.normal(keys[9], (num_classes,), jnp.float32),
    }
    return params, num_flat


if __name__ == "__main__":
    key = jax.random.PRNGKey(0)
    k_param, k_input = jax.random.split(key)

    batch, input_shape, num_classes = 16, (1, 28, 28), 10
    params, num_flat = init_params(k_param, input_shape, num_classes)
    prep = prepare_params(params, input_shape)          # one-time weight packing

    x = jax.random.normal(k_input, (batch,) + input_shape, jnp.float32)  # NCHW

    fwd = jax.jit(functools.partial(cnn_forward, block_b=8,
                                    num_classes=num_classes))
    out = jax.block_until_ready(fwd(x, prep))

    assert out.shape == (batch, num_classes), out.shape
    assert bool(jnp.all(jnp.isfinite(out)))

    # Loose tolerance: conv2 / FC matmuls use bf16 operands with f32 accumulate
    # (intentional inference-precision choice).
    ref = _reference_forward(x, params)
    assert bool(jnp.allclose(out, ref, rtol=1e-1, atol=2e-2)), (
        float(jnp.max(jnp.abs(out - ref))))

    print("KERNEL_OK")
</pallas_src>

<mosaic_0001>
module attributes {stable_mosaic.version = 11 : i64} {
  func.func @_feature_kernel(%arg0: i32, %arg1: memref<8x1x784xf32, #tpu.memory_space<vmem>>, %arg2: memref<16x25xf32, #tpu.memory_space<vmem>>, %arg3: memref<16x1xf32, #tpu.memory_space<vmem>>, %arg4: memref<64x400xbf16, #tpu.memory_space<vmem>>, %arg5: memref<64x1xf32, #tpu.memory_space<vmem>>, %arg6: memref<8x16x64xbf16, #tpu.memory_space<vmem>>, %arg7: memref<16x668xbf16, #tpu.memory_space<vmem>>, %arg8: memref<400x552xbf16, #tpu.memory_space<vmem>>, %arg9: memref<64x552xf32, #tpu.memory_space<vmem>>) attributes {dimension_semantics = [#tpu.dimension_semantics<parallel>], iteration_bounds = array<i64: 2>, scalar_prefetch = 0 : i64, scratch_operands = 3 : i64, tpu.core_type = #tpu.core_type<tc>, window_params = [{transform_indices = @transform_0, window_bounds = array<i64: 8, 1, 784>}, {pipeline_mode = #tpu.pipeline_mode<synchronous>, transform_indices = @transform_1, window_bounds = array<i64: 16, 25>}, {pipeline_mode = #tpu.pipeline_mode<synchronous>, transform_indices = @transform_2, window_bounds = array<i64: 16, 1>}, {pipeline_mode = #tpu.pipeline_mode<synchronous>, transform_indices = @transform_3, window_bounds = array<i64: 64, 400>}, {pipeline_mode = #tpu.pipeline_mode<synchronous>, transform_indices = @transform_4, window_bounds = array<i64: 64, 1>}, {transform_indices = @transform_5, window_bounds = array<i64: 8, 16, 64>}]} {
    %c0 = arith.constant 0 : index
    %c0_0 = arith.constant 0 : index
    %0 = vector.load %arg2[%c0, %c0_0] : memref<16x25xf32, #tpu.memory_space<vmem>>, vector<16x25xf32>
    %c0_1 = arith.constant 0 : index
    %c0_2 = arith.constant 0 : index
    %1 = vector.load %arg3[%c0_1, %c0_2] : memref<16x1xf32, #tpu.memory_space<vmem>>, vector<16x1xf32>
    %c0_3 = arith.constant 0 : index
    %c0_4 = arith.constant 0 : index
    %2 = vector.load %arg5[%c0_3, %c0_4] : memref<64x1xf32, #tpu.memory_space<vmem>>, vector<64x1xf32>
    %3 = tpu.iota {dimensions = array<i32: 0>} : vector<64x64xi32>
    %4 = tpu.iota {dimensions = array<i32: 1>} : vector<64x64xi32>
    %5 = arith.cmpi eq, %3, %4 : vector<64x64xi32>
    %6 = arith.extui %5 : vector<64x64xi1> to vector<64x64xi32>
    %7 = arith.sitofp %6 : vector<64x64xi32> to vector<64x64xf32>
    %8 = arith.truncf %7 : vector<64x64xf32> to vector<64x64xbf16>
    %c0_i32 = arith.constant 0 : i32
    %c8_i32 = arith.constant 8 : i32
    %9 = arith.addi %c0_i32, %c8_i32 : i32
    %c1_i32 = arith.constant 1 : i32
    scf.for %arg10 = %c0_i32 to %9 step %c1_i32  : i32 {
      %10 = arith.index_cast %arg10 : i32 to index
      %c0_6 = arith.constant 0 : index
      %c0_7 = arith.constant 0 : index
      %11 = vector.load %arg1[%10, %c0_6, %c0_7] : memref<8x1x784xf32, #tpu.memory_space<vmem>>, vector<1x1x784xf32>
      %12 = vector.shape_cast %11 : vector<1x1x784xf32> to vector<1x784xf32>
      %13 = vector.shape_cast %1 : vector<16x1xf32> to vector<16x1xf32>
      %14 = vector.broadcast %13 : vector<16x1xf32> to vector<16x668xf32>
      %15 = vector.extract_strided_slice %0 {offsets = [0, 0], sizes = [16, 1], strides = [1, 1]} : vector<16x25xf32> to vector<16x1xf32>
      %16 = vector.extract_strided_slice %12 {offsets = [0, 0], sizes = [1, 668], strides = [1, 1]} : vector<1x784xf32> to vector<1x668xf32>
      %17 = vector.broadcast %15 : vector<16x1xf32> to vector<16x668xf32>
      %18 = vector.broadcast %16 : vector<1x668xf32> to vector<16x668xf32>
      %19 = arith.mulf %17, %18 : vector<16x668xf32>
      %20 = arith.addf %14, %19 : vector<16x668xf32>
      %21 = vector.extract_strided_slice %0 {offsets = [0, 1], sizes = [16, 1], strides = [1, 1]} : vector<16x25xf32> to vector<16x1xf32>
      %22 = vector.extract_strided_slice %12 {offsets = [0, 1], sizes = [1, 668], strides = [1, 1]} : vector<1x784xf32> to vector<1x668xf32>
      %23 = vector.broadcast %21 : vector<16x1xf32> to vector<16x668xf32>
      %24 = vector.broadcast %22 : vector<1x668xf32> to vector<16x668xf32>
      %25 = arith.mulf %23, %24 : vector<16x668xf32>
      %26 = arith.addf %20, %25 : vector<16x668xf32>
      %27 = vector.extract_strided_slice %0 {offsets = [0, 2], sizes = [16, 1], strides = [1, 1]} : vector<16x25xf32> to vector<16x1xf32>
      %28 = vector.extract_strided_slice %12 {offsets = [0, 2], sizes = [1, 668], strides = [1, 1]} : vector<1x784xf32> to vector<1x668xf32>
      %29 = vector.broadcast %27 : vector<16x1xf32> to vector<16x668xf32>
      %30 = vector.broadcast %28 : vector<1x668xf32> to vector<16x668xf32>
      %31 = arith.mulf %29, %30 : vector<16x668xf32>
      %32 = arith.addf %26, %31 : vector<16x668xf32>
      %33 = vector.extract_strided_slice %0 {offsets = [0, 3], sizes = [16, 1], strides = [1, 1]} : vector<16x25xf32> to vector<16x1xf32>
      %34 = vector.extract_strided_slice %12 {offsets = [0, 3], sizes = [1, 668], strides = [1, 1]} : vector<1x784xf32> to vector<1x668xf32>
      %35 = vector.broadcast %33 : vector<16x1xf32> to vector<16x668xf32>
      %36 = vector.broadcast %34 : vector<1x668xf32> to vector<16x668xf32>
      %37 = arith.mulf %35, %36 : vector<16x668xf32>
      %38 = arith.addf %32, %37 : vector<16x668xf32>
      %39 = vector.extract_strided_slice %0 {offsets = [0, 4], sizes = [16, 1], strides = [1, 1]} : vector<16x25xf32> to vector<16x1xf32>
      %40 = vector.extract_strided_slice %12 {offsets = [0, 4], sizes = [1, 668], strides = [1, 1]} : vector<1x784xf32> to vector<1x668xf32>
      %41 = vector.broadcast %39 : vector<16x1xf32> to vector<16x668xf32>
      %42 = vector.broadcast %40 : vector<1x668xf32> to vector<16x668xf32>
      %43 = arith.mulf %41, %42 : vector<16x668xf32>
      %44 = arith.addf %38, %43 : vector<16x668xf32>
      %45 = vector.extract_strided_slice %0 {offsets = [0, 5], sizes = [16, 1], strides = [1, 1]} : vector<16x25xf32> to vector<16x1xf32>
      %46 = vector.extract_strided_slice %12 {offsets = [0, 28], sizes = [1, 668], strides = [1, 1]} : vector<1x784xf32> to vector<1x668xf32>
      %47 = vector.broadcast %45 : vector<16x1xf32> to vector<16x668xf32>
      %48 = vector.broadcast %46 : vector<1x668xf32> to vector<16x668xf32>
      %49 = arith.mulf %47, %48 : vector<16x668xf32>
      %50 = arith.addf %44, %49 : vector<16x668xf32>
      %51 = vector.extract_strided_slice %0 {offsets = [0, 6], sizes = [16, 1], strides = [1, 1]} : vector<16x25xf32> to vector<16x1xf32>
      %52 = vector.extract_strided_slice %12 {offsets = [0, 29], sizes = [1, 668], strides = [1, 1]} : vector<1x784xf32> to vector<1x668xf32>
      %53 = vector.broadcast %51 : vector<16x1xf32> to vector<16x668xf32>
      %54 = vector.broadcast %52 : vector<1x668xf32> to vector<16x668xf32>
      %55 = arith.mulf %53, %54 : vector<16x668xf32>
      %56 = arith.addf %50, %55 : vector<16x668xf32>
      %57 = vector.extract_strided_slice %0 {offsets = [0, 7], sizes = [16, 1], strides = [1, 1]} : vector<16x25xf32> to vector<16x1xf32>
      %58 = vector.extract_strided_slice %12 {offsets = [0, 30], sizes = [1, 668], strides = [1, 1]} : vector<1x784xf32> to vector<1x668xf32>
      %59 = vector.broadcast %57 : vector<16x1xf32> to vector<16x668xf32>
      %60 = vector.broadcast %58 : vector<1x668xf32> to vector<16x668xf32>
      %61 = arith.mulf %59, %60 : vector<16x668xf32>
      %62 = arith.addf %56, %61 : vector<16x668xf32>
      %63 = vector.extract_strided_slice %0 {offsets = [0, 8], sizes = [16, 1], strides = [1, 1]} : vector<16x25xf32> to vector<16x1xf32>
      %64 = vector.extract_strided_slice %12 {offsets = [0, 31], sizes = [1, 668], strides = [1, 1]} : vector<1x784xf32> to vector<1x668xf32>
      %65 = vector.broadcast %63 : vector<16x1xf32> to vector<16x668xf32>
      %66 = vector.broadcast %64 : vector<1x668xf32> to vector<16x668xf32>
      %67 = arith.mulf %65, %66 : vector<16x668xf32>
      %68 = arith.addf %62, %67 : vector<16x668xf32>
      %69 = vector.extract_strided_slice %0 {offsets = [0, 9], sizes = [16, 1], strides = [1, 1]} : vector<16x25xf32> to vector<16x1xf32>
      %70 = vector.extract_strided_slice %12 {offsets = [0, 32], sizes = [1, 668], strides = [1, 1]} : vector<1x784xf32> to vector<1x668xf32>
      %71 = vector.broadcast %69 : vector<16x1xf32> to vector<16x668xf32>
      %72 = vector.broadcast %70 : vector<1x668xf32> to vector<16x668xf32>
      %73 = arith.mulf %71, %72 : vector<16x668xf32>
      %74 = arith.addf %68, %73 : vector<16x668xf32>
      %75 = vector.extract_strided_slice %0 {offsets = [0, 10], sizes = [16, 1], strides = [1, 1]} : vector<16x25xf32> to vector<16x1xf32>
      %76 = vector.extract_strided_slice %12 {offsets = [0, 56], sizes = [1, 668], strides = [1, 1]} : vector<1x784xf32> to vector<1x668xf32>
      %77 = vector.broadcast %75 : vector<16x1xf32> to vector<16x668xf32>
      %78 = vector.broadcast %76 : vector<1x668xf32> to vector<16x668xf32>
      %79 = arith.mulf %77, %78 : vector<16x668xf32>
      %80 = arith.addf %74, %79 : vector<16x668xf32>
      %81 = vector.extract_strided_slice %0 {offsets = [0, 11], sizes = [16, 1], strides = [1, 1]} : vector<16x25xf32> to vector<16x1xf32>
      %82 = vector.extract_strided_slice %12 {offsets = [0, 57], sizes = [1, 668], strides = [1, 1]} : vector<1x784xf32> to vector<1x668xf32>
      %83 = vector.broadcast %81 : vector<16x1xf32> to vector<16x668xf32>
      %84 = vector.broadcast %82 : vector<1x668xf32> to vector<16x668xf32>
      %85 = arith.mulf %83, %84 : vector<16x668xf32>
      %86 = arith.addf %80, %85 : vector<16x668xf32>
      %87 = vector.extract_strided_slice %0 {offsets = [0, 12], sizes = [16, 1], strides = [1, 1]} : vector<16x25xf32> to vector<16x1xf32>
      %88 = vector.extract_strided_slice %12 {offsets = [0, 58], sizes = [1, 668], strides = [1, 1]} : vector<1x784xf32> to vector<1x668xf32>
      %89 = vector.broadcast %87 : vector<16x1xf32> to vector<16x668xf32>
      %90 = vector.broadcast %88 : vector<1x668xf32> to vector<16x668xf32>
      %91 = arith.mulf %89, %90 : vector<16x668xf32>
      %92 = arith.addf %86, %91 : vector<16x668xf32>
      %93 = vector.extract_strided_slice %0 {offsets = [0, 13], sizes = [16, 1], strides = [1, 1]} : vector<16x25xf32> to vector<16x1xf32>
      %94 = vector.extract_strided_slice %12 {offsets = [0, 59], sizes = [1, 668], strides = [1, 1]} : vector<1x784xf32> to vector<1x668xf32>
      %95 = vector.broadcast %93 : vector<16x1xf32> to vector<16x668xf32>
      %96 = vector.broadcast %94 : vector<1x668xf32> to vector<16x668xf32>
      %97 = arith.mulf %95, %96 : vector<16x668xf32>
      %98 = arith.addf %92, %97 : vector<16x668xf32>
      %99 = vector.extract_strided_slice %0 {offsets = [0, 14], sizes = [16, 1], strides = [1, 1]} : vector<16x25xf32> to vector<16x1xf32>
      %100 = vector.extract_strided_slice %12 {offsets = [0, 60], sizes = [1, 668], strides = [1, 1]} : vector<1x784xf32> to vector<1x668xf32>
      %101 = vector.broadcast %99 : vector<16x1xf32> to vector<16x668xf32>
      %102 = vector.broadcast %100 : vector<1x668xf32> to vector<16x668xf32>
      %103 = arith.mulf %101, %102 : vector<16x668xf32>
      %104 = arith.addf %98, %103 : vector<16x668xf32>
      %105 = vector.extract_strided_slice %0 {offsets = [0, 15], sizes = [16, 1], strides = [1, 1]} : vector<16x25xf32> to vector<16x1xf32>
      %106 = vector.extract_strided_slice %12 {offsets = [0, 84], sizes = [1, 668], strides = [1, 1]} : vector<1x784xf32> to vector<1x668xf32>
      %107 = vector.broadcast %105 : vector<16x1xf32> to vector<16x668xf32>
      %108 = vector.broadcast %106 : vector<1x668xf32> to vector<16x668xf32>
      %109 = arith.mulf %107, %108 : vector<16x668xf32>
      %110 = arith.addf %104, %109 : vector<16x668xf32>
      %111 = vector.extract_strided_slice %0 {offsets = [0, 16], sizes = [16, 1], strides = [1, 1]} : vector<16x25xf32> to vector<16x1xf32>
      %112 = vector.extract_strided_slice %12 {offsets = [0, 85], sizes = [1, 668], strides = [1, 1]} : vector<1x784xf32> to vector<1x668xf32>
      %113 = vector.broadcast %111 : vector<16x1xf32> to vector<16x668xf32>
      %114 = vector.broadcast %112 : vector<1x668xf32> to vector<16x668xf32>
      %115 = arith.mulf %113, %114 : vector<16x668xf32>
      %116 = arith.addf %110, %115 : vector<16x668xf32>
      %117 = vector.extract_strided_slice %0 {offsets = [0, 17], sizes = [16, 1], strides = [1, 1]} : vector<16x25xf32> to vector<16x1xf32>
      %118 = vector.extract_strided_slice %12 {offsets = [0, 86], sizes = [1, 668], strides = [1, 1]} : vector<1x784xf32> to vector<1x668xf32>
      %119 = vector.broadcast %117 : vector<16x1xf32> to vector<16x668xf32>
      %120 = vector.broadcast %118 : vector<1x668xf32> to vector<16x668xf32>
      %121 = arith.mulf %119, %120 : vector<16x668xf32>
      %122 = arith.addf %116, %121 : vector<16x668xf32>
      %123 = vector.extract_strided_slice %0 {offsets = [0, 18], sizes = [16, 1], strides = [1, 1]} : vector<16x25xf32> to vector<16x1xf32>
      %124 = vector.extract_strided_slice %12 {offsets = [0, 87], sizes = [1, 668], strides = [1, 1]} : vector<1x784xf32> to vector<1x668xf32>
      %125 = vector.broadcast %123 : vector<16x1xf32> to vector<16x668xf32>
      %126 = vector.broadcast %124 : vector<1x668xf32> to vector<16x668xf32>
      %127 = arith.mulf %125, %126 : vector<16x668xf32>
      %128 = arith.addf %122, %127 : vector<16x668xf32>
      %129 = vector.extract_strided_slice %0 {offsets = [0, 19], sizes = [16, 1], strides = [1, 1]} : vector<16x25xf32> to vector<16x1xf32>
      %130 = vector.extract_strided_slice %12 {offsets = [0, 88], sizes = [1, 668], strides = [1, 1]} : vector<1x784xf32> to vector<1x668xf32>
      %131 = vector.broadcast %129 : vector<16x1xf32> to vector<16x668xf32>
      %132 = vector.broadcast %130 : vector<1x668xf32> to vector<16x668xf32>
      %133 = arith.mulf %131, %132 : vector<16x668xf32>
      %134 = arith.addf %128, %133 : vector<16x668xf32>
      %135 = vector.extract_strided_slice %0 {offsets = [0, 20], sizes = [16, 1], strides = [1, 1]} : vector<16x25xf32> to vector<16x1xf32>
      %136 = vector.extract_strided_slice %12 {offsets = [0, 112], sizes = [1, 668], strides = [1, 1]} : vector<1x784xf32> to vector<1x668xf32>
      %137 = vector.broadcast %135 : vector<16x1xf32> to vector<16x668xf32>
      %138 = vector.broadcast %136 : vector<1x668xf32> to vector<16x668xf32>
      %139 = arith.mulf %137, %138 : vector<16x668xf32>
      %140 = arith.addf %134, %139 : vector<16x668xf32>
      %141 = vector.extract_strided_slice %0 {offsets = [0, 21], sizes = [16, 1], strides = [1, 1]} : vector<16x25xf32> to vector<16x1xf32>
      %142 = vector.extract_strided_slice %12 {offsets = [0, 113], sizes = [1, 668], strides = [1, 1]} : vector<1x784xf32> to vector<1x668xf32>
      %143 = vector.broadcast %141 : vector<16x1xf32> to vector<16x668xf32>
      %144 = vector.broadcast %142 : vector<1x668xf32> to vector<16x668xf32>
      %145 = arith.mulf %143, %144 : vector<16x668xf32>
      %146 = arith.addf %140, %145 : vector<16x668xf32>
      %147 = vector.extract_strided_slice %0 {offsets = [0, 22], sizes = [16, 1], strides = [1, 1]} : vector<16x25xf32> to vector<16x1xf32>
      %148 = vector.extract_strided_slice %12 {offsets = [0, 114], sizes = [1, 668], strides = [1, 1]} : vector<1x784xf32> to vector<1x668xf32>
      %149 = vector.broadcast %147 : vector<16x1xf32> to vector<16x668xf32>
      %150 = vector.broadcast %148 : vector<1x668xf32> to vector<16x668xf32>
      %151 = arith.mulf %149, %150 : vector<16x668xf32>
      %152 = arith.addf %146, %151 : vector<16x668xf32>
      %153 = vector.extract_strided_slice %0 {offsets = [0, 23], sizes = [16, 1], strides = [1, 1]} : vector<16x25xf32> to vector<16x1xf32>
      %154 = vector.extract_strided_slice %12 {offsets = [0, 115], sizes = [1, 668], strides = [1, 1]} : vector<1x784xf32> to vector<1x668xf32>
      %155 = vector.broadcast %153 : vector<16x1xf32> to vector<16x668xf32>
      %156 = vector.broadcast %154 : vector<1x668xf32> to vector<16x668xf32>
      %157 = arith.mulf %155, %156 : vector<16x668xf32>
      %158 = arith.addf %152, %157 : vector<16x668xf32>
      %159 = vector.extract_strided_slice %0 {offsets = [0, 24], sizes = [16, 1], strides = [1, 1]} : vector<16x25xf32> to vector<16x1xf32>
      %160 = vector.extract_strided_slice %12 {offsets = [0, 116], sizes = [1, 668], strides = [1, 1]} : vector<1x784xf32> to vector<1x668xf32>
      %161 = vector.broadcast %159 : vector<16x1xf32> to vector<16x668xf32>
      %162 = vector.broadcast %160 : vector<1x668xf32> to vector<16x668xf32>
      %163 = arith.mulf %161, %162 : vector<16x668xf32>
      %164 = arith.addf %158, %163 : vector<16x668xf32>
      %cst = arith.constant 0.000000e+00 : f32
      %165 = vector.broadcast %cst : f32 to vector<16x668xf32>
      %166 = arith.maximumf %164, %165 : vector<16x668xf32>
      %167 = arith.truncf %166 : vector<16x668xf32> to vector<16x668xbf16>
      %c0_8 = arith.constant 0 : index
      %c0_9 = arith.constant 0 : index
      %168 = vector.load %arg7[%c0_8, %c0_9] : memref<16x668xbf16, #tpu.memory_space<vmem>>, vector<16x668xbf16>
      tpu.vector_store %arg7[%c0_8, %c0_9], %167 {strides = array<i32>} : memref<16x668xbf16, #tpu.memory_space<vmem>>, vector<16x668xbf16>,
      %c0_10 = arith.constant 0 : index
      %c0_11 = arith.constant 0 : index
      %169 = vector.load %arg7[%c0_10, %c0_11] : memref<16x668xbf16, #tpu.memory_space<vmem>>, vector<16x552xbf16>
      %c0_12 = arith.constant 0 : index
      %c0_13 = arith.constant 0 : index
      %170 = vector.load %arg8[%c0_12, %c0_13] : memref<400x552xbf16, #tpu.memory_space<vmem>>, vector<16x552xbf16>
      tpu.vector_store %arg8[%c0_12, %c0_13], %169 {strides = array<i32>} : memref<400x552xbf16, #tpu.memory_space<vmem>>, vector<16x552xbf16>,
      %c0_14 = arith.constant 0 : index
      %c1 = arith.constant 1 : index
      %171 = vector.load %arg7[%c0_14, %c1] : memref<16x668xbf16, #tpu.memory_space<vmem>>, vector<16x552xbf16>
      %c16 = arith.constant 16 : index
      %c0_15 = arith.constant 0 : index
      %172 = vector.load %arg8[%c16, %c0_15] : memref<400x552xbf16, #tpu.memory_space<vmem>>, vector<16x552xbf16>
      tpu.vector_store %arg8[%c16, %c0_15], %171 {strides = array<i32>} : memref<400x552xbf16, #tpu.memory_space<vmem>>, vector<16x552xbf16>,
      %c0_16 = arith.constant 0 : index
      %c2 = arith.constant 2 : index
      %173 = vector.load %arg7[%c0_16, %c2] : memref<16x668xbf16, #tpu.memory_space<vmem>>, vector<16x552xbf16>
      %c32 = arith.constant 32 : index
      %c0_17 = arith.constant 0 : index
      %174 = vector.load %arg8[%c32, %c0_17] : memref<400x552xbf16, #tpu.memory_space<vmem>>, vector<16x552xbf16>
      tpu.vector_store %arg8[%c32, %c0_17], %173 {strides = array<i32>} : memref<400x552xbf16, #tpu.memory_space<vmem>>, vector<16x552xbf16>,
      %c0_18 = arith.constant 0 : index
      %c3 = arith.constant 3 : index
      %175 = vector.load %arg7[%c0_18, %c3] : memref<16x668xbf16, #tpu.memory_space<vmem>>, vector<16x552xbf16>
      %c48 = arith.constant 48 : index
      %c0_19 = arith.constant 0 : index
      %176 = vector.load %arg8[%c48, %c0_19] : memref<400x552xbf16, #tpu.memory_space<vmem>>, vector<16x552xbf16>
      tpu.vector_store %arg8[%c48, %c0_19], %175 {strides = array<i32>} : memref<400x552xbf16, #tpu.memory_space<vmem>>, vector<16x552xbf16>,
      %c0_20 = arith.constant 0 : index
      %c4 = arith.constant 4 : index
      %177 = vector.load %arg7[%c0_20, %c4] : memref<16x668xbf16, #tpu.memory_space<vmem>>, vector<16x552xbf16>
      %c64 = arith.constant 64 : index
      %c0_21 = arith.constant 0 : index
      %178 = vector.load %arg8[%c64, %c0_21] : memref<400x552xbf16, #tpu.memory_space<vmem>>, vector<16x552xbf16>
      tpu.vector_store %arg8[%c64, %c0_21], %177 {strides = array<i32>} : memref<400x552xbf16, #tpu.memory_space<vmem>>, vector<16x552xbf16>,
      %c0_22 = arith.constant 0 : index
      %c28 = arith.constant 28 : index
      %179 = vector.load %arg7[%c0_22, %c28] : memref<16x668xbf16, #tpu.memory_space<vmem>>, vector<16x552xbf16>
      %c80 = arith.constant 80 : index
      %c0_23 = arith.constant 0 : index
      %180 = vector.load %arg8[%c80, %c0_23] : memref<400x552xbf16, #tpu.memory_space<vmem>>, vector<16x552xbf16>
      tpu.vector_store %arg8[%c80, %c0_23], %179 {strides = array<i32>} : memref<400x552xbf16, #tpu.memory_space<vmem>>, vector<16x552xbf16>,
      %c0_24 = arith.constant 0 : index
      %c29 = arith.constant 29 : index
      %181 = vector.load %arg7[%c0_24, %c29] : memref<16x668xbf16, #tpu.memory_space<vmem>>, vector<16x552xbf16>
      %c96 = arith.constant 96 : index
      %c0_25 = arith.constant 0 : index
      %182 = vector.load %arg8[%c96, %c0_25] : memref<400x552xbf16, #tpu.memory_space<vmem>>, vector<16x552xbf16>
      tpu.vector_store %arg8[%c96, %c0_25], %181 {strides = array<i32>} : memref<400x552xbf16, #tpu.memory_space<vmem>>, vector<16x552xbf16>,
      %c0_26 = arith.constant 0 : index
      %c30 = arith.constant 30 : index
      %183 = vector.load %arg7[%c0_26, %c30] : memref<16x668xbf16, #tpu.memory_space<vmem>>, vector<16x552xbf16>
      %c112 = arith.constant 112 : index
      %c0_27 = arith.constant 0 : index
      %184 = vector.load %arg8[%c112, %c0_27] : memref<400x552xbf16, #tpu.memory_space<vmem>>, vector<16x552xbf16>
      tpu.vector_store %arg8[%c112, %c0_27], %183 {strides = array<i32>} : memref<400x552xbf16, #tpu.memory_space<vmem>>, vector<16x552xbf16>,
      %c0_28 = arith.constant 0 : index
      %c31 = arith.constant 31 : index
      %185 = vector.load %arg7[%c0_28, %c31] : memref<16x668xbf16, #tpu.memory_space<vmem>>, vector<16x552xbf16>
      %c128 = arith.constant 128 : index
      %c0_29 = arith.constant 0 : index
      %186 = vector.load %arg8[%c128, %c0_29] : memref<400x552xbf16, #tpu.memory_space<vmem>>, vector<16x552xbf16>
      tpu.vector_store %arg8[%c128, %c0_29], %185 {strides = array<i32>} : memref<400x552xbf16, #tpu.memory_space<vmem>>, vector<16x552xbf16>,
      %c0_30 = arith.constant 0 : index
      %c32_31 = arith.constant 32 : index
      %187 = vector.load %arg7[%c0_30, %c32_31] : memref<16x668xbf16, #tpu.memory_space<vmem>>, vector<16x552xbf16>
      %c144 = arith.constant 144 : index
      %c0_32 = arith.constant 0 : index
      %188 = vector.load %arg8[%c144, %c0_32] : memref<400x552xbf16, #tpu.memory_space<vmem>>, vector<16x552xbf16>
      tpu.vector_store %arg8[%c144, %c0_32], %187 {strides = array<i32>} : memref<400x552xbf16, #tpu.memory_space<vmem>>, vector<16x552xbf16>,
      %c0_33 = arith.constant 0 : index
      %c56 = arith.constant 56 : index
      %189 = vector.load %arg7[%c0_33, %c56] : memref<16x668xbf16, #tpu.memory_space<vmem>>, vector<16x552xbf16>
      %c160 = arith.constant 160 : index
      %c0_34 = arith.constant 0 : index
      %190 = vector.load %arg8[%c160, %c0_34] : memref<400x552xbf16, #tpu.memory_space<vmem>>, vector<16x552xbf16>
      tpu.vector_store %arg8[%c160, %c0_34], %189 {strides = array<i32>} : memref<400x552xbf16, #tpu.memory_space<vmem>>, vector<16x552xbf16>,
      %c0_35 = arith.constant 0 : index
      %c57 = arith.constant 57 : index
      %191 = vector.load %arg7[%c0_35, %c57] : memref<16x668xbf16, #tpu.memory_space<vmem>>, vector<16x552xbf16>
      %c176 = arith.constant 176 : index
      %c0_36 = arith.constant 0 : index
      %192 = vector.load %arg8[%c176, %c0_36] : memref<400x552xbf16, #tpu.memory_space<vmem>>, vector<16x552xbf16>
      tpu.vector_store %arg8[%c176, %c0_36], %191 {strides = array<i32>} : memref<400x552xbf16, #tpu.memory_space<vmem>>, vector<16x552xbf16>,
      %c0_37 = arith.constant 0 : index
      %c58 = arith.constant 58 : index
      %193 = vector.load %arg7[%c0_37, %c58] : memref<16x668xbf16, #tpu.memory_space<vmem>>, vector<16x552xbf16>
      %c192 = arith.constant 192 : index
      %c0_38 = arith.constant 0 : index
      %194 = vector.load %arg8[%c192, %c0_38] : memref<400x552xbf16, #tpu.memory_space<vmem>>, vector<16x552xbf16>
      tpu.vector_store %arg8[%c192, %c0_38], %193 {strides = array<i32>} : memref<400x552xbf16, #tpu.memory_space<vmem>>, vector<16x552xbf16>,
      %c0_39 = arith.constant 0 : index
      %c59 = arith.constant 59 : index
      %195 = vector.load %arg7[%c0_39, %c59] : memref<16x668xbf16, #tpu.memory_space<vmem>>, vector<16x552xbf16>
      %c208 = arith.constant 208 : index
      %c0_40 = arith.constant 0 : index
      %196 = vector.load %arg8[%c208, %c0_40] : memref<400x552xbf16, #tpu.memory_space<vmem>>, vector<16x552xbf16>
      tpu.vector_store %arg8[%c208, %c0_40], %195 {strides = array<i32>} : memref<400x552xbf16, #tpu.memory_space<vmem>>, vector<16x552xbf16>,
      %c0_41 = arith.constant 0 : index
      %c60 = arith.constant 60 : index
      %197 = vector.load %arg7[%c0_41, %c60] : memref<16x668xbf16, #tpu.memory_space<vmem>>, vector<16x552xbf16>
      %c224 = arith.constant 224 : index
      %c0_42 = arith.constant 0 : index
      %198 = vector.load %arg8[%c224, %c0_42] : memref<400x552xbf16, #tpu.memory_space<vmem>>, vector<16x552xbf16>
      tpu.vector_store %arg8[%c224, %c0_42], %197 {strides = array<i32>} : memref<400x552xbf16, #tpu.memory_space<vmem>>, vector<16x552xbf16>,
      %c0_43 = arith.constant 0 : index
      %c84 = arith.constant 84 : index
      %199 = vector.load %arg7[%c0_43, %c84] : memref<16x668xbf16, #tpu.memory_space<vmem>>, vector<16x552xbf16>
      %c240 = arith.constant 240 : index
      %c0_44 = arith.constant 0 : index
      %200 = vector.load %arg8[%c240, %c0_44] : memref<400x552xbf16, #tpu.memory_space<vmem>>, vector<16x552xbf16>
      tpu.vector_store %arg8[%c240, %c0_44], %199 {strides = array<i32>} : memref<400x552xbf16, #tpu.memory_space<vmem>>, vector<16x552xbf16>,
      %c0_45 = arith.constant 0 : index
      %c85 = arith.constant 85 : index
      %201 = vector.load %arg7[%c0_45, %c85] : memref<16x668xbf16, #tpu.memory_space<vmem>>, vector<16x552xbf16>
      %c256 = arith.constant 256 : index
      %c0_46 = arith.constant 0 : index
      %202 = vector.load %arg8[%c256, %c0_46] : memref<400x552xbf16, #tpu.memory_space<vmem>>, vector<16x552xbf16>
      tpu.vector_store %arg8[%c256, %c0_46], %201 {strides = array<i32>} : memref<400x552xbf16, #tpu.memory_space<vmem>>, vector<16x552xbf16>,
      %c0_47 = arith.constant 0 : index
      %c86 = arith.constant 86 : index
      %203 = vector.load %arg7[%c0_47, %c86] : memref<16x668xbf16, #tpu.memory_space<vmem>>, vector<16x552xbf16>
      %c272 = arith.constant 272 : index
      %c0_48 = arith.constant 0 : index
      %204 = vector.load %arg8[%c272, %c0_48] : memref<400x552xbf16, #tpu.memory_space<vmem>>, vector<16x552xbf16>
      tpu.vector_store %arg8[%c272, %c0_48], %203 {strides = array<i32>} : memref<400x552xbf16, #tpu.memory_space<vmem>>, vector<16x552xbf16>,
      %c0_49 = arith.constant 0 : index
      %c87 = arith.constant 87 : index
      %205 = vector.load %arg7[%c0_49, %c87] : memref<16x668xbf16, #tpu.memory_space<vmem>>, vector<16x552xbf16>
      %c288 = arith.constant 288 : index
      %c0_50 = arith.constant 0 : index
      %206 = vector.load %arg8[%c288, %c0_50] : memref<400x552xbf16, #tpu.memory_space<vmem>>, vector<16x552xbf16>
      tpu.vector_store %arg8[%c288, %c0_50], %205 {strides = array<i32>} : memref<400x552xbf16, #tpu.memory_space<vmem>>, vector<16x552xbf16>,
      %c0_51 = arith.constant 0 : index
      %c88 = arith.constant 88 : index
      %207 = vector.load %arg7[%c0_51, %c88] : memref<16x668xbf16, #tpu.memory_space<vmem>>, vector<16x552xbf16>
      %c304 = arith.constant 304 : index
      %c0_52 = arith.constant 0 : index
      %208 = vector.load %arg8[%c304, %c0_52] : memref<400x552xbf16, #tpu.memory_space<vmem>>, vector<16x552xbf16>
      tpu.vector_store %arg8[%c304, %c0_52], %207 {strides = array<i32>} : memref<400x552xbf16, #tpu.memory_space<vmem>>, vector<16x552xbf16>,
      %c0_53 = arith.constant 0 : index
      %c112_54 = arith.constant 112 : index
      %209 = vector.load %arg7[%c0_53, %c112_54] : memref<16x668xbf16, #tpu.memory_space<vmem>>, vector<16x552xbf16>
      %c320 = arith.constant 320 : index
      %c0_55 = arith.constant 0 : index
      %210 = vector.load %arg8[%c320, %c0_55] : memref<400x552xbf16, #tpu.memory_space<vmem>>, vector<16x552xbf16>
      tpu.vector_store %arg8[%c320, %c0_55], %209 {strides = array<i32>} : memref<400x552xbf16, #tpu.memory_space<vmem>>, vector<16x552xbf16>,
      %c0_56 = arith.constant 0 : index
      %c113 = arith.constant 113 : index
      %211 = vector.load %arg7[%c0_56, %c113] : memref<16x668xbf16, #tpu.memory_space<vmem>>, vector<16x552xbf16>
      %c336 = arith.constant 336 : index
      %c0_57 = arith.constant 0 : index
      %212 = vector.load %arg8[%c336, %c0_57] : memref<400x552xbf16, #tpu.memory_space<vmem>>, vector<16x552xbf16>
      tpu.vector_store %arg8[%c336, %c0_57], %211 {strides = array<i32>} : memref<400x552xbf16, #tpu.memory_space<vmem>>, vector<16x552xbf16>,
      %c0_58 = arith.constant 0 : index
      %c114 = arith.constant 114 : index
      %213 = vector.load %arg7[%c0_58, %c114] : memref<16x668xbf16, #tpu.memory_space<vmem>>, vector<16x552xbf16>
      %c352 = arith.constant 352 : index
      %c0_59 = arith.constant 0 : index
      %214 = vector.load %arg8[%c352, %c0_59] : memref<400x552xbf16, #tpu.memory_space<vmem>>, vector<16x552xbf16>
      tpu.vector_store %arg8[%c352, %c0_59], %213 {strides = array<i32>} : memref<400x552xbf16, #tpu.memory_space<vmem>>, vector<16x552xbf16>,
      %c0_60 = arith.constant 0 : index
      %c115 = arith.constant 115 : index
      %215 = vector.load %arg7[%c0_60, %c115] : memref<16x668xbf16, #tpu.memory_space<vmem>>, vector<16x552xbf16>
      %c368 = arith.constant 368 : index
      %c0_61 = arith.constant 0 : index
      %216 = vector.load %arg8[%c368, %c0_61] : memref<400x552xbf16, #tpu.memory_space<vmem>>, vector<16x552xbf16>
      tpu.vector_store %arg8[%c368, %c0_61], %215 {strides = array<i32>} : memref<400x552xbf16, #tpu.memory_space<vmem>>, vector<16x552xbf16>,
      %c0_62 = arith.constant 0 : index
      %c116 = arith.constant 116 : index
      %217 = vector.load %arg7[%c0_62, %c116] : memref<16x668xbf16, #tpu.memory_space<vmem>>, vector<16x552xbf16>
      %c384 = arith.constant 384 : index
      %c0_63 = arith.constant 0 : index
      %218 = vector.load %arg8[%c384, %c0_63] : memref<400x552xbf16, #tpu.memory_space<vmem>>, vector<16x552xbf16>
      tpu.vector_store %arg8[%c384, %c0_63], %217 {strides = array<i32>} : memref<400x552xbf16, #tpu.memory_space<vmem>>, vector<16x552xbf16>,
      %c0_64 = arith.constant 0 : index
      %c0_65 = arith.constant 0 : index
      %219 = vector.load %arg4[%c0_64, %c0_65] : memref<64x400xbf16, #tpu.memory_space<vmem>>, vector<64x400xbf16>
      %c0_66 = arith.constant 0 : index
      %c0_67 = arith.constant 0 : index
      %220 = vector.load %arg8[%c0_66, %c0_67] : memref<400x552xbf16, #tpu.memory_space<vmem>>, vector<400x552xbf16>
      %cst_68 = arith.constant dense<0.000000e+00> : vector<64x552xf32>
      %221 = tpu.matmul %219, %220, %cst_68 {dimension_numbers = #tpu.dot_dimension_numbers<[1], [0], [0], [1], [0, 0, 1, 1], [], []>} : vector<64x400xbf16>, vector<400x552xbf16>, vector<64x552xf32> -> vector<64x552xf32>
      %222 = vector.broadcast %2 : vector<64x1xf32> to vector<64x552xf32>
      %223 = arith.addf %221, %222 : vector<64x552xf32>
      %cst_69 = arith.constant 0.000000e+00 : f32
      %224 = vector.broadcast %cst_69 : f32 to vector<64x552xf32>
      %225 = arith.maximumf %223, %224 : vector<64x552xf32>
      %c0_70 = arith.constant 0 : index
      %c0_71 = arith.constant 0 : index
      %226 = vector.load %arg9[%c0_70, %c0_71] : memref<64x552xf32, #tpu.memory_space<vmem>>, vector<64x552xf32>
      tpu.vector_store %arg9[%c0_70, %c0_71], %225 {strides = array<i32>} : memref<64x552xf32, #tpu.memory_space<vmem>>, vector<64x552xf32>,
      %c0_72 = arith.constant 0 : index
      %c0_73 = arith.constant 0 : index
      %227 = vector.load %arg9[%c0_72, %c0_73] : memref<64x552xf32, #tpu.memory_space<vmem>>, vector<64x20xf32>
      %c0_74 = arith.constant 0 : index
      %c28_75 = arith.constant 28 : index
      %228 = vector.load %arg9[%c0_74, %c28_75] : memref<64x552xf32, #tpu.memory_space<vmem>>, vector<64x20xf32>
      %229 = arith.maximumf %227, %228 : vector<64x20xf32>
      %c0_76 = arith.constant 0 : index
      %c56_77 = arith.constant 56 : index
      %230 = vector.load %arg9[%c0_76, %c56_77] : memref<64x552xf32, #tpu.memory_space<vmem>>, vector<64x20xf32>
      %231 = arith.maximumf %229, %230 : vector<64x20xf32>
      %c0_78 = arith.constant 0 : index
      %c84_79 = arith.constant 84 : index
      %232 = vector.load %arg9[%c0_78, %c84_79] : memref<64x552xf32, #tpu.memory_space<vmem>>, vector<64x20xf32>
      %233 = arith.maximumf %231, %232 : vector<64x20xf32>
      %c0_80 = arith.constant 0 : index
      %c112_81 = arith.constant 112 : index
      %234 = vector.load %arg9[%c0_80, %c112_81] : memref<64x552xf32, #tpu.memory_space<vmem>>, vector<64x20xf32>
      %235 = arith.maximumf %233, %234 : vector<64x20xf32>
      %236 = vector.extract_strided_slice %235 {offsets = [0, 0], sizes = [64, 5], strides = [1, 1]} : vector<64x20xf32> to vector<64x5xf32>
      %cst_82 = arith.constant dense<0xFF800000> : vector<64xf32>
      %237 = vector.multi_reduction <maximumf>, %236, %cst_82 [1] : vector<64x5xf32> to vector<64xf32>
      %238 = vector.shape_cast %237 : vector<64xf32> to vector<64x1xf32>
      %239 = vector.extract_strided_slice %235 {offsets = [0, 5], sizes = [64, 5], strides = [1, 1]} : vector<64x20xf32> to vector<64x5xf32>
      %cst_83 = arith.constant dense<0xFF800000> : vector<64xf32>
      %240 = vector.multi_reduction <maximumf>, %239, %cst_83 [1] : vector<64x5xf32> to vector<64xf32>
      %241 = vector.shape_cast %240 : vector<64xf32> to vector<64x1xf32>
      %242 = vector.extract_strided_slice %235 {offsets = [0, 10], sizes = [64, 5], strides = [1, 1]} : vector<64x20xf32> to vector<64x5xf32>
      %cst_84 = arith.constant dense<0xFF800000> : vector<64xf32>
      %243 = vector.multi_reduction <maximumf>, %242, %cst_84 [1] : vector<64x5xf32> to vector<64xf32>
      %244 = vector.shape_cast %243 : vector<64xf32> to vector<64x1xf32>
      %245 = vector.extract_strided_slice %235 {offsets = [0, 15], sizes = [64, 5], strides = [1, 1]} : vector<64x20xf32> to vector<64x5xf32>
      %cst_85 = arith.constant dense<0xFF800000> : vector<64xf32>
      %246 = vector.multi_reduction <maximumf>, %245, %cst_85 [1] : vector<64x5xf32> to vector<64xf32>
      %247 = vector.shape_cast %246 : vector<64xf32> to vector<64x1xf32>
      %c0_86 = arith.constant 0 : index
      %c140 = arith.constant 140 : index
      %248 = vector.load %arg9[%c0_86, %c140] : memref<64x552xf32, #tpu.memory_space<vmem>>, vector<64x20xf32>
      %c0_87 = arith.constant 0 : index
      %c168 = arith.constant 168 : index
      %249 = vector.load %arg9[%c0_87, %c168] : memref<64x552xf32, #tpu.memory_space<vmem>>, vector<64x20xf32>
      %250 = arith.maximumf %248, %249 : vector<64x20xf32>
      %c0_88 = arith.constant 0 : index
      %c196 = arith.constant 196 : index
      %251 = vector.load %arg9[%c0_88, %c196] : memref<64x552xf32, #tpu.memory_space<vmem>>, vector<64x20xf32>
      %252 = arith.maximumf %250, %251 : vector<64x20xf32>
      %c0_89 = arith.constant 0 : index
      %c224_90 = arith.constant 224 : index
      %253 = vector.load %arg9[%c0_89, %c224_90] : memref<64x552xf32, #tpu.memory_space<vmem>>, vector<64x20xf32>
      %254 = arith.maximumf %252, %253 : vector<64x20xf32>
      %c0_91 = arith.constant 0 : index
      %c252 = arith.constant 252 : index
      %255 = vector.load %arg9[%c0_91, %c252] : memref<64x552xf32, #tpu.memory_space<vmem>>, vector<64x20xf32>
      %256 = arith.maximumf %254, %255 : vector<64x20xf32>
      %257 = vector.extract_strided_slice %256 {offsets = [0, 0], sizes = [64, 5], strides = [1, 1]} : vector<64x20xf32> to vector<64x5xf32>
      %cst_92 = arith.constant dense<0xFF800000> : vector<64xf32>
      %258 = vector.multi_reduction <maximumf>, %257, %cst_92 [1] : vector<64x5xf32> to vector<64xf32>
      %259 = vector.shape_cast %258 : vector<64xf32> to vector<64x1xf32>
      %260 = vector.extract_strided_slice %256 {offsets = [0, 5], sizes = [64, 5], strides = [1, 1]} : vector<64x20xf32> to vector<64x5xf32>
      %cst_93 = arith.constant dense<0xFF800000> : vector<64xf32>
      %261 = vector.multi_reduction <maximumf>, %260, %cst_93 [1] : vector<64x5xf32> to vector<64xf32>
      %262 = vector.shape_cast %261 : vector<64xf32> to vector<64x1xf32>
      %263 = vector.extract_strided_slice %256 {offsets = [0, 10], sizes = [64, 5], strides = [1, 1]} : vector<64x20xf32> to vector<64x5xf32>
      %cst_94 = arith.constant dense<0xFF800000> : vector<64xf32>
      %264 = vector.multi_reduction <maximumf>, %263, %cst_94 [1] : vector<64x5xf32> to vector<64xf32>
      %265 = vector.shape_cast %264 : vector<64xf32> to vector<64x1xf32>
      %266 = vector.extract_strided_slice %256 {offsets = [0, 15], sizes = [64, 5], strides = [1, 1]} : vector<64x20xf32> to vector<64x5xf32>
      %cst_95 = arith.constant dense<0xFF800000> : vector<64xf32>
      %267 = vector.multi_reduction <maximumf>, %266, %cst_95 [1] : vector<64x5xf32> to vector<64xf32>
      %268 = vector.shape_cast %267 : vector<64xf32> to vector<64x1xf32>
      %c0_96 = arith.constant 0 : index
      %c280 = arith.constant 280 : index
      %269 = vector.load %arg9[%c0_96, %c280] : memref<64x552xf32, #tpu.memory_space<vmem>>, vector<64x20xf32>
      %c0_97 = arith.constant 0 : index
      %c308 = arith.constant 308 : index
      %270 = vector.load %arg9[%c0_97, %c308] : memref<64x552xf32, #tpu.memory_space<vmem>>, vector<64x20xf32>
      %271 = arith.maximumf %269, %270 : vector<64x20xf32>
      %c0_98 = arith.constant 0 : index
      %c336_99 = arith.constant 336 : index
      %272 = vector.load %arg9[%c0_98, %c336_99] : memref<64x552xf32, #tpu.memory_space<vmem>>, vector<64x20xf32>
      %273 = arith.maximumf %271, %272 : vector<64x20xf32>
      %c0_100 = arith.constant 0 : index
      %c364 = arith.constant 364 : index
      %274 = vector.load %arg9[%c0_100, %c364] : memref<64x552xf32, #tpu.memory_space<vmem>>, vector<64x20xf32>
      %275 = arith.maximumf %273, %274 : vector<64x20xf32>
      %c0_101 = arith.constant 0 : index
      %c392 = arith.constant 392 : index
      %276 = vector.load %arg9[%c0_101, %c392] : memref<64x552xf32, #tpu.memory_space<vmem>>, vector<64x20xf32>
      %277 = arith.maximumf %275, %276 : vector<64x20xf32>
      %278 = vector.extract_strided_slice %277 {offsets = [0, 0], sizes = [64, 5], strides = [1, 1]} : vector<64x20xf32> to vector<64x5xf32>
      %cst_102 = arith.constant dense<0xFF800000> : vector<64xf32>
      %279 = vector.multi_reduction <maximumf>, %278, %cst_102 [1] : vector<64x5xf32> to vector<64xf32>
      %280 = vector.shape_cast %279 : vector<64xf32> to vector<64x1xf32>
      %281 = vector.extract_strided_slice %277 {offsets = [0, 5], sizes = [64, 5], strides = [1, 1]} : vector<64x20xf32> to vector<64x5xf32>
      %cst_103 = arith.constant dense<0xFF800000> : vector<64xf32>
      %282 = vector.multi_reduction <maximumf>, %281, %cst_103 [1] : vector<64x5xf32> to vector<64xf32>
      %283 = vector.shape_cast %282 : vector<64xf32> to vector<64x1xf32>
      %284 = vector.extract_strided_slice %277 {offsets = [0, 10], sizes = [64, 5], strides = [1, 1]} : vector<64x20xf32> to vector<64x5xf32>
      %cst_104 = arith.constant dense<0xFF800000> : vector<64xf32>
      %285 = vector.multi_reduction <maximumf>, %284, %cst_104 [1] : vector<64x5xf32> to vector<64xf32>
      %286 = vector.shape_cast %285 : vector<64xf32> to vector<64x1xf32>
      %287 = vector.extract_strided_slice %277 {offsets = [0, 15], sizes = [64, 5], strides = [1, 1]} : vector<64x20xf32> to vector<64x5xf32>
      %cst_105 = arith.constant dense<0xFF800000> : vector<64xf32>
      %288 = vector.multi_reduction <maximumf>, %287, %cst_105 [1] : vector<64x5xf32> to vector<64xf32>
      %289 = vector.shape_cast %288 : vector<64xf32> to vector<64x1xf32>
      %c0_106 = arith.constant 0 : index
      %c420 = arith.constant 420 : index
      %290 = vector.load %arg9[%c0_106, %c420] : memref<64x552xf32, #tpu.memory_space<vmem>>, vector<64x20xf32>
      %c0_107 = arith.constant 0 : index
      %c448 = arith.constant 448 : index
      %291 = vector.load %arg9[%c0_107, %c448] : memref<64x552xf32, #tpu.memory_space<vmem>>, vector<64x20xf32>
      %292 = arith.maximumf %290, %291 : vector<64x20xf32>
      %c0_108 = arith.constant 0 : index
      %c476 = arith.constant 476 : index
      %293 = vector.load %arg9[%c0_108, %c476] : memref<64x552xf32, #tpu.memory_space<vmem>>, vector<64x20xf32>
      %294 = arith.maximumf %292, %293 : vector<64x20xf32>
      %c0_109 = arith.constant 0 : index
      %c504 = arith.constant 504 : index
      %295 = vector.load %arg9[%c0_109, %c504] : memref<64x552xf32, #tpu.memory_space<vmem>>, vector<64x20xf32>
      %296 = arith.maximumf %294, %295 : vector<64x20xf32>
      %c0_110 = arith.constant 0 : index
      %c532 = arith.constant 532 : index
      %297 = vector.load %arg9[%c0_110, %c532] : memref<64x552xf32, #tpu.memory_space<vmem>>, vector<64x20xf32>
      %298 = arith.maximumf %296, %297 : vector<64x20xf32>
      %299 = vector.extract_strided_slice %298 {offsets = [0, 0], sizes = [64, 5], strides = [1, 1]} : vector<64x20xf32> to vector<64x5xf32>
      %cst_111 = arith.constant dense<0xFF800000> : vector<64xf32>
      %300 = vector.multi_reduction <maximumf>, %299, %cst_111 [1] : vector<64x5xf32> to vector<64xf32>
      %301 = vector.shape_cast %300 : vector<64xf32> to vector<64x1xf32>
      %302 = vector.extract_strided_slice %298 {offsets = [0, 5], sizes = [64, 5], strides = [1, 1]} : vector<64x20xf32> to vector<64x5xf32>
      %cst_112 = arith.constant dense<0xFF800000> : vector<64xf32>
      %303 = vector.multi_reduction <maximumf>, %302, %cst_112 [1] : vector<64x5xf32> to vector<64xf32>
      %304 = vector.shape_cast %303 : vector<64xf32> to vector<64x1xf32>
      %305 = vector.extract_strided_slice %298 {offsets = [0, 10], sizes = [64, 5], strides = [1, 1]} : vector<64x20xf32> to vector<64x5xf32>
      %cst_113 = arith.constant dense<0xFF800000> : vector<64xf32>
      %306 = vector.multi_reduction <maximumf>, %305, %cst_113 [1] : vector<64x5xf32> to vector<64xf32>
      %307 = vector.shape_cast %306 : vector<64xf32> to vector<64x1xf32>
      %308 = vector.extract_strided_slice %298 {offsets = [0, 15], sizes = [64, 5], strides = [1, 1]} : vector<64x20xf32> to vector<64x5xf32>
      %cst_114 = arith.constant dense<0xFF800000> : vector<64xf32>
      %309 = vector.multi_reduction <maximumf>, %308, %cst_114 [1] : vector<64x5xf32> to vector<64xf32>
      %310 = vector.shape_cast %309 : vector<64xf32> to vector<64x1xf32>
      %311 = tpu.concatenate %238, %241, %244, %247, %259, %262, %265, %268, %280, %283, %286, %289, %301, %304, %307, %310 in 1 : vector<64x1xf32>, vector<64x1xf32>, vector<64x1xf32>, vector<64x1xf32>, vector<64x1xf32>, vector<64x1xf32>, vector<64x1xf32>, vector<64x1xf32>, vector<64x1xf32>, vector<64x1xf32>, vector<64x1xf32>, vector<64x1xf32>, vector<64x1xf32>, vector<64x1xf32>, vector<64x1xf32>, vector<64x1xf32> -> vector<64x16xf32>
      %312 = arith.truncf %311 : vector<64x16xf32> to vector<64x16xbf16>
      %cst_115 = arith.constant dense<0.000000e+00> : vector<16x64xf32>
      %313 = tpu.matmul %312, %8, %cst_115 {dimension_numbers = #tpu.dot_dimension_numbers<[0], [0], [1], [1], [0, 1, 1, 1], [], []>} : vector<64x16xbf16>, vector<64x64xbf16>, vector<16x64xf32> -> vector<16x64xf32>
      %314 = arith.truncf %313 : vector<16x64xf32> to vector<16x64xbf16>
      %315 = arith.index_cast %arg10 : i32 to index
      %c0_116 = arith.constant 0 : index
      %c0_117 = arith.constant 0 : index
      %316 = vector.load %arg6[%315, %c0_116, %c0_117] : memref<8x16x64xbf16, #tpu.memory_space<vmem>>, vector<1x16x64xbf16>
      %317 = vector.shape_cast %316 : vector<1x16x64xbf16> to vector<16x64xbf16>
      %318 = vector.shape_cast %314 : vector<16x64xbf16> to vector<1x16x64xbf16>
      tpu.vector_store %arg6[%315, %c0_116, %c0_117], %318 {strides = array<i32>} : memref<8x16x64xbf16, #tpu.memory_space<vmem>>, vector<1x16x64xbf16>,
    }
    %c8_i32_5 = arith.constant 8 : i32
    return
  }
  func.func @transform_0(%arg0: i32) -> (i32, i32, i32) {
    %c0_i32 = arith.constant 0 : i32
    %c0_i32_0 = arith.constant 0 : i32
    %c0_i32_1 = arith.constant 0 : i32
    return %arg0, %c0_i32, %c0_i32_0 : i32, i32, i32
  }
  func.func @transform_1(%arg0: i32) -> (i32, i32) {
    %c0_i32 = arith.constant 0 : i32
    %c0_i32_0 = arith.constant 0 : i32
    %c0_i32_1 = arith.constant 0 : i32
    return %c0_i32, %c0_i32_0 : i32, i32
  }
  func.func @transform_2(%arg0: i32) -> (i32, i32) {
    %c0_i32 = arith.constant 0 : i32
    %c0_i32_0 = arith.constant 0 : i32
    %c0_i32_1 = arith.constant 0 : i32
    return %c0_i32, %c0_i32_0 : i32, i32
  }
  func.func @transform_3(%arg0: i32) -> (i32, i32) {
    %c0_i32 = arith.constant 0 : i32
    %c0_i32_0 = arith.constant 0 : i32
    %c0_i32_1 = arith.constant 0 : i32
    return %c0_i32, %c0_i32_0 : i32, i32
  }
  func.func @transform_4(%arg0: i32) -> (i32, i32) {
    %c0_i32 = arith.constant 0 : i32
    %c0_i32_0 = arith.constant 0 : i32
    %c0_i32_1 = arith.constant 0 : i32
    return %c0_i32, %c0_i32_0 : i32, i32
  }
  func.func @transform_5(%arg0: i32) -> (i32, i32, i32) {
    %c0_i32 = arith.constant 0 : i32
    %c0_i32_0 = arith.constant 0 : i32
    %c0_i32_1 = arith.constant 0 : i32
    return %arg0, %c0_i32, %c0_i32_0 : i32, i32, i32
  }
}

module attributes {stable_mosaic.version = 11 : i64} {
  func.func @_fc_head_kernel(%arg0: i32, %arg1: memref<16x1024xbf16, #tpu.memory_space<vmem>>, %arg2: memref<1024x512xbf16, #tpu.memory_space<vmem>>, %arg3: memref<1x512xf32, #tpu.memory_space<vmem>>, %arg4: memref<512x256xbf16, #tpu.memory_space<vmem>>, %arg5: memref<1x256xf32, #tpu.memory_space<vmem>>, %arg6: memref<256x128xbf16, #tpu.memory_space<vmem>>, %arg7: memref<1x128xf32, #tpu.memory_space<vmem>>, %arg8: memref<16x128xf32, #tpu.memory_space<vmem>>) attributes {dimension_semantics = [#tpu.dimension_semantics<parallel>], iteration_bounds = array<i64: 1>, scalar_prefetch = 0 : i64, scratch_operands = 0 : i64, tpu.core_type = #tpu.core_type<tc>, window_params = [{transform_indices = @transform_0, window_bounds = array<i64: 16, 1024>}, {pipeline_mode = #tpu.pipeline_mode<synchronous>, transform_indices = @transform_1, window_bounds = array<i64: 1024, 512>}, {pipeline_mode = #tpu.pipeline_mode<synchronous>, transform_indices = @transform_2, window_bounds = array<i64: 1, 512>}, {pipeline_mode = #tpu.pipeline_mode<synchronous>, transform_indices = @transform_3, window_bounds = array<i64: 512, 256>}, {pipeline_mode = #tpu.pipeline_mode<synchronous>, transform_indices = @transform_4, window_bounds = array<i64: 1, 256>}, {pipeline_mode = #tpu.pipeline_mode<synchronous>, transform_indices = @transform_5, window_bounds = array<i64: 256, 128>}, {pipeline_mode = #tpu.pipeline_mode<synchronous>, transform_indices = @transform_6, window_bounds = array<i64: 1, 128>}, {transform_indices = @transform_7, window_bounds = array<i64: 16, 128>}]} {
    %c0 = arith.constant 0 : index
    %c0_0 = arith.constant 0 : index
    %0 = vector.load %arg1[%c0, %c0_0] : memref<16x1024xbf16, #tpu.memory_space<vmem>>, vector<16x1024xbf16>
    %c0_1 = arith.constant 0 : index
    %c0_2 = arith.constant 0 : index
    %1 = vector.load %arg2[%c0_1, %c0_2] : memref<1024x512xbf16, #tpu.memory_space<vmem>>, vector<1024x512xbf16>
    %cst = arith.constant dense<0.000000e+00> : vector<16x512xf32>
    %2 = tpu.matmul %0, %1, %cst {dimension_numbers = #tpu.dot_dimension_numbers<[1], [0], [0], [1], [0, 0, 1, 1], [], []>} : vector<16x1024xbf16>, vector<1024x512xbf16>, vector<16x512xf32> -> vector<16x512xf32>
    %c0_3 = arith.constant 0 : index
    %c0_4 = arith.constant 0 : index
    %3 = vector.load %arg3[%c0_3, %c0_4] : memref<1x512xf32, #tpu.memory_space<vmem>>, vector<1x512xf32>
    %4 = vector.broadcast %3 : vector<1x512xf32> to vector<16x512xf32>
    %5 = arith.addf %2, %4 : vector<16x512xf32>
    %cst_5 = arith.constant 0.000000e+00 : f32
    %6 = vector.broadcast %cst_5 : f32 to vector<16x512xf32>
    %7 = arith.maximumf %5, %6 : vector<16x512xf32>
    %8 = arith.truncf %7 : vector<16x512xf32> to vector<16x512xbf16>
    %c0_6 = arith.constant 0 : index
    %c0_7 = arith.constant 0 : index
    %9 = vector.load %arg4[%c0_6, %c0_7] : memref<512x256xbf16, #tpu.memory_space<vmem>>, vector<512x256xbf16>
    %cst_8 = arith.constant dense<0.000000e+00> : vector<16x256xf32>
    %10 = tpu.matmul %8, %9, %cst_8 {dimension_numbers = #tpu.dot_dimension_numbers<[1], [0], [0], [1], [0, 0, 1, 1], [], []>} : vector<16x512xbf16>, vector<512x256xbf16>, vector<16x256xf32> -> vector<16x256xf32>
    %c0_9 = arith.constant 0 : index
    %c0_10 = arith.constant 0 : index
    %11 = vector.load %arg5[%c0_9, %c0_10] : memref<1x256xf32, #tpu.memory_space<vmem>>, vector<1x256xf32>
    %12 = vector.broadcast %11 : vector<1x256xf32> to vector<16x256xf32>
    %13 = arith.addf %10, %12 : vector<16x256xf32>
    %cst_11 = arith.constant 0.000000e+00 : f32
    %14 = vector.broadcast %cst_11 : f32 to vector<16x256xf32>
    %15 = arith.maximumf %13, %14 : vector<16x256xf32>
    %16 = arith.truncf %15 : vector<16x256xf32> to vector<16x256xbf16>
    %c0_12 = arith.constant 0 : index
    %c0_13 = arith.constant 0 : index
    %17 = vector.load %arg6[%c0_12, %c0_13] : memref<256x128xbf16, #tpu.memory_space<vmem>>, vector<256x128xbf16>
    %cst_14 = arith.constant dense<0.000000e+00> : vector<16x128xf32>
    %18 = tpu.matmul %16, %17, %cst_14 {dimension_numbers = #tpu.dot_dimension_numbers<[1], [0], [0], [1], [0, 0, 1, 1], [], []>} : vector<16x256xbf16>, vector<256x128xbf16>, vector<16x128xf32> -> vector<16x128xf32>
    %c0_15 = arith.constant 0 : index
    %c0_16 = arith.constant 0 : index
    %19 = vector.load %arg7[%c0_15, %c0_16] : memref<1x128xf32, #tpu.memory_space<vmem>>, vector<1x128xf32>
    %20 = vector.broadcast %19 : vector<1x128xf32> to vector<16x128xf32>
    %21 = arith.addf %18, %20 : vector<16x128xf32>
    %c0_17 = arith.constant 0 : index
    %c0_18 = arith.constant 0 : index
    %22 = vector.load %arg8[%c0_17, %c0_18] : memref<16x128xf32, #tpu.memory_space<vmem>>, vector<16x128xf32>
    tpu.vector_store %arg8[%c0_17, %c0_18], %21 {strides = array<i32>} : memref<16x128xf32, #tpu.memory_space<vmem>>, vector<16x128xf32>,
    return
  }
  func.func @transform_0(%arg0: i32) -> (i32, i32) {
    %c0_i32 = arith.constant 0 : i32
    %c0_i32_0 = arith.constant 0 : i32
    return %arg0, %c0_i32 : i32, i32
  }
  func.func @transform_1(%arg0: i32) -> (i32, i32) {
    %c0_i32 = arith.constant 0 : i32
    %c0_i32_0 = arith.constant 0 : i32
    %c0_i32_1 = arith.constant 0 : i32
    return %c0_i32, %c0_i32_0 : i32, i32
  }
  func.func @transform_2(%arg0: i32) -> (i32, i32) {
    %c0_i32 = arith.constant 0 : i32
    %c0_i32_0 = arith.constant 0 : i32
    %c0_i32_1 = arith.constant 0 : i32
    return %c0_i32, %c0_i32_0 : i32, i32
  }
  func.func @transform_3(%arg0: i32) -> (i32, i32) {
    %c0_i32 = arith.constant 0 : i32
    %c0_i32_0 = arith.constant 0 : i32
    %c0_i32_1 = arith.constant 0 : i32
    return %c0_i32, %c0_i32_0 : i32, i32
  }
  func.func @transform_4(%arg0: i32) -> (i32, i32) {
    %c0_i32 = arith.constant 0 : i32
    %c0_i32_0 = arith.constant 0 : i32
    %c0_i32_1 = arith.constant 0 : i32
    return %c0_i32, %c0_i32_0 : i32, i32
  }
  func.func @transform_5(%arg0: i32) -> (i32, i32) {
    %c0_i32 = arith.constant 0 : i32
    %c0_i32_0 = arith.constant 0 : i32
    %c0_i32_1 = arith.constant 0 : i32
    return %c0_i32, %c0_i32_0 : i32, i32
  }
  func.func @transform_6(%arg0: i32) -> (i32, i32) {
    %c0_i32 = arith.constant 0 : i32
    %c0_i32_0 = arith.constant 0 : i32
    %c0_i32_1 = arith.constant 0 : i32
    return %c0_i32, %c0_i32_0 : i32, i32
  }
  func.func @transform_7(%arg0: i32) -> (i32, i32) {
    %c0_i32 = arith.constant 0 : i32
    %c0_i32_0 = arith.constant 0 : i32
    return %arg0, %c0_i32 : i32, i32
  }
}

</mosaic_0001>

<bundles_post_ra>
// kernel: cnn_forward.3
= control target key start
LH: loop header
LB: loop body
LE: loop exit
PB: predicated region body
PF: predicated region fallthrough
CT: control target
= control target key end

     0   :  { %12 = vsyncpa [#allocation3], 0  ;;  %s4629_s0 = inlined_call_operand.vmem [shape: bf16[16,1024], index: 0, kind: input, shape index: {}]   ;;  %s4630_s1 = inlined_call_operand.vmem [shape: bf16[1024,512], index: 1, kind: input, shape index: {}]   ;;  %s4631_s2 = inlined_call_operand.vmem [shape: f32[1,512], index: 2, kind: input, shape index: {}]   ;;  %s4632_s3 = inlined_call_operand.hbm [shape: bf16[512,256], index: 3, kind: input, shape index: {}]   ;;  %s4633_s4 = inlined_call_operand.vmem [shape: f32[1,256], index: 4, kind: input, shape index: {}]   ;;  %s4634_s5 = inlined_call_operand.vmem [shape: bf16[256,128], index: 5, kind: input, shape index: {}]   ;;  %s4635_s6 = inlined_call_operand.vmem [shape: f32[1,128], index: 6, kind: input, shape index: {}]   ;;  %s4636_s7 = inlined_call_operand.hbm [shape: f32[16,128], index: 7, kind: output, shape index: {}]  }
   0x1   :  { %13 = vsyncpa [#allocation4], 0  ;;  %s3642_s24 = smov [#allocation2]   ;;  %s3594_s28 = scalar_lea.hbm %s4632_s3, 8192 }
   0x2   :  { %s25_s25 = sshll.u32 %s3642_s24, 4  ;;  %p3595_p0 = scmp.ne.s32.totalorder %s4632_s3, %s3594_s28  ;;  %s26_s25 = int_to_ptr.vmem [resolvable:$true] %s25_s25 }
   0x3   :  { %p3598_p1 = scmp.lt.u32.totalorder %s3594_s28, %s4632_s3 }
   0x5   :  { %p3600_p2 = pnand %p3598_p1, %p3595_p0 }
   0x7   :  { %3603 = shalt.err (!%p3600_p2)
}
   0x8   :  { %s3604_s10 = scalar_lea.vmem %s26_s25, 8192  ;;  %p3609_p4 = scmp.lt.s32.totalorder %s26_s25, %s26_s25 }
   0x9   :  { %p3605_p3 = scmp.ne.s32.totalorder %s26_s25, %s3604_s10  ;;  %p3610_p5 = scmp.lt.s32.totalorder %s3604_s10, %s3604_s10 }
   0xb   :  { %p3611_p6 = por %p3610_p5, %p3609_p4 }
   0xd   :  { %p3612_p7 = pnand %p3611_p6, %p3605_p3 }
   0xf   :  { %3615 = shalt.err (!%p3612_p7)
}
  0x10   :  { %s3643_s11 = smov 128   ;;  %s3644_s12 = smov 8  }
  0x11   :  { %31 = dma.hbm_to_vmem [thread:$0]  %s4632_s3, 8192, %s26_s25, [#allocation3], %s3643_s11, %s3643_s11, %s3644_s12  }
  0x12   :  { %3638 = dma.done.wait [#allocation3], 8192  }
  0x13   :  { %3639 = vsyncadd [#allocation3], 4294959104  ;;  %v3098_v0 = vld [vmem:[%s4630_s1 + $0x4] ss:$16 sps:$4 sm:$0xff]   ;;  %v3102_v2 = vld [vmem:[%s4630_s1] ss:$16 sps:$4 sm:$0xff]  }
  0x14   :  { %v3100_v1 = vld [vmem:[%s4630_s1 + $0x204] ss:$16 sps:$4 sm:$0xff]   ;;  %1648 = vmatprep.subr.bf16.mxu1 %v3098_v0  ;;  %v3103_v3 = vld [vmem:[%s4630_s1 + $0x200] ss:$16 sps:$4 sm:$0xff]   ;;  %v43_v50 = vld [vmem:[%s4629_s0 + $0x8] sm:$0xff]  ;;  %s3645_s13 = smov [#allocation5]  }
  0x15   :  { %1691 = vmatprep.subr.bf16.mxu0 %v3100_v1  ;;  %v3104_v4 = vld [vmem:[%s4630_s1 + $0x24] ss:$16 sps:$4 sm:$0xff]   ;;  %1649 = vmatpush1.bf16.msra.mxu1 %v3102_v2  ;;  %v3108_v6 = vld [vmem:[%s4630_s1 + $0x20] ss:$16 sps:$4 sm:$0xff]   ;;  %v47_v51 = vld [vmem:[%s4629_s0 + $0x28] sm:$0xff]  ;;  %s2675_s14 = sshll.u32 %s3645_s13, 4  ;;  %s2676_s14 = int_to_ptr.vmem [resolvable:$true] %s2675_s14 }
  0x16   :  { %1692 = vmatpush1.bf16.msra.mxu0 %v3103_v3  ;;  %v3106_v5 = vld [vmem:[%s4630_s1 + $0x224] ss:$16 sps:$4 sm:$0xff]   ;;  %1650 = vmatprep.subr.bf16.mxu1 %v3104_v4  ;;  %v3109_v7 = vld [vmem:[%s4630_s1 + $0x220] ss:$16 sps:$4 sm:$0xff]   ;;  %v3863_v55 = vcombine.high %v43_v50, %v47_v51  ;;  %s3616_s15 = scalar_lea.vmem %s2676_s14, 256  ;;  %p3621_p9 = scmp.lt.s32.totalorder %s2676_s14, %s2676_s14 }
  0x17   :  { %1693 = vmatprep.subr.bf16.mxu0 %v3106_v5  ;;  %v3110_v8 = vld [vmem:[%s4630_s1 + $0x44] ss:$16 sps:$4 sm:$0xff]   ;;  %v3114_v10 = vld [vmem:[%s4630_s1 + $0x40] ss:$16 sps:$4 sm:$0xff]   ;;  %p3617_p8 = scmp.ne.s32.totalorder %s2676_s14, %s3616_s15  ;;  %p3622_p10 = scmp.lt.s32.totalorder %s3616_s15, %s3616_s15 }
  0x18   :  { %v3112_v9 = vld [vmem:[%s4630_s1 + $0x244] ss:$16 sps:$4 sm:$0xff]   ;;  %v3115_v11 = vld [vmem:[%s4630_s1 + $0x240] ss:$16 sps:$4 sm:$0xff]   ;;  %1723 = vmatprep.mubr.bf16.mxu0 %v3863_v55 }
  0x19   :  { %1651 = vmatpush1.bf16.msra.mxu1 %v3108_v6  ;;  %v3116_v12 = vld [vmem:[%s4630_s1 + $0x64] ss:$16 sps:$4 sm:$0xff]   ;;  %v3120_v14 = vld [vmem:[%s4630_s1 + $0x60] ss:$16 sps:$4 sm:$0xff]   ;;  %p3623_p11 = por %p3622_p10, %p3621_p9 }
  0x1a   :  { %1694 = vmatpush1.bf16.msra.mxu0 %v3109_v7  ;;  %1652 = vmatprep.subr.bf16.mxu1 %v3110_v8  ;;  %v3118_v13 = vld [vmem:[%s4630_s1 + $0x264] ss:$16 sps:$4 sm:$0xff]   ;;  %v3121_v15 = vld [vmem:[%s4630_s1 + $0x260] ss:$16 sps:$4 sm:$0xff]   ;;  %v3199_v7 = vld [vmem:[%s4630_s1 + $0xc] ss:$16 sps:$4 sm:$0xff]  }
  0x1b   :  { %1695 = vmatprep.subr.bf16.mxu0 %v3112_v9  ;;  %v3122_v16 = vld [vmem:[%s4630_s1 + $0x84] ss:$16 sps:$4 sm:$0xff]   ;;  %v3126_v18 = vld [vmem:[%s4630_s1 + $0x80] ss:$16 sps:$4 sm:$0xff]   ;;  %v3916_v9 = vcombine.low %v43_v50, %v47_v51  ;;  %v3251_v50 = vld [vmem:[%s4630_s1 + $0x128] ss:$16 sps:$4 sm:$0xff]   ;;  %p3624_p12 = pnand %p3623_p11, %p3617_p8 }
  0x1c   :  { %v3124_v17 = vld [vmem:[%s4630_s1 + $0x284] ss:$16 sps:$4 sm:$0xff]   ;;  %v3127_v19 = vld [vmem:[%s4630_s1 + $0x280] ss:$16 sps:$4 sm:$0xff]  }
  0x1d   :  { %1653 = vmatpush1.bf16.msra.mxu1 %v3114_v10  ;;  %v3128_v20 = vld [vmem:[%s4630_s1 + $0xa4] ss:$16 sps:$4 sm:$0xff]   ;;  %v3132_v22 = vld [vmem:[%s4630_s1 + $0xa0] ss:$16 sps:$4 sm:$0xff]  }
  0x1e   :  { %1696 = vmatpush1.bf16.msra.mxu0 %v3115_v11  ;;  %1654 = vmatprep.subr.bf16.mxu1 %v3116_v12  ;;  %v3130_v21 = vld [vmem:[%s4630_s1 + $0x2a4] ss:$16 sps:$4 sm:$0xff]   ;;  %v3133_v23 = vld [vmem:[%s4630_s1 + $0x2a0] ss:$16 sps:$4 sm:$0xff]   ;;  %v3197_v11 = vld [vmem:[%s4630_s1 + $0x8] ss:$16 sps:$4 sm:$0xff]  }
  0x1f   :  { %1697 = vmatprep.subr.bf16.mxu0 %v3118_v13  ;;  %v3134_v24 = vld [vmem:[%s4630_s1 + $0xc4] ss:$16 sps:$4 sm:$0xff]   ;;  %v3138_v26 = vld [vmem:[%s4630_s1 + $0xc0] ss:$16 sps:$4 sm:$0xff]   ;;  %v3205_v13 = vld [vmem:[%s4630_s1 + $0x2c] ss:$16 sps:$4 sm:$0xff]  }
  0x20   :  { %v3136_v25 = vld [vmem:[%s4630_s1 + $0x2c4] ss:$16 sps:$4 sm:$0xff]   ;;  %v3139_v27 = vld [vmem:[%s4630_s1 + $0x2c0] ss:$16 sps:$4 sm:$0xff]  }
  0x21   :  { %1655 = vmatpush1.bf16.msra.mxu1 %v3120_v14  ;;  %v3140_v28 = vld [vmem:[%s4630_s1 + $0xe4] ss:$16 sps:$4 sm:$0xff]   ;;  %v3144_v30 = vld [vmem:[%s4630_s1 + $0xe0] ss:$16 sps:$4 sm:$0xff]  }
  0x22   :  { %1698 = vmatpush1.bf16.msra.mxu0 %v3121_v15  ;;  %1656 = vmatprep.subr.bf16.mxu1 %v3122_v16  ;;  %v3142_v29 = vld [vmem:[%s4630_s1 + $0x2e4] ss:$16 sps:$4 sm:$0xff]   ;;  %v3145_v31 = vld [vmem:[%s4630_s1 + $0x2e0] ss:$16 sps:$4 sm:$0xff]   ;;  %v3203_v15 = vld [vmem:[%s4630_s1 + $0x28] ss:$16 sps:$4 sm:$0xff]  }
  0x23   :  { %1699 = vmatprep.subr.bf16.mxu0 %v3124_v17  ;;  %v3146_v32 = vld [vmem:[%s4630_s1 + $0x104] ss:$16 sps:$4 sm:$0xff]   ;;  %v3150_v34 = vld [vmem:[%s4630_s1 + $0x100] ss:$16 sps:$4 sm:$0xff]   ;;  %v3211_v17 = vld [vmem:[%s4630_s1 + $0x4c] ss:$16 sps:$4 sm:$0xff]  }
  0x24   :  { %v3148_v33 = vld [vmem:[%s4630_s1 + $0x304] ss:$16 sps:$4 sm:$0xff]   ;;  %v3151_v35 = vld [vmem:[%s4630_s1 + $0x300] ss:$16 sps:$4 sm:$0xff]  }
  0x25   :  { %1657 = vmatpush1.bf16.msra.mxu1 %v3126_v18  ;;  %v3152_v36 = vld [vmem:[%s4630_s1 + $0x124] ss:$16 sps:$4 sm:$0xff]   ;;  %v3156_v38 = vld [vmem:[%s4630_s1 + $0x120] ss:$16 sps:$4 sm:$0xff]  }
  0x26   :  { %1700 = vmatpush1.bf16.msra.mxu0 %v3127_v19  ;;  %1658 = vmatprep.subr.bf16.mxu1 %v3128_v20  ;;  %v3154_v37 = vld [vmem:[%s4630_s1 + $0x324] ss:$16 sps:$4 sm:$0xff]   ;;  %v3157_v39 = vld [vmem:[%s4630_s1 + $0x320] ss:$16 sps:$4 sm:$0xff]   ;;  %v3209_v19 = vld [vmem:[%s4630_s1 + $0x48] ss:$16 sps:$4 sm:$0xff]  }
  0x27   :  { %1701 = vmatprep.subr.bf16.mxu0 %v3130_v21  ;;  %v3158_v40 = vld [vmem:[%s4630_s1 + $0x144] ss:$16 sps:$4 sm:$0xff]   ;;  %v3162_v42 = vld [vmem:[%s4630_s1 + $0x140] ss:$16 sps:$4 sm:$0xff]   ;;  %v3217_v21 = vld [vmem:[%s4630_s1 + $0x6c] ss:$16 sps:$4 sm:$0xff]  }
  0x28   :  { %v3160_v41 = vld [vmem:[%s4630_s1 + $0x344] ss:$16 sps:$4 sm:$0xff]   ;;  %v3163_v43 = vld [vmem:[%s4630_s1 + $0x340] ss:$16 sps:$4 sm:$0xff]  }
  0x29   :  { %1659 = vmatpush1.bf16.msra.mxu1 %v3132_v22  ;;  %v3164_v44 = vld [vmem:[%s4630_s1 + $0x164] ss:$16 sps:$4 sm:$0xff]   ;;  %v3168_v46 = vld [vmem:[%s4630_s1 + $0x160] ss:$16 sps:$4 sm:$0xff]  }
  0x2a   :  { %1702 = vmatpush1.bf16.msra.mxu0 %v3133_v23  ;;  %1660 = vmatprep.subr.bf16.mxu1 %v3134_v24  ;;  %v3166_v45 = vld [vmem:[%s4630_s1 + $0x364] ss:$16 sps:$4 sm:$0xff]   ;;  %v3169_v47 = vld [vmem:[%s4630_s1 + $0x360] ss:$16 sps:$4 sm:$0xff]   ;;  %v3215_v23 = vld [vmem:[%s4630_s1 + $0x68] ss:$16 sps:$4 sm:$0xff]  }
  0x2b   :  { %1703 = vmatprep.subr.bf16.mxu0 %v3136_v25  ;;  %v42_v48 = vld [vmem:[%s4629_s0] sm:$0xff]  ;;  %v3223_v25 = vld [vmem:[%s4630_s1 + $0x8c] ss:$16 sps:$4 sm:$0xff]  }
  0x2c   :  { %v46_v49 = vld [vmem:[%s4629_s0 + $0x20] sm:$0xff] }
  0x2d   :  { %1661 = vmatpush1.bf16.msra.mxu1 %v3138_v26  ;;  %v3170_v52 = vld [vmem:[%s4630_s1 + $0x184] ss:$16 sps:$4 sm:$0xff]   ;;  %v2688_v53 = vcombine.high %v42_v48, %v46_v49  ;;  %v3174_v56 = vld [vmem:[%s4630_s1 + $0x180] ss:$16 sps:$4 sm:$0xff]   ;;  %v3914_v8 = vcombine.low %v42_v48, %v46_v49  ;;  %v3253_v48 = vld [vmem:[%s4630_s1 + $0x12c] ss:$16 sps:$4 sm:$0xff]  }
  0x2e   :  { %1704 = vmatpush1.bf16.msra.mxu0 %v3139_v27  ;;  %1662 = vmatprep.subr.bf16.mxu1 %v3140_v28  ;;  %v3172_v54 = vld [vmem:[%s4630_s1 + $0x384] ss:$16 sps:$4 sm:$0xff]   ;;  %v3175_v57 = vld [vmem:[%s4630_s1 + $0x380] ss:$16 sps:$4 sm:$0xff]   ;;  %v3221_v27 = vld [vmem:[%s4630_s1 + $0x88] ss:$16 sps:$4 sm:$0xff]  }
  0x2f   :  { %1705 = vmatprep.subr.bf16.mxu0 %v3142_v29  ;;  %1680 = vmatprep.mubr.bf16.mxu1 %v2688_v53  ;;  %v3176_v58 = vld [vmem:[%s4630_s1 + $0x1a4] ss:$16 sps:$4 sm:$0xff]   ;;  %v3180_v60 = vld [vmem:[%s4630_s1 + $0x1a0] ss:$16 sps:$4 sm:$0xff]   ;;  %v3229_v29 = vld [vmem:[%s4630_s1 + $0xac] ss:$16 sps:$4 sm:$0xff]  }
  0x30   :  { %v3178_v59 = vld [vmem:[%s4630_s1 + $0x3a4] ss:$16 sps:$4 sm:$0xff]   ;;  %v3181_v61 = vld [vmem:[%s4630_s1 + $0x3a0] ss:$16 sps:$4 sm:$0xff]  }
  0x31   :  { %1663 = vmatpush1.bf16.msra.mxu1 %v3144_v30  ;;  %v3182_v62 = vld [vmem:[%s4630_s1 + $0x1c4] ss:$16 sps:$4 sm:$0xff]   ;;  %v3186_v0 = vld [vmem:[%s4630_s1 + $0x1c0] ss:$16 sps:$4 sm:$0xff]  }
  0x32   :  { %1706 = vmatpush1.bf16.msra.mxu0 %v3145_v31  ;;  %1664 = vmatprep.subr.bf16.mxu1 %v3146_v32  ;;  %v3184_v63 = vld [vmem:[%s4630_s1 + $0x3c4] ss:$16 sps:$4 sm:$0xff]   ;;  %v3187_v1 = vld [vmem:[%s4630_s1 + $0x3c0] ss:$16 sps:$4 sm:$0xff]   ;;  %v3227_v31 = vld [vmem:[%s4630_s1 + $0xa8] ss:$16 sps:$4 sm:$0xff]  }
  0x33   :  { %1707 = vmatprep.subr.bf16.mxu0 %v3148_v33  ;;  %v3188_v2 = vld [vmem:[%s4630_s1 + $0x1e4] ss:$16 sps:$4 sm:$0xff]   ;;  %v3192_v4 = vld [vmem:[%s4630_s1 + $0x1e0] ss:$16 sps:$4 sm:$0xff]   ;;  %v3235_v33 = vld [vmem:[%s4630_s1 + $0xcc] ss:$16 sps:$4 sm:$0xff]  }
  0x34   :  { %v3190_v3 = vld [vmem:[%s4630_s1 + $0x3e4] ss:$16 sps:$4 sm:$0xff]   ;;  %v3193_v5 = vld [vmem:[%s4630_s1 + $0x3e0] ss:$16 sps:$4 sm:$0xff]  }
  0x35   :  { %1665 = vmatpush1.bf16.msra.mxu1 %v3150_v34  ;;  %v3196_v6 = vld [vmem:[%s4630_s1 + $0x404] ss:$16 sps:$4 sm:$0xff]   ;;  %v3194_v10 = vld [vmem:[%s4630_s1 + $0x400] ss:$16 sps:$4 sm:$0xff]  }
  0x36   :  { %1708 = vmatpush1.bf16.msra.mxu0 %v3151_v35  ;;  %1666 = vmatprep.subr.bf16.mxu1 %v3152_v36  ;;  %v3202_v12 = vld [vmem:[%s4630_s1 + $0x424] ss:$16 sps:$4 sm:$0xff]   ;;  %v3200_v14 = vld [vmem:[%s4630_s1 + $0x420] ss:$16 sps:$4 sm:$0xff]  }
  0x37   :  { %1709 = vmatprep.subr.bf16.mxu0 %v3154_v37  ;;  %v3208_v16 = vld [vmem:[%s4630_s1 + $0x444] ss:$16 sps:$4 sm:$0xff]   ;;  %v3206_v18 = vld [vmem:[%s4630_s1 + $0x440] ss:$16 sps:$4 sm:$0xff]   ;;  %v3233_v37 = vld [vmem:[%s4630_s1 + $0xc8] ss:$16 sps:$4 sm:$0xff]  }
  0x38   :  { %v3214_v20 = vld [vmem:[%s4630_s1 + $0x464] ss:$16 sps:$4 sm:$0xff]   ;;  %v3212_v22 = vld [vmem:[%s4630_s1 + $0x460] ss:$16 sps:$4 sm:$0xff]  }
  0x39   :  { %1667 = vmatpush1.bf16.msra.mxu1 %v3156_v38  ;;  %v3220_v24 = vld [vmem:[%s4630_s1 + $0x484] ss:$16 sps:$4 sm:$0xff]   ;;  %v3218_v26 = vld [vmem:[%s4630_s1 + $0x480] ss:$16 sps:$4 sm:$0xff]  }
  0x3a   :  { %1710 = vmatpush1.bf16.msra.mxu0 %v3157_v39  ;;  %1668 = vmatprep.subr.bf16.mxu1 %v3158_v40  ;;  %v3226_v28 = vld [vmem:[%s4630_s1 + $0x4a4] ss:$16 sps:$4 sm:$0xff]   ;;  %v3224_v30 = vld [vmem:[%s4630_s1 + $0x4a0] ss:$16 sps:$4 sm:$0xff]   ;;  %v3241_v40 = vld [vmem:[%s4630_s1 + $0xec] ss:$16 sps:$4 sm:$0xff]  }
  0x3b   :  { %1711 = vmatprep.subr.bf16.mxu0 %v3160_v41  ;;  %v3232_v32 = vld [vmem:[%s4630_s1 + $0x4c4] ss:$16 sps:$4 sm:$0xff]   ;;  %v3230_v36 = vld [vmem:[%s4630_s1 + $0x4c0] ss:$16 sps:$4 sm:$0xff]  }
  0x3c   :  { %v3995_v34 = vld [vmem:[%s4629_s0 + $0x10] sm:$0xff] }
  0x3d   :  { %1669 = vmatpush1.bf16.msra.mxu1 %v3162_v42  ;;  %v4000_v35 = vld [vmem:[%s4629_s0 + $0x30] sm:$0xff]  ;;  %v3239_v42 = vld [vmem:[%s4630_s1 + $0xe8] ss:$16 sps:$4 sm:$0xff]  }
  0x3e   :  { %1712 = vmatpush1.bf16.msra.mxu0 %v3163_v43  ;;  %1670 = vmatprep.subr.bf16.mxu1 %v3164_v44  ;;  %v4010_v38 = vcombine.high %v3995_v34, %v4000_v35  ;;  %v3238_v39 = vld [vmem:[%s4630_s1 + $0x4e4] ss:$16 sps:$4 sm:$0xff]   ;;  %v3236_v41 = vld [vmem:[%s4630_s1 + $0x4e0] ss:$16 sps:$4 sm:$0xff]   ;;  %v3247_v44 = vld [vmem:[%s4630_s1 + $0x10c] ss:$16 sps:$4 sm:$0xff]  }
  0x3f   :  { %1713 = vmatprep.subr.bf16.mxu0 %v3166_v45  ;;  %v3244_v43 = vld [vmem:[%s4630_s1 + $0x504] ss:$16 sps:$4 sm:$0xff]   ;;  %v3242_v45 = vld [vmem:[%s4630_s1 + $0x500] ss:$16 sps:$4 sm:$0xff]  }
  0x40   :  { %v3248_v49 = vld [vmem:[%s4630_s1 + $0x520] ss:$16 sps:$4 sm:$0xff]   ;;  %v3256_v51 = vld [vmem:[%s4630_s1 + $0x544] ss:$16 sps:$4 sm:$0xff]  }
  0x41   :  { %1671 = vmatpush1.bf16.msra.mxu1 %v3168_v46  ;;  %v3245_v46 = vld [vmem:[%s4630_s1 + $0x108] ss:$16 sps:$4 sm:$0xff]  }
  0x42   :  { %1714 = vmatpush1.bf16.msra.mxu0 %v3169_v47  ;;  %1672 = vmatprep.subr.bf16.mxu1 %v3170_v52  ;;  %v3250_v47 = vld [vmem:[%s4630_s1 + $0x524] ss:$16 sps:$4 sm:$0xff]   ;;  %v3259_v52 = vld [vmem:[%s4630_s1 + $0x14c] ss:$16 sps:$4 sm:$0xff]  }
  0x43   :  { %1715 = vmatprep.subr.bf16.mxu0 %v3172_v54  ;;  %v3257_v54 = vld [vmem:[%s4630_s1 + $0x148] ss:$16 sps:$4 sm:$0xff]  }
  0x45   :  { %1673 = vmatpush1.bf16.msra.mxu1 %v3174_v56  ;;  %v3262_v56 = vld [vmem:[%s4630_s1 + $0x564] ss:$16 sps:$4 sm:$0xff]  }
  0x46   :  { %1716 = vmatpush1.bf16.msra.mxu0 %v3175_v57  ;;  %1674 = vmatprep.subr.bf16.mxu1 %v3176_v58  ;;  %v3265_v57 = vld [vmem:[%s4630_s1 + $0x16c] ss:$16 sps:$4 sm:$0xff]   ;;  %v3260_v58 = vld [vmem:[%s4630_s1 + $0x560] ss:$16 sps:$4 sm:$0xff]  }
  0x47   :  { %1717 = vmatprep.subr.bf16.mxu0 %v3178_v59  ;;  %v3263_v59 = vld [vmem:[%s4630_s1 + $0x168] ss:$16 sps:$4 sm:$0xff]  }
  0x49   :  { %1675 = vmatpush1.bf16.msra.mxu1 %v3180_v60  ;;  %v3268_v60 = vld [vmem:[%s4630_s1 + $0x584] ss:$16 sps:$4 sm:$0xff]  }
  0x4a   :  { %1718 = vmatpush1.bf16.msra.mxu0 %v3181_v61  ;;  %1676 = vmatprep.subr.bf16.mxu1 %v3182_v62  ;;  %v3271_v61 = vld [vmem:[%s4630_s1 + $0x18c] ss:$16 sps:$4 sm:$0xff]   ;;  %v3266_v62 = vld [vmem:[%s4630_s1 + $0x580] ss:$16 sps:$4 sm:$0xff]  }
  0x4b   :  { %1719 = vmatprep.subr.bf16.mxu0 %v3184_v63  ;;  %v3269_v63 = vld [vmem:[%s4630_s1 + $0x188] ss:$16 sps:$4 sm:$0xff]  }
  0x4d   :  { %1677 = vmatpush1.bf16.msra.mxu1 %v3186_v0  ;;  %v3274_v0 = vld [vmem:[%s4630_s1 + $0x5a4] ss:$16 sps:$4 sm:$0xff]  }
  0x4e   :  { %1720 = vmatpush1.bf16.msra.mxu0 %v3187_v1  ;;  %1678 = vmatprep.subr.bf16.mxu1 %v3188_v2  ;;  %v3277_v1 = vld [vmem:[%s4630_s1 + $0x1ac] ss:$16 sps:$4 sm:$0xff]   ;;  %v3272_v2 = vld [vmem:[%s4630_s1 + $0x5a0] ss:$16 sps:$4 sm:$0xff]  }
  0x4f   :  { %1721 = vmatprep.subr.bf16.mxu0 %v3190_v3  ;;  %v3275_v3 = vld [vmem:[%s4630_s1 + $0x1a8] ss:$16 sps:$4 sm:$0xff]  }
  0x51   :  { %1679 = vmatpush1.bf16.msra.mxu1 %v3192_v4  ;;  %v3280_v4 = vld [vmem:[%s4630_s1 + $0x5c4] ss:$16 sps:$4 sm:$0xff]  }
  0x52   :  { %1722 = vmatpush1.bf16.msra.mxu0 %v3193_v5  ;;  %1820 = vmatprep.subr.bf16.mxu1 %v3199_v7  ;;  %v3283_v5 = vld [vmem:[%s4630_s1 + $0x1cc] ss:$16 sps:$4 sm:$0xff]   ;;  %v3281_v7 = vld [vmem:[%s4630_s1 + $0x1c8] ss:$16 sps:$4 sm:$0xff]  }
  0x53   :  { %1734 = vmatprep.subr.bf16.mxu0 %v3196_v6  ;;  %v3278_v6 = vld [vmem:[%s4630_s1 + $0x5c0] ss:$16 sps:$4 sm:$0xff]  }
  0x54   :  { %1681 = vmatmul.mubr.bf16.vlgmr.msra.gmra.mrb[0].mxu1 %v3914_v8 }
  0x55   :  { %1724 = vmatmul.mubr.bf16.vlgmr.msra.gmra.mrb[0].mxu0 %v3916_v9  ;;  %1821 = vmatpush1.bf16.msra.mxu1 %v3197_v11  ;;  %v3289_v11 = vld [vmem:[%s4630_s1 + $0x1ec] ss:$16 sps:$4 sm:$0xff]  }
  0x56   :  { %1735 = vmatpush1.bf16.msra.mxu0 %v3194_v10  ;;  %1822 = vmatprep.subr.bf16.mxu1 %v3205_v13  ;;  %v3286_v10 = vld [vmem:[%s4630_s1 + $0x5e4] ss:$16 sps:$4 sm:$0xff]   ;;  %v3287_v13 = vld [vmem:[%s4630_s1 + $0x1e8] ss:$16 sps:$4 sm:$0xff]  }
  0x57   :  { %1736 = vmatprep.subr.bf16.mxu0 %v3202_v12  ;;  %1852 = vmatprep.mubr.bf16.mxu1 %v2688_v53  ;;  %v3254_v53 = vld [vmem:[%s4630_s1 + $0x540] ss:$16 sps:$4 sm:$0xff]  }
  0x58   :  { %1766 = vmatprep.mubr.bf16.mxu0 %v4010_v38  ;;  %v3284_v12 = vld [vmem:[%s4630_s1 + $0x5e0] ss:$16 sps:$4 sm:$0xff]  }
  0x59   :  { %1823 = vmatpush1.bf16.msra.mxu1 %v3203_v15  ;;  %v3295_v15 = vld [vmem:[%s4630_s1 + $0x20c] ss:$16 sps:$4 sm:$0xff]  }
  0x5a   :  { %1737 = vmatpush1.bf16.msra.mxu0 %v3200_v14  ;;  %1824 = vmatprep.subr.bf16.mxu1 %v3211_v17  ;;  %v3292_v14 = vld [vmem:[%s4630_s1 + $0x604] ss:$16 sps:$4 sm:$0xff]   ;;  %v3290_v17 = vld [vmem:[%s4630_s1 + $0x600] ss:$16 sps:$4 sm:$0xff]  }
  0x5b   :  { %1738 = vmatprep.subr.bf16.mxu0 %v3208_v16  ;;  %v4129_v16 = vcombine.low %v3995_v34, %v4000_v35  ;;  %v3314_v34 = vld [vmem:[%s4630_s1 + $0x680] ss:$16 sps:$4 sm:$0xff]   ;;  %v3317_v35 = vld [vmem:[%s4630_s1 + $0x288] ss:$16 sps:$4 sm:$0xff]  }
  0x5d   :  { %1825 = vmatpush1.bf16.msra.mxu1 %v3209_v19  ;;  %v3298_v19 = vld [vmem:[%s4630_s1 + $0x624] ss:$16 sps:$4 sm:$0xff]  }
  0x5e   :  { %1739 = vmatpush1.bf16.msra.mxu0 %v3206_v18  ;;  %1826 = vmatprep.subr.bf16.mxu1 %v3217_v21  ;;  %v3293_v18 = vld [vmem:[%s4630_s1 + $0x208] ss:$16 sps:$4 sm:$0xff]  }
  0x5f   :  { %1740 = vmatprep.subr.bf16.mxu0 %v3214_v20  ;;  %v3301_v20 = vld [vmem:[%s4630_s1 + $0x22c] ss:$16 sps:$4 sm:$0xff]  }
  0x60   :  { %v4146_v21 = vld [vmem:[%s4629_s0 + $0x18] sm:$0xff] }
  0x61   :  { %1827 = vmatpush1.bf16.msra.mxu1 %v3215_v23  ;;  %v3296_v23 = vld [vmem:[%s4630_s1 + $0x620] ss:$16 sps:$4 sm:$0xff]  }
  0x62   :  { %1741 = vmatpush1.bf16.msra.mxu0 %v3212_v22  ;;  %1828 = vmatprep.subr.bf16.mxu1 %v3223_v25  ;;  %v4151_v22 = vld [vmem:[%s4629_s0 + $0x38] sm:$0xff] }
  0x63   :  { %1742 = vmatprep.subr.bf16.mxu0 %v3220_v24  ;;  %v3299_v24 = vld [vmem:[%s4630_s1 + $0x228] ss:$16 sps:$4 sm:$0xff]   ;;  %v4163_v25 = vcombine.high %v4146_v21, %v4151_v22 }
  0x65   :  { %1829 = vmatpush1.bf16.msra.mxu1 %v3221_v27  ;;  %v3302_v27 = vld [vmem:[%s4630_s1 + $0x640] ss:$16 sps:$4 sm:$0xff]  }
  0x66   :  { %1743 = vmatpush1.bf16.msra.mxu0 %v3218_v26  ;;  %1830 = vmatprep.subr.bf16.mxu1 %v3229_v29  ;;  %v3304_v26 = vld [vmem:[%s4630_s1 + $0x644] ss:$16 sps:$4 sm:$0xff]  }
  0x67   :  { %1744 = vmatprep.subr.bf16.mxu0 %v3226_v28  ;;  %v3305_v28 = vld [vmem:[%s4630_s1 + $0x248] ss:$16 sps:$4 sm:$0xff]   ;;  %v3310_v29 = vld [vmem:[%s4630_s1 + $0x664] ss:$16 sps:$4 sm:$0xff]  }
  0x69   :  { %1831 = vmatpush1.bf16.msra.mxu1 %v3227_v31  ;;  %v3311_v31 = vld [vmem:[%s4630_s1 + $0x268] ss:$16 sps:$4 sm:$0xff]  }
  0x6a   :  { %1745 = vmatpush1.bf16.msra.mxu0 %v3224_v30  ;;  %1832 = vmatprep.subr.bf16.mxu1 %v3235_v33  ;;  %v3308_v30 = vld [vmem:[%s4630_s1 + $0x660] ss:$16 sps:$4 sm:$0xff]   ;;  %v3319_v33 = vld [vmem:[%s4630_s1 + $0x28c] ss:$16 sps:$4 sm:$0xff]  }
  0x6b   :  { %1746 = vmatprep.subr.bf16.mxu0 %v3232_v32  ;;  %v3316_v32 = vld [vmem:[%s4630_s1 + $0x684] ss:$16 sps:$4 sm:$0xff]  }
  0x6d   :  { %1833 = vmatpush1.bf16.msra.mxu1 %v3233_v37  ;;  %v3325_v37 = vld [vmem:[%s4630_s1 + $0x2ac] ss:$16 sps:$4 sm:$0xff]  }
  0x6e   :  { %1747 = vmatpush1.bf16.msra.mxu0 %v3230_v36  ;;  %1834 = vmatprep.subr.bf16.mxu1 %v3241_v40  ;;  %v3322_v36 = vld [vmem:[%s4630_s1 + $0x6a4] ss:$16 sps:$4 sm:$0xff]   ;;  %v3323_v40 = vld [vmem:[%s4630_s1 + $0x2a8] ss:$16 sps:$4 sm:$0xff]  }
  0x6f   :  { %1748 = vmatprep.subr.bf16.mxu0 %v3238_v39  ;;  %v3320_v39 = vld [vmem:[%s4630_s1 + $0x6a0] ss:$16 sps:$4 sm:$0xff]  }
  0x71   :  { %1835 = vmatpush1.bf16.msra.mxu1 %v3239_v42  ;;  %v3331_v42 = vld [vmem:[%s4630_s1 + $0x2cc] ss:$16 sps:$4 sm:$0xff]  }
  0x72   :  { %1749 = vmatpush1.bf16.msra.mxu0 %v3236_v41  ;;  %1836 = vmatprep.subr.bf16.mxu1 %v3247_v44  ;;  %v3328_v41 = vld [vmem:[%s4630_s1 + $0x6c4] ss:$16 sps:$4 sm:$0xff]   ;;  %v3329_v44 = vld [vmem:[%s4630_s1 + $0x2c8] ss:$16 sps:$4 sm:$0xff]  }
  0x73   :  { %1750 = vmatprep.subr.bf16.mxu0 %v3244_v43  ;;  %v3326_v43 = vld [vmem:[%s4630_s1 + $0x6c0] ss:$16 sps:$4 sm:$0xff]  }
  0x75   :  { %1837 = vmatpush1.bf16.msra.mxu1 %v3245_v46  ;;  %v3337_v46 = vld [vmem:[%s4630_s1 + $0x2ec] ss:$16 sps:$4 sm:$0xff]  }
  0x76   :  { %1751 = vmatpush1.bf16.msra.mxu0 %v3242_v45  ;;  %1838 = vmatprep.subr.bf16.mxu1 %v3253_v48  ;;  %v3334_v45 = vld [vmem:[%s4630_s1 + $0x6e4] ss:$16 sps:$4 sm:$0xff]   ;;  %v3335_v48 = vld [vmem:[%s4630_s1 + $0x2e8] ss:$16 sps:$4 sm:$0xff]  }
  0x77   :  { %1752 = vmatprep.subr.bf16.mxu0 %v3250_v47  ;;  %v3332_v47 = vld [vmem:[%s4630_s1 + $0x6e0] ss:$16 sps:$4 sm:$0xff]  }
  0x79   :  { %1839 = vmatpush1.bf16.msra.mxu1 %v3251_v50  ;;  %v3343_v50 = vld [vmem:[%s4630_s1 + $0x30c] ss:$16 sps:$4 sm:$0xff]  }
  0x7a   :  { %1753 = vmatpush1.bf16.msra.mxu0 %v3248_v49  ;;  %1840 = vmatprep.subr.bf16.mxu1 %v3259_v52  ;;  %v3340_v49 = vld [vmem:[%s4630_s1 + $0x704] ss:$16 sps:$4 sm:$0xff]   ;;  %v3341_v52 = vld [vmem:[%s4630_s1 + $0x308] ss:$16 sps:$4 sm:$0xff]  }
  0x7b   :  { %1754 = vmatprep.subr.bf16.mxu0 %v3256_v51  ;;  %v3338_v51 = vld [vmem:[%s4630_s1 + $0x700] ss:$16 sps:$4 sm:$0xff]  }
  0x7d   :  { %1841 = vmatpush1.bf16.msra.mxu1 %v3257_v54  ;;  %v3349_v54 = vld [vmem:[%s4630_s1 + $0x32c] ss:$16 sps:$4 sm:$0xff]  }
  0x7e   :  { %1755 = vmatpush1.bf16.msra.mxu0 %v3254_v53  ;;  %1842 = vmatprep.subr.bf16.mxu1 %v3265_v57  ;;  %v3346_v53 = vld [vmem:[%s4630_s1 + $0x724] ss:$16 sps:$4 sm:$0xff]   ;;  %v3347_v57 = vld [vmem:[%s4630_s1 + $0x328] ss:$16 sps:$4 sm:$0xff]  }
  0x7f   :  { %1756 = vmatprep.subr.bf16.mxu0 %v3262_v56  ;;  %v3344_v56 = vld [vmem:[%s4630_s1 + $0x720] ss:$16 sps:$4 sm:$0xff]  }
  0x81   :  { %1843 = vmatpush1.bf16.msra.mxu1 %v3263_v59  ;;  %v3355_v59 = vld [vmem:[%s4630_s1 + $0x34c] ss:$16 sps:$4 sm:$0xff]  }
  0x82   :  { %1757 = vmatpush1.bf16.msra.mxu0 %v3260_v58  ;;  %1844 = vmatprep.subr.bf16.mxu1 %v3271_v61  ;;  %v3352_v58 = vld [vmem:[%s4630_s1 + $0x744] ss:$16 sps:$4 sm:$0xff]   ;;  %v3353_v61 = vld [vmem:[%s4630_s1 + $0x348] ss:$16 sps:$4 sm:$0xff]  }
  0x83   :  { %1758 = vmatprep.subr.bf16.mxu0 %v3268_v60  ;;  %v3350_v60 = vld [vmem:[%s4630_s1 + $0x740] ss:$16 sps:$4 sm:$0xff]  }
  0x85   :  { %1845 = vmatpush1.bf16.msra.mxu1 %v3269_v63  ;;  %v3361_v63 = vld [vmem:[%s4630_s1 + $0x36c] ss:$16 sps:$4 sm:$0xff]  }
  0x86   :  { %1759 = vmatpush1.bf16.msra.mxu0 %v3266_v62  ;;  %1846 = vmatprep.subr.bf16.mxu1 %v3277_v1  ;;  %v3358_v62 = vld [vmem:[%s4630_s1 + $0x764] ss:$16 sps:$4 sm:$0xff]   ;;  %v3359_v1 = vld [vmem:[%s4630_s1 + $0x368] ss:$16 sps:$4 sm:$0xff]  }
  0x87   :  { %1760 = vmatprep.subr.bf16.mxu0 %v3274_v0  ;;  %v3356_v0 = vld [vmem:[%s4630_s1 + $0x760] ss:$16 sps:$4 sm:$0xff]  }
  0x89   :  { %1847 = vmatpush1.bf16.msra.mxu1 %v3275_v3  ;;  %v3367_v3 = vld [vmem:[%s4630_s1 + $0x38c] ss:$16 sps:$4 sm:$0xff]  }
  0x8a   :  { %1761 = vmatpush1.bf16.msra.mxu0 %v3272_v2  ;;  %1848 = vmatprep.subr.bf16.mxu1 %v3283_v5  ;;  %v3364_v2 = vld [vmem:[%s4630_s1 + $0x784] ss:$16 sps:$4 sm:$0xff]   ;;  %v3365_v5 = vld [vmem:[%s4630_s1 + $0x388] ss:$16 sps:$4 sm:$0xff]  }
  0x8b   :  { %1762 = vmatprep.subr.bf16.mxu0 %v3280_v4  ;;  %v3362_v4 = vld [vmem:[%s4630_s1 + $0x780] ss:$16 sps:$4 sm:$0xff]  }
  0x8d   :  { %1849 = vmatpush1.bf16.msra.mxu1 %v3281_v7  ;;  %v3373_v7 = vld [vmem:[%s4630_s1 + $0x3ac] ss:$16 sps:$4 sm:$0xff]  }
  0x8e   :  { %1763 = vmatpush1.bf16.msra.mxu0 %v3278_v6  ;;  %1850 = vmatprep.subr.bf16.mxu1 %v3289_v11  ;;  %v3370_v6 = vld [vmem:[%s4630_s1 + $0x7a4] ss:$16 sps:$4 sm:$0xff]   ;;  %v3371_v11 = vld [vmem:[%s4630_s1 + $0x3a8] ss:$16 sps:$4 sm:$0xff]  }
  0x8f   :  { %1764 = vmatprep.subr.bf16.mxu0 %v3286_v10  ;;  %v3368_v10 = vld [vmem:[%s4630_s1 + $0x7a0] ss:$16 sps:$4 sm:$0xff]  }
  0x91   :  { %1851 = vmatpush1.bf16.msra.mxu1 %v3287_v13  ;;  %v3379_v13 = vld [vmem:[%s4630_s1 + $0x3cc] ss:$16 sps:$4 sm:$0xff]  }
  0x92   :  { %1765 = vmatpush1.bf16.msra.mxu0 %v3284_v12  ;;  %1863 = vmatprep.subr.bf16.mxu1 %v3295_v15  ;;  %v3376_v12 = vld [vmem:[%s4630_s1 + $0x7c4] ss:$16 sps:$4 sm:$0xff]   ;;  %v3377_v15 = vld [vmem:[%s4630_s1 + $0x3c8] ss:$16 sps:$4 sm:$0xff]  }
  0x93   :  { %1777 = vmatprep.subr.bf16.mxu0 %v3292_v14  ;;  %v3374_v14 = vld [vmem:[%s4630_s1 + $0x7c0] ss:$16 sps:$4 sm:$0xff]  }
  0x94   :  { %1853 = vmatmul.mubr.bf16.vlgmr.msra.gmra.mrb[4].mxu1 %v3914_v8  ;;  %v3307_v8 = vld [vmem:[%s4630_s1 + $0x24c] ss:$16 sps:$4 sm:$0xff]  }
  0x95   :  { %1767 = vmatmul.mubr.bf16.vlgmr.msra.gmra.mrb[0].mxu0 %v4129_v16  ;;  %1864 = vmatpush1.bf16.msra.mxu1 %v3293_v18  ;;  %v3385_v18 = vld [vmem:[%s4630_s1 + $0x3ec] ss:$16 sps:$4 sm:$0xff]  }
  0x96   :  { %1778 = vmatpush1.bf16.msra.mxu0 %v3290_v17  ;;  %1865 = vmatprep.subr.bf16.mxu1 %v3301_v20  ;;  %v3382_v17 = vld [vmem:[%s4630_s1 + $0x7e4] ss:$16 sps:$4 sm:$0xff]   ;;  %v3383_v20 = vld [vmem:[%s4630_s1 + $0x3e8] ss:$16 sps:$4 sm:$0xff]  }
  0x97   :  { %1779 = vmatprep.subr.bf16.mxu0 %v3298_v19  ;;  %1809 = vmatprep.mubr.bf16.mxu0 %v4163_v25  ;;  %v3380_v19 = vld [vmem:[%s4630_s1 + $0x7e0] ss:$16 sps:$4 sm:$0xff]  }
  0x98   :  { %1895 = vmatprep.mubr.bf16.mxu1 %v3863_v55  ;;  %v3313_v55 = vld [vmem:[%s4630_s1 + $0x26c] ss:$16 sps:$4 sm:$0xff]  }
  0x99   :  { %1866 = vmatpush1.bf16.msra.mxu1 %v3299_v24  ;;  %v3386_v24 = vld [vmem:[%s4630_s1 + $0x408] ss:$16 sps:$4 sm:$0xff]  }
  0x9a   :  { %1780 = vmatpush1.bf16.msra.mxu0 %v3296_v23  ;;  %1867 = vmatprep.subr.bf16.mxu1 %v3307_v8  ;;  %v3388_v23 = vld [vmem:[%s4630_s1 + $0x40c] ss:$16 sps:$4 sm:$0xff]  }
  0x9b   :  { %1781 = vmatprep.subr.bf16.mxu0 %v3304_v26  ;;  %v4343_v26 = vcombine.low %v4146_v21, %v4151_v22  ;;  %v3391_v8 = vld [vmem:[%s4630_s1 + $0x42c] ss:$16 sps:$4 sm:$0xff]  }
  0x9c   :  { %v3487_v21 = vld [vmem:[#allocation2 + $0x14] ss:$8 sps:$4 sm:$0xff]  }
  0x9d   :  { %1868 = vmatpush1.bf16.msra.mxu1 %v3305_v28  ;;  %v3484_v28 = vld [vmem:[#allocation2 + $0x4] ss:$8 sps:$4 sm:$0xff]  }
  0x9e   :  { %1782 = vmatpush1.bf16.msra.mxu0 %v3302_v27  ;;  %1869 = vmatprep.subr.bf16.mxu1 %v3313_v55  ;;  %v3482_v27 = vld [vmem:[#allocation2] ss:$8 sps:$4 sm:$0xff]   ;;  %v3394_v22 = vld [vmem:[%s4630_s1 + $0x44c] ss:$16 sps:$4 sm:$0xff]   ;;  %v3485_v55 = vld [vmem:[#allocation2 + $0x10] ss:$8 sps:$4 sm:$0xff]  }
  0x9f   :  { %1783 = vmatprep.subr.bf16.mxu0 %v3310_v29  ;;  %v3389_v29 = vld [vmem:[%s4630_s1 + $0x428] ss:$16 sps:$4 sm:$0xff]  }
  0xa1   :  { %1870 = vmatpush1.bf16.msra.mxu1 %v3311_v31  ;;  %v3488_v31 = vld [vmem:[#allocation2 + $0x20] ss:$8 sps:$4 sm:$0xff]  }
  0xa2   :  { %1784 = vmatpush1.bf16.msra.mxu0 %v3308_v30  ;;  %1871 = vmatprep.subr.bf16.mxu1 %v3319_v33  ;;  %v3392_v30 = vld [vmem:[%s4630_s1 + $0x448] ss:$16 sps:$4 sm:$0xff]   ;;  %v3400_v33 = vld [vmem:[%s4630_s1 + $0x48c] ss:$16 sps:$4 sm:$0xff]  }
  0xa3   :  { %1785 = vmatprep.subr.bf16.mxu0 %v3316_v32  ;;  %v3395_v32 = vld [vmem:[%s4630_s1 + $0x468] ss:$16 sps:$4 sm:$0xff]  }
  0xa5   :  { %1872 = vmatpush1.bf16.msra.mxu1 %v3317_v35  ;;  %v3491_v35 = vld [vmem:[#allocation2 + $0x30] ss:$8 sps:$4 sm:$0xff]  }
  0xa6   :  { %1786 = vmatpush1.bf16.msra.mxu0 %v3314_v34  ;;  %1873 = vmatprep.subr.bf16.mxu1 %v3325_v37  ;;  %v3493_v34 = vld [vmem:[#allocation2 + $0x34] ss:$8 sps:$4 sm:$0xff]   ;;  %v3398_v37 = vld [vmem:[%s4630_s1 + $0x488] ss:$16 sps:$4 sm:$0xff]  }
  0xa7   :  { %1787 = vmatprep.subr.bf16.mxu0 %v3322_v36  ;;  %v3496_v36 = vld [vmem:[#allocation2 + $0x44] ss:$8 sps:$4 sm:$0xff]  }
  0xa9   :  { %1874 = vmatpush1.bf16.msra.mxu1 %v3323_v40  ;;  %v3494_v40 = vld [vmem:[#allocation2 + $0x40] ss:$8 sps:$4 sm:$0xff]  }
  0xaa   :  { %1788 = vmatpush1.bf16.msra.mxu0 %v3320_v39  ;;  %1875 = vmatprep.subr.bf16.mxu1 %v3331_v42  ;;  %v3403_v39 = vld [vmem:[%s4630_s1 + $0x4ac] ss:$16 sps:$4 sm:$0xff]   ;;  %v3401_v42 = vld [vmem:[%s4630_s1 + $0x4a8] ss:$16 sps:$4 sm:$0xff]  }
  0xab   :  { %1789 = vmatprep.subr.bf16.mxu0 %v3328_v41  ;;  %v3499_v41 = vld [vmem:[#allocation2 + $0x54] ss:$8 sps:$4 sm:$0xff]  }
  0xad   :  { %1876 = vmatpush1.bf16.msra.mxu1 %v3329_v44  ;;  %v3497_v44 = vld [vmem:[#allocation2 + $0x50] ss:$8 sps:$4 sm:$0xff]  }
  0xae   :  { %1790 = vmatpush1.bf16.msra.mxu0 %v3326_v43  ;;  %1877 = vmatprep.subr.bf16.mxu1 %v3337_v46  ;;  %v3406_v43 = vld [vmem:[%s4630_s1 + $0x4cc] ss:$16 sps:$4 sm:$0xff]   ;;  %v3404_v46 = vld [vmem:[%s4630_s1 + $0x4c8] ss:$16 sps:$4 sm:$0xff]  }
  0xaf   :  { %1791 = vmatprep.subr.bf16.mxu0 %v3334_v45  ;;  %v3502_v45 = vld [vmem:[#allocation2 + $0x64] ss:$8 sps:$4 sm:$0xff]  }
  0xb1   :  { %1878 = vmatpush1.bf16.msra.mxu1 %v3335_v48  ;;  %v3500_v48 = vld [vmem:[#allocation2 + $0x60] ss:$8 sps:$4 sm:$0xff]  }
  0xb2   :  { %1792 = vmatpush1.bf16.msra.mxu0 %v3332_v47  ;;  %1879 = vmatprep.subr.bf16.mxu1 %v3343_v50  ;;  %v3409_v47 = vld [vmem:[%s4630_s1 + $0x4ec] ss:$16 sps:$4 sm:$0xff]   ;;  %v3407_v50 = vld [vmem:[%s4630_s1 + $0x4e8] ss:$16 sps:$4 sm:$0xff]  }
  0xb3   :  { %1793 = vmatprep.subr.bf16.mxu0 %v3340_v49  ;;  %v3505_v49 = vld [vmem:[#allocation2 + $0x74] ss:$8 sps:$4 sm:$0xff]  }
  0xb5   :  { %1880 = vmatpush1.bf16.msra.mxu1 %v3341_v52  ;;  %v3503_v52 = vld [vmem:[#allocation2 + $0x70] ss:$8 sps:$4 sm:$0xff]  }
  0xb6   :  { %1794 = vmatpush1.bf16.msra.mxu0 %v3338_v51  ;;  %1881 = vmatprep.subr.bf16.mxu1 %v3349_v54  ;;  %v3412_v51 = vld [vmem:[%s4630_s1 + $0x50c] ss:$16 sps:$4 sm:$0xff]   ;;  %v3410_v54 = vld [vmem:[%s4630_s1 + $0x508] ss:$16 sps:$4 sm:$0xff]  }
  0xb7   :  { %1795 = vmatprep.subr.bf16.mxu0 %v3346_v53  ;;  %v3508_v53 = vld [vmem:[#allocation2 + $0x84] ss:$8 sps:$4 sm:$0xff]  }
  0xb9   :  { %1882 = vmatpush1.bf16.msra.mxu1 %v3347_v57  ;;  %v3506_v57 = vld [vmem:[#allocation2 + $0x80] ss:$8 sps:$4 sm:$0xff]  }
  0xba   :  { %1796 = vmatpush1.bf16.msra.mxu0 %v3344_v56  ;;  %1883 = vmatprep.subr.bf16.mxu1 %v3355_v59  ;;  %v3415_v56 = vld [vmem:[%s4630_s1 + $0x52c] ss:$16 sps:$4 sm:$0xff]   ;;  %v3413_v59 = vld [vmem:[%s4630_s1 + $0x528] ss:$16 sps:$4 sm:$0xff]  }
  0xbb   :  { %1797 = vmatprep.subr.bf16.mxu0 %v3352_v58  ;;  %v3511_v58 = vld [vmem:[#allocation2 + $0x94] ss:$8 sps:$4 sm:$0xff]  }
  0xbd   :  { %1884 = vmatpush1.bf16.msra.mxu1 %v3353_v61  ;;  %v3509_v61 = vld [vmem:[#allocation2 + $0x90] ss:$8 sps:$4 sm:$0xff]  }
  0xbe   :  { %1798 = vmatpush1.bf16.msra.mxu0 %v3350_v60  ;;  %1885 = vmatprep.subr.bf16.mxu1 %v3361_v63  ;;  %v3418_v60 = vld [vmem:[%s4630_s1 + $0x54c] ss:$16 sps:$4 sm:$0xff]   ;;  %v3416_v63 = vld [vmem:[%s4630_s1 + $0x548] ss:$16 sps:$4 sm:$0xff]  }
  0xbf   :  { %1799 = vmatprep.subr.bf16.mxu0 %v3358_v62  ;;  %v3514_v62 = vld [vmem:[#allocation2 + $0xa4] ss:$8 sps:$4 sm:$0xff]  }
  0xc1   :  { %1886 = vmatpush1.bf16.msra.mxu1 %v3359_v1  ;;  %v3512_v1 = vld [vmem:[#allocation2 + $0xa0] ss:$8 sps:$4 sm:$0xff]  }
  0xc2   :  { %1800 = vmatpush1.bf16.msra.mxu0 %v3356_v0  ;;  %1887 = vmatprep.subr.bf16.mxu1 %v3367_v3  ;;  %v3421_v0 = vld [vmem:[%s4630_s1 + $0x56c] ss:$16 sps:$4 sm:$0xff]   ;;  %v3419_v3 = vld [vmem:[%s4630_s1 + $0x568] ss:$16 sps:$4 sm:$0xff]  }
  0xc3   :  { %1801 = vmatprep.subr.bf16.mxu0 %v3364_v2  ;;  %v3517_v2 = vld [vmem:[#allocation2 + $0xb4] ss:$8 sps:$4 sm:$0xff]  }
  0xc5   :  { %1888 = vmatpush1.bf16.msra.mxu1 %v3365_v5  ;;  %v3515_v5 = vld [vmem:[#allocation2 + $0xb0] ss:$8 sps:$4 sm:$0xff]  }
  0xc6   :  { %1802 = vmatpush1.bf16.msra.mxu0 %v3362_v4  ;;  %1889 = vmatprep.subr.bf16.mxu1 %v3373_v7  ;;  %v3424_v4 = vld [vmem:[%s4630_s1 + $0x58c] ss:$16 sps:$4 sm:$0xff]   ;;  %v3422_v7 = vld [vmem:[%s4630_s1 + $0x588] ss:$16 sps:$4 sm:$0xff]  }
  0xc7   :  { %1803 = vmatprep.subr.bf16.mxu0 %v3370_v6  ;;  %v3520_v6 = vld [vmem:[#allocation2 + $0xc4] ss:$8 sps:$4 sm:$0xff]  }
  0xc9   :  { %1890 = vmatpush1.bf16.msra.mxu1 %v3371_v11  ;;  %v3518_v11 = vld [vmem:[#allocation2 + $0xc0] ss:$8 sps:$4 sm:$0xff]  }
  0xca   :  { %1804 = vmatpush1.bf16.msra.mxu0 %v3368_v10  ;;  %1891 = vmatprep.subr.bf16.mxu1 %v3379_v13  ;;  %v3427_v10 = vld [vmem:[%s4630_s1 + $0x5ac] ss:$16 sps:$4 sm:$0xff]   ;;  %v3425_v13 = vld [vmem:[%s4630_s1 + $0x5a8] ss:$16 sps:$4 sm:$0xff]  }
  0xcb   :  { %1805 = vmatprep.subr.bf16.mxu0 %v3376_v12  ;;  %v3523_v12 = vld [vmem:[#allocation2 + $0xd4] ss:$8 sps:$4 sm:$0xff]  }
  0xcd   :  { %1892 = vmatpush1.bf16.msra.mxu1 %v3377_v15  ;;  %v3521_v15 = vld [vmem:[#allocation2 + $0xd0] ss:$8 sps:$4 sm:$0xff]  }
  0xce   :  { %1806 = vmatpush1.bf16.msra.mxu0 %v3374_v14  ;;  %1893 = vmatprep.subr.bf16.mxu1 %v3385_v18  ;;  %v3430_v14 = vld [vmem:[%s4630_s1 + $0x5cc] ss:$16 sps:$4 sm:$0xff]  }
  0xcf   :  { %1807 = vmatprep.subr.bf16.mxu0 %v3382_v17  ;;  %v3428_v17 = vld [vmem:[%s4630_s1 + $0x5c8] ss:$16 sps:$4 sm:$0xff]   ;;  %v3433_v18 = vld [vmem:[%s4630_s1 + $0x5ec] ss:$16 sps:$4 sm:$0xff]  }
  0xd1   :  { %1894 = vmatpush1.bf16.msra.mxu1 %v3383_v20  ;;  %v3436_v20 = vld [vmem:[%s4630_s1 + $0x60c] ss:$16 sps:$4 sm:$0xff]  }
  0xd2   :  { %1808 = vmatpush1.bf16.msra.mxu0 %v3380_v19  ;;  %1906 = vmatprep.subr.bf16.mxu1 %v3388_v23  ;;  %v3431_v19 = vld [vmem:[%s4630_s1 + $0x5e8] ss:$16 sps:$4 sm:$0xff]  }
  0xd3   :  { %2400 = vmatprep.subr.bf16.mxu0 %v3484_v28  ;;  %v3434_v23 = vld [vmem:[%s4630_s1 + $0x608] ss:$16 sps:$4 sm:$0xff]  }
  0xd4   :  { %1896 = vmatmul.mubr.bf16.vlgmr.msra.gmra.mrb[4].mxu1 %v3916_v9  ;;  %v3490_v9 = vld [vmem:[#allocation2 + $0x24] ss:$8 sps:$4 sm:$0xff]   ;;  %v3440_v28 = vld [vmem:[%s4630_s1 + $0x648] ss:$16 sps:$4 sm:$0xff]  }
  0xd5   :  { %1810 = vmatmul.mubr.bf16.vlgmr.msra.gmra.mrb[0].mxu0 %v4343_v26  ;;  %1907 = vmatpush1.bf16.msra.mxu1 %v3386_v24  ;;  %v3439_v24 = vld [vmem:[%s4630_s1 + $0x62c] ss:$16 sps:$4 sm:$0xff]  }
  0xd6   :  { %1938 = vmatprep.mubr.bf16.mxu1 %v4010_v38  ;;  %1908 = vmatprep.subr.bf16.mxu1 %v3391_v8  ;;  %v3397_v38 = vld [vmem:[%s4630_s1 + $0x46c] ss:$16 sps:$4 sm:$0xff]   ;;  %v3437_v8 = vld [vmem:[%s4630_s1 + $0x628] ss:$16 sps:$4 sm:$0xff]  }
  0xd7   :  { %2401 = vmatpush1.bf16.msra.mxu0 %v3482_v27  ;;  %v3442_v27 = vld [vmem:[%s4630_s1 + $0x64c] ss:$16 sps:$4 sm:$0xff]  }
  0xd8   :  { %2402 = vmatprep.subr.bf16.mxu0 %v3487_v21  ;;  %v3446_v21 = vld [vmem:[%s4630_s1 + $0x688] ss:$16 sps:$4 sm:$0xff]  }
  0xd9   :  { %1909 = vmatpush1.bf16.msra.mxu1 %v3389_v29  ;;  %v3448_v29 = vld [vmem:[%s4630_s1 + $0x68c] ss:$16 sps:$4 sm:$0xff]  }
  0xda   :  { %1910 = vmatprep.subr.bf16.mxu1 %v3394_v22  ;;  %v3451_v22 = vld [vmem:[%s4630_s1 + $0x6ac] ss:$16 sps:$4 sm:$0xff]  }
  0xdb   :  { %2403 = vmatpush1.bf16.msra.mxu0 %v3485_v55  ;;  %v3449_v55 = vld [vmem:[%s4630_s1 + $0x6a8] ss:$16 sps:$4 sm:$0xff]  }
  0xdc   :  { %2404 = vmatprep.subr.bf16.mxu0 %v3490_v9  ;;  %v3454_v9 = vld [vmem:[%s4630_s1 + $0x6cc] ss:$16 sps:$4 sm:$0xff]  }
  0xdd   :  { %1911 = vmatpush1.bf16.msra.mxu1 %v3392_v30 }
  0xde   :  { %1912 = vmatprep.subr.bf16.mxu1 %v3397_v38 }
  0xdf   :  { %2405 = vmatpush1.bf16.msra.mxu0 %v3488_v31  ;;  %v3526_v31 = vld [vmem:[#allocation2 + $0xe4] ss:$8 sps:$4 sm:$0xff]  }
  0xe0   :  { %2406 = vmatprep.subr.bf16.mxu0 %v3493_v34  ;;  %v3524_v34 = vld [vmem:[#allocation2 + $0xe0] ss:$8 sps:$4 sm:$0xff]  }
  0xe1   :  { %1913 = vmatpush1.bf16.msra.mxu1 %v3395_v32 }
  0xe2   :  { %1914 = vmatprep.subr.bf16.mxu1 %v3400_v33  ;;  %v3452_v33 = vld [vmem:[%s4630_s1 + $0x6c8] ss:$16 sps:$4 sm:$0xff]  }
  0xe3   :  { %2407 = vmatpush1.bf16.msra.mxu0 %v3491_v35 }
  0xe4   :  { %2408 = vmatprep.subr.bf16.mxu0 %v3496_v36  ;;  %v3457_v36 = vld [vmem:[%s4630_s1 + $0x6ec] ss:$16 sps:$4 sm:$0xff]  }
  0xe5   :  { %1915 = vmatpush1.bf16.msra.mxu1 %v3398_v37  ;;  %v3529_v37 = vld [vmem:[#allocation2 + $0xf4] ss:$8 sps:$4 sm:$0xff]  }
  0xe6   :  { %1916 = vmatprep.subr.bf16.mxu1 %v3403_v39  ;;  %v3455_v39 = vld [vmem:[%s4630_s1 + $0x6e8] ss:$16 sps:$4 sm:$0xff]  }
  0xe7   :  { %2409 = vmatpush1.bf16.msra.mxu0 %v3494_v40  ;;  %v3527_v40 = vld [vmem:[#allocation2 + $0xf0] ss:$8 sps:$4 sm:$0xff]  }
  0xe8   :  { %2410 = vmatprep.subr.bf16.mxu0 %v3499_v41  ;;  %v3460_v41 = vld [vmem:[%s4630_s1 + $0x70c] ss:$16 sps:$4 sm:$0xff]  }
  0xe9   :  { %1917 = vmatpush1.bf16.msra.mxu1 %v3401_v42  ;;  %v3458_v42 = vld [vmem:[%s4630_s1 + $0x708] ss:$16 sps:$4 sm:$0xff]  }
  0xea   :  { %1918 = vmatprep.subr.bf16.mxu1 %v3406_v43  ;;  %v3463_v43 = vld [vmem:[%s4630_s1 + $0x72c] ss:$16 sps:$4 sm:$0xff]  }
  0xeb   :  { %2411 = vmatpush1.bf16.msra.mxu0 %v3497_v44  ;;  %v3532_v44 = vld [vmem:[#allocation2 + $0x104] ss:$8 sps:$4 sm:$0xff]  }
  0xec   :  { %2412 = vmatprep.subr.bf16.mxu0 %v3502_v45  ;;  %v3461_v45 = vld [vmem:[%s4630_s1 + $0x728] ss:$16 sps:$4 sm:$0xff]  }
  0xed   :  { %1919 = vmatpush1.bf16.msra.mxu1 %v3404_v46  ;;  %v3466_v46 = vld [vmem:[%s4630_s1 + $0x74c] ss:$16 sps:$4 sm:$0xff]  }
  0xee   :  { %1920 = vmatprep.subr.bf16.mxu1 %v3409_v47  ;;  %v3464_v47 = vld [vmem:[%s4630_s1 + $0x748] ss:$16 sps:$4 sm:$0xff]  }
  0xef   :  { %2413 = vmatpush1.bf16.msra.mxu0 %v3500_v48  ;;  %v3469_v48 = vld [vmem:[%s4630_s1 + $0x76c] ss:$16 sps:$4 sm:$0xff]  }
  0xf0   :  { %2414 = vmatprep.subr.bf16.mxu0 %v3505_v49  ;;  %v3467_v49 = vld [vmem:[%s4630_s1 + $0x768] ss:$16 sps:$4 sm:$0xff]  }
  0xf1   :  { %1921 = vmatpush1.bf16.msra.mxu1 %v3407_v50  ;;  %v3472_v50 = vld [vmem:[%s4630_s1 + $0x78c] ss:$16 sps:$4 sm:$0xff]  }
  0xf2   :  { %1922 = vmatprep.subr.bf16.mxu1 %v3412_v51  ;;  %v3470_v51 = vld [vmem:[%s4630_s1 + $0x788] ss:$16 sps:$4 sm:$0xff]  }
  0xf3   :  { %2415 = vmatpush1.bf16.msra.mxu0 %v3503_v52  ;;  %v3475_v52 = vld [vmem:[%s4630_s1 + $0x7ac] ss:$16 sps:$4 sm:$0xff]  }
  0xf4   :  { %2416 = vmatprep.subr.bf16.mxu0 %v3508_v53  ;;  %v3473_v53 = vld [vmem:[%s4630_s1 + $0x7a8] ss:$16 sps:$4 sm:$0xff]  }
  0xf5   :  { %1923 = vmatpush1.bf16.msra.mxu1 %v3410_v54  ;;  %v3478_v54 = vld [vmem:[%s4630_s1 + $0x7cc] ss:$16 sps:$4 sm:$0xff]  }
  0xf6   :  { %1924 = vmatprep.subr.bf16.mxu1 %v3415_v56  ;;  %v3476_v56 = vld [vmem:[%s4630_s1 + $0x7c8] ss:$16 sps:$4 sm:$0xff]  }
  0xf7   :  { %2417 = vmatpush1.bf16.msra.mxu0 %v3506_v57  ;;  %v3481_v57 = vld [vmem:[%s4630_s1 + $0x7ec] ss:$16 sps:$4 sm:$0xff]  }
  0xf8   :  { %2418 = vmatprep.subr.bf16.mxu0 %v3511_v58  ;;  %v3479_v58 = vld [vmem:[%s4630_s1 + $0x7e8] ss:$16 sps:$4 sm:$0xff]  }
  0xf9   :  { %1925 = vmatpush1.bf16.msra.mxu1 %v3413_v59  ;;  %v308_v59 = vlaneseq }
  0xfa   :  { %1926 = vmatprep.subr.bf16.mxu1 %v3418_v60 }
  0xfb   :  { %2419 = vmatpush1.bf16.msra.mxu0 %v3509_v61  ;;  %v4537_v60 = vshrl.u32 %v308_v59, 7  ;;  %v3572_v59 = vld [vmem:[#allocation2 + $0x1e0] ss:$8 sps:$4 sm:$0xff]  }
  0xfc   :  { %2420 = vmatprep.subr.bf16.mxu0 %v3514_v62  ;;  %v4543_v62 = vld [vmem:[%s4631_s2] sm:$0xf] }
  0xfd   :  { %1927 = vmatpush1.bf16.msra.mxu1 %v3416_v63  ;;  %v310_v61 = vsub.s32 0, %v4537_v60  ;;  %v314_v63 = vsub.s32 1, %v4537_v60 }
  0xfe   :  { %1928 = vmatprep.subr.bf16.mxu1 %v3421_v0 }
  0xff   :  { %2421 = vmatpush1.bf16.msra.mxu0 %v3512_v1  ;;  %v311_v0 = vrot.slane %v4543_v62, %v310_v61 }
 0x100   :  { %2422 = vmatprep.subr.bf16.mxu0 %v3517_v2 }
 0x101   :  { %1929 = vmatpush1.bf16.msra.mxu1 %v3419_v3 }
 0x102   :  { %1930 = vmatprep.subr.bf16.mxu1 %v3424_v4 }
 0x103   :  { %2423 = vmatpush1.bf16.msra.mxu0 %v3515_v5 }
 0x104   :  { %2424 = vmatprep.subr.bf16.mxu0 %v3520_v6 }
 0x105   :  { %1931 = vmatpush1.bf16.msra.mxu1 %v3422_v7 }
 0x106   :  { %1932 = vmatprep.subr.bf16.mxu1 %v3427_v10 }
 0x107   :  { %2425 = vmatpush1.bf16.msra.mxu0 %v3518_v11 }
 0x108   :  { %2426 = vmatprep.subr.bf16.mxu0 %v3523_v12 }
 0x109   :  { %1933 = vmatpush1.bf16.msra.mxu1 %v3425_v13 }
 0x10a   :  { %1934 = vmatprep.subr.bf16.mxu1 %v3430_v14 }
 0x10b   :  { %2427 = vmatpush1.bf16.msra.mxu0 %v3521_v15 }
 0x10c   :  { %2428 = vmatprep.subr.bf16.mxu0 %v3526_v31  ;;  %v3539_v31 = vld [vmem:[#allocation2 + $0x130] ss:$8 sps:$4 sm:$0xff]  }
 0x10d   :  { %1935 = vmatpush1.bf16.msra.mxu1 %v3428_v17 }
 0x10e   :  { %1936 = vmatprep.subr.bf16.mxu1 %v3433_v18 }
 0x10f   :  { %2429 = vmatpush1.bf16.msra.mxu0 %v3524_v34  ;;  %v3586_v34 = vld [vmem:[%s4634_s5 + $0x60] sm:$0xff]  }
 0x110   :  { %2430 = vmatprep.subr.bf16.mxu0 %v3529_v37  ;;  %v3587_v37 = vld [vmem:[%s4634_s5 + $0x20] sm:$0xff]  }
 0x111   :  { %1937 = vmatpush1.bf16.msra.mxu1 %v3431_v19 }
 0x112   :  { %1949 = vmatprep.subr.bf16.mxu1 %v3436_v20 }
 0x113   :  { %2431 = vmatpush1.bf16.msra.mxu0 %v3527_v40  ;;  %v3545_v40 = vld [vmem:[#allocation2 + $0x150] ss:$8 sps:$4 sm:$0xff]  }
 0x114   :  { %1939 = vmatmul.mubr.bf16.vlgmr.msra.gmra.mrb[4].mxu1 %v4129_v16  ;;  %v3445_v16 = vld [vmem:[%s4630_s1 + $0x66c] ss:$16 sps:$4 sm:$0xff]   ;;  %2443 = vmatprep.subr.bf16.mxu0 %v3532_v44  ;;  %v3551_v44 = vld [vmem:[#allocation2 + $0x170] ss:$8 sps:$4 sm:$0xff]  }
 0x115   :  { %1950 = vmatpush1.bf16.msra.mxu1 %v3434_v23  ;;  %1981 = vmatprep.mubr.bf16.mxu1 %v4163_v25  ;;  %v3443_v25 = vld [vmem:[%s4630_s1 + $0x668] ss:$16 sps:$4 sm:$0xff]  }
 0x116   :  { %1951 = vmatprep.subr.bf16.mxu1 %v3439_v24  ;;  %v3530_v24 = vld [vmem:[#allocation2 + $0x100] ss:$8 sps:$4 sm:$0xff]  }
 0x119   :  { %1952 = vmatpush1.bf16.msra.mxu1 %v3437_v8  ;;  %v3535_v8 = vld [vmem:[#allocation2 + $0x114] ss:$8 sps:$4 sm:$0xff]  }
 0x11a   :  { %1953 = vmatprep.subr.bf16.mxu1 %v3442_v27  ;;  %v3578_v27 = vld [vmem:[%s4634_s5 + $0x40] sm:$0xff]  }
 0x11d   :  { %1954 = vmatpush1.bf16.msra.mxu1 %v3440_v28  ;;  %v3579_v28 = vld [vmem:[%s4634_s5] sm:$0xff]  }
 0x11e   :  { %1955 = vmatprep.subr.bf16.mxu1 %v3445_v16  ;;  %v3580_v16 = vld [vmem:[%s4634_s5 + $0x48] sm:$0xff]  }
 0x121   :  { %1956 = vmatpush1.bf16.msra.mxu1 %v3443_v25  ;;  %v3533_v25 = vld [vmem:[#allocation2 + $0x110] ss:$8 sps:$4 sm:$0xff]  }
 0x122   :  { %1957 = vmatprep.subr.bf16.mxu1 %v3448_v29  ;;  %v3538_v29 = vld [vmem:[#allocation2 + $0x124] ss:$8 sps:$4 sm:$0xff]  }
 0x125   :  { %1958 = vmatpush1.bf16.msra.mxu1 %v3446_v21  ;;  %v3581_v21 = vld [vmem:[%s4634_s5 + $0x8] sm:$0xff]  }
 0x126   :  { %1959 = vmatprep.subr.bf16.mxu1 %v3451_v22  ;;  %v3582_v22 = vld [vmem:[%s4634_s5 + $0x50] sm:$0xff]  }
 0x127   :  { %v1682_v30 = vpop.f32.mrb[0].mxu1 }
 0x128   :  { %v1684_v38 = vpop.f32.mrb[1].mxu1  ;;  %v1683_v1 = vadd.f32 %v1682_v30, %v311_v0  ;;  %v3583_v30 = vld [vmem:[%s4634_s5 + $0x10] sm:$0xff]  }
 0x129   :  { %v1686_v32 = vpop.f32.mrb[2].mxu1  ;;  %1960 = vmatpush1.bf16.msra.mxu1 %v3449_v55  ;;  %v3536_v55 = vld [vmem:[#allocation2 + $0x120] ss:$8 sps:$4 sm:$0xff]  }
 0x12a   :  { %v1688_v35 = vpop.f32.mrb[3].mxu1  ;;  %1961 = vmatprep.subr.bf16.mxu1 %v3454_v9  ;;  %v1687_v4 = vadd.f32 %v1686_v32, %v311_v0  ;;  %v3541_v9 = vld [vmem:[#allocation2 + $0x134] ss:$8 sps:$4 sm:$0xff]   ;;  %v3544_v32 = vld [vmem:[#allocation2 + $0x144] ss:$8 sps:$4 sm:$0xff]  }
 0x12b   :  { %v3577_v0 = vld [vmem:[#allocation2 + $0x1f4] ss:$8 sps:$4 sm:$0xff]  }
 0x12d   :  { %1962 = vmatpush1.bf16.msra.mxu1 %v3452_v33  ;;  %v3585_v33 = vld [vmem:[%s4634_s5 + $0x18] sm:$0xff]  }
 0x12e   :  { %1963 = vmatprep.subr.bf16.mxu1 %v3457_v36  ;;  %v3547_v36 = vld [vmem:[#allocation2 + $0x154] ss:$8 sps:$4 sm:$0xff]  }
 0x131   :  { %1964 = vmatpush1.bf16.msra.mxu1 %v3455_v39  ;;  %v3588_v39 = vld [vmem:[%s4634_s5 + $0x68] sm:$0xff]  }
 0x132   :  { %1965 = vmatprep.subr.bf16.mxu1 %v3460_v41  ;;  %v3550_v41 = vld [vmem:[#allocation2 + $0x164] ss:$8 sps:$4 sm:$0xff]  }
 0x135   :  { %1966 = vmatpush1.bf16.msra.mxu1 %v3458_v42  ;;  %v3548_v42 = vld [vmem:[#allocation2 + $0x160] ss:$8 sps:$4 sm:$0xff]  }
 0x136   :  { %1967 = vmatprep.subr.bf16.mxu1 %v3463_v43  ;;  %v3553_v43 = vld [vmem:[#allocation2 + $0x174] ss:$8 sps:$4 sm:$0xff]  }
 0x139   :  { %1968 = vmatpush1.bf16.msra.mxu1 %v3461_v45  ;;  %v3556_v45 = vld [vmem:[#allocation2 + $0x184] ss:$8 sps:$4 sm:$0xff]  }
 0x13a   :  { %1969 = vmatprep.subr.bf16.mxu1 %v3466_v46  ;;  %v3554_v46 = vld [vmem:[#allocation2 + $0x180] ss:$8 sps:$4 sm:$0xff]  }
 0x13d   :  { %1970 = vmatpush1.bf16.msra.mxu1 %v3464_v47  ;;  %v3559_v47 = vld [vmem:[#allocation2 + $0x194] ss:$8 sps:$4 sm:$0xff]  }
 0x13e   :  { %1971 = vmatprep.subr.bf16.mxu1 %v3469_v48  ;;  %v3557_v48 = vld [vmem:[#allocation2 + $0x190] ss:$8 sps:$4 sm:$0xff]  }
 0x141   :  { %1972 = vmatpush1.bf16.msra.mxu1 %v3467_v49  ;;  %v3562_v49 = vld [vmem:[#allocation2 + $0x1a4] ss:$8 sps:$4 sm:$0xff]  }
 0x142   :  { %1973 = vmatprep.subr.bf16.mxu1 %v3472_v50  ;;  %v3560_v50 = vld [vmem:[#allocation2 + $0x1a0] ss:$8 sps:$4 sm:$0xff]  }
 0x145   :  { %1974 = vmatpush1.bf16.msra.mxu1 %v3470_v51  ;;  %v3565_v51 = vld [vmem:[#allocation2 + $0x1b4] ss:$8 sps:$4 sm:$0xff]  }
 0x146   :  { %1975 = vmatprep.subr.bf16.mxu1 %v3475_v52  ;;  %v3563_v52 = vld [vmem:[#allocation2 + $0x1b0] ss:$8 sps:$4 sm:$0xff]  }
 0x149   :  { %1976 = vmatpush1.bf16.msra.mxu1 %v3473_v53  ;;  %v3568_v53 = vld [vmem:[#allocation2 + $0x1c4] ss:$8 sps:$4 sm:$0xff]  }
 0x14a   :  { %1977 = vmatprep.subr.bf16.mxu1 %v3478_v54  ;;  %v3566_v54 = vld [vmem:[#allocation2 + $0x1c0] ss:$8 sps:$4 sm:$0xff]  }
 0x14d   :  { %1978 = vmatpush1.bf16.msra.mxu1 %v3476_v56  ;;  %v3571_v56 = vld [vmem:[#allocation2 + $0x1d4] ss:$8 sps:$4 sm:$0xff]  }
 0x14e   :  { %1979 = vmatprep.subr.bf16.mxu1 %v3481_v57  ;;  %v3569_v57 = vld [vmem:[#allocation2 + $0x1d0] ss:$8 sps:$4 sm:$0xff]  }
 0x151   :  { %1980 = vmatpush1.bf16.msra.mxu1 %v3479_v58  ;;  %v3574_v58 = vld [vmem:[#allocation2 + $0x1e4] ss:$8 sps:$4 sm:$0xff]  }
 0x152   :  { %3032 = vmatprep.subr.bf16.mxu1 %v3578_v27  ;;  %v3592_v27 = vld [vmem:[%s4634_s5 + $0x78] sm:$0xff]  }
 0x154   :  { %1982 = vmatmul.mubr.bf16.vlgmr.msra.gmra.mrb[4].mxu1 %v4343_v26  ;;  %v315_v26 = vrot.slane %v4543_v62, %v314_v63 }
 0x155   :  { %3033 = vmatpush3.bf16.msra.mxu1 %v3579_v28  ;;  %v3593_v28 = vld [vmem:[%s4634_s5 + $0x38] sm:$0xff]  }
 0x156   :  { %v1685_v2 = vadd.f32 %v1684_v38, %v315_v26  ;;  %v1689_v7 = vadd.f32 %v1688_v35, %v315_v26  ;;  %3034 = vmatprep.subr.bf16.mxu1 %v3580_v16  ;;  %v3584_v38 = vld [vmem:[%s4634_s5 + $0x58] sm:$0xff]   ;;  %v3542_v35 = vld [vmem:[#allocation2 + $0x140] ss:$8 sps:$4 sm:$0xff]  }
 0x157   :  { %v3575_v26 = vld [vmem:[#allocation2 + $0x1f0] ss:$8 sps:$4 sm:$0xff]   ;;  %v2068_v16 = vld [vmem:[%s4633_s4] sm:$0x3] }
 0x159   :  { %3035 = vmatpush3.bf16.msra.mxu1 %v3581_v21 }
 0x15a   :  { %3036 = vmatprep.subr.bf16.mxu1 %v3582_v22 }
 0x15d   :  { %3037 = vmatpush3.bf16.msra.mxu1 %v3583_v30 }
 0x15e   :  { %3038 = vmatprep.subr.bf16.mxu1 %v3584_v38 }
 0x161   :  { %3039 = vmatpush3.bf16.msra.mxu1 %v3585_v33 }
 0x162   :  { %3040 = vmatprep.subr.bf16.mxu1 %v3586_v34 }
 0x165   :  { %3041 = vmatpush3.bf16.msra.mxu1 %v3587_v37 }
 0x166   :  { %3042 = vmatprep.subr.bf16.mxu1 %v3588_v39 }
 0x1a8   :  { %v1811_v3 = vpop.f32.mrb[0].mxu0 }
 0x1a9   :  { %v3055_v5 = vadd.f32 %v1811_v3, %v1683_v1  ;;  %v1813_v6 = vpop.f32.mrb[1].mxu0  ;;  %v318_v1 = vsub.s32 2, %v4537_v60 }
 0x1aa   :  { %v3057_v10 = vadd.f32 %v1813_v6, %v1685_v2  ;;  %v1815_v11 = vpop.f32.mrb[2].mxu0  ;;  %v322_v2 = vsub.s32 3, %v4537_v60  ;;  %v3015_v60 = vld [vmem:[%s4635_s6] ss:$0 sm:$0xff] }
 0x1ab   :  { %v3059_v12 = vadd.f32 %v1815_v11, %v1687_v4  ;;  %v1817_v13 = vpop.f32.mrb[3].mxu0  ;;  %v1992_v15 = vmax.f32 %v3055_v5, 0.0  ;;  %v319_v3 = vrot.slane %v4543_v62, %v318_v1 }
 0x1ac   :  { %v3061_v14 = vadd.f32 %v1817_v13, %v1689_v7  ;;  %v1993_v18 = vmax.f32 %v3057_v10, 0.0  ;;  %v323_v4 = vrot.slane %v4543_v62, %v322_v2  ;;  %v3589_v62 = vld [vmem:[%s4634_s5 + $0x28] sm:$0xff]  }
 0x1ad   :  { %v1996_v17 = vmax.f32 %v3059_v12, 0.0  ;;  %3043 = vmatpush3.bf16.msra.mxu1 %v3589_v62 }
 0x1ae   :  { %v1997_v19 = vmax.f32 %v3061_v14, 0.0 }
 0x1af   :  { %v2000_v20 = vpack.c.bf16 %v1996_v17, %v1992_v15 }
 0x1b0   :  { %v2001_v23 = vpack.c.bf16 %v1997_v19, %v1993_v18 }
 0x1b2   :  { %2432 = vmatprep.mubr.bf16.mxu0 %v2001_v23 }
 0x1b3   :  { %2433 = vmatmul.mubr.bf16.vlgmr.msra.gmra.mrb[4].mxu0 %v2000_v20 }
 0x1b4   :  { %2444 = vmatpush1.bf16.msra.mxu0 %v3530_v24  ;;  %v3590_v24 = vld [vmem:[%s4634_s5 + $0x70] sm:$0xff]  }
 0x1b5   :  { %2445 = vmatprep.subr.bf16.mxu0 %v3535_v8  ;;  %v3591_v8 = vld [vmem:[%s4634_s5 + $0x30] sm:$0xff]   ;;  %3044 = vmatprep.subr.bf16.mxu1 %v3590_v24 }
 0x1b6   :  { %3045 = vmatpush3.bf16.msra.mxu1 %v3591_v8 }
 0x1b7   :  { %3046 = vmatprep.subr.bf16.mxu1 %v3592_v27 }
 0x1b8   :  { %2446 = vmatpush1.bf16.msra.mxu0 %v3533_v25  ;;  %v2073_v25 = vrot.slane %v2068_v16, %v310_v61 }
 0x1b9   :  { %2447 = vmatprep.subr.bf16.mxu0 %v3538_v29  ;;  %v2077_v29 = vrot.slane %v2068_v16, %v314_v63 }
 0x1ba   :  { %3047 = vmatpush3.bf16.msra.mxu1 %v3593_v28 }
 0x1bc   :  { %2448 = vmatpush1.bf16.msra.mxu0 %v3536_v55 }
 0x1bd   :  { %2449 = vmatprep.subr.bf16.mxu0 %v3541_v9 }
 0x1c0   :  { %2450 = vmatpush1.bf16.msra.mxu0 %v3539_v31 }
 0x1c1   :  { %2451 = vmatprep.subr.bf16.mxu0 %v3544_v32 }
 0x1c4   :  { %2452 = vmatpush1.bf16.msra.mxu0 %v3542_v35 }
 0x1c5   :  { %2453 = vmatprep.subr.bf16.mxu0 %v3547_v36 }
 0x1c8   :  { %2454 = vmatpush1.bf16.msra.mxu0 %v3545_v40 }
 0x1c9   :  { %2455 = vmatprep.subr.bf16.mxu0 %v3550_v41 }
 0x1cc   :  { %2456 = vmatpush1.bf16.msra.mxu0 %v3548_v42 }
 0x1cd   :  { %2457 = vmatprep.subr.bf16.mxu0 %v3553_v43 }
 0x1d0   :  { %2458 = vmatpush1.bf16.msra.mxu0 %v3551_v44 }
 0x1d1   :  { %2459 = vmatprep.subr.bf16.mxu0 %v3556_v45 }
 0x1d4   :  { %2460 = vmatpush1.bf16.msra.mxu0 %v3554_v46 }
 0x1d5   :  { %2461 = vmatprep.subr.bf16.mxu0 %v3559_v47 }
 0x1d8   :  { %2462 = vmatpush1.bf16.msra.mxu0 %v3557_v48 }
 0x1d9   :  { %2463 = vmatprep.subr.bf16.mxu0 %v3562_v49 }
 0x1dc   :  { %2464 = vmatpush1.bf16.msra.mxu0 %v3560_v50 }
 0x1dd   :  { %2465 = vmatprep.subr.bf16.mxu0 %v3565_v51 }
 0x1e0   :  { %2466 = vmatpush1.bf16.msra.mxu0 %v3563_v52 }
 0x1e1   :  { %2467 = vmatprep.subr.bf16.mxu0 %v3568_v53 }
 0x1e4   :  { %2468 = vmatpush1.bf16.msra.mxu0 %v3566_v54 }
 0x1e5   :  { %2469 = vmatprep.subr.bf16.mxu0 %v3571_v56 }
 0x1e8   :  { %2470 = vmatpush1.bf16.msra.mxu0 %v3569_v57 }
 0x1e9   :  { %2471 = vmatprep.subr.bf16.mxu0 %v3574_v58 }
 0x1ec   :  { %2472 = vmatpush1.bf16.msra.mxu0 %v3572_v59 }
 0x1ed   :  { %2473 = vmatprep.subr.bf16.mxu0 %v3577_v0 }
 0x1f0   :  { %2474 = vmatpush1.bf16.msra.mxu0 %v3575_v26 }
 0x227   :  { %v1983_v5 = vpop.f32.mrb[4].mxu1 }
 0x228   :  { %v3062_v6 = vadd.f32 %v1983_v5, %v319_v3  ;;  %v1985_v7 = vpop.f32.mrb[5].mxu1 }
 0x229   :  { %v3063_v10 = vadd.f32 %v1985_v7, %v323_v4  ;;  %v1987_v11 = vpop.f32.mrb[6].mxu1 }
 0x22a   :  { %v3064_v12 = vadd.f32 %v1987_v11, %v319_v3  ;;  %v1989_v13 = vpop.f32.mrb[7].mxu1  ;;  %v1994_v15 = vmax.f32 %v3062_v6, 0.0 }
 0x22b   :  { %v3065_v14 = vadd.f32 %v1989_v13, %v323_v4  ;;  %v1995_v18 = vmax.f32 %v3063_v10, 0.0 }
 0x22c   :  { %v1998_v17 = vmax.f32 %v3064_v12, 0.0 }
 0x22d   :  { %v1999_v19 = vmax.f32 %v3065_v14, 0.0 }
 0x22e   :  { %v2002_v20 = vpack.c.bf16 %v1998_v17, %v1994_v15 }
 0x22f   :  { %v2003_v23 = vpack.c.bf16 %v1999_v19, %v1995_v18 }
 0x231   :  { %2475 = vmatprep.mubr.bf16.mxu0 %v2003_v23 }
 0x232   :  { %2476 = vmatmul.mubr.bf16.vlgmr.msra.gmra.mrb[4].mxu0 %v2002_v20 }
 0x305   :  { %v2477_v21 = vpop.f32.mrb[4].mxu0 }
 0x306   :  { %v3066_v22 = vadd.f32 %v2477_v21, %v2073_v25  ;;  %v2479_v55 = vpop.f32.mrb[5].mxu0 }
 0x307   :  { %v3067_v9 = vadd.f32 %v2479_v55, %v2077_v29  ;;  %v2481_v30 = vpop.f32.mrb[6].mxu0 }
 0x308   :  { %v3068_v38 = vadd.f32 %v2481_v30, %v2073_v25  ;;  %v2483_v31 = vpop.f32.mrb[7].mxu0  ;;  %v2486_v33 = vmax.f32 %v3066_v22, 0.0 }
 0x309   :  { %v3069_v32 = vadd.f32 %v2483_v31, %v2077_v29  ;;  %v2487_v35 = vmax.f32 %v3067_v9, 0.0 }
 0x30a   :  { %v2488_v34 = vmax.f32 %v3068_v38, 0.0 }
 0x30b   :  { %v2489_v36 = vmax.f32 %v3069_v32, 0.0 }
 0x30c   :  { %v2490_v37 = vpack.c.bf16 %v2488_v34, %v2486_v33 }
 0x30d   :  { %v2491_v39 = vpack.c.bf16 %v2489_v36, %v2487_v35 }
 0x30f   :  { %2659 = vmatprep.mubr.bf16.mxu1 %v2491_v39 }
 0x310   :  { %2660 = vmatmul.mubr.bf16.vlgmr.msra.gmra.mrb[8].mxu1 %v2490_v37 }
 0x3e3   :  { %v3048_v61 = vpop.f32.mrb[8].mxu1 }
 0x3e4   :  { %v3049_v63 = vpop.f32.mrb[9].mxu1 }
 0x3e5   :  { %v3050_v40 = vadd.f32 %v3049_v63, %v3048_v61  ;;  %v3051_v41 = vpop.f32.mrb[10].mxu1 }
 0x3e6   :  { %v3052_v42 = vpop.f32.mrb[11].mxu1 }
 0x3e7   :  { %v2662_v43 = vadd.f32 %v3050_v40, %v3015_v60  ;;  %v3053_v44 = vadd.f32 %v3052_v42, %v3051_v41 }
 0x3e9   :  { %2668 = vst [vmem:[#allocation5] sm:$0xff] %v2662_v43  ;;  %v2665_v45 = vadd.f32 %v3053_v44, %v3015_v60 }
 0x3eb   :  { %2669 = vst [vmem:[#allocation5 + $0x8] sm:$0xff] %v2665_v45 }
 0x3ec   :  { %3627 = shalt.err (!%p3624_p12)
}
 0x3ed   :  { %s3628_s0 = scalar_lea.hbm %s4636_s7, 256 }
 0x3ee   :  { %p3629_p13 = scmp.ne.s32.totalorder %s4636_s7, %s3628_s0  ;;  %p3632_p0 = scmp.lt.u32.totalorder %s3628_s0, %s4636_s7 }
 0x3f0   :  { %p3634_p1 = pnand %p3632_p0, %p3629_p13 }
 0x3f2   :  { %3637 = shalt.err (!%p3634_p1)
}
 0x3f3   :  { %2681 = dma.vmem_to_hbm [thread:$0]  %s2676_s14, 256, %s4636_s7, [#allocation4], %s3643_s11, %s3643_s11, %s3644_s12  }
 0x3f4   :  { %3640 = dma.done.wait [#allocation4], 256  }
 0x3f5   :  { %3641 = vsyncadd [#allocation4], 4294967040 }
 0x3f6   :  { %2685 = vsyncpa [#allocation3], 1 }
 0x3f7   :  { %2686 = vsyncpa [#allocation4], 1 }

// kernel: cnn_forward.2
= control target key start
LH: loop header
LB: loop body
LE: loop exit
PB: predicated region body
PF: predicated region fallthrough
CT: control target
= control target key end

     0   :  { %s6408_s18 = smov 0   ;;  %s11102_s0 = inlined_call_operand.vmem [shape: f32[16,1,784], index: 0, kind: input, shape index: {}]   ;;  %s11103_s1 = inlined_call_operand.vmem [shape: f32[16,25], index: 1, kind: input, shape index: {}]   ;;  %s11104_s2 = inlined_call_operand.vmem [shape: f32[16,1], index: 2, kind: input, shape index: {}]   ;;  %s11105_s3 = inlined_call_operand.vmem [shape: bf16[64,400], index: 3, kind: input, shape index: {}]   ;;  %s11106_s4 = inlined_call_operand.vmem [shape: f32[64,1], index: 4, kind: input, shape index: {}]   ;;  %s11107_s5 = inlined_call_operand.vmem [shape: bf16[16,16,64], index: 5, kind: output, shape index: {}]  }
   0x1 LB: > { %s5600_s19 = sadd.s32 4294967295, %s6320_s18   ;;  %p5604_p0 = scmp.ge.s32.totalorder %s6320_s18, 1  ;;  %s6320_s18 = sphi %s6408_s18, %s15_s18  }
   0x2   : > { %p188_p1 = scmp.lt.s32.totalorder %s6320_s18, 3 }
   0x4   : > { %p189_p2 = pnand %p5604_p0, %p188_p1 }
   0x5   : > { %s5605_s20 = sshll.u32 (!%p189_p2), %s5600_s19, 3  ;;  %v6419_v0 = vld [vmem:[%s11103_s1] sm:$0xff] (!%p189_p2)  ;;  %v6424_v1 = vld [vmem:[%s11103_s1 + $0x8] sm:$0xff] (!%p189_p2)  ;;  %v243_v3 = vlaneseq (!%p189_p2)  ;;  %v6449_v7 = vld [vmem:[%s11106_s4 + $0x10] sm:$0xff] (!%p189_p2)  ;;  %s6527_s29 = smov (!%p189_p2), 0  }
   0x6   : > { %192 = sbr.rel (%p189_p2) target bundleno = 5038 (0x13ae), region = 40  ;;  %11352 = vst [vmem:[#allocation5_spill] sm:$0xff] (!%p189_p2), %v6419_v0  ;;  %11353 = vst [vmem:[#allocation6_spill] sm:$0xff] (!%p189_p2), %v6424_v1  ;;  %v6429_v2 = vld [vmem:[%s11104_s2] sm:$0xff] (!%p189_p2)  ;;  %p218_p3 = scmp.lt.s32.totalorder (!%p189_p2), %s5605_s20, 15  ;;  %v6434_v4 = vld [vmem:[%s11104_s2 + $0x8] sm:$0xff] (!%p189_p2) }
   0x7   : > { %11354 = vst [vmem:[#allocation7_spill] sm:$0xff] (!%p189_p2), %v6429_v2  ;;  %11355 = vst [vmem:[#allocation8_spill] sm:$0xff] (!%p189_p2), %v6434_v4  ;;  %v6439_v5 = vld [vmem:[%s11106_s4] sm:$0xff] (!%p189_p2)  ;;  %v6444_v6 = vld [vmem:[%s11106_s4 + $0x8] sm:$0xff] (!%p189_p2)  ;;  %v6461_v10 = vshrl.u32 (!%p189_p2), %v243_v3, 7  ;;  %v6463_v11 = vand.u32 (!%p189_p2), 127, %v243_v3 }
   0x8   : > { %11356 = vst [vmem:[#allocation9_spill] sm:$0xff] (!%p189_p2), %v6439_v5  ;;  %11357 = vst [vmem:[#allocation10_spill] sm:$0xff] (!%p189_p2), %v6444_v6  ;;  %v6454_v8 = vld [vmem:[%s11106_s4 + $0x18] sm:$0xff] (!%p189_p2)  ;;  %v6459_v9 = vld [vmem:[%s11106_s4 + $0x20] sm:$0xff] (!%p189_p2) }
   0x9   : > { %11358 = vst [vmem:[#allocation11_spill] sm:$0xff] (!%p189_p2), %v6449_v7  ;;  %11359 = vst [vmem:[#allocation12_spill] sm:$0xff] (!%p189_p2), %v6454_v8  ;;  %v6468_v12 = vld [vmem:[%s11106_s4 + $0x28] sm:$0xff] (!%p189_p2)  ;;  %v6473_v13 = vld [vmem:[%s11106_s4 + $0x30] sm:$0xff] (!%p189_p2)  ;;  %v6481_v15 = vadd.s32 (!%p189_p2), 8, %v6461_v10  ;;  %v6484_v16 = vadd.s32 (!%p189_p2), 16, %v6461_v10 }
   0xa   : > { %11360 = vst [vmem:[#allocation13_spill] sm:$0xff] (!%p189_p2), %v6459_v9  ;;  %11361 = vst [vmem:[#allocation14_spill] sm:$0xff] (!%p189_p2), %v6461_v10  ;;  %v6478_v14 = vld [vmem:[%s11106_s4 + $0x38] sm:$0xff] (!%p189_p2)  ;;  %v6487_v17 = vadd.s32 (!%p189_p2), 24, %v6461_v10  ;;  %v6490_v18 = vadd.s32 (!%p189_p2), 32, %v6461_v10  ;;  %v6493_v19 = vadd.s32 (!%p189_p2), 40, %v6461_v10 }
   0xb   : > { %11362 = vst [vmem:[#allocation15_spill] sm:$0xff] (!%p189_p2), %v6463_v11  ;;  %11363 = vst [vmem:[#allocation16_spill] sm:$0xff] (!%p189_p2), %v6468_v12  ;;  %v6496_v20 = vadd.s32 (!%p189_p2), 48, %v6461_v10  ;;  %v6499_v21 = vadd.s32 (!%p189_p2), 56, %v6461_v10 }
   0xc   : > { %11364 = vst [vmem:[#allocation17_spill] sm:$0xff] (!%p189_p2), %v6473_v13  ;;  %11365 = vst [vmem:[#allocation18_spill] sm:$0xff] (!%p189_p2), %v6478_v14 }
   0xd   : > { %s12387_s20 = smov (!%p218_p3, %s5605_s20), 15  ;;  %11366 = vst [vmem:[#allocation19_spill] sm:$0xff] %v6481_v15  ;;  %11367 = vst [vmem:[#allocation20_spill] sm:$0xff] %v6484_v16 }
   0xe   : > { %11368 = vst [vmem:[#allocation21_spill] sm:$0xff] %v6487_v17  ;;  %11369 = vst [vmem:[#allocation22_spill] sm:$0xff] %v6490_v18  ;;  %s5785_s22 = smul.u32 7, %s12387_s20  ;;  %s5660_s23 = sshll.u32 %s12387_s20, 3 }
   0xf   : > { %11370 = vst [vmem:[#allocation23_spill] sm:$0xff] %v6493_v19  ;;  %11371 = vst [vmem:[#allocation24_spill] sm:$0xff] %v6496_v20  ;;  %s6506_s26 = scalar_lea.vmem %s11107_s5, %s5660_s23 }
  0x10   : > { %11372 = vst [vmem:[#allocation25_spill] sm:$0xff] %v6499_v21  ;;  %s6519_s28 = scalar_lea.vmem %s11102_s0, %s5785_s22 }
  0x11 LB: >> { %v11373_v1 = vld [vmem:[#allocation6_spill] sm:$0xff]  ;;  %v11374_v0 = vld [vmem:[#allocation5_spill] sm:$0xff]  ;;  %v6326_v22 = vmov 1   ;;  %v11108_v23 = vmov 0   ;;  %v6328_v24 = vmov 2   ;;  %v6329_v25 = vmov 3   ;;  %s6324_s29 = sphi %s6527_s29, %s287_s29  }
  0x12   : >> { %v11375_v10 = vld [vmem:[#allocation14_spill] sm:$0xff]  ;;  %5855 = vset.pattern.permute.xlu0 %v6326_v22  ;;  %5854 = vset.pattern.permute.xlu1 %v11108_v23  ;;  %v6330_v26 = vmov 4   ;;  %v6331_v27 = vmov 5   ;;  %s288_s30 = smul.u32 7, %s6324_s29  ;;  %s6332_s7 = smov 127   ;;  %v6333_v44 = vmov 6  }
  0x13   : >> { %367 = vperm.xlu0 %5855, %v11374_v0   ;;  %303 = vperm.xlu1 %5854, %v11374_v0   ;;  %v314_v28 = vsub.s32 0, %v11375_v10  ;;  %v318_v29 = vsub.s32 1, %v11375_v10  ;;  %v322_v31 = vsub.s32 2, %v11375_v10  ;;  %v326_v32 = vsub.s32 3, %v11375_v10  ;;  %s6334_s8 = smov 126   ;;  %s6335_s9 = smov 125  }
  0x14   : >> { %s6547_s6 = scalar_lea.vmem %s6519_s28, %s288_s30  ;;  %v330_v37 = vsub.s32 4, %v11375_v10  ;;  %v334_v38 = vsub.s32 5, %v11375_v10  ;;  %s6336_s10 = smov 124   ;;  %v11610_v2 = vld [vmem:[#allocation7_spill] sm:$0xff]  ;;  %v11611_v4 = vld [vmem:[#allocation8_spill] sm:$0xff]  ;;  %vm422_vm8 = vcmask 1039360  }
  0x15   : >> { %v290_v30 = vld [vmem:[%s6547_s6] sm:$0x7f]  ;;  %s6337_s11 = smov 100   ;;  %s6339_s12 = smov 99   ;;  %vm513_vm9 = vcmask 1031168   ;;  %vm604_vm10 = vcmask 1022976  }
  0x16   : >> { %v6554_v33 = vrot.slane %v290_v30, %v314_v28  ;;  %v6556_v34 = vrot.slane %v290_v30, %v318_v29  ;;  %v6562_v39 = vrot.slane %v290_v30, %v322_v31  ;;  %v6564_v40 = vrot.slane %v290_v30, %v326_v32  ;;  %s6341_s13 = smov 98   ;;  %s6343_s14 = smov 97  }
  0x17   : >> { %308 = vperm.xlu1 %5854, %v11373_v1   ;;  %5858 = vset.pattern.permute.xlu0 %v6328_v24  ;;  %v6572_v45 = vrot.slane %v290_v30, %v330_v37  ;;  %v6574_v46 = vrot.slane %v290_v30, %v334_v38  ;;  %s6345_s15 = smov 96   ;;  %s6347_s16 = smov 72   ;;  %vm695_vm11 = vcmask 1014784   ;;  %vm786_vm12 = vcmask 818176  }
  0x18   : >> { %462 = vperm.xlu0 %5858, %v11373_v1   ;;  %s6349_s17 = smov 71   ;;  %s6351_s19 = smov 70   ;;  %vm877_vm13 = vcmask 809984   ;;  %vm968_vm14 = vcmask 801792   ;;  %vm1059_vm15 = vcmask 793600   ;;  %vm1150_vm7 = vcmask 785408  }
  0x19   : >> { %s6353_s21 = smov 69   ;;  %s6355_s22 = smov 68   ;;  %vm1241_vm6 = vcmask 588800   ;;  %vm1332_vm5 = vcmask 580608   ;;  %vm1423_vm4 = vcmask 572416   ;;  %vm1514_vm3 = vcmask 564224  }
  0x1a   : >> { %s6357_s23 = smov 44   ;;  %s6359_s24 = smov 43   ;;  %vm11329_vm2 = vcmask 556032   ;;  %vm11325_vm1 = vcmask 359424   ;;  %vm11326_vm0 = vcmask 351232  }
  0x1b   : >> { %5856 = vset.pattern.permute.xlu1 %v6326_v22  ;;  %s6361_s25 = smov 42   ;;  %s6363_s20 = smov 41  }
  0x1c   : >> { %371 = vperm.xlu1 %5856, %v11373_v1   ;;  %5859 = vset.pattern.permute.xlu0 %v6329_v25  ;;  %s6365_s27 = smov 40   ;;  %s6367_s30 = smov 16  }
  0x1d   : >> { %549 = vperm.xlu0 %5859, %v11374_v0  }
  0x20   : >> { %5857 = vset.pattern.permute.xlu1 %v6328_v24 }
  0x21   : >> { %458 = vperm.xlu1 %5857, %v11374_v0   ;;  %5862 = vset.pattern.permute.xlu0 %v6330_v26 }
  0x22   : >> { %644 = vperm.xlu0 %5862, %v11373_v1  }
  0x25   : >> { %5860 = vset.pattern.permute.xlu1 %v6329_v25 }
  0x26   : >> { %553 = vperm.xlu1 %5860, %v11373_v1   ;;  %5863 = vset.pattern.permute.xlu0 %v6331_v27 }
  0x27   : >> { %731 = vperm.xlu0 %5863, %v11374_v0  }
  0x2a   : >> { %5861 = vset.pattern.permute.xlu1 %v6330_v26 }
  0x2b   : >> { %640 = vperm.xlu1 %5861, %v11374_v0   ;;  %5866 = vset.pattern.permute.xlu0 %v6333_v44 }
  0x2f   : >> { %5864 = vset.pattern.permute.xlu1 %v6331_v27 }
  0x30   : >> { %735 = vperm.xlu1 %5864, %v11373_v1  }
  0x34   : >> { %5865 = vset.pattern.permute.xlu1 %v6333_v44 }
  0x92   : >> { %v368_v35 = vpop.permute.xlu0 %367  ;;  %v6558_v36 = vpop.permute.xlu1 %303 }
  0x93   : >> { %v375_v41 = vmul.f32 %v368_v35, %v6556_v34  ;;  %v374_v42 = vmul.f32 %v368_v35, %v6554_v33  ;;  %v377_v47 = vmul.f32 %v368_v35, %v6564_v40  ;;  %v376_v48 = vmul.f32 %v368_v35, %v6562_v39 }
  0x94   : >> { %v379_v50 = vmul.f32 %v368_v35, %v6574_v46  ;;  %v378_v51 = vmul.f32 %v368_v35, %v6572_v45 }
  0x95   : >> { %400 = vrot.lane.b32.xlu0 %v375_v41, %s6332_s7  ;;  %398 = vrot.lane.b32.xlu1 %v374_v42, %s6332_s7 }
  0x96   : >> { %v6570_v43 = vpop.permute.xlu1 %308 }
  0x97   : >> { %v463_v61 = vpop.permute.xlu0 %462 }
  0x98   : >> { %v471_v3 = vmul.f32 %v463_v61, %v6554_v33  ;;  %v473_v24 = vmul.f32 %v463_v61, %v6562_v39  ;;  %v475_v26 = vmul.f32 %v463_v61, %v6572_v45  ;;  %v472_v27 = vmul.f32 %v463_v61, %v6556_v34 }
  0x99   : >> { %404 = vrot.lane.b32.xlu0 %v377_v47, %s6332_s7  ;;  %402 = vrot.lane.b32.xlu1 %v376_v48, %s6332_s7  ;;  %v474_v30 = vmul.f32 %v463_v61, %v6564_v40  ;;  %v476_v32 = vmul.f32 %v463_v61, %v6574_v46 }
  0x9b   : >> { %v372_v49 = vpop.permute.xlu1 %371 }
  0x9c   : >> { %v381_v52 = vmul.f32 %v372_v49, %v6556_v34  ;;  %v380_v53 = vmul.f32 %v372_v49, %v6554_v33  ;;  %v383_v54 = vmul.f32 %v372_v49, %v6564_v40  ;;  %v382_v55 = vmul.f32 %v372_v49, %v6562_v39  ;;  %v550_v28 = vpop.permute.xlu0 %549 }
  0x9d   : >> { %408 = vrot.lane.b32.xlu0 %v379_v50, %s6332_s7  ;;  %406 = vrot.lane.b32.xlu1 %v378_v51, %s6332_s7  ;;  %v385_v57 = vmul.f32 %v372_v49, %v6574_v46  ;;  %v384_v58 = vmul.f32 %v372_v49, %v6572_v45  ;;  %v557_v29 = vmul.f32 %v550_v28, %v6556_v34 }
  0x9e   : >> { %v559_v31 = vmul.f32 %v550_v28, %v6564_v40  ;;  %v561_v35 = vmul.f32 %v550_v28, %v6574_v46  ;;  %v556_v37 = vmul.f32 %v550_v28, %v6554_v33  ;;  %v558_v42 = vmul.f32 %v550_v28, %v6562_v39 }
  0x9f   : >> { %v560_v47 = vmul.f32 %v550_v28, %v6572_v45 }
  0xa0   : >> { %v459_v56 = vpop.permute.xlu1 %458 }
  0xa1   : >> { %412 = vrot.lane.b32.xlu0 %v381_v52, %s6332_s7  ;;  %410 = vrot.lane.b32.xlu1 %v380_v53, %s6332_s7  ;;  %v467_v59 = vmul.f32 %v459_v56, %v6562_v39  ;;  %v465_v60 = vmul.f32 %v459_v56, %v6554_v33  ;;  %v469_v62 = vmul.f32 %v459_v56, %v6572_v45 }
  0xa2   : >> { %v466_v63 = vmul.f32 %v459_v56, %v6556_v34  ;;  %v468_v22 = vmul.f32 %v459_v56, %v6564_v40  ;;  %v470_v25 = vmul.f32 %v459_v56, %v6574_v46 }
  0xa5   : >> { %416 = vrot.lane.b32.xlu0 %v383_v54, %s6332_s7  ;;  %414 = vrot.lane.b32.xlu1 %v382_v55, %s6332_s7  ;;  %v554_v38 = vpop.permute.xlu1 %553  ;;  %v645_v54 = vpop.permute.xlu0 %644 }
  0xa6   : >> { %v563_v41 = vmul.f32 %v554_v38, %v6556_v34  ;;  %v565_v44 = vmul.f32 %v554_v38, %v6564_v40  ;;  %v567_v48 = vmul.f32 %v554_v38, %v6574_v46  ;;  %v562_v49 = vmul.f32 %v554_v38, %v6554_v33 }
  0xa7   : >> { %v564_v52 = vmul.f32 %v554_v38, %v6562_v39  ;;  %v566_v55 = vmul.f32 %v554_v38, %v6572_v45 }
  0xa9   : >> { %420 = vrot.lane.b32.xlu0 %v385_v57, %s6332_s7  ;;  %418 = vrot.lane.b32.xlu1 %v384_v58, %s6332_s7  ;;  %v653_v57 = vmul.f32 %v645_v54, %v6554_v33  ;;  %v655_v58 = vmul.f32 %v645_v54, %v6562_v39  ;;  %v732_v61 = vpop.permute.xlu0 %731 }
  0xaa   : >> { %v641_v50 = vpop.permute.xlu1 %640 }
  0xab   : >> { %v649_v51 = vmul.f32 %v641_v50, %v6562_v39  ;;  %v651_v53 = vmul.f32 %v641_v50, %v6572_v45  ;;  %v647_v56 = vmul.f32 %v641_v50, %v6554_v33 }
  0xad   : >> { %493 = vrot.lane.b32.xlu0 %v467_v59, %s6334_s8  ;;  %489 = vrot.lane.b32.xlu1 %v465_v60, %s6334_s8  ;;  %v648_v59 = vmul.f32 %v641_v50, %v6556_v34  ;;  %v657_v60 = vmul.f32 %v645_v54, %v6572_v45 }
  0xb1   : >> { %497 = vrot.lane.b32.xlu0 %v469_v62, %s6334_s8  ;;  %491 = vrot.lane.b32.xlu1 %v466_v63, %s6334_s8  ;;  %v650_v62 = vmul.f32 %v641_v50, %v6564_v40  ;;  %v739_v63 = vmul.f32 %v732_v61, %v6556_v34 }
  0xb5   : >> { %501 = vrot.lane.b32.xlu0 %v471_v3, %s6334_s8  ;;  %495 = vrot.lane.b32.xlu1 %v468_v22, %s6334_s8  ;;  %v652_v3 = vmul.f32 %v641_v50, %v6574_v46  ;;  %v654_v22 = vmul.f32 %v645_v54, %v6556_v34 }
  0xb9   : >> { %505 = vrot.lane.b32.xlu0 %v473_v24, %s6334_s8  ;;  %499 = vrot.lane.b32.xlu1 %v470_v25, %s6334_s8  ;;  %v741_v24 = vmul.f32 %v732_v61, %v6564_v40  ;;  %v743_v25 = vmul.f32 %v732_v61, %v6574_v46 }
  0xbd   : >> { %509 = vrot.lane.b32.xlu0 %v475_v26, %s6334_s8  ;;  %503 = vrot.lane.b32.xlu1 %v472_v27, %s6334_s8  ;;  %v736_v26 = vpop.permute.xlu1 %735  ;;  %v656_v27 = vmul.f32 %v645_v54, %v6564_v40 }
  0xbe   : >> { %v745_v28 = vmul.f32 %v736_v26, %v6556_v34  ;;  %v744_v38 = vmul.f32 %v736_v26, %v6554_v33 }
  0xc1   : >> { %582 = vrot.lane.b32.xlu0 %v557_v29, %s6335_s9  ;;  %507 = vrot.lane.b32.xlu1 %v474_v30, %s6334_s8  ;;  %v658_v29 = vmul.f32 %v645_v54, %v6574_v46  ;;  %v738_v30 = vmul.f32 %v732_v61, %v6554_v33 }
  0xc5   : >> { %586 = vrot.lane.b32.xlu0 %v559_v31, %s6335_s9  ;;  %511 = vrot.lane.b32.xlu1 %v476_v32, %s6334_s8  ;;  %v747_v31 = vmul.f32 %v736_v26, %v6564_v40  ;;  %v749_v32 = vmul.f32 %v736_v26, %v6574_v46 }
  0xc9   : >> { %590 = vrot.lane.b32.xlu0 %v561_v35, %s6335_s9  ;;  %580 = vrot.lane.b32.xlu1 %v556_v37, %s6335_s9  ;;  %v740_v35 = vmul.f32 %v732_v61, %v6562_v39  ;;  %v742_v37 = vmul.f32 %v732_v61, %v6572_v45 }
  0xcd   : >> { %594 = vrot.lane.b32.xlu0 %v563_v41, %s6335_s9  ;;  %584 = vrot.lane.b32.xlu1 %v558_v42, %s6335_s9 }
  0xd1   : >> { %598 = vrot.lane.b32.xlu0 %v565_v44, %s6335_s9  ;;  %588 = vrot.lane.b32.xlu1 %v560_v47, %s6335_s9 }
  0xd5   : >> { %602 = vrot.lane.b32.xlu0 %v567_v48, %s6335_s9  ;;  %592 = vrot.lane.b32.xlu1 %v562_v49, %s6335_s9  ;;  %v746_v48 = vmul.f32 %v736_v26, %v6562_v39 }
  0xd9   : >> { %596 = vrot.lane.b32.xlu1 %v564_v52, %s6335_s9  ;;  %675 = vrot.lane.b32.xlu0 %v649_v51, %s6336_s10  ;;  %v748_v51 = vmul.f32 %v736_v26, %v6572_v45 }
  0xdd   : >> { %600 = vrot.lane.b32.xlu1 %v566_v55, %s6335_s9  ;;  %679 = vrot.lane.b32.xlu0 %v651_v53, %s6336_s10 }
  0xe1   : >> { %671 = vrot.lane.b32.xlu1 %v647_v56, %s6336_s10  ;;  %683 = vrot.lane.b32.xlu0 %v653_v57, %s6336_s10 }
  0xe5   : >> { %673 = vrot.lane.b32.xlu1 %v648_v59, %s6336_s10  ;;  %687 = vrot.lane.b32.xlu0 %v655_v58, %s6336_s10 }
  0xe9   : >> { %677 = vrot.lane.b32.xlu1 %v650_v62, %s6336_s10  ;;  %691 = vrot.lane.b32.xlu0 %v657_v60, %s6336_s10 }
  0xed   : >> { %681 = vrot.lane.b32.xlu1 %v652_v3, %s6336_s10  ;;  %764 = vrot.lane.b32.xlu0 %v739_v63, %s6337_s11  ;;  %v6338_v3 = vmov 7  }
  0xf1   : >> { %685 = vrot.lane.b32.xlu1 %v654_v22, %s6336_s10  ;;  %768 = vrot.lane.b32.xlu0 %v741_v24, %s6337_s11 }
  0xf5   : >> { %689 = vrot.lane.b32.xlu1 %v656_v27, %s6336_s10  ;;  %772 = vrot.lane.b32.xlu0 %v743_v25, %s6337_s11 }
  0xf9   : >> { %693 = vrot.lane.b32.xlu1 %v658_v29, %s6336_s10  ;;  %776 = vrot.lane.b32.xlu0 %v745_v28, %s6337_s11 }
  0xfd   : >> { %762 = vrot.lane.b32.xlu1 %v738_v30, %s6337_s11  ;;  %780 = vrot.lane.b32.xlu0 %v747_v31, %s6337_s11 }
 0x101   : >> { %766 = vrot.lane.b32.xlu1 %v740_v35, %s6337_s11  ;;  %784 = vrot.lane.b32.xlu0 %v749_v32, %s6337_s11 }
 0x105   : >> { %770 = vrot.lane.b32.xlu1 %v742_v37, %s6337_s11  ;;  %826 = vperm.xlu0 %5866, %v11373_v1  }
 0x107   : >> { %v6688_v41 = vpop.permute.xlu0 %400  ;;  %v6690_v42 = vpop.permute.xlu1 %398 }
 0x109   : >> { %774 = vrot.lane.b32.xlu1 %v744_v38, %s6337_s11  ;;  %5867 = vset.pattern.permute.xlu0 %v6338_v3 }
 0x10b   : >> { %v6693_v44 = vpop.permute.xlu0 %404  ;;  %v6695_v47 = vpop.permute.xlu1 %402 }
 0x10d   : >> { %778 = vrot.lane.b32.xlu1 %v746_v48, %s6337_s11 }
 0x10f   : >> { %v6699_v49 = vpop.permute.xlu0 %408  ;;  %v6701_v50 = vpop.permute.xlu1 %406 }
 0x111   : >> { %782 = vrot.lane.b32.xlu1 %v748_v51, %s6337_s11 }
 0x113   : >> { %v6705_v52 = vpop.permute.xlu0 %412  ;;  %v6707_v53 = vpop.permute.xlu1 %410 }
 0x115   : >> { %822 = vperm.xlu1 %5865, %v11374_v0  }
 0x117   : >> { %v6710_v54 = vpop.permute.xlu0 %416  ;;  %v6712_v55 = vpop.permute.xlu1 %414 }
 0x119   : >> { %5868 = vset.pattern.permute.xlu1 %v6338_v3 }
 0x11b   : >> { %v6714_v56 = vpop.permute.xlu0 %420  ;;  %v6716_v57 = vpop.permute.xlu1 %418 }
 0x11f   : >> { %v6718_v58 = vpop.permute.xlu0 %493  ;;  %v6720_v59 = vpop.permute.xlu1 %489 }
 0x123   : >> { %v6722_v60 = vpop.permute.xlu0 %497  ;;  %v6724_v61 = vpop.permute.xlu1 %491 }
 0x127   : >> { %v6726_v62 = vpop.permute.xlu0 %501  ;;  %v6728_v63 = vpop.permute.xlu1 %495 }
 0x12b   : >> { %v6730_v22 = vpop.permute.xlu1 %499  ;;  %v6732_v24 = vpop.permute.xlu0 %505 }
 0x12c   : >> { %11376 = vst [vmem:[#allocation26_spill] sm:$0xff] %v6730_v22 }
 0x12f   : >> { %v6734_v25 = vpop.permute.xlu1 %503  ;;  %v6736_v26 = vpop.permute.xlu0 %509 }
 0x133   : >> { %v6738_v27 = vpop.permute.xlu1 %507  ;;  %v6742_v29 = vpop.permute.xlu0 %582 }
 0x137   : >> { %v6740_v28 = vpop.permute.xlu1 %511  ;;  %v6746_v31 = vpop.permute.xlu0 %586 }
 0x13b   : >> { %v6744_v30 = vpop.permute.xlu1 %580  ;;  %v6752_v37 = vpop.permute.xlu0 %590 }
 0x13c   : >> { %11377 = vst [vmem:[#allocation27_spill] sm:$0xff] %v6752_v37 }
 0x13f   : >> { %v6748_v32 = vpop.permute.xlu1 %584  ;;  %v6756_v48 = vpop.permute.xlu0 %594 }
 0x143   : >> { %v6750_v35 = vpop.permute.xlu1 %588  ;;  %v6762_v23 = vpop.permute.xlu0 %598 }
 0x147   : >> { %v6754_v38 = vpop.permute.xlu1 %592  ;;  %v6766_v20 = vpop.permute.xlu0 %602 }
 0x148   : >> { %11378 = vst [vmem:[#allocation28_spill] sm:$0xff] %v6766_v20 }
 0x14b   : >> { %v6758_v51 = vpop.permute.xlu1 %596  ;;  %v6770_v18 = vpop.permute.xlu0 %675 }
 0x14f   : >> { %v6760_v3 = vpop.permute.xlu1 %600  ;;  %v6776_v15 = vpop.permute.xlu0 %679 }
 0x150   : >> { %11380 = vst [vmem:[#allocation30_spill] sm:$0xff] %v6776_v15 }
 0x153   : >> { %v6764_v21 = vpop.permute.xlu1 %671  ;;  %v6780_v14 = vpop.permute.xlu0 %683 }
 0x154   : >> { %11382 = vst [vmem:[#allocation32_spill] sm:$0xff] %v6780_v14 }
 0x157   : >> { %v6768_v19 = vpop.permute.xlu1 %673  ;;  %v6784_v13 = vpop.permute.xlu0 %687 }
 0x158   : >> { %11384 = vst [vmem:[#allocation34_spill] sm:$0xff] %v6784_v13 }
 0x15b   : >> { %v6772_v17 = vpop.permute.xlu1 %677  ;;  %v6788_v9 = vpop.permute.xlu0 %691 }
 0x15c   : >> { %11386 = vst [vmem:[#allocation36_spill] sm:$0xff] %v6788_v9 }
 0x15f   : >> { %v6774_v16 = vpop.permute.xlu1 %681  ;;  %v6792_v6 = vpop.permute.xlu0 %764 }
 0x160   : >> { %11379 = vst [vmem:[#allocation29_spill] sm:$0xff] %v6774_v16  ;;  %11388 = vst [vmem:[#allocation38_spill] sm:$0xff] %v6792_v6 }
 0x163   : >> { %v6778_v11 = vpop.permute.xlu1 %685  ;;  %v6796_v16 = vpop.permute.xlu0 %768 }
 0x164   : >> { %11381 = vst [vmem:[#allocation31_spill] sm:$0xff] %v6778_v11  ;;  %11390 = vst [vmem:[#allocation40_spill] sm:$0xff] %v6796_v16 }
 0x167   : >> { %v6782_v12 = vpop.permute.xlu1 %689  ;;  %v6800_v11 = vpop.permute.xlu0 %772 }
 0x168   : >> { %11383 = vst [vmem:[#allocation33_spill] sm:$0xff] %v6782_v12  ;;  %11392 = vst [vmem:[#allocation42_spill] sm:$0xff] %v6800_v11 }
 0x16b   : >> { %v6786_v8 = vpop.permute.xlu1 %693  ;;  %v6804_v12 = vpop.permute.xlu0 %776 }
 0x16c   : >> { %11385 = vst [vmem:[#allocation35_spill] sm:$0xff] %v6786_v8  ;;  %11394 = vst [vmem:[#allocation44_spill] sm:$0xff] %v6804_v12 }
 0x16f   : >> { %v6790_v7 = vpop.permute.xlu1 %762  ;;  %v6808_v8 = vpop.permute.xlu0 %780 }
 0x170   : >> { %11387 = vst [vmem:[#allocation37_spill] sm:$0xff] %v6790_v7  ;;  %11396 = vst [vmem:[#allocation46_spill] sm:$0xff] %v6808_v8 }
 0x173   : >> { %v6794_v5 = vpop.permute.xlu1 %766  ;;  %v6812_v7 = vpop.permute.xlu0 %784 }
 0x174   : >> { %11389 = vst [vmem:[#allocation39_spill] sm:$0xff] %v6794_v5  ;;  %11398 = vst [vmem:[#allocation48_spill] sm:$0xff] %v6812_v7 }
 0x177   : >> { %v6798_v15 = vpop.permute.xlu1 %770 }
 0x178   : >> { %11391 = vst [vmem:[#allocation41_spill] sm:$0xff] %v6798_v15 }
 0x17b   : >> { %v6802_v14 = vpop.permute.xlu1 %774 }
 0x17c   : >> { %11393 = vst [vmem:[#allocation43_spill] sm:$0xff] %v6802_v14 }
 0x17f   : >> { %v6806_v13 = vpop.permute.xlu1 %778 }
 0x180   : >> { %11395 = vst [vmem:[#allocation45_spill] sm:$0xff] %v6806_v13 }
 0x183   : >> { %v6810_v9 = vpop.permute.xlu1 %782 }
 0x184   : >> { %11397 = vst [vmem:[#allocation47_spill] sm:$0xff] %v6810_v9  ;;  %v827_v14 = vpop.permute.xlu0 %826 }
 0x185   : >> { %v835_v7 = vmul.f32 %v827_v14, %v6554_v33 }
 0x194   : >> { %v823_v6 = vpop.permute.xlu1 %822 }
 0x195   : >> { %v831_v5 = vmul.f32 %v823_v6, %v6562_v39  ;;  %v829_v16 = vmul.f32 %v823_v6, %v6554_v33  ;;  %v833_v12 = vmul.f32 %v823_v6, %v6572_v45  ;;  %v830_v13 = vmul.f32 %v823_v6, %v6556_v34 }
 0x196   : >> { %v832_v9 = vmul.f32 %v823_v6, %v6564_v40 }
 0x197   : >> { %857 = vrot.lane.b32.xlu0 %v831_v5, %s6339_s12  ;;  %853 = vrot.lane.b32.xlu1 %v829_v16, %s6339_s12  ;;  %v837_v5 = vmul.f32 %v827_v14, %v6562_v39  ;;  %v834_v16 = vmul.f32 %v823_v6, %v6574_v46  ;;  %v840_v6 = vmul.f32 %v827_v14, %v6574_v46 }
 0x19b   : >> { %861 = vrot.lane.b32.xlu0 %v833_v12, %s6339_s12  ;;  %855 = vrot.lane.b32.xlu1 %v830_v13, %s6339_s12  ;;  %v839_v12 = vmul.f32 %v827_v14, %v6572_v45  ;;  %v836_v13 = vmul.f32 %v827_v14, %v6556_v34 }
 0x19f   : >> { %865 = vrot.lane.b32.xlu0 %v835_v7, %s6339_s12  ;;  %859 = vrot.lane.b32.xlu1 %v832_v9, %s6339_s12  ;;  %v838_v7 = vmul.f32 %v827_v14, %v6564_v40  ;;  %v6340_v9 = vmov 8  }
 0x1a3   : >> { %869 = vrot.lane.b32.xlu0 %v837_v5, %s6339_s12  ;;  %863 = vrot.lane.b32.xlu1 %v834_v16, %s6339_s12 }
 0x1a7   : >> { %873 = vrot.lane.b32.xlu0 %v839_v12, %s6339_s12  ;;  %867 = vrot.lane.b32.xlu1 %v836_v13, %s6339_s12 }
 0x1ab   : >> { %913 = vperm.xlu0 %5867, %v11374_v0   ;;  %871 = vrot.lane.b32.xlu1 %v838_v7, %s6339_s12 }
 0x1af   : >> { %875 = vrot.lane.b32.xlu1 %v840_v6, %s6339_s12  ;;  %5870 = vset.pattern.permute.xlu0 %v6340_v9 }
 0x1b3   : >> { %917 = vperm.xlu1 %5868, %v11373_v1  }
 0x1b7   : >> { %5869 = vset.pattern.permute.xlu1 %v6340_v9 }
 0x209   : >> { %v6840_v5 = vpop.permute.xlu1 %853  ;;  %v6842_v16 = vpop.permute.xlu0 %857 }
 0x20a   : >> { %11399 = vst [vmem:[#allocation49_spill] sm:$0xff] %v6840_v5  ;;  %11400 = vst [vmem:[#allocation50_spill] sm:$0xff] %v6842_v16 }
 0x20d   : >> { %v6844_v12 = vpop.permute.xlu1 %855  ;;  %v6846_v13 = vpop.permute.xlu0 %861 }
 0x20e   : >> { %11401 = vst [vmem:[#allocation51_spill] sm:$0xff] %v6844_v12  ;;  %11402 = vst [vmem:[#allocation52_spill] sm:$0xff] %v6846_v13 }
 0x211   : >> { %v6848_v8 = vpop.permute.xlu1 %859  ;;  %v6850_v7 = vpop.permute.xlu0 %865 }
 0x212   : >> { %11403 = vst [vmem:[#allocation53_spill] sm:$0xff] %v6848_v8  ;;  %11404 = vst [vmem:[#allocation54_spill] sm:$0xff] %v6850_v7 }
 0x215   : >> { %v6852_v14 = vpop.permute.xlu1 %863  ;;  %v6854_v6 = vpop.permute.xlu0 %869 }
 0x216   : >> { %11405 = vst [vmem:[#allocation55_spill] sm:$0xff] %v6852_v14  ;;  %11406 = vst [vmem:[#allocation56_spill] sm:$0xff] %v6854_v6 }
 0x219   : >> { %v6856_v11 = vpop.permute.xlu1 %867  ;;  %v6858_v15 = vpop.permute.xlu0 %873 }
 0x21a   : >> { %11407 = vst [vmem:[#allocation57_spill] sm:$0xff] %v6856_v11  ;;  %11408 = vst [vmem:[#allocation58_spill] sm:$0xff] %v6858_v15 }
 0x21d   : >> { %v6860_v9 = vpop.permute.xlu1 %871 }
 0x21e   : >> { %11409 = vst [vmem:[#allocation59_spill] sm:$0xff] %v6860_v9 }
 0x221   : >> { %v6866_v7 = vpop.permute.xlu1 %875 }
 0x222   : >> { %11410 = vst [vmem:[#allocation60_spill] sm:$0xff] %v6866_v7 }
 0x22a   : >> { %v914_v5 = vpop.permute.xlu0 %913 }
 0x22b   : >> { %v921_v16 = vmul.f32 %v914_v5, %v6556_v34  ;;  %v920_v12 = vmul.f32 %v914_v5, %v6554_v33  ;;  %v923_v6 = vmul.f32 %v914_v5, %v6564_v40  ;;  %v922_v11 = vmul.f32 %v914_v5, %v6562_v39 }
 0x22c   : >> { %v925_v9 = vmul.f32 %v914_v5, %v6574_v46  ;;  %v924_v14 = vmul.f32 %v914_v5, %v6572_v45 }
 0x22d   : >> { %946 = vrot.lane.b32.xlu0 %v921_v16, %s6341_s13  ;;  %944 = vrot.lane.b32.xlu1 %v920_v12, %s6341_s13 }
 0x231   : >> { %950 = vrot.lane.b32.xlu0 %v923_v6, %s6341_s13  ;;  %948 = vrot.lane.b32.xlu1 %v922_v11, %s6341_s13 }
 0x232   : >> { %v918_v15 = vpop.permute.xlu1 %917 }
 0x233   : >> { %v927_v16 = vmul.f32 %v918_v15, %v6556_v34  ;;  %v926_v12 = vmul.f32 %v918_v15, %v6554_v33  ;;  %v929_v6 = vmul.f32 %v918_v15, %v6564_v40  ;;  %v928_v11 = vmul.f32 %v918_v15, %v6562_v39 }
 0x234   : >> { %v931_v5 = vmul.f32 %v918_v15, %v6574_v46 }
 0x235   : >> { %954 = vrot.lane.b32.xlu0 %v925_v9, %s6341_s13  ;;  %952 = vrot.lane.b32.xlu1 %v924_v14, %s6341_s13  ;;  %v930_v14 = vmul.f32 %v918_v15, %v6572_v45  ;;  %v6342_v9 = vmov 9  }
 0x239   : >> { %958 = vrot.lane.b32.xlu0 %v927_v16, %s6341_s13  ;;  %956 = vrot.lane.b32.xlu1 %v926_v12, %s6341_s13 }
 0x23d   : >> { %962 = vrot.lane.b32.xlu0 %v929_v6, %s6341_s13  ;;  %960 = vrot.lane.b32.xlu1 %v928_v11, %s6341_s13 }
 0x241   : >> { %966 = vrot.lane.b32.xlu0 %v931_v5, %s6341_s13  ;;  %964 = vrot.lane.b32.xlu1 %v930_v14, %s6341_s13 }
 0x245   : >> { %1004 = vperm.xlu1 %5869, %v11374_v0   ;;  %1008 = vperm.xlu0 %5870, %v11373_v1  }
 0x249   : >> { %5871 = vset.pattern.permute.xlu0 %v6342_v9  ;;  %5872 = vset.pattern.permute.xlu1 %v6342_v9 }
 0x29f   : >> { %v6890_v16 = vpop.permute.xlu1 %944  ;;  %v6892_v12 = vpop.permute.xlu0 %946 }
 0x2a0   : >> { %11411 = vst [vmem:[#allocation61_spill] sm:$0xff] %v6890_v16  ;;  %11412 = vst [vmem:[#allocation62_spill] sm:$0xff] %v6892_v12 }
 0x2a3   : >> { %v6894_v6 = vpop.permute.xlu1 %948  ;;  %v6896_v11 = vpop.permute.xlu0 %950 }
 0x2a4   : >> { %11413 = vst [vmem:[#allocation63_spill] sm:$0xff] %v6894_v6  ;;  %11414 = vst [vmem:[#allocation64_spill] sm:$0xff] %v6896_v11 }
 0x2a7   : >> { %v6898_v15 = vpop.permute.xlu1 %952  ;;  %v6900_v5 = vpop.permute.xlu0 %954 }
 0x2a8   : >> { %11415 = vst [vmem:[#allocation65_spill] sm:$0xff] %v6898_v15  ;;  %11416 = vst [vmem:[#allocation66_spill] sm:$0xff] %v6900_v5 }
 0x2ab   : >> { %v6902_v14 = vpop.permute.xlu1 %956  ;;  %v6904_v7 = vpop.permute.xlu0 %958 }
 0x2ac   : >> { %11417 = vst [vmem:[#allocation67_spill] sm:$0xff] %v6902_v14  ;;  %11418 = vst [vmem:[#allocation68_spill] sm:$0xff] %v6904_v7 }
 0x2af   : >> { %v6906_v13 = vpop.permute.xlu1 %960  ;;  %v6908_v8 = vpop.permute.xlu0 %962 }
 0x2b0   : >> { %11419 = vst [vmem:[#allocation69_spill] sm:$0xff] %v6906_v13  ;;  %11420 = vst [vmem:[#allocation70_spill] sm:$0xff] %v6908_v8 }
 0x2b3   : >> { %v6910_v9 = vpop.permute.xlu1 %964  ;;  %v6912_v16 = vpop.permute.xlu0 %966 }
 0x2b4   : >> { %11421 = vst [vmem:[#allocation71_spill] sm:$0xff] %v6910_v9  ;;  %11422 = vst [vmem:[#allocation72_spill] sm:$0xff] %v6912_v16 }
 0x2c4   : >> { %v1005_v12 = vpop.permute.xlu1 %1004  ;;  %v1009_v14 = vpop.permute.xlu0 %1008 }
 0x2c5   : >> { %v1013_v6 = vmul.f32 %v1005_v12, %v6562_v39  ;;  %v1011_v11 = vmul.f32 %v1005_v12, %v6554_v33  ;;  %v1015_v7 = vmul.f32 %v1005_v12, %v6572_v45  ;;  %v1012_v13 = vmul.f32 %v1005_v12, %v6556_v34 }
 0x2c6   : >> { %v1017_v16 = vmul.f32 %v1009_v14, %v6554_v33  ;;  %v1014_v9 = vmul.f32 %v1005_v12, %v6564_v40 }
 0x2c7   : >> { %1039 = vrot.lane.b32.xlu0 %v1013_v6, %s6343_s14  ;;  %1035 = vrot.lane.b32.xlu1 %v1011_v11, %s6343_s14  ;;  %v1019_v6 = vmul.f32 %v1009_v14, %v6562_v39  ;;  %v1016_v11 = vmul.f32 %v1005_v12, %v6574_v46  ;;  %v1022_v12 = vmul.f32 %v1009_v14, %v6574_v46 }
 0x2cb   : >> { %1043 = vrot.lane.b32.xlu0 %v1015_v7, %s6343_s14  ;;  %1037 = vrot.lane.b32.xlu1 %v1012_v13, %s6343_s14  ;;  %v1021_v7 = vmul.f32 %v1009_v14, %v6572_v45  ;;  %v1018_v13 = vmul.f32 %v1009_v14, %v6556_v34 }
 0x2cf   : >> { %1047 = vrot.lane.b32.xlu0 %v1017_v16, %s6343_s14  ;;  %1041 = vrot.lane.b32.xlu1 %v1014_v9, %s6343_s14  ;;  %v1020_v16 = vmul.f32 %v1009_v14, %v6564_v40  ;;  %v6344_v9 = vmov 10  }
 0x2d3   : >> { %1051 = vrot.lane.b32.xlu0 %v1019_v6, %s6343_s14  ;;  %1045 = vrot.lane.b32.xlu1 %v1016_v11, %s6343_s14 }
 0x2d7   : >> { %1055 = vrot.lane.b32.xlu0 %v1021_v7, %s6343_s14  ;;  %1049 = vrot.lane.b32.xlu1 %v1018_v13, %s6343_s14 }
 0x2db   : >> { %1095 = vperm.xlu0 %5871, %v11374_v0   ;;  %1053 = vrot.lane.b32.xlu1 %v1020_v16, %s6343_s14 }
 0x2df   : >> { %1057 = vrot.lane.b32.xlu1 %v1022_v12, %s6343_s14  ;;  %5874 = vset.pattern.permute.xlu0 %v6344_v9 }
 0x2e3   : >> { %1099 = vperm.xlu1 %5872, %v11373_v1  }
 0x2e7   : >> { %5873 = vset.pattern.permute.xlu1 %v6344_v9 }
 0x339   : >> { %v6940_v6 = vpop.permute.xlu1 %1035  ;;  %v6942_v11 = vpop.permute.xlu0 %1039 }
 0x33a   : >> { %11423 = vst [vmem:[#allocation73_spill] sm:$0xff] %v6940_v6  ;;  %11424 = vst [vmem:[#allocation74_spill] sm:$0xff] %v6942_v11 }
 0x33d   : >> { %v6944_v7 = vpop.permute.xlu1 %1037  ;;  %v6946_v13 = vpop.permute.xlu0 %1043 }
 0x33e   : >> { %11425 = vst [vmem:[#allocation75_spill] sm:$0xff] %v6944_v7  ;;  %11426 = vst [vmem:[#allocation76_spill] sm:$0xff] %v6946_v13 }
 0x341   : >> { %v6948_v8 = vpop.permute.xlu1 %1041  ;;  %v6950_v16 = vpop.permute.xlu0 %1047 }
 0x342   : >> { %11427 = vst [vmem:[#allocation77_spill] sm:$0xff] %v6948_v8  ;;  %11428 = vst [vmem:[#allocation78_spill] sm:$0xff] %v6950_v16 }
 0x345   : >> { %v6952_v14 = vpop.permute.xlu1 %1045  ;;  %v6954_v12 = vpop.permute.xlu0 %1051 }
 0x346   : >> { %11429 = vst [vmem:[#allocation79_spill] sm:$0xff] %v6952_v14  ;;  %11430 = vst [vmem:[#allocation80_spill] sm:$0xff] %v6954_v12 }
 0x349   : >> { %v6956_v5 = vpop.permute.xlu1 %1049  ;;  %v6958_v15 = vpop.permute.xlu0 %1055 }
 0x34a   : >> { %11431 = vst [vmem:[#allocation81_spill] sm:$0xff] %v6956_v5  ;;  %11432 = vst [vmem:[#allocation82_spill] sm:$0xff] %v6958_v15 }
 0x34d   : >> { %v6960_v9 = vpop.permute.xlu1 %1053 }
 0x34e   : >> { %11433 = vst [vmem:[#allocation83_spill] sm:$0xff] %v6960_v9 }
 0x351   : >> { %v6966_v16 = vpop.permute.xlu1 %1057 }
 0x352   : >> { %11434 = vst [vmem:[#allocation84_spill] sm:$0xff] %v6966_v16 }
 0x35a   : >> { %v1096_v6 = vpop.permute.xlu0 %1095 }
 0x35b   : >> { %v1103_v11 = vmul.f32 %v1096_v6, %v6556_v34  ;;  %v1102_v7 = vmul.f32 %v1096_v6, %v6554_v33  ;;  %v1105_v12 = vmul.f32 %v1096_v6, %v6564_v40  ;;  %v1104_v5 = vmul.f32 %v1096_v6, %v6562_v39 }
 0x35c   : >> { %v1107_v9 = vmul.f32 %v1096_v6, %v6574_v46  ;;  %v1106_v14 = vmul.f32 %v1096_v6, %v6572_v45 }
 0x35d   : >> { %1128 = vrot.lane.b32.xlu0 %v1103_v11, %s6345_s15  ;;  %1126 = vrot.lane.b32.xlu1 %v1102_v7, %s6345_s15 }
 0x361   : >> { %1132 = vrot.lane.b32.xlu0 %v1105_v12, %s6345_s15  ;;  %1130 = vrot.lane.b32.xlu1 %v1104_v5, %s6345_s15 }
 0x362   : >> { %v1100_v15 = vpop.permute.xlu1 %1099 }
 0x363   : >> { %v1109_v11 = vmul.f32 %v1100_v15, %v6556_v34  ;;  %v1108_v7 = vmul.f32 %v1100_v15, %v6554_v33  ;;  %v1111_v12 = vmul.f32 %v1100_v15, %v6564_v40  ;;  %v1110_v5 = vmul.f32 %v1100_v15, %v6562_v39 }
 0x364   : >> { %v1113_v6 = vmul.f32 %v1100_v15, %v6574_v46 }
 0x365   : >> { %1136 = vrot.lane.b32.xlu0 %v1107_v9, %s6345_s15  ;;  %1134 = vrot.lane.b32.xlu1 %v1106_v14, %s6345_s15  ;;  %v1112_v14 = vmul.f32 %v1100_v15, %v6572_v45  ;;  %v6346_v9 = vmov 11  }
 0x369   : >> { %1140 = vrot.lane.b32.xlu0 %v1109_v11, %s6345_s15  ;;  %1138 = vrot.lane.b32.xlu1 %v1108_v7, %s6345_s15 }
 0x36d   : >> { %1144 = vrot.lane.b32.xlu0 %v1111_v12, %s6345_s15  ;;  %1142 = vrot.lane.b32.xlu1 %v1110_v5, %s6345_s15 }
 0x371   : >> { %1148 = vrot.lane.b32.xlu0 %v1113_v6, %s6345_s15  ;;  %1146 = vrot.lane.b32.xlu1 %v1112_v14, %s6345_s15 }
 0x375   : >> { %1186 = vperm.xlu1 %5873, %v11374_v0   ;;  %1190 = vperm.xlu0 %5874, %v11373_v1  }
 0x379   : >> { %5875 = vset.pattern.permute.xlu0 %v6346_v9  ;;  %5876 = vset.pattern.permute.xlu1 %v6346_v9 }
 0x3cf   : >> { %v6990_v11 = vpop.permute.xlu1 %1126  ;;  %v6992_v7 = vpop.permute.xlu0 %1128 }
 0x3d0   : >> { %11435 = vst [vmem:[#allocation85_spill] sm:$0xff] %v6990_v11  ;;  %11436 = vst [vmem:[#allocation86_spill] sm:$0xff] %v6992_v7 }
 0x3d3   : >> { %v6994_v12 = vpop.permute.xlu1 %1130  ;;  %v6996_v5 = vpop.permute.xlu0 %1132 }
 0x3d4   : >> { %11437 = vst [vmem:[#allocation87_spill] sm:$0xff] %v6994_v12  ;;  %11438 = vst [vmem:[#allocation88_spill] sm:$0xff] %v6996_v5 }
 0x3d7   : >> { %v6998_v15 = vpop.permute.xlu1 %1134  ;;  %v7000_v6 = vpop.permute.xlu0 %1136 }
 0x3d8   : >> { %11439 = vst [vmem:[#allocation89_spill] sm:$0xff] %v6998_v15  ;;  %11440 = vst [vmem:[#allocation90_spill] sm:$0xff] %v7000_v6 }
 0x3db   : >> { %v7002_v14 = vpop.permute.xlu1 %1138  ;;  %v7004_v16 = vpop.permute.xlu0 %1140 }
 0x3dc   : >> { %11441 = vst [vmem:[#allocation91_spill] sm:$0xff] %v7002_v14  ;;  %11442 = vst [vmem:[#allocation92_spill] sm:$0xff] %v7004_v16 }
 0x3df   : >> { %v7006_v13 = vpop.permute.xlu1 %1142  ;;  %v7008_v8 = vpop.permute.xlu0 %1144 }
 0x3e0   : >> { %11443 = vst [vmem:[#allocation93_spill] sm:$0xff] %v7006_v13  ;;  %11444 = vst [vmem:[#allocation94_spill] sm:$0xff] %v7008_v8 }
 0x3e3   : >> { %v7010_v9 = vpop.permute.xlu1 %1146  ;;  %v7012_v11 = vpop.permute.xlu0 %1148 }
 0x3e4   : >> { %11445 = vst [vmem:[#allocation95_spill] sm:$0xff] %v7010_v9  ;;  %11446 = vst [vmem:[#allocation96_spill] sm:$0xff] %v7012_v11 }
 0x3f4   : >> { %v1187_v7 = vpop.permute.xlu1 %1186  ;;  %v1191_v14 = vpop.permute.xlu0 %1190 }
 0x3f5   : >> { %v1195_v12 = vmul.f32 %v1187_v7, %v6562_v39  ;;  %v1193_v5 = vmul.f32 %v1187_v7, %v6554_v33  ;;  %v1197_v16 = vmul.f32 %v1187_v7, %v6572_v45  ;;  %v1194_v13 = vmul.f32 %v1187_v7, %v6556_v34 }
 0x3f6   : >> { %v1199_v11 = vmul.f32 %v1191_v14, %v6554_v33  ;;  %v1196_v9 = vmul.f32 %v1187_v7, %v6564_v40 }
 0x3f7   : >> { %1221 = vrot.lane.b32.xlu0 %v1195_v12, %s6347_s16  ;;  %1217 = vrot.lane.b32.xlu1 %v1193_v5, %s6347_s16  ;;  %v1201_v12 = vmul.f32 %v1191_v14, %v6562_v39  ;;  %v1198_v5 = vmul.f32 %v1187_v7, %v6574_v46  ;;  %v1204_v7 = vmul.f32 %v1191_v14, %v6574_v46 }
 0x3fb   : >> { %1225 = vrot.lane.b32.xlu0 %v1197_v16, %s6347_s16  ;;  %1219 = vrot.lane.b32.xlu1 %v1194_v13, %s6347_s16  ;;  %v1203_v16 = vmul.f32 %v1191_v14, %v6572_v45  ;;  %v1200_v13 = vmul.f32 %v1191_v14, %v6556_v34 }
 0x3ff   : >> { %1229 = vrot.lane.b32.xlu0 %v1199_v11, %s6347_s16  ;;  %1223 = vrot.lane.b32.xlu1 %v1196_v9, %s6347_s16  ;;  %v1202_v11 = vmul.f32 %v1191_v14, %v6564_v40  ;;  %v6348_v9 = vmov 12  }
 0x403   : >> { %1233 = vrot.lane.b32.xlu0 %v1201_v12, %s6347_s16  ;;  %1227 = vrot.lane.b32.xlu1 %v1198_v5, %s6347_s16 }
 0x407   : >> { %1237 = vrot.lane.b32.xlu0 %v1203_v16, %s6347_s16  ;;  %1231 = vrot.lane.b32.xlu1 %v1200_v13, %s6347_s16 }
 0x40b   : >> { %1277 = vperm.xlu0 %5875, %v11374_v0   ;;  %1235 = vrot.lane.b32.xlu1 %v1202_v11, %s6347_s16 }
 0x40f   : >> { %1239 = vrot.lane.b32.xlu1 %v1204_v7, %s6347_s16  ;;  %5878 = vset.pattern.permute.xlu0 %v6348_v9 }
 0x413   : >> { %1281 = vperm.xlu1 %5876, %v11373_v1  }
 0x417   : >> { %5877 = vset.pattern.permute.xlu1 %v6348_v9 }
 0x469   : >> { %v7040_v12 = vpop.permute.xlu1 %1217  ;;  %v7042_v5 = vpop.permute.xlu0 %1221 }
 0x46a   : >> { %11447 = vst [vmem:[#allocation97_spill] sm:$0xff] %v7040_v12  ;;  %11448 = vst [vmem:[#allocation98_spill] sm:$0xff] %v7042_v5 }
 0x46d   : >> { %v7044_v16 = vpop.permute.xlu1 %1219  ;;  %v7046_v13 = vpop.permute.xlu0 %1225 }
 0x46e   : >> { %11449 = vst [vmem:[#allocation99_spill] sm:$0xff] %v7044_v16  ;;  %11450 = vst [vmem:[#allocation100_spill] sm:$0xff] %v7046_v13 }
 0x471   : >> { %v7048_v8 = vpop.permute.xlu1 %1223  ;;  %v7050_v11 = vpop.permute.xlu0 %1229 }
 0x472   : >> { %11451 = vst [vmem:[#allocation101_spill] sm:$0xff] %v7048_v8  ;;  %11452 = vst [vmem:[#allocation102_spill] sm:$0xff] %v7050_v11 }
 0x475   : >> { %v7052_v14 = vpop.permute.xlu1 %1227  ;;  %v7054_v7 = vpop.permute.xlu0 %1233 }
 0x476   : >> { %11453 = vst [vmem:[#allocation103_spill] sm:$0xff] %v7052_v14  ;;  %11454 = vst [vmem:[#allocation104_spill] sm:$0xff] %v7054_v7 }
 0x479   : >> { %v7056_v6 = vpop.permute.xlu1 %1231  ;;  %v7058_v15 = vpop.permute.xlu0 %1237 }
 0x47a   : >> { %11455 = vst [vmem:[#allocation105_spill] sm:$0xff] %v7056_v6  ;;  %11456 = vst [vmem:[#allocation106_spill] sm:$0xff] %v7058_v15 }
 0x47d   : >> { %v7060_v9 = vpop.permute.xlu1 %1235 }
 0x47e   : >> { %11457 = vst [vmem:[#allocation107_spill] sm:$0xff] %v7060_v9 }
 0x481   : >> { %v7066_v11 = vpop.permute.xlu1 %1239 }
 0x482   : >> { %11458 = vst [vmem:[#allocation108_spill] sm:$0xff] %v7066_v11 }
 0x48a   : >> { %v1278_v12 = vpop.permute.xlu0 %1277 }
 0x48b   : >> { %v1285_v5 = vmul.f32 %v1278_v12, %v6556_v34  ;;  %v1284_v16 = vmul.f32 %v1278_v12, %v6554_v33  ;;  %v1287_v7 = vmul.f32 %v1278_v12, %v6564_v40  ;;  %v1286_v6 = vmul.f32 %v1278_v12, %v6562_v39 }
 0x48c   : >> { %v1289_v9 = vmul.f32 %v1278_v12, %v6574_v46  ;;  %v1288_v14 = vmul.f32 %v1278_v12, %v6572_v45 }
 0x48d   : >> { %1310 = vrot.lane.b32.xlu0 %v1285_v5, %s6349_s17  ;;  %1308 = vrot.lane.b32.xlu1 %v1284_v16, %s6349_s17 }
 0x491   : >> { %1314 = vrot.lane.b32.xlu0 %v1287_v7, %s6349_s17  ;;  %1312 = vrot.lane.b32.xlu1 %v1286_v6, %s6349_s17 }
 0x492   : >> { %v1282_v15 = vpop.permute.xlu1 %1281 }
 0x493   : >> { %v1291_v5 = vmul.f32 %v1282_v15, %v6556_v34  ;;  %v1290_v16 = vmul.f32 %v1282_v15, %v6554_v33  ;;  %v1293_v7 = vmul.f32 %v1282_v15, %v6564_v40  ;;  %v1292_v6 = vmul.f32 %v1282_v15, %v6562_v39 }
 0x494   : >> { %v1295_v12 = vmul.f32 %v1282_v15, %v6574_v46 }
 0x495   : >> { %1318 = vrot.lane.b32.xlu0 %v1289_v9, %s6349_s17  ;;  %1316 = vrot.lane.b32.xlu1 %v1288_v14, %s6349_s17  ;;  %v1294_v14 = vmul.f32 %v1282_v15, %v6572_v45  ;;  %v6350_v9 = vmov 13  }
 0x499   : >> { %1322 = vrot.lane.b32.xlu0 %v1291_v5, %s6349_s17  ;;  %1320 = vrot.lane.b32.xlu1 %v1290_v16, %s6349_s17 }
 0x49d   : >> { %1326 = vrot.lane.b32.xlu0 %v1293_v7, %s6349_s17  ;;  %1324 = vrot.lane.b32.xlu1 %v1292_v6, %s6349_s17 }
 0x4a1   : >> { %1330 = vrot.lane.b32.xlu0 %v1295_v12, %s6349_s17  ;;  %1328 = vrot.lane.b32.xlu1 %v1294_v14, %s6349_s17 }
 0x4a5   : >> { %1368 = vperm.xlu1 %5877, %v11374_v0   ;;  %1372 = vperm.xlu0 %5878, %v11373_v1  }
 0x4a9   : >> { %5879 = vset.pattern.permute.xlu0 %v6350_v9  ;;  %5880 = vset.pattern.permute.xlu1 %v6350_v9 }
 0x4ff   : >> { %v7090_v5 = vpop.permute.xlu1 %1308  ;;  %v7092_v16 = vpop.permute.xlu0 %1310 }
 0x500   : >> { %11459 = vst [vmem:[#allocation109_spill] sm:$0xff] %v7090_v5  ;;  %11460 = vst [vmem:[#allocation110_spill] sm:$0xff] %v7092_v16 }
 0x503   : >> { %v7094_v7 = vpop.permute.xlu1 %1312  ;;  %v7096_v6 = vpop.permute.xlu0 %1314 }
 0x504   : >> { %11461 = vst [vmem:[#allocation111_spill] sm:$0xff] %v7094_v7  ;;  %11462 = vst [vmem:[#allocation112_spill] sm:$0xff] %v7096_v6 }
 0x507   : >> { %v7098_v15 = vpop.permute.xlu1 %1316  ;;  %v7100_v12 = vpop.permute.xlu0 %1318 }
 0x508   : >> { %11463 = vst [vmem:[#allocation113_spill] sm:$0xff] %v7098_v15  ;;  %11464 = vst [vmem:[#allocation114_spill] sm:$0xff] %v7100_v12 }
 0x50b   : >> { %v7102_v14 = vpop.permute.xlu1 %1320  ;;  %v7104_v11 = vpop.permute.xlu0 %1322 }
 0x50c   : >> { %11465 = vst [vmem:[#allocation115_spill] sm:$0xff] %v7102_v14  ;;  %11466 = vst [vmem:[#allocation116_spill] sm:$0xff] %v7104_v11 }
 0x50f   : >> { %v7106_v13 = vpop.permute.xlu1 %1324  ;;  %v7108_v8 = vpop.permute.xlu0 %1326 }
 0x510   : >> { %11467 = vst [vmem:[#allocation117_spill] sm:$0xff] %v7106_v13  ;;  %11468 = vst [vmem:[#allocation118_spill] sm:$0xff] %v7108_v8 }
 0x513   : >> { %v7110_v9 = vpop.permute.xlu1 %1328  ;;  %v7112_v5 = vpop.permute.xlu0 %1330 }
 0x514   : >> { %11469 = vst [vmem:[#allocation119_spill] sm:$0xff] %v7110_v9  ;;  %11470 = vst [vmem:[#allocation120_spill] sm:$0xff] %v7112_v5 }
 0x524   : >> { %v1369_v16 = vpop.permute.xlu1 %1368  ;;  %v1373_v14 = vpop.permute.xlu0 %1372 }
 0x525   : >> { %v1377_v7 = vmul.f32 %v1369_v16, %v6562_v39  ;;  %v1375_v6 = vmul.f32 %v1369_v16, %v6554_v33  ;;  %v1379_v11 = vmul.f32 %v1369_v16, %v6572_v45  ;;  %v1376_v13 = vmul.f32 %v1369_v16, %v6556_v34 }
 0x526   : >> { %v1381_v5 = vmul.f32 %v1373_v14, %v6554_v33  ;;  %v1378_v9 = vmul.f32 %v1369_v16, %v6564_v40 }
 0x527   : >> { %1403 = vrot.lane.b32.xlu0 %v1377_v7, %s6351_s19  ;;  %1399 = vrot.lane.b32.xlu1 %v1375_v6, %s6351_s19  ;;  %v1383_v7 = vmul.f32 %v1373_v14, %v6562_v39  ;;  %v1380_v6 = vmul.f32 %v1369_v16, %v6574_v46  ;;  %v1386_v16 = vmul.f32 %v1373_v14, %v6574_v46 }
 0x52b   : >> { %1407 = vrot.lane.b32.xlu0 %v1379_v11, %s6351_s19  ;;  %1401 = vrot.lane.b32.xlu1 %v1376_v13, %s6351_s19  ;;  %v1385_v11 = vmul.f32 %v1373_v14, %v6572_v45  ;;  %v1382_v13 = vmul.f32 %v1373_v14, %v6556_v34 }
 0x52f   : >> { %1411 = vrot.lane.b32.xlu0 %v1381_v5, %s6351_s19  ;;  %1405 = vrot.lane.b32.xlu1 %v1378_v9, %s6351_s19  ;;  %v1384_v5 = vmul.f32 %v1373_v14, %v6564_v40  ;;  %v6352_v9 = vmov 14  }
 0x533   : >> { %1415 = vrot.lane.b32.xlu0 %v1383_v7, %s6351_s19  ;;  %1409 = vrot.lane.b32.xlu1 %v1380_v6, %s6351_s19 }
 0x537   : >> { %1419 = vrot.lane.b32.xlu0 %v1385_v11, %s6351_s19  ;;  %1413 = vrot.lane.b32.xlu1 %v1382_v13, %s6351_s19 }
 0x53b   : >> { %1459 = vperm.xlu0 %5879, %v11374_v0   ;;  %1417 = vrot.lane.b32.xlu1 %v1384_v5, %s6351_s19 }
 0x53f   : >> { %1421 = vrot.lane.b32.xlu1 %v1386_v16, %s6351_s19  ;;  %5882 = vset.pattern.permute.xlu0 %v6352_v9 }
 0x543   : >> { %1463 = vperm.xlu1 %5880, %v11373_v1  }
 0x547   : >> { %5881 = vset.pattern.permute.xlu1 %v6352_v9 }
 0x599   : >> { %v7140_v7 = vpop.permute.xlu1 %1399  ;;  %v7142_v6 = vpop.permute.xlu0 %1403 }
 0x59a   : >> { %11471 = vst [vmem:[#allocation121_spill] sm:$0xff] %v7140_v7  ;;  %11472 = vst [vmem:[#allocation122_spill] sm:$0xff] %v7142_v6 }
 0x59d   : >> { %v7144_v11 = vpop.permute.xlu1 %1401  ;;  %v7146_v13 = vpop.permute.xlu0 %1407 }
 0x59e   : >> { %11473 = vst [vmem:[#allocation123_spill] sm:$0xff] %v7144_v11  ;;  %11474 = vst [vmem:[#allocation124_spill] sm:$0xff] %v7146_v13 }
 0x5a1   : >> { %v7148_v8 = vpop.permute.xlu1 %1405  ;;  %v7150_v5 = vpop.permute.xlu0 %1411 }
 0x5a2   : >> { %11475 = vst [vmem:[#allocation125_spill] sm:$0xff] %v7148_v8  ;;  %11476 = vst [vmem:[#allocation126_spill] sm:$0xff] %v7150_v5 }
 0x5a5   : >> { %v7152_v14 = vpop.permute.xlu1 %1409  ;;  %v7154_v16 = vpop.permute.xlu0 %1415 }
 0x5a6   : >> { %11477 = vst [vmem:[#allocation127_spill] sm:$0xff] %v7152_v14  ;;  %11478 = vst [vmem:[#allocation128_spill] sm:$0xff] %v7154_v16 }
 0x5a9   : >> { %v7156_v12 = vpop.permute.xlu1 %1413  ;;  %v7158_v15 = vpop.permute.xlu0 %1419 }
 0x5aa   : >> { %11479 = vst [vmem:[#allocation129_spill] sm:$0xff] %v7156_v12  ;;  %11480 = vst [vmem:[#allocation130_spill] sm:$0xff] %v7158_v15 }
 0x5ad   : >> { %v7160_v9 = vpop.permute.xlu1 %1417 }
 0x5ae   : >> { %11481 = vst [vmem:[#allocation131_spill] sm:$0xff] %v7160_v9 }
 0x5b1   : >> { %v7166_v5 = vpop.permute.xlu1 %1421 }
 0x5b2   : >> { %11482 = vst [vmem:[#allocation132_spill] sm:$0xff] %v7166_v5 }
 0x5ba   : >> { %v1460_v7 = vpop.permute.xlu0 %1459 }
 0x5bb   : >> { %v1467_v6 = vmul.f32 %v1460_v7, %v6556_v34  ;;  %v1466_v11 = vmul.f32 %v1460_v7, %v6554_v33  ;;  %v1469_v16 = vmul.f32 %v1460_v7, %v6564_v40  ;;  %v1468_v12 = vmul.f32 %v1460_v7, %v6562_v39 }
 0x5bc   : >> { %v1471_v9 = vmul.f32 %v1460_v7, %v6574_v46  ;;  %v1470_v14 = vmul.f32 %v1460_v7, %v6572_v45 }
 0x5bd   : >> { %1492 = vrot.lane.b32.xlu0 %v1467_v6, %s6353_s21  ;;  %1490 = vrot.lane.b32.xlu1 %v1466_v11, %s6353_s21 }
 0x5c1   : >> { %1496 = vrot.lane.b32.xlu0 %v1469_v16, %s6353_s21  ;;  %1494 = vrot.lane.b32.xlu1 %v1468_v12, %s6353_s21 }
 0x5c2   : >> { %v1464_v15 = vpop.permute.xlu1 %1463 }
 0x5c3   : >> { %v1473_v6 = vmul.f32 %v1464_v15, %v6556_v34  ;;  %v1472_v11 = vmul.f32 %v1464_v15, %v6554_v33  ;;  %v1475_v16 = vmul.f32 %v1464_v15, %v6564_v40  ;;  %v1474_v12 = vmul.f32 %v1464_v15, %v6562_v39 }
 0x5c4   : >> { %v1477_v7 = vmul.f32 %v1464_v15, %v6574_v46 }
 0x5c5   : >> { %1500 = vrot.lane.b32.xlu0 %v1471_v9, %s6353_s21  ;;  %1498 = vrot.lane.b32.xlu1 %v1470_v14, %s6353_s21  ;;  %v1476_v14 = vmul.f32 %v1464_v15, %v6572_v45  ;;  %v6354_v9 = vmov 15  }
 0x5c9   : >> { %1504 = vrot.lane.b32.xlu0 %v1473_v6, %s6353_s21  ;;  %1502 = vrot.lane.b32.xlu1 %v1472_v11, %s6353_s21 }
 0x5cd   : >> { %1508 = vrot.lane.b32.xlu0 %v1475_v16, %s6353_s21  ;;  %1506 = vrot.lane.b32.xlu1 %v1474_v12, %s6353_s21 }
 0x5d1   : >> { %1512 = vrot.lane.b32.xlu0 %v1477_v7, %s6353_s21  ;;  %1510 = vrot.lane.b32.xlu1 %v1476_v14, %s6353_s21 }
 0x5d5   : >> { %1550 = vperm.xlu1 %5881, %v11374_v0   ;;  %1554 = vperm.xlu0 %5882, %v11373_v1  }
 0x5d9   : >> { %5883 = vset.pattern.permute.xlu0 %v6354_v9  ;;  %5884 = vset.pattern.permute.xlu1 %v6354_v9 }
 0x62f   : >> { %v7190_v6 = vpop.permute.xlu1 %1490  ;;  %v7192_v11 = vpop.permute.xlu0 %1492 }
 0x630   : >> { %11483 = vst [vmem:[#allocation133_spill] sm:$0xff] %v7190_v6  ;;  %11484 = vst [vmem:[#allocation134_spill] sm:$0xff] %v7192_v11 }
 0x633   : >> { %v7194_v16 = vpop.permute.xlu1 %1494  ;;  %v7196_v12 = vpop.permute.xlu0 %1496 }
 0x634   : >> { %11485 = vst [vmem:[#allocation135_spill] sm:$0xff] %v7194_v16  ;;  %11486 = vst [vmem:[#allocation136_spill] sm:$0xff] %v7196_v12 }
 0x637   : >> { %v7198_v15 = vpop.permute.xlu1 %1498  ;;  %v7200_v7 = vpop.permute.xlu0 %1500 }
 0x638   : >> { %11487 = vst [vmem:[#allocation137_spill] sm:$0xff] %v7198_v15  ;;  %11488 = vst [vmem:[#allocation138_spill] sm:$0xff] %v7200_v7 }
 0x63b   : >> { %v7202_v14 = vpop.permute.xlu1 %1502  ;;  %v7204_v5 = vpop.permute.xlu0 %1504 }
 0x63c   : >> { %11489 = vst [vmem:[#allocation139_spill] sm:$0xff] %v7202_v14  ;;  %11490 = vst [vmem:[#allocation140_spill] sm:$0xff] %v7204_v5 }
 0x63f   : >> { %v7206_v13 = vpop.permute.xlu1 %1506  ;;  %v7208_v8 = vpop.permute.xlu0 %1508 }
 0x640   : >> { %11491 = vst [vmem:[#allocation141_spill] sm:$0xff] %v7206_v13  ;;  %11492 = vst [vmem:[#allocation142_spill] sm:$0xff] %v7208_v8 }
 0x643   : >> { %v7210_v9 = vpop.permute.xlu1 %1510  ;;  %v7212_v6 = vpop.permute.xlu0 %1512 }
 0x644   : >> { %11493 = vst [vmem:[#allocation143_spill] sm:$0xff] %v7210_v9  ;;  %11494 = vst [vmem:[#allocation144_spill] sm:$0xff] %v7212_v6 }
 0x654   : >> { %v1551_v11 = vpop.permute.xlu1 %1550  ;;  %v1555_v14 = vpop.permute.xlu0 %1554 }
 0x655   : >> { %v1559_v16 = vmul.f32 %v1551_v11, %v6562_v39  ;;  %v1557_v12 = vmul.f32 %v1551_v11, %v6554_v33  ;;  %v1561_v5 = vmul.f32 %v1551_v11, %v6572_v45  ;;  %v1558_v13 = vmul.f32 %v1551_v11, %v6556_v34 }
 0x656   : >> { %v1563_v6 = vmul.f32 %v1555_v14, %v6554_v33  ;;  %v1560_v9 = vmul.f32 %v1551_v11, %v6564_v40 }
 0x657   : >> { %1585 = vrot.lane.b32.xlu0 %v1559_v16, %s6355_s22  ;;  %1581 = vrot.lane.b32.xlu1 %v1557_v12, %s6355_s22  ;;  %v1565_v16 = vmul.f32 %v1555_v14, %v6562_v39  ;;  %v1562_v12 = vmul.f32 %v1551_v11, %v6574_v46  ;;  %v1568_v11 = vmul.f32 %v1555_v14, %v6574_v46 }
 0x65b   : >> { %1589 = vrot.lane.b32.xlu0 %v1561_v5, %s6355_s22  ;;  %1583 = vrot.lane.b32.xlu1 %v1558_v13, %s6355_s22  ;;  %v1567_v5 = vmul.f32 %v1555_v14, %v6572_v45  ;;  %v1564_v13 = vmul.f32 %v1555_v14, %v6556_v34 }
 0x65f   : >> { %1593 = vrot.lane.b32.xlu0 %v1563_v6, %s6355_s22  ;;  %1587 = vrot.lane.b32.xlu1 %v1560_v9, %s6355_s22  ;;  %v1566_v6 = vmul.f32 %v1555_v14, %v6564_v40  ;;  %v6356_v9 = vmov 16  }
 0x663   : >> { %1597 = vrot.lane.b32.xlu0 %v1565_v16, %s6355_s22  ;;  %1591 = vrot.lane.b32.xlu1 %v1562_v12, %s6355_s22 }
 0x667   : >> { %1601 = vrot.lane.b32.xlu0 %v1567_v5, %s6355_s22  ;;  %1595 = vrot.lane.b32.xlu1 %v1564_v13, %s6355_s22 }
 0x66b   : >> { %1641 = vperm.xlu0 %5883, %v11374_v0   ;;  %1599 = vrot.lane.b32.xlu1 %v1566_v6, %s6355_s22 }
 0x66f   : >> { %1603 = vrot.lane.b32.xlu1 %v1568_v11, %s6355_s22  ;;  %5886 = vset.pattern.permute.xlu0 %v6356_v9 }
 0x673   : >> { %1645 = vperm.xlu1 %5884, %v11373_v1  }
 0x677   : >> { %5885 = vset.pattern.permute.xlu1 %v6356_v9 }
 0x6c9   : >> { %v7240_v16 = vpop.permute.xlu1 %1581  ;;  %v7242_v12 = vpop.permute.xlu0 %1585 }
 0x6ca   : >> { %11495 = vst [vmem:[#allocation145_spill] sm:$0xff] %v7240_v16  ;;  %11496 = vst [vmem:[#allocation146_spill] sm:$0xff] %v7242_v12 }
 0x6cd   : >> { %v7244_v5 = vpop.permute.xlu1 %1583  ;;  %v7246_v13 = vpop.permute.xlu0 %1589 }
 0x6ce   : >> { %11497 = vst [vmem:[#allocation147_spill] sm:$0xff] %v7244_v5  ;;  %11498 = vst [vmem:[#allocation148_spill] sm:$0xff] %v7246_v13 }
 0x6d1   : >> { %v7248_v8 = vpop.permute.xlu1 %1587  ;;  %v7250_v6 = vpop.permute.xlu0 %1593 }
 0x6d2   : >> { %11499 = vst [vmem:[#allocation149_spill] sm:$0xff] %v7248_v8  ;;  %11500 = vst [vmem:[#allocation150_spill] sm:$0xff] %v7250_v6 }
 0x6d5   : >> { %v7252_v14 = vpop.permute.xlu1 %1591  ;;  %v7254_v11 = vpop.permute.xlu0 %1597 }
 0x6d6   : >> { %11501 = vst [vmem:[#allocation151_spill] sm:$0xff] %v7252_v14  ;;  %11502 = vst [vmem:[#allocation152_spill] sm:$0xff] %v7254_v11 }
 0x6d9   : >> { %v7256_v7 = vpop.permute.xlu1 %1595  ;;  %v7258_v15 = vpop.permute.xlu0 %1601 }
 0x6da   : >> { %11503 = vst [vmem:[#allocation153_spill] sm:$0xff] %v7256_v7  ;;  %11504 = vst [vmem:[#allocation154_spill] sm:$0xff] %v7258_v15 }
 0x6dd   : >> { %v7260_v9 = vpop.permute.xlu1 %1599 }
 0x6de   : >> { %11505 = vst [vmem:[#allocation155_spill] sm:$0xff] %v7260_v9 }
 0x6e1   : >> { %v7266_v6 = vpop.permute.xlu1 %1603 }
 0x6e2   : >> { %11506 = vst [vmem:[#allocation156_spill] sm:$0xff] %v7266_v6 }
 0x6ea   : >> { %v1642_v16 = vpop.permute.xlu0 %1641 }
 0x6eb   : >> { %v1649_v12 = vmul.f32 %v1642_v16, %v6556_v34  ;;  %v1648_v5 = vmul.f32 %v1642_v16, %v6554_v33  ;;  %v1651_v11 = vmul.f32 %v1642_v16, %v6564_v40  ;;  %v1650_v7 = vmul.f32 %v1642_v16, %v6562_v39 }
 0x6ec   : >> { %v1653_v9 = vmul.f32 %v1642_v16, %v6574_v46  ;;  %v1652_v14 = vmul.f32 %v1642_v16, %v6572_v45 }
 0x6ed   : >> { %1674 = vrot.lane.b32.xlu0 %v1649_v12, %s6357_s23  ;;  %1672 = vrot.lane.b32.xlu1 %v1648_v5, %s6357_s23 }
 0x6f1   : >> { %1678 = vrot.lane.b32.xlu0 %v1651_v11, %s6357_s23  ;;  %1676 = vrot.lane.b32.xlu1 %v1650_v7, %s6357_s23 }
 0x6f2   : >> { %v1646_v15 = vpop.permute.xlu1 %1645 }
 0x6f3   : >> { %v1655_v12 = vmul.f32 %v1646_v15, %v6556_v34  ;;  %v1654_v5 = vmul.f32 %v1646_v15, %v6554_v33  ;;  %v1657_v11 = vmul.f32 %v1646_v15, %v6564_v40  ;;  %v1656_v7 = vmul.f32 %v1646_v15, %v6562_v39 }
 0x6f4   : >> { %v1659_v16 = vmul.f32 %v1646_v15, %v6574_v46 }
 0x6f5   : >> { %1682 = vrot.lane.b32.xlu0 %v1653_v9, %s6357_s23  ;;  %1680 = vrot.lane.b32.xlu1 %v1652_v14, %s6357_s23  ;;  %v1658_v14 = vmul.f32 %v1646_v15, %v6572_v45  ;;  %v6358_v9 = vmov 17  }
 0x6f9   : >> { %1686 = vrot.lane.b32.xlu0 %v1655_v12, %s6357_s23  ;;  %1684 = vrot.lane.b32.xlu1 %v1654_v5, %s6357_s23 }
 0x6fd   : >> { %1690 = vrot.lane.b32.xlu0 %v1657_v11, %s6357_s23  ;;  %1688 = vrot.lane.b32.xlu1 %v1656_v7, %s6357_s23 }
 0x701   : >> { %1694 = vrot.lane.b32.xlu0 %v1659_v16, %s6357_s23  ;;  %1692 = vrot.lane.b32.xlu1 %v1658_v14, %s6357_s23 }
 0x705   : >> { %1732 = vperm.xlu1 %5885, %v11374_v0   ;;  %1736 = vperm.xlu0 %5886, %v11373_v1  }
 0x709   : >> { %5887 = vset.pattern.permute.xlu0 %v6358_v9  ;;  %5888 = vset.pattern.permute.xlu1 %v6358_v9 }
 0x75f   : >> { %v7290_v12 = vpop.permute.xlu1 %1672  ;;  %v7292_v5 = vpop.permute.xlu0 %1674 }
 0x760   : >> { %11507 = vst [vmem:[#allocation157_spill] sm:$0xff] %v7290_v12  ;;  %11508 = vst [vmem:[#allocation158_spill] sm:$0xff] %v7292_v5 }
 0x763   : >> { %v7294_v11 = vpop.permute.xlu1 %1676  ;;  %v7296_v7 = vpop.permute.xlu0 %1678 }
 0x764   : >> { %11509 = vst [vmem:[#allocation159_spill] sm:$0xff] %v7294_v11  ;;  %11510 = vst [vmem:[#allocation160_spill] sm:$0xff] %v7296_v7 }
 0x767   : >> { %v7298_v15 = vpop.permute.xlu1 %1680  ;;  %v7300_v16 = vpop.permute.xlu0 %1682 }
 0x768   : >> { %11511 = vst [vmem:[#allocation161_spill] sm:$0xff] %v7298_v15  ;;  %11512 = vst [vmem:[#allocation162_spill] sm:$0xff] %v7300_v16 }
 0x76b   : >> { %v7302_v14 = vpop.permute.xlu1 %1684  ;;  %v7304_v6 = vpop.permute.xlu0 %1686 }
 0x76c   : >> { %11513 = vst [vmem:[#allocation163_spill] sm:$0xff] %v7302_v14  ;;  %11514 = vst [vmem:[#allocation164_spill] sm:$0xff] %v7304_v6 }
 0x76f   : >> { %v7306_v13 = vpop.permute.xlu1 %1688  ;;  %v7308_v8 = vpop.permute.xlu0 %1690 }
 0x770   : >> { %11515 = vst [vmem:[#allocation165_spill] sm:$0xff] %v7306_v13  ;;  %11516 = vst [vmem:[#allocation166_spill] sm:$0xff] %v7308_v8 }
 0x773   : >> { %v7310_v9 = vpop.permute.xlu1 %1692  ;;  %v7312_v12 = vpop.permute.xlu0 %1694 }
 0x774   : >> { %11517 = vst [vmem:[#allocation167_spill] sm:$0xff] %v7310_v9  ;;  %11518 = vst [vmem:[#allocation168_spill] sm:$0xff] %v7312_v12 }
 0x784   : >> { %v1733_v5 = vpop.permute.xlu1 %1732  ;;  %v1737_v14 = vpop.permute.xlu0 %1736 }
 0x785   : >> { %v1741_v11 = vmul.f32 %v1733_v5, %v6562_v39  ;;  %v1739_v7 = vmul.f32 %v1733_v5, %v6554_v33  ;;  %v1743_v6 = vmul.f32 %v1733_v5, %v6572_v45  ;;  %v1740_v13 = vmul.f32 %v1733_v5, %v6556_v34 }
 0x786   : >> { %v1745_v12 = vmul.f32 %v1737_v14, %v6554_v33  ;;  %v1742_v9 = vmul.f32 %v1733_v5, %v6564_v40 }
 0x787   : >> { %1767 = vrot.lane.b32.xlu0 %v1741_v11, %s6359_s24  ;;  %1763 = vrot.lane.b32.xlu1 %v1739_v7, %s6359_s24  ;;  %v1747_v11 = vmul.f32 %v1737_v14, %v6562_v39  ;;  %v1744_v7 = vmul.f32 %v1733_v5, %v6574_v46  ;;  %v1750_v5 = vmul.f32 %v1737_v14, %v6574_v46 }
 0x78b   : >> { %1771 = vrot.lane.b32.xlu0 %v1743_v6, %s6359_s24  ;;  %1765 = vrot.lane.b32.xlu1 %v1740_v13, %s6359_s24  ;;  %v1749_v6 = vmul.f32 %v1737_v14, %v6572_v45  ;;  %v1746_v13 = vmul.f32 %v1737_v14, %v6556_v34 }
 0x78f   : >> { %1775 = vrot.lane.b32.xlu0 %v1745_v12, %s6359_s24  ;;  %1769 = vrot.lane.b32.xlu1 %v1742_v9, %s6359_s24  ;;  %v1748_v12 = vmul.f32 %v1737_v14, %v6564_v40  ;;  %v6360_v9 = vmov 18  }
 0x793   : >> { %1779 = vrot.lane.b32.xlu0 %v1747_v11, %s6359_s24  ;;  %1773 = vrot.lane.b32.xlu1 %v1744_v7, %s6359_s24 }
 0x797   : >> { %1783 = vrot.lane.b32.xlu0 %v1749_v6, %s6359_s24  ;;  %1777 = vrot.lane.b32.xlu1 %v1746_v13, %s6359_s24 }
 0x79b   : >> { %1823 = vperm.xlu0 %5887, %v11374_v0   ;;  %1781 = vrot.lane.b32.xlu1 %v1748_v12, %s6359_s24 }
 0x79f   : >> { %1785 = vrot.lane.b32.xlu1 %v1750_v5, %s6359_s24  ;;  %5890 = vset.pattern.permute.xlu0 %v6360_v9 }
 0x7a3   : >> { %1827 = vperm.xlu1 %5888, %v11373_v1  }
 0x7a7   : >> { %5889 = vset.pattern.permute.xlu1 %v6360_v9 }
 0x7f9   : >> { %v7340_v11 = vpop.permute.xlu1 %1763  ;;  %v7342_v7 = vpop.permute.xlu0 %1767 }
 0x7fa   : >> { %11519 = vst [vmem:[#allocation169_spill] sm:$0xff] %v7340_v11  ;;  %11520 = vst [vmem:[#allocation170_spill] sm:$0xff] %v7342_v7 }
 0x7fd   : >> { %v7344_v6 = vpop.permute.xlu1 %1765  ;;  %v7346_v13 = vpop.permute.xlu0 %1771 }
 0x7fe   : >> { %11521 = vst [vmem:[#allocation171_spill] sm:$0xff] %v7344_v6  ;;  %11522 = vst [vmem:[#allocation172_spill] sm:$0xff] %v7346_v13 }
 0x801   : >> { %v7348_v8 = vpop.permute.xlu1 %1769  ;;  %v7350_v12 = vpop.permute.xlu0 %1775 }
 0x802   : >> { %11523 = vst [vmem:[#allocation173_spill] sm:$0xff] %v7348_v8  ;;  %11524 = vst [vmem:[#allocation174_spill] sm:$0xff] %v7350_v12 }
 0x805   : >> { %v7352_v14 = vpop.permute.xlu1 %1773  ;;  %v7354_v5 = vpop.permute.xlu0 %1779 }
 0x806   : >> { %11525 = vst [vmem:[#allocation175_spill] sm:$0xff] %v7352_v14  ;;  %11526 = vst [vmem:[#allocation176_spill] sm:$0xff] %v7354_v5 }
 0x809   : >> { %v7356_v16 = vpop.permute.xlu1 %1777  ;;  %v7358_v15 = vpop.permute.xlu0 %1783 }
 0x80a   : >> { %11527 = vst [vmem:[#allocation177_spill] sm:$0xff] %v7356_v16  ;;  %11528 = vst [vmem:[#allocation178_spill] sm:$0xff] %v7358_v15 }
 0x80d   : >> { %v7360_v9 = vpop.permute.xlu1 %1781 }
 0x80e   : >> { %11529 = vst [vmem:[#allocation179_spill] sm:$0xff] %v7360_v9 }
 0x811   : >> { %v7366_v12 = vpop.permute.xlu1 %1785 }
 0x812   : >> { %11530 = vst [vmem:[#allocation180_spill] sm:$0xff] %v7366_v12 }
 0x81a   : >> { %v1824_v11 = vpop.permute.xlu0 %1823 }
 0x81b   : >> { %v1831_v7 = vmul.f32 %v1824_v11, %v6556_v34  ;;  %v1830_v6 = vmul.f32 %v1824_v11, %v6554_v33  ;;  %v1833_v5 = vmul.f32 %v1824_v11, %v6564_v40  ;;  %v1832_v16 = vmul.f32 %v1824_v11, %v6562_v39 }
 0x81c   : >> { %v1835_v9 = vmul.f32 %v1824_v11, %v6574_v46  ;;  %v1834_v14 = vmul.f32 %v1824_v11, %v6572_v45 }
 0x81d   : >> { %1856 = vrot.lane.b32.xlu0 %v1831_v7, %s6361_s25  ;;  %1854 = vrot.lane.b32.xlu1 %v1830_v6, %s6361_s25 }
 0x821   : >> { %1860 = vrot.lane.b32.xlu0 %v1833_v5, %s6361_s25  ;;  %1858 = vrot.lane.b32.xlu1 %v1832_v16, %s6361_s25 }
 0x822   : >> { %v1828_v15 = vpop.permute.xlu1 %1827 }
 0x823   : >> { %v1837_v7 = vmul.f32 %v1828_v15, %v6556_v34  ;;  %v1836_v6 = vmul.f32 %v1828_v15, %v6554_v33  ;;  %v1839_v5 = vmul.f32 %v1828_v15, %v6564_v40  ;;  %v1838_v16 = vmul.f32 %v1828_v15, %v6562_v39 }
 0x824   : >> { %v1841_v11 = vmul.f32 %v1828_v15, %v6574_v46 }
 0x825   : >> { %1864 = vrot.lane.b32.xlu0 %v1835_v9, %s6361_s25  ;;  %1862 = vrot.lane.b32.xlu1 %v1834_v14, %s6361_s25  ;;  %v1840_v14 = vmul.f32 %v1828_v15, %v6572_v45  ;;  %v6362_v9 = vmov 19  }
 0x829   : >> { %1868 = vrot.lane.b32.xlu0 %v1837_v7, %s6361_s25  ;;  %1866 = vrot.lane.b32.xlu1 %v1836_v6, %s6361_s25 }
 0x82d   : >> { %1872 = vrot.lane.b32.xlu0 %v1839_v5, %s6361_s25  ;;  %1870 = vrot.lane.b32.xlu1 %v1838_v16, %s6361_s25 }
 0x831   : >> { %1876 = vrot.lane.b32.xlu0 %v1841_v11, %s6361_s25  ;;  %1874 = vrot.lane.b32.xlu1 %v1840_v14, %s6361_s25 }
 0x835   : >> { %1914 = vperm.xlu1 %5889, %v11374_v0   ;;  %1918 = vperm.xlu0 %5890, %v11373_v1  }
 0x839   : >> { %5891 = vset.pattern.permute.xlu0 %v6362_v9  ;;  %5892 = vset.pattern.permute.xlu1 %v6362_v9 }
 0x88f   : >> { %v7390_v7 = vpop.permute.xlu1 %1854  ;;  %v7392_v6 = vpop.permute.xlu0 %1856 }
 0x890   : >> { %11531 = vst [vmem:[#allocation181_spill] sm:$0xff] %v7390_v7  ;;  %11532 = vst [vmem:[#allocation182_spill] sm:$0xff] %v7392_v6 }
 0x893   : >> { %v7394_v5 = vpop.permute.xlu1 %1858  ;;  %v7396_v16 = vpop.permute.xlu0 %1860 }
 0x894   : >> { %11533 = vst [vmem:[#allocation183_spill] sm:$0xff] %v7394_v5  ;;  %11534 = vst [vmem:[#allocation184_spill] sm:$0xff] %v7396_v16 }
 0x897   : >> { %v7398_v15 = vpop.permute.xlu1 %1862  ;;  %v7400_v11 = vpop.permute.xlu0 %1864 }
 0x898   : >> { %11535 = vst [vmem:[#allocation185_spill] sm:$0xff] %v7398_v15  ;;  %11536 = vst [vmem:[#allocation186_spill] sm:$0xff] %v7400_v11 }
 0x89b   : >> { %v7402_v14 = vpop.permute.xlu1 %1866  ;;  %v7404_v12 = vpop.permute.xlu0 %1868 }
 0x89c   : >> { %11537 = vst [vmem:[#allocation187_spill] sm:$0xff] %v7402_v14  ;;  %11538 = vst [vmem:[#allocation188_spill] sm:$0xff] %v7404_v12 }
 0x89f   : >> { %v7406_v13 = vpop.permute.xlu1 %1870  ;;  %v7408_v8 = vpop.permute.xlu0 %1872 }
 0x8a0   : >> { %11539 = vst [vmem:[#allocation189_spill] sm:$0xff] %v7406_v13  ;;  %11540 = vst [vmem:[#allocation190_spill] sm:$0xff] %v7408_v8 }
 0x8a3   : >> { %v7410_v9 = vpop.permute.xlu1 %1874  ;;  %v7412_v7 = vpop.permute.xlu0 %1876 }
 0x8a4   : >> { %11541 = vst [vmem:[#allocation191_spill] sm:$0xff] %v7410_v9  ;;  %11542 = vst [vmem:[#allocation192_spill] sm:$0xff] %v7412_v7 }
 0x8b4   : >> { %v1915_v6 = vpop.permute.xlu1 %1914  ;;  %v1919_v14 = vpop.permute.xlu0 %1918 }
 0x8b5   : >> { %v1923_v5 = vmul.f32 %v1915_v6, %v6562_v39  ;;  %v1921_v16 = vmul.f32 %v1915_v6, %v6554_v33  ;;  %v1925_v12 = vmul.f32 %v1915_v6, %v6572_v45  ;;  %v1922_v13 = vmul.f32 %v1915_v6, %v6556_v34 }
 0x8b6   : >> { %v1927_v7 = vmul.f32 %v1919_v14, %v6554_v33  ;;  %v1924_v9 = vmul.f32 %v1915_v6, %v6564_v40 }
 0x8b7   : >> { %1949 = vrot.lane.b32.xlu0 %v1923_v5, %s6363_s20  ;;  %1945 = vrot.lane.b32.xlu1 %v1921_v16, %s6363_s20  ;;  %v1929_v5 = vmul.f32 %v1919_v14, %v6562_v39  ;;  %v1926_v16 = vmul.f32 %v1915_v6, %v6574_v46  ;;  %v1932_v6 = vmul.f32 %v1919_v14, %v6574_v46 }
 0x8bb   : >> { %1953 = vrot.lane.b32.xlu0 %v1925_v12, %s6363_s20  ;;  %1947 = vrot.lane.b32.xlu1 %v1922_v13, %s6363_s20  ;;  %v1931_v12 = vmul.f32 %v1919_v14, %v6572_v45  ;;  %v1928_v13 = vmul.f32 %v1919_v14, %v6556_v34 }
 0x8bf   : >> { %1957 = vrot.lane.b32.xlu0 %v1927_v7, %s6363_s20  ;;  %1951 = vrot.lane.b32.xlu1 %v1924_v9, %s6363_s20  ;;  %v1930_v7 = vmul.f32 %v1919_v14, %v6564_v40  ;;  %v6364_v9 = vmov 20  }
 0x8c3   : >> { %1961 = vrot.lane.b32.xlu0 %v1929_v5, %s6363_s20  ;;  %1955 = vrot.lane.b32.xlu1 %v1926_v16, %s6363_s20 }
 0x8c7   : >> { %1965 = vrot.lane.b32.xlu0 %v1931_v12, %s6363_s20  ;;  %1959 = vrot.lane.b32.xlu1 %v1928_v13, %s6363_s20 }
 0x8cb   : >> { %2005 = vperm.xlu0 %5891, %v11374_v0   ;;  %1963 = vrot.lane.b32.xlu1 %v1930_v7, %s6363_s20 }
 0x8cf   : >> { %1967 = vrot.lane.b32.xlu1 %v1932_v6, %s6363_s20  ;;  %5894 = vset.pattern.permute.xlu0 %v6364_v9 }
 0x8d3   : >> { %2009 = vperm.xlu1 %5892, %v11373_v1  }
 0x8d7   : >> { %5893 = vset.pattern.permute.xlu1 %v6364_v9 }
 0x929   : >> { %v7440_v5 = vpop.permute.xlu1 %1945  ;;  %v7442_v16 = vpop.permute.xlu0 %1949 }
 0x92a   : >> { %11543 = vst [vmem:[#allocation193_spill] sm:$0xff] %v7440_v5  ;;  %11544 = vst [vmem:[#allocation194_spill] sm:$0xff] %v7442_v16 }
 0x92d   : >> { %v7444_v12 = vpop.permute.xlu1 %1947  ;;  %v7446_v13 = vpop.permute.xlu0 %1953 }
 0x92e   : >> { %11545 = vst [vmem:[#allocation195_spill] sm:$0xff] %v7444_v12  ;;  %11546 = vst [vmem:[#allocation196_spill] sm:$0xff] %v7446_v13 }
 0x931   : >> { %v7448_v8 = vpop.permute.xlu1 %1951  ;;  %v7450_v7 = vpop.permute.xlu0 %1957 }
 0x932   : >> { %11547 = vst [vmem:[#allocation197_spill] sm:$0xff] %v7448_v8  ;;  %11548 = vst [vmem:[#allocation198_spill] sm:$0xff] %v7450_v7 }
 0x935   : >> { %v7452_v14 = vpop.permute.xlu1 %1955  ;;  %v7454_v6 = vpop.permute.xlu0 %1961 }
 0x936   : >> { %11549 = vst [vmem:[#allocation199_spill] sm:$0xff] %v7452_v14  ;;  %11550 = vst [vmem:[#allocation200_spill] sm:$0xff] %v7454_v6 }
 0x939   : >> { %v7456_v11 = vpop.permute.xlu1 %1959  ;;  %v7458_v15 = vpop.permute.xlu0 %1965 }
 0x93a   : >> { %11551 = vst [vmem:[#allocation201_spill] sm:$0xff] %v7456_v11  ;;  %11552 = vst [vmem:[#allocation202_spill] sm:$0xff] %v7458_v15 }
 0x93d   : >> { %v7460_v9 = vpop.permute.xlu1 %1963 }
 0x93e   : >> { %11553 = vst [vmem:[#allocation203_spill] sm:$0xff] %v7460_v9 }
 0x941   : >> { %v7466_v7 = vpop.permute.xlu1 %1967 }
 0x942   : >> { %11554 = vst [vmem:[#allocation204_spill] sm:$0xff] %v7466_v7 }
 0x94a   : >> { %v2006_v5 = vpop.permute.xlu0 %2005 }
 0x94b   : >> { %v2013_v16 = vmul.f32 %v2006_v5, %v6556_v34  ;;  %v2012_v12 = vmul.f32 %v2006_v5, %v6554_v33  ;;  %v2015_v6 = vmul.f32 %v2006_v5, %v6564_v40  ;;  %v2014_v11 = vmul.f32 %v2006_v5, %v6562_v39 }
 0x94c   : >> { %v2017_v9 = vmul.f32 %v2006_v5, %v6574_v46  ;;  %v2016_v14 = vmul.f32 %v2006_v5, %v6572_v45 }
 0x94d   : >> { %2038 = vrot.lane.b32.xlu0 %v2013_v16, %s6365_s27  ;;  %2036 = vrot.lane.b32.xlu1 %v2012_v12, %s6365_s27 }
 0x951   : >> { %2042 = vrot.lane.b32.xlu0 %v2015_v6, %s6365_s27  ;;  %2040 = vrot.lane.b32.xlu1 %v2014_v11, %s6365_s27 }
 0x952   : >> { %v2010_v15 = vpop.permute.xlu1 %2009 }
 0x953   : >> { %v2019_v16 = vmul.f32 %v2010_v15, %v6556_v34  ;;  %v2018_v12 = vmul.f32 %v2010_v15, %v6554_v33  ;;  %v2021_v6 = vmul.f32 %v2010_v15, %v6564_v40  ;;  %v2020_v11 = vmul.f32 %v2010_v15, %v6562_v39 }
 0x954   : >> { %v2023_v5 = vmul.f32 %v2010_v15, %v6574_v46 }
 0x955   : >> { %2046 = vrot.lane.b32.xlu0 %v2017_v9, %s6365_s27  ;;  %2044 = vrot.lane.b32.xlu1 %v2016_v14, %s6365_s27  ;;  %v2022_v14 = vmul.f32 %v2010_v15, %v6572_v45  ;;  %v6366_v9 = vmov 21  }
 0x959   : >> { %2050 = vrot.lane.b32.xlu0 %v2019_v16, %s6365_s27  ;;  %2048 = vrot.lane.b32.xlu1 %v2018_v12, %s6365_s27 }
 0x95d   : >> { %2054 = vrot.lane.b32.xlu0 %v2021_v6, %s6365_s27  ;;  %2052 = vrot.lane.b32.xlu1 %v2020_v11, %s6365_s27 }
 0x961   : >> { %2058 = vrot.lane.b32.xlu0 %v2023_v5, %s6365_s27  ;;  %2056 = vrot.lane.b32.xlu1 %v2022_v14, %s6365_s27 }
 0x965   : >> { %2096 = vperm.xlu1 %5893, %v11374_v0   ;;  %2100 = vperm.xlu0 %5894, %v11373_v1  }
 0x969   : >> { %5895 = vset.pattern.permute.xlu0 %v6366_v9  ;;  %5896 = vset.pattern.permute.xlu1 %v6366_v9 }
 0x9bf   : >> { %v7490_v16 = vpop.permute.xlu1 %2036  ;;  %v7494_v6 = vpop.permute.xlu0 %2038 }
 0x9c0   : >> { %11555 = vst [vmem:[#allocation205_spill] sm:$0xff] %v7490_v16  ;;  %11557 = vst [vmem:[#allocation207_spill] sm:$0xff] %v7494_v6 }
 0x9c3   : >> { %v7492_v12 = vpop.permute.xlu1 %2040  ;;  %v7498_v15 = vpop.permute.xlu0 %2042 }
 0x9c4   : >> { %11556 = vst [vmem:[#allocation206_spill] sm:$0xff] %v7492_v12  ;;  %11559 = vst [vmem:[#allocation209_spill] sm:$0xff] %v7498_v15  ;;  %v2105_v15 = vsub.s32 6, %v11375_v10 }
 0x9c7   : >> { %v7496_v11 = vpop.permute.xlu1 %2044  ;;  %v7502_v14 = vpop.permute.xlu0 %2046 }
 0x9c8   : >> { %11558 = vst [vmem:[#allocation208_spill] sm:$0xff] %v7496_v11  ;;  %11561 = vst [vmem:[#allocation211_spill] sm:$0xff] %v7502_v14 }
 0x9cb   : >> { %v7500_v5 = vpop.permute.xlu1 %2048  ;;  %v7506_v13 = vpop.permute.xlu0 %2050 }
 0x9cc   : >> { %11560 = vst [vmem:[#allocation210_spill] sm:$0xff] %v7500_v5  ;;  %11563 = vst [vmem:[#allocation213_spill] sm:$0xff] %v7506_v13  ;;  %v6289_v13 = vld [vmem:[%s6547_s6] sm:$0x7f]  ;;  %s11292_s6 = smov 15  }
 0x9cf   : >> { %v7504_v7 = vpop.permute.xlu1 %2052  ;;  %v7510_v16 = vpop.permute.xlu0 %2054 }
 0x9d0   : >> { %11562 = vst [vmem:[#allocation212_spill] sm:$0xff] %v7504_v7  ;;  %11565 = vst [vmem:[#allocation215_spill] sm:$0xff] %v7510_v16  ;;  %v7522_v16 = vrot.slane %v6289_v13, %v2105_v15 }
 0x9d3   : >> { %v7508_v9 = vpop.permute.xlu1 %2056  ;;  %v7517_v5 = vpop.permute.xlu0 %2058 }
 0x9d4   : >> { %11564 = vst [vmem:[#allocation214_spill] sm:$0xff] %v7508_v9  ;;  %11566 = vst [vmem:[#allocation216_spill] sm:$0xff] %v7517_v5 }
 0x9e4   : >> { %v2097_v12 = vpop.permute.xlu1 %2096  ;;  %v2101_v14 = vpop.permute.xlu0 %2100 }
 0x9e5   : >> { %v2110_v6 = vmul.f32 %v2097_v12, %v6562_v39  ;;  %v2108_v11 = vmul.f32 %v2097_v12, %v6554_v33  ;;  %v2112_v7 = vmul.f32 %v2097_v12, %v6572_v45  ;;  %v2109_v9 = vmul.f32 %v2097_v12, %v6556_v34 }
 0x9e6   : >> { %v2114_v10 = vmul.f32 %v7522_v16, %v2097_v12  ;;  %v2113_v5 = vmul.f32 %v2097_v12, %v6574_v46  ;;  %v2118_v13 = vmul.f32 %v2101_v14, %v6564_v40  ;;  %v2117_v15 = vmul.f32 %v2101_v14, %v6562_v39 }
 0x9e7   : >> { %2140 = vrot.lane.b32.xlu0 %v2110_v6, %s6367_s30  ;;  %2136 = vrot.lane.b32.xlu1 %v2108_v11, %s6367_s30  ;;  %v2111_v6 = vmul.f32 %v2097_v12, %v6564_v40  ;;  %v2116_v11 = vmul.f32 %v2101_v14, %v6556_v34  ;;  %v2119_v12 = vmul.f32 %v2101_v14, %v6572_v45 }
 0x9eb   : >> { %2144 = vrot.lane.b32.xlu0 %v2112_v7, %s6367_s30  ;;  %2138 = vrot.lane.b32.xlu1 %v2109_v9, %s6367_s30  ;;  %v2115_v7 = vmul.f32 %v2101_v14, %v6554_v33  ;;  %v6368_v9 = vmov 22  }
 0x9ef   : >> { %2148 = vrot.lane.b32.xlu0 %v2114_v10, %s6367_s30  ;;  %2142 = vrot.lane.b32.xlu1 %v2111_v6, %s6367_s30  ;;  %v2120_v10 = vmul.f32 %v2101_v14, %v6574_v46 }
 0x9f3   : >> { %2152 = vrot.lane.b32.xlu0 %v2116_v11, %s6367_s30  ;;  %2146 = vrot.lane.b32.xlu1 %v2113_v5, %s6367_s30  ;;  %v2121_v5 = vmul.f32 %v7522_v16, %v2101_v14 }
 0x9f7   : >> { %2156 = vrot.lane.b32.xlu0 %v2118_v13, %s6367_s30  ;;  %2150 = vrot.lane.b32.xlu1 %v2115_v7, %s6367_s30 }
 0x9fb   : >> { %2160 = vrot.lane.b32.xlu0 %v2120_v10, %s6367_s30  ;;  %2154 = vrot.lane.b32.xlu1 %v2117_v15, %s6367_s30 }
 0x9ff   : >> { %2202 = vperm.xlu0 %5895, %v11374_v0   ;;  %2158 = vrot.lane.b32.xlu1 %v2119_v12, %s6367_s30 }
 0xa03   : >> { %2162 = vrot.lane.b32.xlu1 %v2121_v5, %s6367_s30  ;;  %5898 = vset.pattern.permute.xlu0 %v6368_v9 }
 0xa07   : >> { %2206 = vperm.xlu1 %5896, %v11373_v1  }
 0xa0b   : >> { %5897 = vset.pattern.permute.xlu1 %v6368_v9 }
 0xa59   : >> { %v7548_v6 = vpop.permute.xlu1 %2136  ;;  %v7550_v11 = vpop.permute.xlu0 %2140 }
 0xa5a   : >> { %11567 = vst [vmem:[#allocation217_spill] sm:$0xff] %v7548_v6  ;;  %11568 = vst [vmem:[#allocation218_spill] sm:$0xff] %v7550_v11 }
 0xa5d   : >> { %v7552_v13 = vpop.permute.xlu1 %2138  ;;  %v7554_v7 = vpop.permute.xlu0 %2144 }
 0xa5e   : >> { %11569 = vst [vmem:[#allocation219_spill] sm:$0xff] %v7552_v13  ;;  %11570 = vst [vmem:[#allocation220_spill] sm:$0xff] %v7554_v7 }
 0xa61   : >> { %v7556_v10 = vpop.permute.xlu1 %2142  ;;  %v7558_v15 = vpop.permute.xlu0 %2148 }
 0xa62   : >> { %11571 = vst [vmem:[#allocation221_spill] sm:$0xff] %v7556_v10  ;;  %11572 = vst [vmem:[#allocation222_spill] sm:$0xff] %v7558_v15 }
 0xa65   : >> { %v7560_v14 = vpop.permute.xlu1 %2146  ;;  %v7562_v12 = vpop.permute.xlu0 %2152 }
 0xa66   : >> { %11573 = vst [vmem:[#allocation223_spill] sm:$0xff] %v7560_v14  ;;  %11574 = vst [vmem:[#allocation224_spill] sm:$0xff] %v7562_v12 }
 0xa69   : >> { %v7564_v5 = vpop.permute.xlu1 %2150  ;;  %v7566_v8 = vpop.permute.xlu0 %2156 }
 0xa6a   : >> { %11575 = vst [vmem:[#allocation225_spill] sm:$0xff] %v7564_v5  ;;  %11576 = vst [vmem:[#allocation226_spill] sm:$0xff] %v7566_v8 }
 0xa6d   : >> { %v7568_v9 = vpop.permute.xlu1 %2154  ;;  %v7570_v6 = vpop.permute.xlu0 %2160 }
 0xa6e   : >> { %11577 = vst [vmem:[#allocation227_spill] sm:$0xff] %v7568_v9  ;;  %11578 = vst [vmem:[#allocation228_spill] sm:$0xff] %v7570_v6 }
 0xa71   : >> { %v7572_v11 = vpop.permute.xlu1 %2158 }
 0xa72   : >> { %11579 = vst [vmem:[#allocation229_spill] sm:$0xff] %v7572_v11 }
 0xa75   : >> { %v7578_v12 = vpop.permute.xlu1 %2162 }
 0xa76   : >> { %11580 = vst [vmem:[#allocation230_spill] sm:$0xff] %v7578_v12 }
 0xa7e   : >> { %v2203_v13 = vpop.permute.xlu0 %2202 }
 0xa7f   : >> { %v2210_v7 = vmul.f32 %v2203_v13, %v6556_v34  ;;  %v2209_v10 = vmul.f32 %v2203_v13, %v6554_v33  ;;  %v2212_v8 = vmul.f32 %v2203_v13, %v6564_v40  ;;  %v2211_v9 = vmul.f32 %v2203_v13, %v6562_v39 }
 0xa80   : >> { %v2214_v11 = vmul.f32 %v2203_v13, %v6574_v46  ;;  %v2213_v5 = vmul.f32 %v2203_v13, %v6572_v45 }
 0xa81   : >> { %2239 = vrot.lane.b32.xlu0 %v2210_v7, %s11292_s6  ;;  %2237 = vrot.lane.b32.xlu1 %v2209_v10, %s11292_s6  ;;  %v2215_v10 = vmul.f32 %v2203_v13, %v7522_v16 }
 0xa85   : >> { %2243 = vrot.lane.b32.xlu0 %v2212_v8, %s11292_s6  ;;  %2241 = vrot.lane.b32.xlu1 %v2211_v9, %s11292_s6 }
 0xa86   : >> { %v2207_v6 = vpop.permute.xlu1 %2206 }
 0xa87   : >> { %v2216_v7 = vmul.f32 %v2207_v6, %v6554_v33  ;;  %v2217_v8 = vmul.f32 %v2207_v6, %v6556_v34  ;;  %v2218_v9 = vmul.f32 %v2207_v6, %v6562_v39  ;;  %v2221_v13 = vmul.f32 %v2207_v6, %v6574_v46 }
 0xa89   : >> { %2247 = vrot.lane.b32.xlu0 %v2214_v11, %s11292_s6  ;;  %2245 = vrot.lane.b32.xlu1 %v2213_v5, %s11292_s6  ;;  %v2219_v11 = vmul.f32 %v2207_v6, %v6564_v40  ;;  %v2220_v5 = vmul.f32 %v2207_v6, %v6572_v45 }
 0xa8d   : >> { %2249 = vrot.lane.b32.xlu1 %v2215_v10, %s11292_s6  ;;  %2251 = vrot.lane.b32.xlu0 %v2216_v7, %s11292_s6  ;;  %v2222_v7 = vmul.f32 %v2207_v6, %v7522_v16  ;;  %v6370_v10 = vmov 23  }
 0xa91   : >> { %2253 = vrot.lane.b32.xlu1 %v2217_v8, %s11292_s6  ;;  %2255 = vrot.lane.b32.xlu0 %v2218_v9, %s11292_s6 }
 0xa95   : >> { %2257 = vrot.lane.b32.xlu1 %v2219_v11, %s11292_s6  ;;  %2259 = vrot.lane.b32.xlu0 %v2220_v5, %s11292_s6 }
 0xa99   : >> { %2261 = vrot.lane.b32.xlu1 %v2221_v13, %s11292_s6  ;;  %2263 = vrot.lane.b32.xlu0 %v2222_v7, %s11292_s6  ;;  %s11304_s6 = smov 14  }
 0xa9d   : >> { %2303 = vperm.xlu1 %5897, %v11374_v0   ;;  %2307 = vperm.xlu0 %5898, %v11373_v1  }
 0xaa1   : >> { %5899 = vset.pattern.permute.xlu0 %v6370_v10  ;;  %5900 = vset.pattern.permute.xlu1 %v6370_v10 }
 0xaf3   : >> { %v7606_v8 = vpop.permute.xlu1 %2237  ;;  %v7610_v11 = vpop.permute.xlu0 %2239 }
 0xaf4   : >> { %11581 = vst [vmem:[#allocation231_spill] sm:$0xff] %v7606_v8  ;;  %11583 = vst [vmem:[#allocation233_spill] sm:$0xff] %v7610_v11 }
 0xaf7   : >> { %v7608_v9 = vpop.permute.xlu1 %2241  ;;  %v7614_v6 = vpop.permute.xlu0 %2243 }
 0xaf8   : >> { %11582 = vst [vmem:[#allocation232_spill] sm:$0xff] %v7608_v9  ;;  %11585 = vst [vmem:[#allocation235_spill] sm:$0xff] %v7614_v6 }
 0xafb   : >> { %v7612_v5 = vpop.permute.xlu1 %2245  ;;  %v7618_v7 = vpop.permute.xlu0 %2247 }
 0xafc   : >> { %11584 = vst [vmem:[#allocation234_spill] sm:$0xff] %v7612_v5  ;;  %11587 = vst [vmem:[#allocation237_spill] sm:$0xff] %v7618_v7 }
 0xaff   : >> { %v7616_v13 = vpop.permute.xlu1 %2249  ;;  %v7622_v15 = vpop.permute.xlu0 %2251 }
 0xb00   : >> { %11586 = vst [vmem:[#allocation236_spill] sm:$0xff] %v7616_v13  ;;  %11589 = vst [vmem:[#allocation239_spill] sm:$0xff] %v7622_v15 }
 0xb03   : >> { %v7620_v12 = vpop.permute.xlu1 %2253  ;;  %v7626_v10 = vpop.permute.xlu0 %2255 }
 0xb04   : >> { %11588 = vst [vmem:[#allocation238_spill] sm:$0xff] %v7620_v12  ;;  %11591 = vst [vmem:[#allocation241_spill] sm:$0xff] %v7626_v10 }
 0xb07   : >> { %v7624_v14 = vpop.permute.xlu1 %2257  ;;  %v7630_v9 = vpop.permute.xlu0 %2259 }
 0xb08   : >> { %11590 = vst [vmem:[#allocation240_spill] sm:$0xff] %v7624_v14  ;;  %11593 = vst [vmem:[#allocation243_spill] sm:$0xff] %v7630_v9 }
 0xb0b   : >> { %v7628_v8 = vpop.permute.xlu1 %2261  ;;  %v7636_v12 = vpop.permute.xlu0 %2263 }
 0xb0c   : >> { %11592 = vst [vmem:[#allocation242_spill] sm:$0xff] %v7628_v8  ;;  %11594 = vst [vmem:[#allocation244_spill] sm:$0xff] %v7636_v12 }
 0xb1c   : >> { %v2304_v11 = vpop.permute.xlu1 %2303  ;;  %v2308_v8 = vpop.permute.xlu0 %2307 }
 0xb1d   : >> { %v2312_v5 = vmul.f32 %v2304_v11, %v6562_v39  ;;  %v2310_v6 = vmul.f32 %v2304_v11, %v6554_v33  ;;  %v2314_v14 = vmul.f32 %v2304_v11, %v6572_v45  ;;  %v2311_v10 = vmul.f32 %v2304_v11, %v6556_v34 }
 0xb1e   : >> { %v2316_v9 = vmul.f32 %v2304_v11, %v7522_v16  ;;  %v2313_v15 = vmul.f32 %v2304_v11, %v6564_v40 }
 0xb1f   : >> { %2342 = vrot.lane.b32.xlu0 %v2312_v5, %s11304_s6  ;;  %2338 = vrot.lane.b32.xlu1 %v2310_v6, %s11304_s6  ;;  %v2318_v5 = vmul.f32 %v2308_v8, %v6556_v34  ;;  %v2315_v6 = vmul.f32 %v2304_v11, %v6574_v46  ;;  %v2321_v11 = vmul.f32 %v2308_v8, %v6572_v45 }
 0xb23   : >> { %2346 = vrot.lane.b32.xlu0 %v2314_v14, %s11304_s6  ;;  %2340 = vrot.lane.b32.xlu1 %v2311_v10, %s11304_s6  ;;  %v2320_v14 = vmul.f32 %v2308_v8, %v6564_v40  ;;  %v2317_v10 = vmul.f32 %v2308_v8, %v6554_v33 }
 0xb27   : >> { %2350 = vrot.lane.b32.xlu0 %v2316_v9, %s11304_s6  ;;  %2344 = vrot.lane.b32.xlu1 %v2313_v15, %s11304_s6  ;;  %v2322_v9 = vmul.f32 %v2308_v8, %v6574_v46  ;;  %v2319_v15 = vmul.f32 %v2308_v8, %v6562_v39 }
 0xb2b   : >> { %2354 = vrot.lane.b32.xlu0 %v2318_v5, %s11304_s6  ;;  %2348 = vrot.lane.b32.xlu1 %v2315_v6, %s11304_s6  ;;  %v2323_v5 = vmul.f32 %v2308_v8, %v7522_v16  ;;  %v6372_v6 = vmov 24  }
 0xb2f   : >> { %2358 = vrot.lane.b32.xlu0 %v2320_v14, %s11304_s6  ;;  %2352 = vrot.lane.b32.xlu1 %v2317_v10, %s11304_s6 }
 0xb33   : >> { %2362 = vrot.lane.b32.xlu0 %v2322_v9, %s11304_s6  ;;  %2356 = vrot.lane.b32.xlu1 %v2319_v15, %s11304_s6 }
 0xb37   : >> { %2404 = vperm.xlu0 %5899, %v11374_v0   ;;  %2360 = vrot.lane.b32.xlu1 %v2321_v11, %s11304_s6 }
 0xb3b   : >> { %2364 = vrot.lane.b32.xlu1 %v2323_v5, %s11304_s6  ;;  %5902 = vset.pattern.permute.xlu0 %v6372_v6  ;;  %s11322_s6 = smov 13  }
 0xb3f   : >> { %2408 = vperm.xlu1 %5900, %v11373_v1  }
 0xb43   : >> { %5901 = vset.pattern.permute.xlu1 %v6372_v6 }
 0xb91   : >> { %v7664_v14 = vpop.permute.xlu1 %2338  ;;  %v7666_v10 = vpop.permute.xlu0 %2342 }
 0xb92   : >> { %11595 = vst [vmem:[#allocation245_spill] sm:$0xff] %v7664_v14  ;;  %11596 = vst [vmem:[#allocation246_spill] sm:$0xff] %v7666_v10 }
 0xb95   : >> { %v7668_v9 = vpop.permute.xlu1 %2340  ;;  %v7670_v15 = vpop.permute.xlu0 %2346 }
 0xb96   : >> { %11597 = vst [vmem:[#allocation247_spill] sm:$0xff] %v7668_v9  ;;  %11598 = vst [vmem:[#allocation248_spill] sm:$0xff] %v7670_v15 }
 0xb99   : >> { %v7672_v12 = vpop.permute.xlu1 %2344  ;;  %v7674_v11 = vpop.permute.xlu0 %2350 }
 0xb9a   : >> { %11599 = vst [vmem:[#allocation249_spill] sm:$0xff] %v7672_v12  ;;  %11600 = vst [vmem:[#allocation250_spill] sm:$0xff] %v7674_v11  ;;  %v7792_v11 = vsel %vm422_vm8, %v6688_v41, %v6695_v47 }
 0xb9d   : >> { %v7676_v8 = vpop.permute.xlu1 %2348  ;;  %v7678_v5 = vpop.permute.xlu0 %2354 }
 0xb9e   : >> { %11601 = vst [vmem:[#allocation251_spill] sm:$0xff] %v7676_v8  ;;  %11602 = vst [vmem:[#allocation252_spill] sm:$0xff] %v7678_v5  ;;  %v7797_v8 = vsel %vm422_vm8, %v6695_v47, %v6693_v44  ;;  %v7817_v47 = vsel %vm422_vm8, %v6705_v52, %v6712_v55 }
 0xba1   : >> { %v7680_v13 = vpop.permute.xlu1 %2352  ;;  %v7682_v7 = vpop.permute.xlu0 %2358 }
 0xba2   : >> { %11603 = vst [vmem:[#allocation253_spill] sm:$0xff] %v7680_v13  ;;  %11604 = vst [vmem:[#allocation254_spill] sm:$0xff] %v7682_v7 }
 0xba5   : >> { %v7684_v6 = vpop.permute.xlu1 %2356  ;;  %v7686_v14 = vpop.permute.xlu0 %2362 }
 0xba6   : >> { %11605 = vst [vmem:[#allocation255_spill] sm:$0xff] %v7684_v6  ;;  %11606 = vst [vmem:[#allocation256_spill] sm:$0xff] %v7686_v14 }
 0xba9   : >> { %v7688_v10 = vpop.permute.xlu1 %2360 }
 0xbaa   : >> { %11607 = vst [vmem:[#allocation257_spill] sm:$0xff] %v7688_v10 }
 0xbad   : >> { %v7694_v5 = vpop.permute.xlu1 %2364 }
 0xbae   : >> { %11608 = vst [vmem:[#allocation258_spill] sm:$0xff] %v7694_v5  ;;  %v7787_v5 = vsel %vm422_vm8, %v6690_v42, %v6688_v41  ;;  %v7807_v42 = vsel %vm422_vm8, %v6701_v50, %v6699_v49  ;;  %v7812_v41 = vsel %vm422_vm8, %v6707_v53, %v6705_v52  ;;  %v7834_v53 = vsel %vm422_vm8, %v6716_v57, %v6714_v56 }
 0xbaf   : >> { %v7839_v52 = vsel %vm513_vm9, %v6720_v59, %v6724_v61  ;;  %v7859_v59 = vsel %vm513_vm9, %v6722_v60, %v6730_v22 }
 0xbb6   : >> { %v2405_v9 = vpop.permute.xlu0 %2404 }
 0xbb7   : >> { %v2412_v15 = vmul.f32 %v2405_v9, %v6556_v34  ;;  %v2411_v12 = vmul.f32 %v2405_v9, %v6554_v33  ;;  %v2414_v7 = vmul.f32 %v2405_v9, %v6564_v40  ;;  %v2413_v6 = vmul.f32 %v2405_v9, %v6562_v39 }
 0xbb8   : >> { %v2416_v10 = vmul.f32 %v2405_v9, %v6574_v46  ;;  %v2415_v13 = vmul.f32 %v2405_v9, %v6572_v45 }
 0xbb9   : >> { %2441 = vrot.lane.b32.xlu0 %v2412_v15, %s11322_s6  ;;  %2439 = vrot.lane.b32.xlu1 %v2411_v12, %s11322_s6  ;;  %v2417_v15 = vmul.f32 %v2405_v9, %v7522_v16 }
 0xbbd   : >> { %2445 = vrot.lane.b32.xlu0 %v2414_v7, %s11322_s6  ;;  %2443 = vrot.lane.b32.xlu1 %v2413_v6, %s11322_s6  ;;  %v11609_v6 = vmov 0  }
 0xbbe   : >> { %v2409_v14 = vpop.permute.xlu1 %2408 }
 0xbbf   : >> { %v2418_v12 = vmul.f32 %v2409_v14, %v6554_v33  ;;  %v2419_v7 = vmul.f32 %v2409_v14, %v6556_v34  ;;  %v2421_v9 = vmul.f32 %v2409_v14, %v6564_v40 }
 0xbc1   : >> { %2449 = vrot.lane.b32.xlu0 %v2416_v10, %s11322_s6  ;;  %2447 = vrot.lane.b32.xlu1 %v2415_v13, %s11322_s6  ;;  %v2420_v13 = vmul.f32 %v2409_v14, %v6562_v39  ;;  %v2422_v10 = vmul.f32 %v2409_v14, %v6572_v45 }
 0xbc5   : >> { %2451 = vrot.lane.b32.xlu1 %v2417_v15, %s11322_s6  ;;  %2453 = vrot.lane.b32.xlu0 %v2418_v12, %s11322_s6  ;;  %v2424_v12 = vmul.f32 %v2409_v14, %v7522_v16  ;;  %v2423_v15 = vmul.f32 %v2409_v14, %v6574_v46  ;;  %v7744_v14 = vmul.f32 %v6562_v39, %v6558_v36 }
 0xbc9   : >> { %2505 = vperm.xlu1 %5901, %v11374_v0   ;;  %2509 = vperm.xlu0 %5902, %v11373_v1  }
 0xbcd   : >> { %2455 = vrot.lane.b32.xlu1 %v2419_v7, %s11322_s6  ;;  %5903 = vset.pattern.permute.xlu0 %v11609_v6 }
 0xbce   : >> { %293 = vperm.xlu0 %5903, %v11610_v2   ;;  %5904 = vset.pattern.permute.xlu1 %v11609_v6  ;;  %v7756_v2 = vmul.f32 %v6574_v46, %v6558_v36  ;;  %v7764_v6 = vmul.f32 %v6556_v34, %v6570_v43 }
 0xbd1   : >> { %2457 = vrot.lane.b32.xlu1 %v2420_v13, %s11322_s6 }
 0xbd2   : >> { %298 = vperm.xlu0 %5903, %v11611_v4   ;;  %v7760_v4 = vmul.f32 %v6554_v33, %v6570_v43 }
 0xbd5   : >> { %2461 = vrot.lane.b32.xlu1 %v2422_v10, %s11322_s6  ;;  %v7736_v10 = vmul.f32 %v6554_v33, %v6558_v36 }
 0xbd6   : >> { %2459 = vrot.lane.b32.xlu0 %v2421_v9, %s11322_s6  ;;  %v7740_v9 = vmul.f32 %v6556_v34, %v6558_v36 }
 0xbd9   : >> { %2465 = vrot.lane.b32.xlu1 %v2424_v12, %s11322_s6  ;;  %v7748_v12 = vmul.f32 %v6564_v40, %v6558_v36 }
 0xbda   : >> { %2463 = vrot.lane.b32.xlu0 %v2423_v15, %s11322_s6  ;;  %v7752_v15 = vmul.f32 %v6572_v45, %v6558_v36  ;;  %v7776_v36 = vmul.f32 %v6572_v45, %v6570_v43  ;;  %s6374_s6 = smov 12  }
 0xc2b   : >> { %v7726_v7 = vpop.permute.xlu1 %2439  ;;  %v7730_v0 = vpop.permute.xlu0 %2441 }
 0xc2c   : >> { %11612 = vst [vmem:[#allocation259_spill] sm:$0xff] %v7726_v7  ;;  %11614 = vst [vmem:[#allocation261_spill] sm:$0xff] %v7730_v0  ;;  %v7780_v7 = vmul.f32 %v6574_v46, %v6570_v43 }
 0xc2f   : >> { %v7728_v13 = vpop.permute.xlu1 %2443  ;;  %v7782_v0 = vpop.permute.xlu0 %2445 }
 0xc30   : >> { %11613 = vst [vmem:[#allocation260_spill] sm:$0xff] %v7728_v13  ;;  %v7772_v13 = vmul.f32 %v6564_v40, %v6570_v43  ;;  %11616 = vst [vmem:[#allocation263_spill] sm:$0xff] %v7782_v0 }
 0xc33   : >> { %v7732_v1 = vpop.permute.xlu1 %2447 }
 0xc34   : >> { %11615 = vst [vmem:[#allocation262_spill] sm:$0xff] %v7732_v1  ;;  %v7768_v1 = vmul.f32 %v6562_v39, %v6570_v43  ;;  %v7802_v43 = vsel %vm422_vm8, %v6693_v44, %v6701_v50  ;;  %v7824_v44 = vsel %vm422_vm8, %v6712_v55, %v6710_v54  ;;  %v7829_v50 = vsel %vm422_vm8, %v6710_v54, %v6716_v57 }
 0xc35   : >> { %v7844_v55 = vsel %vm513_vm9, %v6724_v61, %v6718_v58  ;;  %v7849_v54 = vsel %vm513_vm9, %v6718_v58, %v6728_v63  ;;  %v7854_v57 = vsel %vm513_vm9, %v6728_v63, %v6722_v60  ;;  %v7864_v61 = vsel %vm513_vm9, %v6726_v62, %v6734_v25 }
 0xc36   : >> { %v7869_v58 = vsel %vm513_vm9, %v6734_v25, %v6732_v24  ;;  %v7874_v63 = vsel %vm513_vm9, %v6732_v24, %v6738_v27  ;;  %v7879_v60 = vsel %vm513_vm9, %v6738_v27, %v6736_v26  ;;  %v7884_v62 = vsel %vm513_vm9, %v6736_v26, %v6740_v28 }
 0xc37   : >> { %v7819_v0 = vpop.permute.xlu1 %2451  ;;  %v7889_v25 = vsel %vm604_vm10, %v6744_v30, %v6742_v29  ;;  %v7894_v24 = vsel %vm604_vm10, %v6742_v29, %v6748_v32  ;;  %v7899_v27 = vsel %vm604_vm10, %v6748_v32, %v6746_v31  ;;  %v7908_v26 = vsel %vm604_vm10, %v6746_v31, %v6750_v35 }
 0xc38   : >> { %11617 = vst [vmem:[#allocation264_spill] sm:$0xff] %v7819_v0  ;;  %v7901_v0 = vpop.permute.xlu0 %2449  ;;  %v7913_v30 = vsel %vm604_vm10, %v6750_v35, %v6752_v37  ;;  %v7927_v31 = vsel %vm604_vm10, %v6756_v48, %v6758_v51  ;;  %v7932_v35 = vsel %vm604_vm10, %v6758_v51, %v6762_v23  ;;  %v7937_v37 = vsel %vm604_vm10, %v6762_v23, %v6760_v3 }
 0xc39   : >> { %11618 = vst [vmem:[#allocation265_spill] sm:$0xff] %v7901_v0  ;;  %11619 = vst [vmem:[#allocation266_spill] sm:$0xff] %v7913_v30  ;;  %v7922_v0 = vsel %vm604_vm10, %v6754_v38, %v6756_v48  ;;  %v7942_v38 = vsel %vm604_vm10, %v6760_v3, %v6766_v20  ;;  %v7947_v48 = vsel %vm695_vm11, %v6764_v21, %v6768_v19  ;;  %v11624_v3 = vld [vmem:[#allocation30_spill] sm:$0xff]  ;;  %v11626_v30 = vld [vmem:[#allocation29_spill] sm:$0xff] }
 0xc3a   : >> { %11620 = vst [vmem:[#allocation267_spill] sm:$0xff] %v7932_v35  ;;  %11621 = vst [vmem:[#allocation268_spill] sm:$0xff] %v7937_v37  ;;  %v7952_v51 = vsel %vm695_vm11, %v6768_v19, %v6770_v18  ;;  %v7959_v23 = vsel %vm695_vm11, %v6770_v18, %v6772_v17  ;;  %v7964_v21 = vsel %vm695_vm11, %v6772_v17, %v11624_v3  ;;  %v11628_v20 = vld [vmem:[#allocation31_spill] sm:$0xff]  ;;  %v11632_v37 = vld [vmem:[#allocation34_spill] sm:$0xff] }
 0xc3b   : >> { %11622 = vst [vmem:[#allocation269_spill] sm:$0xff] %v7942_v38  ;;  %11623 = vst [vmem:[#allocation270_spill] sm:$0xff] %v7959_v23  ;;  %v7969_v19 = vsel %vm695_vm11, %v11624_v3, %v11626_v30  ;;  %v11629_v38 = vld [vmem:[#allocation32_spill] sm:$0xff]  ;;  %v7981_v18 = vsel %vm695_vm11, %v11628_v20, %v11632_v37  ;;  %v11634_v23 = vld [vmem:[#allocation33_spill] sm:$0xff] }
 0xc3c   : >> { %11625 = vst [vmem:[#allocation30_spill] sm:$0xff] %v7964_v21  ;;  %11627 = vst [vmem:[#allocation271_spill] sm:$0xff] %v7969_v19  ;;  %v7986_v17 = vsel %vm695_vm11, %v11632_v37, %v11634_v23  ;;  %v11638_v19 = vld [vmem:[#allocation35_spill] sm:$0xff]  ;;  %v11645_v35 = vld [vmem:[#allocation40_spill] sm:$0xff] }
 0xc3d   : >> { %11633 = vst [vmem:[#allocation34_spill] sm:$0xff] %v7981_v18  ;;  %11635 = vst [vmem:[#allocation33_spill] sm:$0xff] %v7986_v17  ;;  %v11640_v18 = vld [vmem:[#allocation38_spill] sm:$0xff]  ;;  %v11643_v17 = vld [vmem:[#allocation39_spill] sm:$0xff] }
 0xc3e   : >> { %v8010_v21 = vsel %vm786_vm12, %v11640_v18, %v11643_v17 }
 0xc48   : >> { %v7903_v22 = vpop.permute.xlu1 %2505 }
 0xc49   : >> { %v2513_v29 = vmul.f32 %v7903_v22, %v6556_v34  ;;  %v2512_v32 = vmul.f32 %v7903_v22, %v6554_v33  ;;  %v2515_v3 = vmul.f32 %v7903_v22, %v6564_v40  ;;  %v2514_v30 = vmul.f32 %v7903_v22, %v6562_v39 }
 0xc4b   : >> { %2542 = vrot.lane.b32.xlu1 %v2513_v29, %s6374_s6  ;;  %2540 = vrot.lane.b32.xlu0 %v2512_v32, %s6374_s6  ;;  %v7974_v29 = vsel %vm695_vm11, %v11629_v38, %v11628_v20  ;;  %v7976_v32 = vpop.permute.xlu0 %2453  ;;  %v11636_v38 = vld [vmem:[#allocation36_spill] sm:$0xff] }
 0xc4c   : >> { %11630 = vst [vmem:[#allocation31_spill] sm:$0xff] %v7974_v29  ;;  %11631 = vst [vmem:[#allocation32_spill] sm:$0xff] %v7976_v32  ;;  %v7995_v32 = vsel %vm695_vm11, %v11634_v23, %v11636_v38  ;;  %v8000_v20 = vsel %vm695_vm11, %v11636_v38, %v11638_v19  ;;  %v11641_v29 = vld [vmem:[#allocation37_spill] sm:$0xff]  ;;  %v8015_v23 = vsel %vm786_vm12, %v11643_v17, %v11645_v35 }
 0xc4d   : >> { %11637 = vst [vmem:[#allocation36_spill] sm:$0xff] %v7995_v32  ;;  %11639 = vst [vmem:[#allocation272_spill] sm:$0xff] %v8000_v20  ;;  %v8005_v37 = vsel %vm786_vm12, %v11641_v29, %v11640_v18  ;;  %v11647_v32 = vld [vmem:[#allocation41_spill] sm:$0xff]  ;;  %v11649_v29 = vld [vmem:[#allocation42_spill] sm:$0xff] }
 0xc4e   : >> { %11642 = vst [vmem:[#allocation38_spill] sm:$0xff] %v8005_v37  ;;  %11644 = vst [vmem:[#allocation37_spill] sm:$0xff] %v8010_v21  ;;  %v8020_v38 = vsel %vm786_vm12, %v11645_v35, %v11647_v32  ;;  %v8027_v19 = vsel %vm786_vm12, %v11647_v32, %v11649_v29  ;;  %v11651_v18 = vld [vmem:[#allocation44_spill] sm:$0xff]  ;;  %v11652_v20 = vld [vmem:[#allocation43_spill] sm:$0xff] }
 0xc4f   : >> { %11646 = vst [vmem:[#allocation39_spill] sm:$0xff] %v8015_v23  ;;  %11648 = vst [vmem:[#allocation40_spill] sm:$0xff] %v8020_v38  ;;  %2546 = vrot.lane.b32.xlu1 %v2515_v3, %s6374_s6  ;;  %2544 = vrot.lane.b32.xlu0 %v2514_v30, %s6374_s6  ;;  %v8032_v21 = vsel %vm786_vm12, %v11652_v20, %v11651_v18  ;;  %v11654_v17 = vld [vmem:[#allocation45_spill] sm:$0xff]  ;;  %v11656_v35 = vld [vmem:[#allocation46_spill] sm:$0xff] }
 0xc50   : >> { %11650 = vst [vmem:[#allocation41_spill] sm:$0xff] %v8027_v19  ;;  %11653 = vst [vmem:[#allocation44_spill] sm:$0xff] %v8032_v21  ;;  %v8037_v23 = vsel %vm786_vm12, %v11651_v18, %v11654_v17  ;;  %v8042_v3 = vsel %vm786_vm12, %v11654_v17, %v11656_v35  ;;  %v11658_v30 = vld [vmem:[#allocation47_spill] sm:$0xff]  ;;  %v11660_v29 = vld [vmem:[#allocation48_spill] sm:$0xff] }
 0xc51   : >> { %11655 = vst [vmem:[#allocation43_spill] sm:$0xff] %v8037_v23  ;;  %11657 = vst [vmem:[#allocation45_spill] sm:$0xff] %v8042_v3  ;;  %v8047_v32 = vsel %vm786_vm12, %v11656_v35, %v11658_v30  ;;  %v8052_v20 = vsel %vm786_vm12, %v11658_v30, %v11660_v29  ;;  %v11662_v19 = vld [vmem:[#allocation51_spill] sm:$0xff]  ;;  %v11663_v21 = vld [vmem:[#allocation49_spill] sm:$0xff]  ;;  %v2517_v23 = vmul.f32 %v7903_v22, %v6574_v46  ;;  %v8071_v30 = vpop.permute.xlu0 %2509 }
 0xc52   : >> { %11659 = vst [vmem:[#allocation46_spill] sm:$0xff] %v8047_v32  ;;  %11661 = vst [vmem:[#allocation47_spill] sm:$0xff] %v8052_v20  ;;  %v8057_v18 = vsel %vm877_vm13, %v11663_v21, %v11662_v19  ;;  %v11665_v17 = vld [vmem:[#allocation50_spill] sm:$0xff]  ;;  %v11667_v35 = vld [vmem:[#allocation53_spill] sm:$0xff]  ;;  %v2516_v21 = vmul.f32 %v7903_v22, %v6572_v45 }
 0xc53   : >> { %11664 = vst [vmem:[#allocation51_spill] sm:$0xff] %v8057_v18  ;;  %v8064_v3 = vsel %vm877_vm13, %v11662_v19, %v11665_v17  ;;  %v8069_v32 = vsel %vm877_vm13, %v11665_v17, %v11667_v35  ;;  %v11669_v29 = vld [vmem:[#allocation52_spill] sm:$0xff]  ;;  %v11671_v18 = vld [vmem:[#allocation55_spill] sm:$0xff]  ;;  %v11674_v38 = vld [vmem:[#allocation54_spill] sm:$0xff]  ;;  %2550 = vrot.lane.b32.xlu1 %v2517_v23, %s6374_s6 }
 0xc54   : >> { %11666 = vst [vmem:[#allocation49_spill] sm:$0xff] %v8064_v3  ;;  %11668 = vst [vmem:[#allocation50_spill] sm:$0xff] %v8069_v32  ;;  %v8078_v20 = vsel %vm877_vm13, %v11667_v35, %v11669_v29  ;;  %v8083_v19 = vsel %vm877_vm13, %v11669_v29, %v11671_v18  ;;  %v11673_v3 = vld [vmem:[#allocation57_spill] sm:$0xff]  ;;  %v2519_v32 = vmul.f32 %v8071_v30, %v6554_v33  ;;  %v11676_v37 = vld [vmem:[#allocation56_spill] sm:$0xff]  ;;  %2548 = vrot.lane.b32.xlu0 %v2516_v21, %s6374_s6 }
 0xc55   : >> { %11670 = vst [vmem:[#allocation53_spill] sm:$0xff] %v8078_v20  ;;  %11672 = vst [vmem:[#allocation52_spill] sm:$0xff] %v8083_v19  ;;  %v8088_v17 = vsel %vm877_vm13, %v11674_v38, %v11673_v3  ;;  %v8096_v35 = vsel %vm877_vm13, %v11673_v3, %v11676_v37  ;;  %v11678_v20 = vld [vmem:[#allocation59_spill] sm:$0xff]  ;;  %v11680_v18 = vld [vmem:[#allocation58_spill] sm:$0xff] }
 0xc56   : >> { %11675 = vst [vmem:[#allocation57_spill] sm:$0xff] %v8088_v17  ;;  %11677 = vst [vmem:[#allocation54_spill] sm:$0xff] %v8096_v35  ;;  %v8101_v29 = vsel %vm877_vm13, %v11676_v37, %v11678_v20  ;;  %v8106_v38 = vsel %vm877_vm13, %v11678_v20, %v11680_v18  ;;  %v11682_v19 = vld [vmem:[#allocation60_spill] sm:$0xff]  ;;  %v11684_v33 = vld [vmem:[#allocation62_spill] sm:$0xff] }
 0xc57   : >> { %11679 = vst [vmem:[#allocation56_spill] sm:$0xff] %v8101_v29  ;;  %11681 = vst [vmem:[#allocation59_spill] sm:$0xff] %v8106_v38  ;;  %v8111_v23 = vsel %vm877_vm13, %v11680_v18, %v11682_v19  ;;  %v11685_v3 = vld [vmem:[#allocation61_spill] sm:$0xff]  ;;  %v11686_v17 = vld [vmem:[#allocation63_spill] sm:$0xff]  ;;  %2554 = vrot.lane.b32.xlu1 %v2519_v32, %s6374_s6 }
 0xc58   : >> { %11683 = vst [vmem:[#allocation58_spill] sm:$0xff] %v8111_v23  ;;  %v8117_v35 = vsel %vm968_vm14, %v11685_v3, %v11684_v33  ;;  %v8122_v37 = vsel %vm968_vm14, %v11684_v33, %v11686_v17  ;;  %v11688_v29 = vld [vmem:[#allocation64_spill] sm:$0xff]  ;;  %v11690_v18 = vld [vmem:[#allocation65_spill] sm:$0xff]  ;;  %v11692_v19 = vld [vmem:[#allocation66_spill] sm:$0xff] }
 0xc59   : >> { %11687 = vst [vmem:[#allocation62_spill] sm:$0xff] %v8122_v37  ;;  %v8127_v20 = vsel %vm968_vm14, %v11686_v17, %v11688_v29  ;;  %v8132_v21 = vsel %vm968_vm14, %v11688_v29, %v11690_v18  ;;  %v8137_v3 = vsel %vm968_vm14, %v11690_v18, %v11692_v19  ;;  %v11694_v23 = vld [vmem:[#allocation68_spill] sm:$0xff]  ;;  %v11695_v38 = vld [vmem:[#allocation67_spill] sm:$0xff]  ;;  %v2518_v17 = vmul.f32 %v7903_v22, %v7522_v16  ;;  %v11699_v29 = vld [vmem:[#allocation70_spill] sm:$0xff] }
 0xc5a   : >> { %11689 = vst [vmem:[#allocation61_spill] sm:$0xff] %v8127_v20  ;;  %11691 = vst [vmem:[#allocation63_spill] sm:$0xff] %v8132_v21  ;;  %v8142_v33 = vsel %vm968_vm14, %v11695_v38, %v11694_v23  ;;  %v11697_v20 = vld [vmem:[#allocation69_spill] sm:$0xff]  ;;  %v11701_v18 = vld [vmem:[#allocation71_spill] sm:$0xff] }
 0xc5b   : >> { %11693 = vst [vmem:[#allocation64_spill] sm:$0xff] %v8137_v3  ;;  %11696 = vst [vmem:[#allocation65_spill] sm:$0xff] %v8142_v33  ;;  %v8149_v37 = vsel %vm968_vm14, %v11694_v23, %v11697_v20  ;;  %v8154_v21 = vsel %vm968_vm14, %v11697_v20, %v11699_v29  ;;  %v8159_v19 = vsel %vm968_vm14, %v11699_v29, %v11701_v18  ;;  %v11703_v38 = vld [vmem:[#allocation72_spill] sm:$0xff]  ;;  %v11705_v22 = vld [vmem:[#allocation75_spill] sm:$0xff]  ;;  %2552 = vrot.lane.b32.xlu0 %v2518_v17, %s6374_s6 }
 0xc5c   : >> { %11698 = vst [vmem:[#allocation68_spill] sm:$0xff] %v8149_v37  ;;  %11700 = vst [vmem:[#allocation67_spill] sm:$0xff] %v8154_v21  ;;  %v8164_v3 = vsel %vm968_vm14, %v11701_v18, %v11703_v38  ;;  %v11706_v23 = vld [vmem:[#allocation73_spill] sm:$0xff]  ;;  %v11707_v33 = vld [vmem:[#allocation74_spill] sm:$0xff] }
 0xc5d   : >> { %11702 = vst [vmem:[#allocation69_spill] sm:$0xff] %v8159_v19  ;;  %11704 = vst [vmem:[#allocation70_spill] sm:$0xff] %v8164_v3  ;;  %v8170_v37 = vsel %vm1059_vm15, %v11706_v23, %v11705_v22  ;;  %v8175_v20 = vsel %vm1059_vm15, %v11705_v22, %v11707_v33  ;;  %v11708_v21 = vld [vmem:[#allocation77_spill] sm:$0xff]  ;;  %v11710_v18 = vld [vmem:[#allocation76_spill] sm:$0xff] }
 0xc5e   : >> { %v8180_v29 = vsel %vm1059_vm15, %v11707_v33, %v11708_v21  ;;  %v8186_v32 = vsel %vm1059_vm15, %v11708_v21, %v11710_v18  ;;  %v11712_v23 = vld [vmem:[#allocation79_spill] sm:$0xff]  ;;  %v11714_v22 = vld [vmem:[#allocation81_spill] sm:$0xff]  ;;  %v11715_v3 = vld [vmem:[#allocation78_spill] sm:$0xff]  ;;  %v2521_v33 = vmul.f32 %v8071_v30, %v6562_v39 }
 0xc5f   : >> { %11709 = vst [vmem:[#allocation71_spill] sm:$0xff] %v8180_v29  ;;  %11711 = vst [vmem:[#allocation75_spill] sm:$0xff] %v8186_v32  ;;  %v8191_v38 = vsel %vm1059_vm15, %v11710_v18, %v11712_v23  ;;  %v8196_v19 = vsel %vm1059_vm15, %v11715_v3, %v11714_v22  ;;  %v11717_v29 = vld [vmem:[#allocation80_spill] sm:$0xff]  ;;  %v11719_v21 = vld [vmem:[#allocation83_spill] sm:$0xff]  ;;  %v2520_v3 = vmul.f32 %v8071_v30, %v6556_v34 }
 0xc60   : >> { %11713 = vst [vmem:[#allocation73_spill] sm:$0xff] %v8191_v38  ;;  %11716 = vst [vmem:[#allocation74_spill] sm:$0xff] %v8196_v19  ;;  %v8203_v17 = vsel %vm1059_vm15, %v11714_v22, %v11717_v29  ;;  %v8208_v32 = vsel %vm1059_vm15, %v11717_v29, %v11719_v21  ;;  %v11721_v18 = vld [vmem:[#allocation82_spill] sm:$0xff]  ;;  %v11723_v38 = vld [vmem:[#allocation84_spill] sm:$0xff]  ;;  %2558 = vrot.lane.b32.xlu1 %v2521_v33, %s6374_s6 }
 0xc61   : >> { %11718 = vst [vmem:[#allocation77_spill] sm:$0xff] %v8203_v17  ;;  %11720 = vst [vmem:[#allocation76_spill] sm:$0xff] %v8208_v32  ;;  %v8213_v23 = vsel %vm1059_vm15, %v11719_v21, %v11721_v18  ;;  %v8220_v39 = vsel %vm1059_vm15, %v11721_v18, %v11723_v38  ;;  %v11725_v22 = vld [vmem:[#allocation86_spill] sm:$0xff]  ;;  %v11726_v17 = vld [vmem:[#allocation85_spill] sm:$0xff]  ;;  %2556 = vrot.lane.b32.xlu0 %v2520_v3, %s6374_s6 }
 0xc62   : >> { %11722 = vst [vmem:[#allocation81_spill] sm:$0xff] %v8213_v23  ;;  %11724 = vst [vmem:[#allocation78_spill] sm:$0xff] %v8220_v39  ;;  %v8225_v19 = vsel %vm1150_vm7, %v11726_v17, %v11725_v22  ;;  %v11727_v29 = vld [vmem:[#allocation87_spill] sm:$0xff]  ;;  %v11729_v21 = vld [vmem:[#allocation88_spill] sm:$0xff] }
 0xc63   : >> { %v8230_v32 = vsel %vm1150_vm7, %v11725_v22, %v11727_v29  ;;  %v8236_v34 = vsel %vm1150_vm7, %v11727_v29, %v11729_v21  ;;  %v11731_v18 = vld [vmem:[#allocation89_spill] sm:$0xff]  ;;  %v11733_v17 = vld [vmem:[#allocation90_spill] sm:$0xff]  ;;  %v11735_v22 = vld [vmem:[#allocation92_spill] sm:$0xff] }
 0xc64   : >> { %11728 = vst [vmem:[#allocation80_spill] sm:$0xff] %v8230_v32  ;;  %11730 = vst [vmem:[#allocation83_spill] sm:$0xff] %v8236_v34  ;;  %v8241_v38 = vsel %vm1150_vm7, %v11729_v21, %v11731_v18  ;;  %v8246_v39 = vsel %vm1150_vm7, %v11731_v18, %v11733_v17  ;;  %v11736_v23 = vld [vmem:[#allocation91_spill] sm:$0xff]  ;;  %v11737_v33 = vld [vmem:[#allocation93_spill] sm:$0xff] }
 0xc65   : >> { %11732 = vst [vmem:[#allocation82_spill] sm:$0xff] %v8241_v38  ;;  %11734 = vst [vmem:[#allocation86_spill] sm:$0xff] %v8246_v39  ;;  %v8251_v32 = vsel %vm1150_vm7, %v11736_v23, %v11735_v22  ;;  %v8257_v29 = vsel %vm1150_vm7, %v11735_v22, %v11737_v33  ;;  %v11739_v34 = vld [vmem:[#allocation94_spill] sm:$0xff]  ;;  %v11741_v38 = vld [vmem:[#allocation95_spill] sm:$0xff]  ;;  %v2523_v23 = vmul.f32 %v8071_v30, %v6572_v45 }
 0xc66   : >> { %11738 = vst [vmem:[#allocation85_spill] sm:$0xff] %v8257_v29  ;;  %v8262_v21 = vsel %vm1150_vm7, %v11737_v33, %v11739_v34  ;;  %v8267_v18 = vsel %vm1150_vm7, %v11739_v34, %v11741_v38  ;;  %v11743_v17 = vld [vmem:[#allocation96_spill] sm:$0xff]  ;;  %v11745_v22 = vld [vmem:[#allocation99_spill] sm:$0xff]  ;;  %v11746_v39 = vld [vmem:[#allocation97_spill] sm:$0xff]  ;;  %v2522_v33 = vmul.f32 %v8071_v30, %v6564_v40 }
 0xc67   : >> { %11740 = vst [vmem:[#allocation87_spill] sm:$0xff] %v8262_v21  ;;  %11742 = vst [vmem:[#allocation88_spill] sm:$0xff] %v8267_v18  ;;  %v8274_v3 = vsel %vm1150_vm7, %v11741_v38, %v11743_v17  ;;  %v8279_v29 = vsel %vm1241_vm6, %v11746_v39, %v11745_v22  ;;  %v11748_v21 = vld [vmem:[#allocation98_spill] sm:$0xff]  ;;  %v11750_v45 = vld [vmem:[#allocation101_spill] sm:$0xff]  ;;  %2562 = vrot.lane.b32.xlu1 %v2523_v23, %s6374_s6 }
 0xc68   : >> { %11744 = vst [vmem:[#allocation89_spill] sm:$0xff] %v8274_v3  ;;  %11747 = vst [vmem:[#allocation92_spill] sm:$0xff] %v8279_v29  ;;  %v8286_v34 = vsel %vm1241_vm6, %v11745_v22, %v11748_v21  ;;  %v8291_v18 = vsel %vm1241_vm6, %v11748_v21, %v11750_v45  ;;  %v11752_v38 = vld [vmem:[#allocation100_spill] sm:$0xff]  ;;  %v11754_v39 = vld [vmem:[#allocation103_spill] sm:$0xff]  ;;  %2560 = vrot.lane.b32.xlu0 %v2522_v33, %s6374_s6 }
 0xc69   : >> { %11749 = vst [vmem:[#allocation91_spill] sm:$0xff] %v8286_v34  ;;  %11751 = vst [vmem:[#allocation93_spill] sm:$0xff] %v8291_v18  ;;  %v8296_v17 = vsel %vm1241_vm6, %v11750_v45, %v11752_v38  ;;  %v8301_v3 = vsel %vm1241_vm6, %v11752_v38, %v11754_v39  ;;  %v11756_v40 = vld [vmem:[#allocation105_spill] sm:$0xff]  ;;  %v11757_v22 = vld [vmem:[#allocation102_spill] sm:$0xff] }
 0xc6a   : >> { %11753 = vst [vmem:[#allocation94_spill] sm:$0xff] %v8296_v17  ;;  %11755 = vst [vmem:[#allocation95_spill] sm:$0xff] %v8301_v3  ;;  %v8307_v34 = vsel %vm1241_vm6, %v11757_v22, %v11756_v40  ;;  %v11758_v29 = vld [vmem:[#allocation104_spill] sm:$0xff]  ;;  %v11759_v18 = vld [vmem:[#allocation107_spill] sm:$0xff] }
 0xc6b   : >> { %v8312_v21 = vsel %vm1241_vm6, %v11756_v40, %v11758_v29  ;;  %v8317_v45 = vsel %vm1241_vm6, %v11758_v29, %v11759_v18  ;;  %v11761_v17 = vld [vmem:[#allocation106_spill] sm:$0xff]  ;;  %v11763_v23 = vld [vmem:[#allocation108_spill] sm:$0xff]  ;;  %v11766_v40 = vld [vmem:[#allocation109_spill] sm:$0xff]  ;;  %v2525_v29 = vmul.f32 %v8071_v30, %v7522_v16 }
 0xc6c   : >> { %11760 = vst [vmem:[#allocation99_spill] sm:$0xff] %v8317_v45  ;;  %v8322_v38 = vsel %vm1241_vm6, %v11759_v18, %v11761_v17  ;;  %v8328_v22 = vsel %vm1241_vm6, %v11761_v17, %v11763_v23  ;;  %v11765_v39 = vld [vmem:[#allocation110_spill] sm:$0xff]  ;;  %v11768_v45 = vld [vmem:[#allocation111_spill] sm:$0xff]  ;;  %v11770_v33 = vld [vmem:[#allocation112_spill] sm:$0xff] }
 0xc6d   : >> { %11762 = vst [vmem:[#allocation97_spill] sm:$0xff] %v8322_v38  ;;  %11764 = vst [vmem:[#allocation98_spill] sm:$0xff] %v8328_v22  ;;  %v8333_v3 = vsel %vm1332_vm5, %v11766_v40, %v11765_v39  ;;  %v8340_v18 = vsel %vm1332_vm5, %v11765_v39, %v11768_v45  ;;  %v8345_v38 = vsel %vm1332_vm5, %v11768_v45, %v11770_v33  ;;  %v11772_v17 = vld [vmem:[#allocation113_spill] sm:$0xff]  ;;  %v11774_v22 = vld [vmem:[#allocation114_spill] sm:$0xff]  ;;  %2566 = vrot.lane.b32.xlu1 %v2525_v29, %s6374_s6 }
 0xc6e   : >> { %11767 = vst [vmem:[#allocation101_spill] sm:$0xff] %v8333_v3  ;;  %11769 = vst [vmem:[#allocation100_spill] sm:$0xff] %v8340_v18  ;;  %v8350_v23 = vsel %vm1332_vm5, %v11770_v33, %v11772_v17  ;;  %v2524_v40 = vmul.f32 %v8071_v30, %v6574_v46  ;;  %v8357_v16 = vsel %vm1332_vm5, %v11772_v17, %v11774_v22  ;;  %v11776_v39 = vld [vmem:[#allocation116_spill] sm:$0xff]  ;;  %v11777_v18 = vld [vmem:[#allocation115_spill] sm:$0xff] }
 0xc6f   : >> { %11771 = vst [vmem:[#allocation105_spill] sm:$0xff] %v8345_v38  ;;  %11773 = vst [vmem:[#allocation102_spill] sm:$0xff] %v8350_v23  ;;  %v8362_v3 = vsel %vm1332_vm5, %v11777_v18, %v11776_v39  ;;  %v11779_v45 = vld [vmem:[#allocation117_spill] sm:$0xff]  ;;  %v11781_v33 = vld [vmem:[#allocation118_spill] sm:$0xff] }
 0xc70   : >> { %11775 = vst [vmem:[#allocation104_spill] sm:$0xff] %v8357_v16  ;;  %11778 = vst [vmem:[#allocation107_spill] sm:$0xff] %v8362_v3  ;;  %v8367_v38 = vsel %vm1332_vm5, %v11776_v39, %v11779_v45  ;;  %v8372_v23 = vsel %vm1332_vm5, %v11779_v45, %v11781_v33  ;;  %v11783_v46 = vld [vmem:[#allocation119_spill] sm:$0xff]  ;;  %v11785_v17 = vld [vmem:[#allocation120_spill] sm:$0xff]  ;;  %2564 = vrot.lane.b32.xlu0 %v2524_v40, %s6374_s6 }
 0xc71   : >> { %11780 = vst [vmem:[#allocation106_spill] sm:$0xff] %v8367_v38  ;;  %11782 = vst [vmem:[#allocation110_spill] sm:$0xff] %v8372_v23  ;;  %v8378_v30 = vsel %vm1332_vm5, %v11781_v33, %v11783_v46  ;;  %v8383_v18 = vsel %vm1332_vm5, %v11783_v46, %v11785_v17  ;;  %v11787_v22 = vld [vmem:[#allocation123_spill] sm:$0xff]  ;;  %v11788_v39 = vld [vmem:[#allocation121_spill] sm:$0xff] }
 0xc72   : >> { %11784 = vst [vmem:[#allocation109_spill] sm:$0xff] %v8378_v30  ;;  %11786 = vst [vmem:[#allocation111_spill] sm:$0xff] %v8383_v18  ;;  %v8388_v16 = vsel %vm1423_vm4, %v11788_v39, %v11787_v22  ;;  %v11790_v45 = vld [vmem:[#allocation122_spill] sm:$0xff]  ;;  %v11792_v33 = vld [vmem:[#allocation125_spill] sm:$0xff] }
 0xc73   : >> { %11789 = vst [vmem:[#allocation112_spill] sm:$0xff] %v8388_v16  ;;  %v8394_v29 = vsel %vm1423_vm4, %v11787_v22, %v11790_v45  ;;  %v8399_v30 = vsel %vm1423_vm4, %v11790_v45, %v11792_v33  ;;  %v11794_v46 = vld [vmem:[#allocation124_spill] sm:$0xff]  ;;  %v11796_v39 = vld [vmem:[#allocation127_spill] sm:$0xff]  ;;  %v11798_v40 = vld [vmem:[#allocation129_spill] sm:$0xff] }
 0xc74   : >> { %11791 = vst [vmem:[#allocation113_spill] sm:$0xff] %v8394_v29  ;;  %11793 = vst [vmem:[#allocation116_spill] sm:$0xff] %v8399_v30  ;;  %v8404_v17 = vsel %vm1423_vm4, %v11792_v33, %v11794_v46  ;;  %v8409_v18 = vsel %vm1423_vm4, %v11794_v46, %v11796_v39  ;;  %v11799_v23 = vld [vmem:[#allocation126_spill] sm:$0xff]  ;;  %v11801_v29 = vld [vmem:[#allocation128_spill] sm:$0xff] }
 0xc75   : >> { %11795 = vst [vmem:[#allocation115_spill] sm:$0xff] %v8404_v17  ;;  %11797 = vst [vmem:[#allocation117_spill] sm:$0xff] %v8409_v18  ;;  %v8414_v22 = vsel %vm1423_vm4, %v11799_v23, %v11798_v40  ;;  %v8419_v45 = vsel %vm1423_vm4, %v11798_v40, %v11801_v29  ;;  %v11803_v30 = vld [vmem:[#allocation131_spill] sm:$0xff]  ;;  %v11805_v17 = vld [vmem:[#allocation130_spill] sm:$0xff] }
 0xc76   : >> { %11800 = vst [vmem:[#allocation118_spill] sm:$0xff] %v8414_v22  ;;  %11802 = vst [vmem:[#allocation119_spill] sm:$0xff] %v8419_v45  ;;  %v8424_v33 = vsel %vm1423_vm4, %v11801_v29, %v11803_v30  ;;  %v8429_v46 = vsel %vm1423_vm4, %v11803_v30, %v11805_v17  ;;  %v11807_v39 = vld [vmem:[#allocation132_spill] sm:$0xff]  ;;  %v11809_v18 = vld [vmem:[#allocation134_spill] sm:$0xff] }
 0xc77   : >> { %11804 = vst [vmem:[#allocation123_spill] sm:$0xff] %v8424_v33  ;;  %11806 = vst [vmem:[#allocation121_spill] sm:$0xff] %v8429_v46  ;;  %v8434_v23 = vsel %vm1423_vm4, %v11805_v17, %v11807_v39  ;;  %v11810_v22 = vld [vmem:[#allocation133_spill] sm:$0xff]  ;;  %v11812_v45 = vld [vmem:[#allocation135_spill] sm:$0xff] }
 0xc78   : >> { %11808 = vst [vmem:[#allocation122_spill] sm:$0xff] %v8434_v23  ;;  %v8439_v40 = vsel %vm1514_vm3, %v11810_v22, %v11809_v18  ;;  %v8444_v29 = vsel %vm1514_vm3, %v11809_v18, %v11812_v45  ;;  %v11814_v33 = vld [vmem:[#allocation136_spill] sm:$0xff]  ;;  %v11816_v46 = vld [vmem:[#allocation137_spill] sm:$0xff]  ;;  %v11818_v39 = vld [vmem:[#allocation138_spill] sm:$0xff] }
 0xc79   : >> { %11811 = vst [vmem:[#allocation125_spill] sm:$0xff] %v8439_v40  ;;  %11813 = vst [vmem:[#allocation124_spill] sm:$0xff] %v8444_v29  ;;  %v8449_v30 = vsel %vm1514_vm3, %v11812_v45, %v11814_v33  ;;  %v8454_v17 = vsel %vm1514_vm3, %v11814_v33, %v11816_v46  ;;  %v8459_v22 = vsel %vm1514_vm3, %v11816_v46, %v11818_v39  ;;  %v11820_v23 = vld [vmem:[#allocation140_spill] sm:$0xff]  ;;  %v11821_v40 = vld [vmem:[#allocation139_spill] sm:$0xff]  ;;  %v294_v39 = vpop.permute.xlu0 %293 }
 0xc7a   : >> { %11815 = vst [vmem:[#allocation129_spill] sm:$0xff] %v8449_v30  ;;  %11817 = vst [vmem:[#allocation126_spill] sm:$0xff] %v8454_v17  ;;  %v8464_v18 = vsel %vm1514_vm3, %v11821_v40, %v11820_v23  ;;  %v11823_v29 = vld [vmem:[#allocation141_spill] sm:$0xff]  ;;  %v11825_v30 = vld [vmem:[#allocation142_spill] sm:$0xff] }
 0xc7b   : >> { %11819 = vst [vmem:[#allocation128_spill] sm:$0xff] %v8459_v22  ;;  %11822 = vst [vmem:[#allocation131_spill] sm:$0xff] %v8464_v18  ;;  %v8469_v45 = vsel %vm1514_vm3, %v11820_v23, %v11823_v29  ;;  %v8474_v33 = vsel %vm1514_vm3, %v11823_v29, %v11825_v30  ;;  %v11827_v17 = vld [vmem:[#allocation143_spill] sm:$0xff]  ;;  %v11829_v22 = vld [vmem:[#allocation144_spill] sm:$0xff] }
 0xc7c   : >> { %11824 = vst [vmem:[#allocation130_spill] sm:$0xff] %v8469_v45  ;;  %11826 = vst [vmem:[#allocation134_spill] sm:$0xff] %v8474_v33  ;;  %v8479_v46 = vsel %vm1514_vm3, %v11825_v30, %v11827_v17  ;;  %v8484_v40 = vsel %vm1514_vm3, %v11827_v17, %v11829_v22  ;;  %v11831_v18 = vld [vmem:[#allocation147_spill] sm:$0xff]  ;;  %v11832_v23 = vld [vmem:[#allocation145_spill] sm:$0xff] }
 0xc7d   : >> { %11828 = vst [vmem:[#allocation133_spill] sm:$0xff] %v8479_v46  ;;  %11830 = vst [vmem:[#allocation135_spill] sm:$0xff] %v8484_v40  ;;  %v8489_v45 = vsel %vm11329_vm2, %v11832_v23, %v11831_v18  ;;  %v11834_v16 = vld [vmem:[#allocation146_spill] sm:$0xff]  ;;  %v11836_v33 = vld [vmem:[#allocation149_spill] sm:$0xff] }
 0xc7e   : >> { %11833 = vst [vmem:[#allocation136_spill] sm:$0xff] %v8489_v45  ;;  %v8494_v29 = vsel %vm11329_vm2, %v11831_v18, %v11834_v16  ;;  %v8499_v30 = vsel %vm11329_vm2, %v11834_v16, %v11836_v33  ;;  %v11838_v46 = vld [vmem:[#allocation148_spill] sm:$0xff]  ;;  %v11840_v22 = vld [vmem:[#allocation151_spill] sm:$0xff]  ;;  %v11842_v40 = vld [vmem:[#allocation153_spill] sm:$0xff] }
 0xc7f   : >> { %11835 = vst [vmem:[#allocation137_spill] sm:$0xff] %v8494_v29  ;;  %11837 = vst [vmem:[#allocation140_spill] sm:$0xff] %v8499_v30  ;;  %v8504_v17 = vsel %vm11329_vm2, %v11836_v33, %v11838_v46  ;;  %v8509_v23 = vsel %vm11329_vm2, %v11838_v46, %v11840_v22  ;;  %v11843_v45 = vld [vmem:[#allocation150_spill] sm:$0xff]  ;;  %v11845_v29 = vld [vmem:[#allocation152_spill] sm:$0xff] }
 0xc80   : >> { %11839 = vst [vmem:[#allocation139_spill] sm:$0xff] %v8504_v17  ;;  %11841 = vst [vmem:[#allocation141_spill] sm:$0xff] %v8509_v23  ;;  %v8514_v18 = vsel %vm11329_vm2, %v11843_v45, %v11842_v40  ;;  %v8519_v16 = vsel %vm11329_vm2, %v11842_v40, %v11845_v29  ;;  %v11847_v30 = vld [vmem:[#allocation155_spill] sm:$0xff]  ;;  %v11849_v17 = vld [vmem:[#allocation154_spill] sm:$0xff] }
 0xc81   : >> { %11844 = vst [vmem:[#allocation142_spill] sm:$0xff] %v8514_v18  ;;  %11846 = vst [vmem:[#allocation143_spill] sm:$0xff] %v8519_v16  ;;  %v8524_v33 = vsel %vm11329_vm2, %v11845_v29, %v11847_v30  ;;  %v8529_v46 = vsel %vm11329_vm2, %v11847_v30, %v11849_v17  ;;  %v11851_v22 = vld [vmem:[#allocation156_spill] sm:$0xff]  ;;  %v11853_v23 = vld [vmem:[#allocation158_spill] sm:$0xff] }
 0xc82   : >> { %11848 = vst [vmem:[#allocation147_spill] sm:$0xff] %v8524_v33  ;;  %11850 = vst [vmem:[#allocation145_spill] sm:$0xff] %v8529_v46  ;;  %v8534_v45 = vsel %vm11329_vm2, %v11849_v17, %v11851_v22  ;;  %v11854_v18 = vld [vmem:[#allocation157_spill] sm:$0xff]  ;;  %v11856_v16 = vld [vmem:[#allocation159_spill] sm:$0xff]  ;;  %vm11333_vm2 = vcmask 121856  }
 0xc83   : >> { %11852 = vst [vmem:[#allocation146_spill] sm:$0xff] %v8534_v45  ;;  %v8539_v40 = vsel %vm11325_vm1, %v11854_v18, %v11853_v23  ;;  %v8544_v29 = vsel %vm11325_vm1, %v11853_v23, %v11856_v16  ;;  %v11858_v33 = vld [vmem:[#allocation160_spill] sm:$0xff]  ;;  %v11860_v46 = vld [vmem:[#allocation161_spill] sm:$0xff]  ;;  %v11862_v22 = vld [vmem:[#allocation162_spill] sm:$0xff] }
 0xc84   : >> { %11855 = vst [vmem:[#allocation149_spill] sm:$0xff] %v8539_v40  ;;  %11857 = vst [vmem:[#allocation148_spill] sm:$0xff] %v8544_v29  ;;  %v8549_v30 = vsel %vm11325_vm1, %v11856_v16, %v11858_v33  ;;  %v8554_v17 = vsel %vm11325_vm1, %v11858_v33, %v11860_v46  ;;  %v8559_v18 = vsel %vm11325_vm1, %v11860_v46, %v11862_v22  ;;  %v11864_v45 = vld [vmem:[#allocation164_spill] sm:$0xff]  ;;  %v11865_v40 = vld [vmem:[#allocation163_spill] sm:$0xff] }
 0xc85   : >> { %11859 = vst [vmem:[#allocation153_spill] sm:$0xff] %v8549_v30  ;;  %11861 = vst [vmem:[#allocation150_spill] sm:$0xff] %v8554_v17  ;;  %v8564_v23 = vsel %vm11325_vm1, %v11865_v40, %v11864_v45  ;;  %v11867_v29 = vld [vmem:[#allocation165_spill] sm:$0xff]  ;;  %v11869_v30 = vld [vmem:[#allocation166_spill] sm:$0xff] }
 0xc86   : >> { %11863 = vst [vmem:[#allocation152_spill] sm:$0xff] %v8559_v18  ;;  %11866 = vst [vmem:[#allocation155_spill] sm:$0xff] %v8564_v23  ;;  %v8569_v16 = vsel %vm11325_vm1, %v11864_v45, %v11867_v29  ;;  %v8574_v33 = vsel %vm11325_vm1, %v11867_v29, %v11869_v30  ;;  %v11871_v17 = vld [vmem:[#allocation167_spill] sm:$0xff]  ;;  %v11873_v22 = vld [vmem:[#allocation168_spill] sm:$0xff]  ;;  %v354_v18 = vadd.f32 %v7736_v10, %v294_v39 }
 0xc87   : >> { %11868 = vst [vmem:[#allocation154_spill] sm:$0xff] %v8569_v16  ;;  %11870 = vst [vmem:[#allocation158_spill] sm:$0xff] %v8574_v33  ;;  %v8579_v46 = vsel %vm11325_vm1, %v11869_v30, %v11871_v17  ;;  %v8584_v40 = vsel %vm11325_vm1, %v11871_v17, %v11873_v22  ;;  %v355_v45 = vadd.f32 %v7740_v9, %v294_v39  ;;  %v299_v16 = vpop.permute.xlu0 %298  ;;  %v11875_v23 = vld [vmem:[#allocation171_spill] sm:$0xff]  ;;  %v11876_v38 = vld [vmem:[#allocation169_spill] sm:$0xff]  ;;  %vm11327_vm1 = vcmask 343040  }
 0xc88   : >> { %11872 = vst [vmem:[#allocation157_spill] sm:$0xff] %v8579_v46  ;;  %11874 = vst [vmem:[#allocation159_spill] sm:$0xff] %v8584_v40  ;;  %v8591_v29 = vsel %vm11326_vm0, %v11876_v38, %v11875_v23  ;;  %v11878_v33 = vld [vmem:[#allocation170_spill] sm:$0xff]  ;;  %v11880_v46 = vld [vmem:[#allocation173_spill] sm:$0xff] }
 0xc89   : >> { %11877 = vst [vmem:[#allocation160_spill] sm:$0xff] %v8591_v29  ;;  %v8596_v30 = vsel %vm11326_vm0, %v11875_v23, %v11878_v33  ;;  %v8601_v17 = vsel %vm11326_vm0, %v11878_v33, %v11880_v46  ;;  %v11882_v22 = vld [vmem:[#allocation172_spill] sm:$0xff]  ;;  %v11884_v9 = vld [vmem:[#allocation175_spill] sm:$0xff]  ;;  %v11886_v40 = vld [vmem:[#allocation177_spill] sm:$0xff]  ;;  %v357_v33 = vadd.f32 %v7748_v12, %v294_v39  ;;  %v445_v12 = vadd.f32 %v7787_v5, %v354_v18 }
 0xc8a   : >> { %11879 = vst [vmem:[#allocation161_spill] sm:$0xff] %v8596_v30  ;;  %11881 = vst [vmem:[#allocation164_spill] sm:$0xff] %v8601_v17  ;;  %v8606_v10 = vsel %vm11326_vm0, %v11880_v46, %v11882_v22  ;;  %v8611_v38 = vsel %vm11326_vm0, %v11882_v22, %v11884_v9  ;;  %v11887_v29 = vld [vmem:[#allocation174_spill] sm:$0xff]  ;;  %v356_v30 = vadd.f32 %v7744_v14, %v294_v39  ;;  %v11888_v17 = vld [vmem:[#allocation176_spill] sm:$0xff] }
 0xc8b   : >> { %11883 = vst [vmem:[#allocation163_spill] sm:$0xff] %v8606_v10  ;;  %11885 = vst [vmem:[#allocation165_spill] sm:$0xff] %v8611_v38  ;;  %v8616_v23 = vsel %vm11326_vm0, %v11887_v29, %v11886_v40  ;;  %v8623_v3 = vsel %vm11326_vm0, %v11886_v40, %v11888_v17  ;;  %v11890_v46 = vld [vmem:[#allocation179_spill] sm:$0xff]  ;;  %v360_v22 = vadd.f32 %v7760_v4, %v299_v16  ;;  %v11892_v29 = vld [vmem:[#allocation178_spill] sm:$0xff] }
 0xc8c   : >> { %11889 = vst [vmem:[#allocation166_spill] sm:$0xff] %v8623_v3  ;;  %v8628_v10 = vsel %vm11326_vm0, %v11888_v17, %v11890_v46  ;;  %v361_v9 = vadd.f32 %v7764_v6, %v299_v16  ;;  %v8635_v14 = vsel %vm11326_vm0, %v11890_v46, %v11892_v29  ;;  %v446_v40 = vadd.f32 %v7792_v11, %v355_v45  ;;  %v11895_v11 = vld [vmem:[#allocation182_spill] sm:$0xff]  ;;  %v11896_v18 = vld [vmem:[#allocation181_spill] sm:$0xff]  ;;  %v11898_v45 = vld [vmem:[#allocation184_spill] sm:$0xff] }
 0xc8d   : >> { %11891 = vst [vmem:[#allocation167_spill] sm:$0xff] %v8628_v10  ;;  %11893 = vst [vmem:[#allocation171_spill] sm:$0xff] %v8635_v14  ;;  %v362_v38 = vadd.f32 %v7768_v1, %v299_v16  ;;  %v363_v3 = vadd.f32 %v7772_v13, %v299_v16  ;;  %v364_v17 = vadd.f32 %v7776_v36, %v299_v16  ;;  %v11894_v10 = vld [vmem:[#allocation180_spill] sm:$0xff]  ;;  %v11897_v13 = vld [vmem:[#allocation183_spill] sm:$0xff] }
 0xc8e   : >> { %v365_v4 = vadd.f32 %v7780_v7, %v299_v16  ;;  %v8646_v6 = vsel %vm11326_vm0, %v11892_v29, %v11894_v10  ;;  %v358_v46 = vadd.f32 %v7752_v15, %v294_v39  ;;  %v447_v14 = vadd.f32 %v7797_v8, %v356_v30 }
 0xc8f   : >> { %v448_v5 = vadd.f32 %v7802_v43, %v357_v33  ;;  %v8654_v1 = vsel %vm11327_vm1, %v11896_v18, %v11895_v11  ;;  %v8659_v7 = vsel %vm11327_vm1, %v11895_v11, %v11897_v13  ;;  %v451_v36 = vadd.f32 %v7812_v41, %v360_v22 }
 0xc90   : >> { %v452_v16 = vadd.f32 %v7817_v47, %v361_v9  ;;  %v8666_v8 = vsel %vm11327_vm1, %v11897_v13, %v11898_v45  ;;  %v359_v15 = vadd.f32 %v7756_v2, %v294_v39  ;;  %v536_v43 = vadd.f32 %v7839_v52, %v445_v12  ;;  %v11899_v47 = vld [vmem:[#allocation185_spill] sm:$0xff]  ;;  %v11908_v13 = vld [vmem:[#allocation267_spill] sm:$0xff] }
 0xc91   : >> { %v537_v30 = vadd.f32 %v7844_v55, %v446_v40  ;;  %v453_v33 = vadd.f32 %v7824_v44, %v362_v38  ;;  %v454_v29 = vadd.f32 %v7829_v50, %v363_v3  ;;  %v455_v11 = vadd.f32 %v7834_v53, %v364_v17  ;;  %v11900_v55 = vld [vmem:[#allocation186_spill] sm:$0xff]  ;;  %v11901_v50 = vld [vmem:[#allocation188_spill] sm:$0xff]  ;;  %v11902_v53 = vld [vmem:[#allocation187_spill] sm:$0xff] }
 0xc92   : >> { %v456_v41 = vadd.f32 %v6714_v56, %v365_v4  ;;  %v8678_v9 = vsel %vm11327_vm1, %v11898_v45, %v11899_v47  ;;  %v449_v22 = vadd.f32 %v7807_v42, %v358_v46  ;;  %v538_v2 = vadd.f32 %v7849_v54, %v447_v14  ;;  %v11903_v38 = vld [vmem:[#allocation189_spill] sm:$0xff] }
 0xc93   : >> { %v539_v52 = vadd.f32 %v7854_v57, %v448_v5  ;;  %v8686_v44 = vsel %vm11327_vm1, %v11899_v47, %v11900_v55  ;;  %v8691_v56 = vsel %vm11327_vm1, %v11902_v53, %v11901_v50  ;;  %v542_v3 = vadd.f32 %v7864_v61, %v451_v36  ;;  %v11915_v47 = vld [vmem:[#allocation270_spill] sm:$0xff] }
 0xc94   : >> { %v543_v39 = vadd.f32 %v7869_v58, %v452_v16  ;;  %v8698_v42 = vsel %vm11327_vm1, %v11901_v50, %v11903_v38  ;;  %v450_v54 = vadd.f32 %v6699_v49, %v359_v15  ;;  %v627_v57 = vadd.f32 %v7889_v25, %v536_v43  ;;  %v11904_v58 = vld [vmem:[#allocation190_spill] sm:$0xff]  ;;  %v11909_v16 = vld [vmem:[#allocation268_spill] sm:$0xff]  ;;  %v11910_v15 = vld [vmem:[#allocation269_spill] sm:$0xff] }
 0xc95   : >> { %v628_v14 = vadd.f32 %v7894_v24, %v537_v30  ;;  %v544_v12 = vadd.f32 %v7874_v63, %v453_v33  ;;  %v545_v40 = vadd.f32 %v7879_v60, %v454_v29  ;;  %v546_v17 = vadd.f32 %v7884_v62, %v455_v11  ;;  %v11905_v24 = vld [vmem:[#allocation191_spill] sm:$0xff]  ;;  %v11906_v62 = vld [vmem:[#allocation192_spill] sm:$0xff]  ;;  %v11913_v33 = vld [vmem:[#allocation193_spill] sm:$0xff] }
 0xc96   : >> { %v547_v61 = vadd.f32 %v6740_v28, %v456_v41  ;;  %v8710_v4 = vsel %vm11327_vm1, %v11903_v38, %v11904_v58  ;;  %v540_v46 = vadd.f32 %v7859_v59, %v449_v22  ;;  %v629_v49 = vadd.f32 %v7899_v27, %v538_v2  ;;  %v11907_v59 = vld [vmem:[#allocation26_spill] sm:$0xff]  ;;  %v11918_v50 = vld [vmem:[#allocation197_spill] sm:$0xff] }
 0xc97   : >> { %v630_v25 = vadd.f32 %v7908_v26, %v539_v52  ;;  %v8718_v63 = vsel %vm11327_vm1, %v11904_v58, %v11905_v24  ;;  %vm11328_vm0 = vcmask 334848   ;;  %v633_v60 = vadd.f32 %v7922_v0, %v542_v3  ;;  %v11911_v0 = vld [vmem:[#allocation28_spill] sm:$0xff]  ;;  %v11914_v11 = vld [vmem:[#allocation266_spill] sm:$0xff]  ;;  %v11919_v3 = vld [vmem:[#allocation31_spill] sm:$0xff] }
 0xc98   : >> { %v634_v28 = vadd.f32 %v7927_v31, %v543_v39  ;;  %v8725_v5 = vsel %vm11327_vm1, %v11905_v24, %v11906_v62  ;;  %v541_v18 = vadd.f32 %v11907_v59, %v450_v54  ;;  %v718_v27 = vadd.f32 %v7947_v48, %v627_v57  ;;  %v11912_v31 = vld [vmem:[#allocation195_spill] sm:$0xff]  ;;  %v11916_v48 = vld [vmem:[#allocation30_spill] sm:$0xff]  ;;  %v11921_v57 = vld [vmem:[#allocation196_spill] sm:$0xff] }
 0xc99   : >> { %v719_v26 = vadd.f32 %v7952_v51, %v628_v14  ;;  %v635_v36 = vadd.f32 %v11908_v13, %v544_v12  ;;  %v636_v45 = vadd.f32 %v11909_v16, %v545_v40  ;;  %v637_v43 = vadd.f32 %v11910_v15, %v546_v17  ;;  %v11917_v51 = vld [vmem:[#allocation194_spill] sm:$0xff]  ;;  %v11922_v12 = vld [vmem:[#allocation27_spill] sm:$0xff]  ;;  %v11924_v58 = vld [vmem:[#allocation37_spill] sm:$0xff] }
 0xc9a   : >> { %v638_v30 = vadd.f32 %v11911_v0, %v547_v61  ;;  %v8737_v29 = vsel %vm11328_vm0, %v11913_v33, %v11912_v31  ;;  %v631_v41 = vadd.f32 %v11914_v11, %v540_v46  ;;  %v720_v22 = vadd.f32 %v11915_v47, %v629_v49  ;;  %v11920_v38 = vld [vmem:[#allocation34_spill] sm:$0xff]  ;;  %v11925_v49 = vld [vmem:[#allocation33_spill] sm:$0xff]  ;;  %v11926_v24 = vld [vmem:[#allocation36_spill] sm:$0xff] }
 0xc9b   : >> { %v721_v2 = vadd.f32 %v11916_v48, %v630_v25  ;;  %v8745_v52 = vsel %vm11328_vm0, %v11912_v31, %v11917_v51  ;;  %v8750_v53 = vsel %vm11328_vm0, %v11917_v51, %v11918_v50  ;;  %v724_v39 = vadd.f32 %v11919_v3, %v633_v60  ;;  %v11923_v17 = vld [vmem:[#allocation38_spill] sm:$0xff]  ;;  %v11927_v13 = vld [vmem:[#allocation272_spill] sm:$0xff]  ;;  %v11928_v60 = vld [vmem:[#allocation35_spill] sm:$0xff] }
 0xc9c   : >> { %v725_v54 = vadd.f32 %v11920_v38, %v634_v28  ;;  %v8757_v14 = vsel %vm11328_vm0, %v11918_v50, %v11921_v57  ;;  %v632_v40 = vadd.f32 %v11922_v12, %v541_v18  ;;  %v809_v61 = vadd.f32 %v11923_v17, %v718_v27  ;;  %v11929_v28 = vld [vmem:[#allocation199_spill] sm:$0xff]  ;;  %v11933_v27 = vld [vmem:[#allocation40_spill] sm:$0xff]  ;;  %v11935_v48 = vld [vmem:[#allocation198_spill] sm:$0xff] }
 0xc9d   : >> { %v810_v46 = vadd.f32 %v11924_v58, %v719_v26  ;;  %v726_v25 = vadd.f32 %v11925_v49, %v635_v36  ;;  %v727_v59 = vadd.f32 %v11926_v24, %v636_v45  ;;  %v728_v16 = vadd.f32 %v11927_v13, %v637_v43  ;;  %v11931_v31 = vld [vmem:[#allocation271_spill] sm:$0xff]  ;;  %v11934_v26 = vld [vmem:[#allocation201_spill] sm:$0xff]  ;;  %v11936_v45 = vld [vmem:[#allocation200_spill] sm:$0xff] }
 0xc9e   : >> { %v729_v15 = vadd.f32 %v11928_v60, %v638_v30  ;;  %v8769_v0 = vsel %vm11328_vm0, %v11921_v57, %v11929_v28  ;;  %v722_v33 = vadd.f32 %v11931_v31, %v631_v41  ;;  %v11932_v18 = vld [vmem:[#allocation39_spill] sm:$0xff]  ;;  %v812_v47 = vadd.f32 %v11933_v27, %v721_v2  ;;  %v11937_v30 = vld [vmem:[#allocation44_spill] sm:$0xff]  ;;  %v11939_v41 = vld [vmem:[#allocation29_spill] sm:$0xff] }
 0xc9f   : >> { %11930 = vst [vmem:[#allocation169_spill] sm:$0xff] %v8769_v0  ;;  %v811_v11 = vadd.f32 %v11932_v18, %v720_v22  ;;  %v8777_v36 = vsel %vm11328_vm0, %v11935_v48, %v11934_v26  ;;  %v8782_v43 = vsel %vm11328_vm0, %v11934_v26, %v11936_v45  ;;  %v815_v51 = vadd.f32 %v11937_v30, %v724_v39  ;;  %v11938_v50 = vld [vmem:[#allocation43_spill] sm:$0xff]  ;;  %v11941_v2 = vld [vmem:[#allocation49_spill] sm:$0xff]  ;;  %v11943_v49 = vld [vmem:[#allocation46_spill] sm:$0xff] }
 0xca0   : >> { %v816_v3 = vadd.f32 %v11938_v50, %v725_v54  ;;  %vm2060_vm1 = vcmask 326656   ;;  %v723_v38 = vadd.f32 %v11939_v41, %v632_v40  ;;  %v11940_v22 = vld [vmem:[#allocation51_spill] sm:$0xff]  ;;  %v901_v12 = vadd.f32 %v11941_v2, %v810_v46  ;;  %v11942_v17 = vld [vmem:[#allocation45_spill] sm:$0xff]  ;;  %v11945_v31 = vld [vmem:[#allocation48_spill] sm:$0xff] }
 0xca1   : >> { %v900_v57 = vadd.f32 %v11940_v22, %v809_v61  ;;  %v817_v58 = vadd.f32 %v11942_v17, %v726_v25  ;;  %v818_v24 = vadd.f32 %v11943_v49, %v727_v59  ;;  %v11944_v13 = vld [vmem:[#allocation47_spill] sm:$0xff]  ;;  %v820_v18 = vadd.f32 %v11945_v31, %v729_v15  ;;  %v11947_v54 = vld [vmem:[#allocation41_spill] sm:$0xff]  ;;  %v11948_v40 = vld [vmem:[#allocation50_spill] sm:$0xff] }
 0xca2   : >> { %v819_v60 = vadd.f32 %v11944_v13, %v728_v16  ;;  %v11946_v27 = vld [vmem:[#allocation203_spill] sm:$0xff]  ;;  %v813_v26 = vadd.f32 %v11947_v54, %v722_v33  ;;  %v902_v48 = vadd.f32 %v11948_v40, %v811_v11  ;;  %v11949_v61 = vld [vmem:[#allocation53_spill] sm:$0xff]  ;;  %v11950_v46 = vld [vmem:[#allocation202_spill] sm:$0xff] }
 0xca3   : >> { %v8796_v39 = vsel %vm11328_vm0, %v11936_v45, %v11946_v27  ;;  %v903_v30 = vadd.f32 %v11949_v61, %v812_v47  ;;  %v8804_v25 = vsel %vm11328_vm0, %v11946_v27, %v11950_v46  ;;  %v11951_v59 = vld [vmem:[#allocation204_spill] sm:$0xff]  ;;  %v11952_v15 = vld [vmem:[#allocation57_spill] sm:$0xff]  ;;  %v11953_v45 = vld [vmem:[#allocation54_spill] sm:$0xff]  ;;  %v991_v17 = vadd.f32 %v8117_v35, %v900_v57 }
 0xca4   : >> { %v8809_v16 = vsel %vm11328_vm0, %v11950_v46, %v11951_v59  ;;  %v906_v50 = vadd.f32 %v11952_v15, %v815_v51  ;;  %v907_v41 = vadd.f32 %v11953_v45, %v816_v3  ;;  %v11954_v22 = vld [vmem:[#allocation207_spill] sm:$0xff]  ;;  %v11955_v33 = vld [vmem:[#allocation205_spill] sm:$0xff]  ;;  %v11956_v47 = vld [vmem:[#allocation42_spill] sm:$0xff]  ;;  %vm11331_vm0 = vcmask 130048  }
 0xca5   : >> { %v8816_v11 = vsel %vm2060_vm1, %v11955_v33, %v11954_v22  ;;  %v814_v2 = vadd.f32 %v11956_v47, %v723_v38  ;;  %v11957_v49 = vld [vmem:[#allocation62_spill] sm:$0xff]  ;;  %v11958_v31 = vld [vmem:[#allocation56_spill] sm:$0xff]  ;;  %v11959_v54 = vld [vmem:[#allocation59_spill] sm:$0xff] }
 0xca6   : >> { %v992_v13 = vadd.f32 %v11957_v49, %v901_v12  ;;  %v908_v27 = vadd.f32 %v11958_v31, %v817_v58  ;;  %v909_v40 = vadd.f32 %v11959_v54, %v818_v24  ;;  %v11960_v61 = vld [vmem:[#allocation58_spill] sm:$0xff]  ;;  %v11961_v51 = vld [vmem:[#allocation60_spill] sm:$0xff]  ;;  %v11964_v38 = vld [vmem:[#allocation61_spill] sm:$0xff] }
 0xca7   : >> { %v910_v46 = vadd.f32 %v11960_v61, %v819_v60  ;;  %v911_v15 = vadd.f32 %v11961_v51, %v820_v18  ;;  %v11962_v3 = vld [vmem:[#allocation206_spill] sm:$0xff]  ;;  %v11963_v33 = vld [vmem:[#allocation52_spill] sm:$0xff]  ;;  %v993_v47 = vadd.f32 %v11964_v38, %v902_v48  ;;  %v11965_v35 = vld [vmem:[#allocation63_spill] sm:$0xff]  ;;  %v1082_v61 = vadd.f32 %v8170_v37, %v991_v17 }
 0xca8   : >> { %v8828_v45 = vsel %vm2060_vm1, %v11954_v22, %v11962_v3  ;;  %v904_v28 = vadd.f32 %v11963_v33, %v813_v26  ;;  %v994_v57 = vadd.f32 %v11965_v35, %v903_v30  ;;  %v11966_v12 = vld [vmem:[#allocation209_spill] sm:$0xff]  ;;  %v11967_v24 = vld [vmem:[#allocation208_spill] sm:$0xff]  ;;  %v11971_v54 = vld [vmem:[#allocation211_spill] sm:$0xff]  ;;  %v1083_v51 = vadd.f32 %v8175_v20, %v992_v13 }
 0xca9   : >> { %v8836_v58 = vsel %vm2060_vm1, %v11962_v3, %v11966_v12  ;;  %v8841_v60 = vsel %vm2060_vm1, %v11966_v12, %v11967_v24  ;;  %v11969_v18 = vld [vmem:[#allocation65_spill] sm:$0xff]  ;;  %v11970_v22 = vld [vmem:[#allocation68_spill] sm:$0xff]  ;;  %v8848_v26 = vsel %vm2060_vm1, %v11967_v24, %v11971_v54  ;;  %v11973_v48 = vld [vmem:[#allocation55_spill] sm:$0xff] }
 0xcaa   : >> { %11968 = vst [vmem:[#allocation170_spill] sm:$0xff] %v8841_v60  ;;  %v997_v49 = vadd.f32 %v11969_v18, %v906_v50  ;;  %v998_v31 = vadd.f32 %v11970_v22, %v907_v41  ;;  %11972 = vst [vmem:[#allocation173_spill] sm:$0xff] %v8848_v26  ;;  %v905_v30 = vadd.f32 %v11973_v48, %v814_v2  ;;  %v11974_v3 = vld [vmem:[#allocation67_spill] sm:$0xff]  ;;  %v11975_v38 = vld [vmem:[#allocation69_spill] sm:$0xff] }
 0xcab   : >> { %v999_v33 = vadd.f32 %v11974_v3, %v908_v27  ;;  %v1000_v35 = vadd.f32 %v11975_v38, %v909_v40  ;;  %v11976_v12 = vld [vmem:[#allocation70_spill] sm:$0xff]  ;;  %v11977_v50 = vld [vmem:[#allocation72_spill] sm:$0xff]  ;;  %v11978_v41 = vld [vmem:[#allocation213_spill] sm:$0xff] }
 0xcac   : >> { %v1001_v0 = vadd.f32 %v11976_v12, %v910_v46  ;;  %v1002_v18 = vadd.f32 %v11977_v50, %v911_v15  ;;  %v11979_v22 = vld [vmem:[#allocation210_spill] sm:$0xff]  ;;  %v11980_v24 = vld [vmem:[#allocation64_spill] sm:$0xff]  ;;  %v11981_v2 = vld [vmem:[#allocation71_spill] sm:$0xff] }
 0xcad   : >> { %v8860_v60 = vsel %vm2060_vm1, %v11979_v22, %v11978_v41  ;;  %v995_v54 = vadd.f32 %v11980_v24, %v904_v28  ;;  %v1084_v48 = vadd.f32 %v11981_v2, %v993_v47  ;;  %v11982_v37 = vld [vmem:[#allocation75_spill] sm:$0xff]  ;;  %v11983_v20 = vld [vmem:[#allocation212_spill] sm:$0xff]  ;;  %v11987_v46 = vld [vmem:[#allocation74_spill] sm:$0xff]  ;;  %v1173_v47 = vadd.f32 %v8225_v19, %v1082_v61 }
 0xcae   : >> { %v1085_v17 = vadd.f32 %v11982_v37, %v994_v57  ;;  %v8868_v13 = vsel %vm2060_vm1, %v11978_v41, %v11983_v20  ;;  %v11985_v27 = vld [vmem:[#allocation215_spill] sm:$0xff]  ;;  %v1088_v15 = vadd.f32 %v11987_v46, %v997_v49  ;;  %v11988_v3 = vld [vmem:[#allocation77_spill] sm:$0xff]  ;;  %v11989_v28 = vld [vmem:[#allocation66_spill] sm:$0xff] }
 0xcaf   : >> { %11984 = vst [vmem:[#allocation172_spill] sm:$0xff] %v8868_v13  ;;  %v8873_v40 = vsel %vm2060_vm1, %v11983_v20, %v11985_v27  ;;  %v1089_v38 = vadd.f32 %v11988_v3, %v998_v31  ;;  %v996_v12 = vadd.f32 %v11989_v28, %v905_v30  ;;  %v11990_v57 = vld [vmem:[#allocation80_spill] sm:$0xff]  ;;  %v11992_v41 = vld [vmem:[#allocation81_spill] sm:$0xff]  ;;  %v11993_v37 = vld [vmem:[#allocation78_spill] sm:$0xff] }
 0xcb0   : >> { %11986 = vst [vmem:[#allocation177_spill] sm:$0xff] %v8873_v40  ;;  %v1174_v50 = vadd.f32 %v11990_v57, %v1083_v51  ;;  %v11991_v22 = vld [vmem:[#allocation76_spill] sm:$0xff]  ;;  %v1091_v2 = vadd.f32 %v11992_v41, %v1000_v35  ;;  %v1092_v26 = vadd.f32 %v11993_v37, %v1001_v0  ;;  %v11995_v40 = vld [vmem:[#allocation214_spill] sm:$0xff]  ;;  %v11997_v31 = vld [vmem:[#allocation73_spill] sm:$0xff] }
 0xcb1   : >> { %v1090_v24 = vadd.f32 %v11991_v22, %v999_v33  ;;  %v11994_v13 = vld [vmem:[#allocation84_spill] sm:$0xff]  ;;  %v8887_v49 = vsel %vm2060_vm1, %v11985_v27, %v11995_v40  ;;  %v1086_v46 = vadd.f32 %v11997_v31, %v995_v54  ;;  %v11998_v30 = vld [vmem:[#allocation83_spill] sm:$0xff]  ;;  %v11999_v19 = vld [vmem:[#allocation82_spill] sm:$0xff] }
 0xcb2   : >> { %v1093_v20 = vadd.f32 %v11994_v13, %v1002_v18  ;;  %11996 = vst [vmem:[#allocation174_spill] sm:$0xff] %v8887_v49  ;;  %v1175_v3 = vadd.f32 %v11998_v30, %v1084_v48  ;;  %v1176_v61 = vadd.f32 %v11999_v19, %v1085_v17  ;;  %v12000_v51 = vld [vmem:[#allocation216_spill] sm:$0xff]  ;;  %v12002_v35 = vld [vmem:[#allocation219_spill] sm:$0xff]  ;;  %v12003_v0 = vld [vmem:[#allocation217_spill] sm:$0xff]  ;;  %v1179_v13 = vadd.f32 %v8251_v32, %v1088_v15 }
 0xcb3   : >> { %v8895_v33 = vsel %vm2060_vm1, %v11995_v40, %v12000_v51  ;;  %v8900_v18 = vsel %vm11331_vm0, %v12003_v0, %v12002_v35  ;;  %v12004_v27 = vld [vmem:[#allocation85_spill] sm:$0xff]  ;;  %v12005_v57 = vld [vmem:[#allocation218_spill] sm:$0xff]  ;;  %v12006_v48 = vld [vmem:[#allocation79_spill] sm:$0xff] }
 0xcb4   : >> { %12001 = vst [vmem:[#allocation176_spill] sm:$0xff] %v8895_v33  ;;  %v1180_v28 = vadd.f32 %v12004_v27, %v1089_v38  ;;  %v8907_v54 = vsel %vm11331_vm0, %v12002_v35, %v12005_v57  ;;  %v1087_v17 = vadd.f32 %v12006_v48, %v996_v12  ;;  %v12007_v22 = vld [vmem:[#allocation92_spill] sm:$0xff]  ;;  %v12008_v40 = vld [vmem:[#allocation91_spill] sm:$0xff]  ;;  %v12011_v51 = vld [vmem:[#allocation89_spill] sm:$0xff] }
 0xcb5   : >> { %v1264_v41 = vadd.f32 %v12007_v22, %v1173_v47  ;;  %v1265_v37 = vadd.f32 %v12008_v40, %v1174_v50  ;;  %v12009_v31 = vld [vmem:[#allocation87_spill] sm:$0xff]  ;;  %v12010_v19 = vld [vmem:[#allocation88_spill] sm:$0xff]  ;;  %v1183_v33 = vadd.f32 %v12011_v51, %v1092_v26  ;;  %v12013_v38 = vld [vmem:[#allocation221_spill] sm:$0xff] }
 0xcb6   : >> { %v1181_v30 = vadd.f32 %v12009_v31, %v1090_v24  ;;  %v1182_v0 = vadd.f32 %v12010_v19, %v1091_v2  ;;  %v12012_v32 = vld [vmem:[#allocation96_spill] sm:$0xff]  ;;  %v8919_v27 = vsel %vm11331_vm0, %v12005_v57, %v12013_v38  ;;  %v12014_v35 = vld [vmem:[#allocation86_spill] sm:$0xff]  ;;  %v12015_v12 = vld [vmem:[#allocation93_spill] sm:$0xff]  ;;  %v1271_v51 = vadd.f32 %v8312_v21, %v1180_v28 }
 0xcb7   : >> { %v1184_v15 = vadd.f32 %v12012_v32, %v1093_v20  ;;  %v1177_v49 = vadd.f32 %v12014_v35, %v1086_v46  ;;  %v1266_v48 = vadd.f32 %v12015_v12, %v1175_v3  ;;  %v12016_v47 = vld [vmem:[#allocation94_spill] sm:$0xff]  ;;  %v12017_v50 = vld [vmem:[#allocation220_spill] sm:$0xff]  ;;  %v12019_v2 = vld [vmem:[#allocation223_spill] sm:$0xff]  ;;  %v1270_v20 = vadd.f32 %v8307_v34, %v1179_v13 }
 0xcb8   : >> { %v1267_v22 = vadd.f32 %v12016_v47, %v1176_v61  ;;  %v8927_v24 = vsel %vm11331_vm0, %v12013_v38, %v12017_v50  ;;  %v8932_v26 = vsel %vm11331_vm0, %v12017_v50, %v12019_v2  ;;  %v12021_v57 = vld [vmem:[#allocation222_spill] sm:$0xff]  ;;  %v12023_v3 = vld [vmem:[#allocation101_spill] sm:$0xff]  ;;  %v12024_v40 = vld [vmem:[#allocation100_spill] sm:$0xff] }
 0xcb9   : >> { %12018 = vst [vmem:[#allocation179_spill] sm:$0xff] %v8927_v24  ;;  %12020 = vst [vmem:[#allocation178_spill] sm:$0xff] %v8932_v26  ;;  %v8939_v46 = vsel %vm11331_vm0, %v12019_v2, %v12021_v57  ;;  %v1355_v61 = vadd.f32 %v12023_v3, %v1264_v41  ;;  %v1356_v31 = vadd.f32 %v12024_v40, %v1265_v37  ;;  %v12025_v19 = vld [vmem:[#allocation90_spill] sm:$0xff]  ;;  %v12026_v38 = vld [vmem:[#allocation99_spill] sm:$0xff] }
 0xcba   : >> { %12022 = vst [vmem:[#allocation180_spill] sm:$0xff] %v8939_v46  ;;  %v1178_v32 = vadd.f32 %v12025_v19, %v1087_v17  ;;  %v1272_v35 = vadd.f32 %v12026_v38, %v1181_v30  ;;  %v12027_v12 = vld [vmem:[#allocation97_spill] sm:$0xff]  ;;  %v12028_v50 = vld [vmem:[#allocation98_spill] sm:$0xff]  ;;  %v12029_v34 = vld [vmem:[#allocation108_spill] sm:$0xff] }
 0xcbb   : >> { %v1273_v47 = vadd.f32 %v12027_v12, %v1182_v0  ;;  %v1274_v26 = vadd.f32 %v12028_v50, %v1183_v33  ;;  %v1275_v13 = vadd.f32 %v12029_v34, %v1184_v15  ;;  %v12030_v21 = vld [vmem:[#allocation224_spill] sm:$0xff]  ;;  %v12031_v28 = vld [vmem:[#allocation225_spill] sm:$0xff]  ;;  %v12034_v41 = vld [vmem:[#allocation102_spill] sm:$0xff] }
 0xcbc   : >> { %v8951_v24 = vsel %vm11331_vm0, %v12031_v28, %v12030_v21  ;;  %v12033_v2 = vld [vmem:[#allocation105_spill] sm:$0xff]  ;;  %v1358_v3 = vadd.f32 %v12034_v41, %v1267_v22  ;;  %v12035_v37 = vld [vmem:[#allocation95_spill] sm:$0xff]  ;;  %v12038_v0 = vld [vmem:[#allocation226_spill] sm:$0xff] }
 0xcbd   : >> { %12032 = vst [vmem:[#allocation182_spill] sm:$0xff] %v8951_v24  ;;  %v1357_v57 = vadd.f32 %v12033_v2, %v1266_v48  ;;  %v1268_v40 = vadd.f32 %v12035_v37, %v1177_v49  ;;  %v12036_v17 = vld [vmem:[#allocation227_spill] sm:$0xff]  ;;  %v12041_v38 = vld [vmem:[#allocation106_spill] sm:$0xff]  ;;  %v12042_v48 = vld [vmem:[#allocation112_spill] sm:$0xff] }
 0xcbe   : >> { %v8959_v30 = vsel %vm11331_vm0, %v12030_v21, %v12036_v17  ;;  %v8964_v33 = vsel %vm11331_vm0, %v12036_v17, %v12038_v0  ;;  %v12040_v15 = vld [vmem:[#allocation107_spill] sm:$0xff]  ;;  %v1362_v12 = vadd.f32 %v12041_v38, %v1271_v51  ;;  %v1446_v50 = vadd.f32 %v12042_v48, %v1355_v61  ;;  %v12043_v22 = vld [vmem:[#allocation113_spill] sm:$0xff]  ;;  %v12045_v2 = vld [vmem:[#allocation110_spill] sm:$0xff] }
 0xcbf   : >> { %12037 = vst [vmem:[#allocation181_spill] sm:$0xff] %v8959_v30  ;;  %12039 = vst [vmem:[#allocation183_spill] sm:$0xff] %v8964_v33  ;;  %v1361_v19 = vadd.f32 %v12040_v15, %v1270_v20  ;;  %v1447_v34 = vadd.f32 %v12043_v22, %v1356_v31  ;;  %v12044_v49 = vld [vmem:[#allocation103_spill] sm:$0xff]  ;;  %v1363_v41 = vadd.f32 %v12045_v2, %v1272_v35  ;;  %v12046_v21 = vld [vmem:[#allocation109_spill] sm:$0xff] }
 0xcc0   : >> { %v1269_v28 = vadd.f32 %v12044_v49, %v1178_v32  ;;  %v1364_v37 = vadd.f32 %v12046_v21, %v1273_v47  ;;  %v12047_v46 = vld [vmem:[#allocation111_spill] sm:$0xff]  ;;  %v12048_v24 = vld [vmem:[#allocation120_spill] sm:$0xff]  ;;  %v12049_v33 = vld [vmem:[#allocation229_spill] sm:$0xff] }
 0xcc1   : >> { %v1365_v30 = vadd.f32 %v12047_v46, %v1274_v26  ;;  %v1366_v17 = vadd.f32 %v12048_v24, %v1275_v13  ;;  %v8978_v20 = vsel %vm11331_vm0, %v12038_v0, %v12049_v33  ;;  %v12051_v51 = vld [vmem:[#allocation116_spill] sm:$0xff]  ;;  %v12052_v61 = vld [vmem:[#allocation115_spill] sm:$0xff]  ;;  %v12056_v47 = vld [vmem:[#allocation230_spill] sm:$0xff] }
 0xcc2   : >> { %12050 = vst [vmem:[#allocation184_spill] sm:$0xff] %v8978_v20  ;;  %v1448_v15 = vadd.f32 %v12051_v51, %v1357_v57  ;;  %v1449_v38 = vadd.f32 %v12052_v61, %v1358_v3  ;;  %v12053_v31 = vld [vmem:[#allocation104_spill] sm:$0xff]  ;;  %v12058_v26 = vld [vmem:[#allocation118_spill] sm:$0xff]  ;;  %v12059_v13 = vld [vmem:[#allocation119_spill] sm:$0xff] }
 0xcc3   : >> { %v1359_v48 = vadd.f32 %v12053_v31, %v1268_v40  ;;  %v12054_v32 = vld [vmem:[#allocation228_spill] sm:$0xff]  ;;  %v1452_v46 = vadd.f32 %v12058_v26, %v1361_v19  ;;  %v1453_v0 = vadd.f32 %v12059_v13, %v1362_v12  ;;  %v12060_v22 = vld [vmem:[#allocation233_spill] sm:$0xff]  ;;  %v12061_v57 = vld [vmem:[#allocation231_spill] sm:$0xff] }
 0xcc4   : >> { %v8986_v35 = vsel %vm11331_vm0, %v12049_v33, %v12054_v32  ;;  %v8991_v24 = vsel %vm11331_vm0, %v12054_v32, %v12056_v47  ;;  %v8998_v3 = vsel %vm11333_vm2, %v12061_v57, %v12060_v22  ;;  %v12063_v40 = vld [vmem:[#allocation125_spill] sm:$0xff]  ;;  %v12064_v2 = vld [vmem:[#allocation124_spill] sm:$0xff]  ;;  %v12065_v33 = vld [vmem:[#allocation114_spill] sm:$0xff]  ;;  %vm11334_vm0 = vcmask 113664  }
 0xcc5   : >> { %12055 = vst [vmem:[#allocation185_spill] sm:$0xff] %v8986_v35  ;;  %12057 = vst [vmem:[#allocation186_spill] sm:$0xff] %v8991_v24  ;;  %v1537_v49 = vadd.f32 %v12063_v40, %v1446_v50  ;;  %v1538_v21 = vadd.f32 %v12064_v2, %v1447_v34  ;;  %v1360_v51 = vadd.f32 %v12065_v33, %v1269_v28  ;;  %v12066_v61 = vld [vmem:[#allocation123_spill] sm:$0xff]  ;;  %v12067_v35 = vld [vmem:[#allocation121_spill] sm:$0xff] }
 0xcc6   : >> { %12062 = vst [vmem:[#allocation188_spill] sm:$0xff] %v8998_v3  ;;  %v1454_v31 = vadd.f32 %v12066_v61, %v1363_v41  ;;  %v1455_v32 = vadd.f32 %v12067_v35, %v1364_v37  ;;  %v12068_v47 = vld [vmem:[#allocation122_spill] sm:$0xff]  ;;  %v12069_v19 = vld [vmem:[#allocation132_spill] sm:$0xff]  ;;  %v12072_v57 = vld [vmem:[#allocation129_spill] sm:$0xff] }
 0xcc7   : >> { %v1456_v24 = vadd.f32 %v12068_v47, %v1365_v30  ;;  %v1457_v26 = vadd.f32 %v12069_v19, %v1366_v17  ;;  %v12070_v12 = vld [vmem:[#allocation232_spill] sm:$0xff]  ;;  %v1539_v20 = vadd.f32 %v12072_v57, %v1448_v15  ;;  %v12073_v50 = vld [vmem:[#allocation126_spill] sm:$0xff]  ;;  %v12074_v34 = vld [vmem:[#allocation117_spill] sm:$0xff] }
 0xcc8   : >> { %v9010_v13 = vsel %vm11333_vm2, %v12060_v22, %v12070_v12  ;;  %v1540_v40 = vadd.f32 %v12073_v50, %v1449_v38  ;;  %v1450_v2 = vadd.f32 %v12074_v34, %v1359_v48  ;;  %v12075_v28 = vld [vmem:[#allocation235_spill] sm:$0xff]  ;;  %v12077_v37 = vld [vmem:[#allocation234_spill] sm:$0xff]  ;;  %v12081_v61 = vld [vmem:[#allocation237_spill] sm:$0xff]  ;;  %v9032_v38 = vpop.permute.xlu1 %2455 }
 0xcc9   : >> { %12071 = vst [vmem:[#allocation187_spill] sm:$0xff] %v9010_v13  ;;  %v9018_v41 = vsel %vm11333_vm2, %v12070_v12, %v12075_v28  ;;  %v9023_v30 = vsel %vm11333_vm2, %v12075_v28, %v12077_v37  ;;  %v12079_v17 = vld [vmem:[#allocation131_spill] sm:$0xff]  ;;  %v12080_v22 = vld [vmem:[#allocation130_spill] sm:$0xff]  ;;  %v9030_v15 = vsel %vm11333_vm2, %v12077_v37, %v12081_v61  ;;  %12083 = vst [vmem:[#allocation192_spill] sm:$0xff] %v9032_v38 }
 0xcca   : >> { %12076 = vst [vmem:[#allocation189_spill] sm:$0xff] %v9018_v41  ;;  %12078 = vst [vmem:[#allocation190_spill] sm:$0xff] %v9023_v30  ;;  %v1543_v35 = vadd.f32 %v12079_v17, %v1452_v46  ;;  %v1544_v33 = vadd.f32 %v12080_v22, %v1453_v0  ;;  %v12084_v48 = vld [vmem:[#allocation136_spill] sm:$0xff]  ;;  %v12085_v19 = vld [vmem:[#allocation137_spill] sm:$0xff] }
 0xccb   : >> { %12082 = vst [vmem:[#allocation191_spill] sm:$0xff] %v9030_v15  ;;  %v1628_v47 = vadd.f32 %v12084_v48, %v1537_v49  ;;  %v1629_v12 = vadd.f32 %v12085_v19, %v1538_v21  ;;  %v12086_v57 = vld [vmem:[#allocation127_spill] sm:$0xff]  ;;  %v12087_v34 = vld [vmem:[#allocation134_spill] sm:$0xff]  ;;  %v12088_v30 = vld [vmem:[#allocation133_spill] sm:$0xff] }
 0xccc   : >> { %v1451_v50 = vadd.f32 %v12086_v57, %v1360_v51  ;;  %v1545_v28 = vadd.f32 %v12087_v34, %v1454_v31  ;;  %v1546_v41 = vadd.f32 %v12088_v30, %v1455_v32  ;;  %v12089_v46 = vld [vmem:[#allocation135_spill] sm:$0xff]  ;;  %v12090_v0 = vld [vmem:[#allocation144_spill] sm:$0xff]  ;;  %v12096_v51 = vld [vmem:[#allocation238_spill] sm:$0xff] }
 0xccd   : >> { %v1547_v17 = vadd.f32 %v12089_v46, %v1456_v24  ;;  %v1548_v22 = vadd.f32 %v12090_v0, %v1457_v26  ;;  %v12091_v13 = vld [vmem:[#allocation236_spill] sm:$0xff]  ;;  %v12094_v49 = vld [vmem:[#allocation139_spill] sm:$0xff]  ;;  %v12099_v32 = vld [vmem:[#allocation241_spill] sm:$0xff] }
 0xcce   : >> { %v9044_v37 = vsel %vm11333_vm2, %v12081_v61, %v12091_v13  ;;  %v12093_v15 = vld [vmem:[#allocation140_spill] sm:$0xff]  ;;  %v1631_v48 = vadd.f32 %v12094_v49, %v1540_v40  ;;  %v12097_v57 = vld [vmem:[#allocation239_spill] sm:$0xff]  ;;  %v9057_v24 = vsel %vm11333_vm2, %v12096_v51, %v12099_v32  ;;  %v12101_v26 = vld [vmem:[#allocation142_spill] sm:$0xff] }
 0xccf   : >> { %12092 = vst [vmem:[#allocation26_spill] sm:$0xff] %v9044_v37  ;;  %v1630_v38 = vadd.f32 %v12093_v15, %v1539_v20  ;;  %v12095_v21 = vld [vmem:[#allocation128_spill] sm:$0xff]  ;;  %v9052_v31 = vsel %vm11333_vm2, %v12097_v57, %v12096_v51  ;;  %12100 = vst [vmem:[#allocation268_spill] sm:$0xff] %v9057_v24  ;;  %v1634_v30 = vadd.f32 %v12101_v26, %v1543_v35  ;;  %v12102_v13 = vld [vmem:[#allocation143_spill] sm:$0xff] }
 0xcd0   : >> { %v1541_v19 = vadd.f32 %v12095_v21, %v1450_v2  ;;  %12098 = vst [vmem:[#allocation267_spill] sm:$0xff] %v9052_v31  ;;  %v1635_v61 = vadd.f32 %v12102_v13, %v1544_v33  ;;  %v12103_v34 = vld [vmem:[#allocation240_spill] sm:$0xff]  ;;  %v12105_v40 = vld [vmem:[#allocation149_spill] sm:$0xff]  ;;  %v12107_v0 = vld [vmem:[#allocation138_spill] sm:$0xff] }
 0xcd1   : >> { %v9064_v20 = vsel %vm11333_vm2, %v12099_v32, %v12103_v34  ;;  %v1719_v2 = vadd.f32 %v12105_v40, %v1628_v47  ;;  %v12106_v15 = vld [vmem:[#allocation148_spill] sm:$0xff]  ;;  %v1542_v49 = vadd.f32 %v12107_v0, %v1451_v50  ;;  %v12108_v21 = vld [vmem:[#allocation147_spill] sm:$0xff]  ;;  %v12109_v37 = vld [vmem:[#allocation145_spill] sm:$0xff]  ;;  %v9078_v32 = vpop.permute.xlu1 %2457 }
 0xcd2   : >> { %12104 = vst [vmem:[#allocation269_spill] sm:$0xff] %v9064_v20  ;;  %v1720_v46 = vadd.f32 %v12106_v15, %v1629_v12  ;;  %v1636_v57 = vadd.f32 %v12108_v21, %v1545_v28  ;;  %v1637_v51 = vadd.f32 %v12109_v37, %v1546_v41  ;;  %v12110_v24 = vld [vmem:[#allocation146_spill] sm:$0xff]  ;;  %v12111_v35 = vld [vmem:[#allocation156_spill] sm:$0xff]  ;;  %v12112_v33 = vld [vmem:[#allocation243_spill] sm:$0xff] }
 0xcd3   : >> { %v1638_v31 = vadd.f32 %v12110_v24, %v1547_v17  ;;  %v1639_v26 = vadd.f32 %v12111_v35, %v1548_v22  ;;  %v9076_v13 = vsel %vm11333_vm2, %v12103_v34, %v12112_v33  ;;  %12114 = vst [vmem:[#allocation195_spill] sm:$0xff] %v9078_v32  ;;  %v12115_v47 = vld [vmem:[#allocation153_spill] sm:$0xff]  ;;  %v12116_v12 = vld [vmem:[#allocation150_spill] sm:$0xff]  ;;  %v12120_v17 = vld [vmem:[#allocation155_spill] sm:$0xff] }
 0xcd4   : >> { %12113 = vst [vmem:[#allocation28_spill] sm:$0xff] %v9076_v13  ;;  %v1721_v40 = vadd.f32 %v12115_v47, %v1630_v38  ;;  %v1722_v15 = vadd.f32 %v12116_v12, %v1631_v48  ;;  %v12117_v50 = vld [vmem:[#allocation141_spill] sm:$0xff]  ;;  %v12118_v28 = vld [vmem:[#allocation242_spill] sm:$0xff]  ;;  %v1725_v22 = vadd.f32 %v12120_v17, %v1634_v30  ;;  %v12122_v34 = vld [vmem:[#allocation244_spill] sm:$0xff] }
 0xcd5   : >> { %v1632_v0 = vadd.f32 %v12117_v50, %v1541_v19  ;;  %v9086_v41 = vsel %vm11333_vm2, %v12112_v33, %v12118_v28  ;;  %v12121_v37 = vld [vmem:[#allocation154_spill] sm:$0xff]  ;;  %v9093_v21 = vsel %vm11333_vm2, %v12118_v28, %v12122_v34  ;;  %v12123_v38 = vld [vmem:[#allocation160_spill] sm:$0xff]  ;;  %v12124_v48 = vld [vmem:[#allocation161_spill] sm:$0xff]  ;;  %vm11351_vm2 = vcmask 105472  }
 0xcd6   : >> { %12119 = vst [vmem:[#allocation193_spill] sm:$0xff] %v9086_v41  ;;  %v1726_v24 = vadd.f32 %v12121_v37, %v1635_v61  ;;  %v1810_v35 = vadd.f32 %v12123_v38, %v1719_v2  ;;  %v1811_v47 = vadd.f32 %v12124_v48, %v1720_v46  ;;  %v12125_v19 = vld [vmem:[#allocation151_spill] sm:$0xff]  ;;  %v12126_v50 = vld [vmem:[#allocation158_spill] sm:$0xff]  ;;  %v12127_v33 = vld [vmem:[#allocation157_spill] sm:$0xff] }
 0xcd7   : >> { %v1633_v12 = vadd.f32 %v12125_v19, %v1542_v49  ;;  %v1727_v13 = vadd.f32 %v12126_v50, %v1636_v57  ;;  %v1728_v41 = vadd.f32 %v12127_v33, %v1637_v51  ;;  %v12128_v20 = vld [vmem:[#allocation159_spill] sm:$0xff]  ;;  %v12129_v30 = vld [vmem:[#allocation168_spill] sm:$0xff]  ;;  %v12131_v37 = vld [vmem:[#allocation245_spill] sm:$0xff] }
 0xcd8   : >> { %v1729_v32 = vadd.f32 %v12128_v20, %v1638_v31  ;;  %v1730_v17 = vadd.f32 %v12129_v30, %v1639_v26  ;;  %v12130_v61 = vld [vmem:[#allocation247_spill] sm:$0xff]  ;;  %v12132_v28 = vld [vmem:[#allocation164_spill] sm:$0xff]  ;;  %v12135_v49 = vld [vmem:[#allocation246_spill] sm:$0xff]  ;;  %v1816_v20 = vadd.f32 %v8616_v23, %v1725_v22  ;;  %v1901_v33 = vadd.f32 %v8654_v1, %v1810_v35 }
 0xcd9   : >> { %v9105_v3 = vsel %vm11334_vm0, %v12131_v37, %v12130_v61  ;;  %v1812_v34 = vadd.f32 %v12132_v28, %v1721_v40  ;;  %v12133_v2 = vld [vmem:[#allocation163_spill] sm:$0xff]  ;;  %v12134_v46 = vld [vmem:[#allocation152_spill] sm:$0xff]  ;;  %v9113_v57 = vsel %vm11334_vm0, %v12130_v61, %v12135_v49  ;;  %v12136_v51 = vld [vmem:[#allocation249_spill] sm:$0xff]  ;;  %v1902_v30 = vadd.f32 %v8659_v7, %v1811_v47 }
 0xcda   : >> { %v1813_v38 = vadd.f32 %v12133_v2, %v1722_v15  ;;  %v1723_v48 = vadd.f32 %v12134_v46, %v1632_v0  ;;  %v9118_v31 = vsel %vm11334_vm0, %v12135_v49, %v12136_v51  ;;  %v12137_v26 = vld [vmem:[#allocation166_spill] sm:$0xff]  ;;  %v12138_v50 = vld [vmem:[#allocation248_spill] sm:$0xff]  ;;  %v9127_v15 = vpop.permute.xlu1 %2461  ;;  %v9129_v0 = vpop.permute.xlu0 %2459  ;;  %v12140_v28 = vld [vmem:[#allocation167_spill] sm:$0xff]  ;;  %v1821_v46 = vadd.f32 %v11894_v10, %v1730_v17 }
 0xcdb   : >> { %v1817_v19 = vadd.f32 %v12137_v26, %v1726_v24  ;;  %v9125_v40 = vsel %vm11334_vm0, %v12136_v51, %v12138_v50  ;;  %v12139_v61 = vld [vmem:[#allocation162_spill] sm:$0xff]  ;;  %v1818_v2 = vadd.f32 %v12140_v28, %v1727_v13  ;;  %v12141_v23 = vld [vmem:[#allocation171_spill] sm:$0xff]  ;;  %v1820_v24 = vadd.f32 %v8646_v6, %v1729_v32  ;;  %v12143_v7 = vld [vmem:[#allocation165_spill] sm:$0xff] }
 0xcdc   : >> { %v1724_v37 = vadd.f32 %v12139_v61, %v1633_v12  ;;  %v1819_v22 = vadd.f32 %v12141_v23, %v1728_v41  ;;  %v12142_v49 = vld [vmem:[#allocation251_spill] sm:$0xff]  ;;  %v1903_v26 = vadd.f32 %v8666_v8, %v1812_v34  ;;  %v1904_v1 = vadd.f32 %v8678_v9, %v1813_v38  ;;  %v12144_v47 = vld [vmem:[#allocation250_spill] sm:$0xff]  ;;  %v12145_v41 = vld [vmem:[#allocation252_spill] sm:$0xff] }
 0xcdd   : >> { %v9141_v51 = vsel %vm11334_vm0, %v12138_v50, %v12142_v49  ;;  %v1814_v35 = vadd.f32 %v12143_v7, %v1723_v48  ;;  %v9149_v13 = vsel %vm11334_vm0, %v12142_v49, %v12144_v47  ;;  %v12146_v6 = vld [vmem:[#allocation253_spill] sm:$0xff]  ;;  %v1907_v32 = vadd.f32 %v8691_v56, %v1816_v20  ;;  %v12147_v17 = vld [vmem:[#allocation255_spill] sm:$0xff]  ;;  %v12152_v49 = vld [vmem:[#allocation258_spill] sm:$0xff] }
 0xcde   : >> { %v9154_v10 = vsel %vm11334_vm0, %v12146_v6, %v12145_v41  ;;  %v1908_v12 = vadd.f32 %v8698_v42, %v1817_v19  ;;  %v9161_v8 = vsel %vm11334_vm0, %v12145_v41, %v12147_v17  ;;  %v1992_v9 = vadd.f32 %v8737_v29, %v1901_v33  ;;  %v12148_v38 = vld [vmem:[#allocation175_spill] sm:$0xff]  ;;  %v12149_v42 = vld [vmem:[#allocation254_spill] sm:$0xff]  ;;  %v9175_v19 = vpop.permute.xlu1 %2465  ;;  %v9177_v29 = vpop.permute.xlu0 %2463  ;;  %v12158_v41 = vld [vmem:[#allocation172_spill] sm:$0xff] }
 0xcdf   : >> { %v1993_v34 = vadd.f32 %v8745_v52, %v1902_v30  ;;  %v1815_v48 = vadd.f32 %v12148_v38, %v1724_v37  ;;  %v1909_v50 = vadd.f32 %v8710_v4, %v1818_v2  ;;  %v1910_v61 = vadd.f32 %v8718_v63, %v1819_v22  ;;  %v12150_v63 = vld [vmem:[#allocation257_spill] sm:$0xff] }
 0xce0   : >> { %v1911_v28 = vadd.f32 %v8725_v5, %v1820_v24  ;;  %v1912_v56 = vadd.f32 %v11906_v62, %v1821_v46  ;;  %v9173_v20 = vsel %vm11334_vm0, %v12147_v17, %v12149_v42  ;;  %v1994_v52 = vadd.f32 %v8750_v53, %v1903_v26  ;;  %v12151_v62 = vld [vmem:[#allocation256_spill] sm:$0xff]  ;;  %v12161_v38 = vld [vmem:[#allocation177_spill] sm:$0xff] }
 0xce1   : >> { %v1995_v33 = vadd.f32 %v8757_v14, %v1904_v1  ;;  %v1905_v4 = vadd.f32 %v8686_v44, %v1814_v35  ;;  %v9185_v5 = vsel %vm11334_vm0, %v12149_v42, %v12150_v63  ;;  %v9190_v30 = vsel %vm11334_vm0, %v12150_v63, %v12151_v62  ;;  %v12156_v35 = vld [vmem:[#allocation259_spill] sm:$0xff] }
 0xce2   : >> { %v1998_v37 = vadd.f32 %v8777_v36, %v1907_v32  ;;  %v1999_v2 = vadd.f32 %v8782_v43, %v1908_v12  ;;  %v2083_v53 = vadd.f32 %v8816_v11, %v1992_v9  ;;  %v2084_v14 = vadd.f32 %v8828_v45, %v1993_v34  ;;  %v2541_v43 = vpop.permute.xlu0 %2540  ;;  %v2543_v26 = vpop.permute.xlu1 %2542  ;;  %v12153_v45 = vld [vmem:[#allocation170_spill] sm:$0xff]  ;;  %v12159_v32 = vld [vmem:[#allocation263_spill] sm:$0xff] }
 0xce3   : >> { %v1906_v44 = vadd.f32 %v11900_v55, %v1815_v48  ;;  %v2000_v23 = vadd.f32 %v8796_v39, %v1909_v50  ;;  %v2001_v22 = vadd.f32 %v8804_v25, %v1910_v61  ;;  %v2002_v24 = vadd.f32 %v8809_v16, %v1911_v28  ;;  %v12154_v55 = vld [vmem:[#allocation169_spill] sm:$0xff]  ;;  %v12157_v16 = vld [vmem:[#allocation260_spill] sm:$0xff]  ;;  %v12160_v9 = vld [vmem:[#allocation199_spill] sm:$0xff] }
 0xce4   : >> { %v2003_v46 = vadd.f32 %v11951_v59, %v1912_v56  ;;  %v9204_v36 = vsel %vm11334_vm0, %v12151_v62, %v12152_v49  ;;  %v2085_v11 = vadd.f32 %v8836_v58, %v1994_v52  ;;  %v2086_v1 = vadd.f32 %v12153_v45, %v1995_v33  ;;  %v12155_v39 = vld [vmem:[#allocation261_spill] sm:$0xff]  ;;  %v12162_v50 = vld [vmem:[#allocation174_spill] sm:$0xff]  ;;  %v12163_v28 = vld [vmem:[#allocation176_spill] sm:$0xff] }
 0xce5   : >> { %v1996_v7 = vadd.f32 %v12154_v55, %v1905_v4  ;;  %v2468_v25 = vsel %vm11351_vm2, %v12156_v35, %v12155_v39  ;;  %v2469_v59 = vsel %vm11351_vm2, %v12155_v39, %v12157_v16  ;;  %v2089_v47 = vadd.f32 %v8860_v60, %v1998_v37  ;;  %v12164_v60 = vld [vmem:[#allocation216_spill] sm:$0xff]  ;;  %v12165_v52 = vld [vmem:[#allocation262_spill] sm:$0xff]  ;;  %v12166_v62 = vld [vmem:[#allocation179_spill] sm:$0xff] }
 0xce6   : >> { %v2090_v6 = vadd.f32 %v12158_v41, %v1999_v2  ;;  %v9220_v58 = vsel %vm11351_vm2, %v12157_v16, %v12159_v32  ;;  %v2189_v12 = vadd.f32 %v8900_v18, %v2083_v53  ;;  %v2190_v17 = vadd.f32 %v8907_v54, %v2084_v14  ;;  %v2545_v4 = vpop.permute.xlu0 %2544  ;;  %v2547_v18 = vpop.permute.xlu1 %2546  ;;  %v12167_v37 = vld [vmem:[#allocation173_spill] sm:$0xff]  ;;  %v12173_v45 = vld [vmem:[#allocation187_spill] sm:$0xff]  ;;  %v12176_v16 = vld [vmem:[#allocation184_spill] sm:$0xff] }
 0xce7   : >> { %v1997_v34 = vadd.f32 %v12160_v9, %v1906_v44  ;;  %v2091_v48 = vadd.f32 %v12161_v38, %v2000_v23  ;;  %v2092_v61 = vadd.f32 %v12162_v50, %v2001_v22  ;;  %v2093_v56 = vadd.f32 %v12163_v28, %v2002_v24  ;;  %v12168_v53 = vld [vmem:[#allocation265_spill] sm:$0xff]  ;;  %v12169_v44 = vld [vmem:[#allocation264_spill] sm:$0xff]  ;;  %v12170_v22 = vld [vmem:[#allocation182_spill] sm:$0xff] }
 0xce8   : >> { %v2094_v42 = vadd.f32 %v12164_v60, %v2003_v46  ;;  %v2471_v33 = vsel %vm11351_vm2, %v12159_v32, %v12165_v52  ;;  %v2191_v63 = vadd.f32 %v8919_v27, %v2085_v11  ;;  %v2192_v54 = vadd.f32 %v12166_v62, %v2086_v1  ;;  %v12171_v46 = vld [vmem:[#allocation181_spill] sm:$0xff]  ;;  %v12172_v27 = vld [vmem:[#allocation188_spill] sm:$0xff]  ;;  %v12174_v55 = vld [vmem:[#allocation211_spill] sm:$0xff] }
 0xce9   : >> { %v2087_v2 = vadd.f32 %v12167_v37, %v1996_v7  ;;  %v9238_v14 = vsel %vm11351_vm2, %v12165_v52, %v12168_v53  ;;  %v9243_v23 = vsel %vm11351_vm2, %v12168_v53, %v12169_v44  ;;  %v2195_v24 = vadd.f32 %v12170_v22, %v2089_v47  ;;  %v12175_v39 = vld [vmem:[#allocation183_spill] sm:$0xff]  ;;  %v12177_v32 = vld [vmem:[#allocation185_spill] sm:$0xff]  ;;  %v12178_v38 = vld [vmem:[#allocation186_spill] sm:$0xff] }
 0xcea   : >> { %v2196_v49 = vadd.f32 %v12171_v46, %v2090_v6  ;;  %vm11335_vm0 = vcmask 97280   ;;  %v2290_v11 = vadd.f32 %v12172_v27, %v2189_v12  ;;  %v2291_v1 = vadd.f32 %v12173_v45, %v2190_v17  ;;  %v12179_v28 = vld [vmem:[#allocation192_spill] sm:$0xff]  ;;  %v12181_v6 = vld [vmem:[#allocation189_spill] sm:$0xff]  ;;  %v12182_v62 = vld [vmem:[#allocation190_spill] sm:$0xff]  ;;  %v2551_v53 = vpop.permute.xlu1 %2550 }
 0xceb   : >> { %v2088_v7 = vadd.f32 %v12174_v55, %v1997_v34  ;;  %v2197_v35 = vadd.f32 %v12175_v39, %v2091_v48  ;;  %v2198_v41 = vadd.f32 %v12176_v16, %v2092_v61  ;;  %v2199_v9 = vadd.f32 %v12177_v32, %v2093_v56  ;;  %v12180_v60 = vld [vmem:[#allocation32_spill] sm:$0xff]  ;;  %v12183_v37 = vld [vmem:[#allocation178_spill] sm:$0xff]  ;;  %v12184_v34 = vld [vmem:[#allocation195_spill] sm:$0xff]  ;;  %v2549_v56 = vpop.permute.xlu0 %2548 }
 0xcec   : >> { %v2200_v50 = vadd.f32 %v12178_v38, %v2094_v42  ;;  %v2474_v47 = vsel %vm11351_vm2, %v12180_v60, %v12179_v28  ;;  %v2292_v52 = vadd.f32 %v12181_v6, %v2191_v63  ;;  %v2293_v12 = vadd.f32 %v12182_v62, %v2192_v54  ;;  %v12185_v42 = vld [vmem:[#allocation267_spill] sm:$0xff]  ;;  %v12186_v22 = vld [vmem:[#allocation268_spill] sm:$0xff]  ;;  %v12188_v55 = vld [vmem:[#allocation269_spill] sm:$0xff] }
 0xced   : >> { %v2193_v17 = vadd.f32 %v12183_v37, %v2087_v2  ;;  %v2475_v48 = vsel %vm11351_vm2, %v12179_v28, %v12184_v34  ;;  %v2476_v61 = vsel %vm11351_vm2, %v12184_v34, %v9129_v0  ;;  %v2296_v44 = vadd.f32 %v12185_v42, %v2195_v24  ;;  %v12187_v27 = vld [vmem:[#allocation180_spill] sm:$0xff]  ;;  %v12190_v38 = vld [vmem:[#allocation193_spill] sm:$0xff]  ;;  %v12192_v60 = vld [vmem:[#allocation26_spill] sm:$0xff] }
 0xcee   : >> { %v2297_v46 = vadd.f32 %v12186_v22, %v2196_v49  ;;  %v2477_v63 = vsel %vm11351_vm2, %v9129_v0, %v9127_v15  ;;  %v2391_v54 = vadd.f32 %v9105_v3, %v2290_v11  ;;  %v2392_v2 = vadd.f32 %v9113_v57, %v2291_v1  ;;  %v12189_v16 = vld [vmem:[#allocation28_spill] sm:$0xff]  ;;  %v12191_v11 = vld [vmem:[#allocation191_spill] sm:$0xff]  ;;  %v2555_v1 = vpop.permute.xlu1 %2554 }
 0xcef   : >> { %v2194_v45 = vadd.f32 %v12187_v27, %v2088_v7  ;;  %v2298_v39 = vadd.f32 %v12188_v55, %v2197_v35  ;;  %v2299_v32 = vadd.f32 %v12189_v16, %v2198_v41  ;;  %v2300_v28 = vadd.f32 %v12190_v38, %v2199_v9  ;;  %v2553_v41 = vpop.permute.xlu0 %2552 }
 0xcf0   : >> { %v2301_v24 = vadd.f32 %v9093_v21, %v2200_v50  ;;  %v2478_v49 = vsel %vm11351_vm2, %v9127_v15, %v9177_v29  ;;  %v2393_v0 = vadd.f32 %v9118_v31, %v2292_v52  ;;  %v2394_v3 = vadd.f32 %v9125_v40, %v2293_v12 }
 0xcf1   : >> { %v2294_v57 = vadd.f32 %v12191_v11, %v2193_v17  ;;  %v2569_v7 = vsel %vm11335_vm0, %v2541_v43, %v2543_v26  ;;  %v2570_v35 = vsel %vm11335_vm0, %v2543_v26, %v2545_v4  ;;  %v2397_v9 = vadd.f32 %v9154_v10, %v2296_v44 }
 0xcf2   : >> { %v2398_v21 = vadd.f32 %v9161_v8, %v2297_v46  ;;  %v2479_v15 = vsel %vm11351_vm2, %v9177_v29, %v9175_v19  ;;  %v2492_v50 = vadd.f32 %v2468_v25, %v2391_v54  ;;  %v2493_v31 = vadd.f32 %v2469_v59, %v2392_v2  ;;  %v2559_v37 = vpop.permute.xlu1 %2558 }
 0xcf3   : >> { %v2295_v40 = vadd.f32 %v12192_v60, %v2194_v45  ;;  %v2399_v6 = vadd.f32 %v9173_v20, %v2298_v39  ;;  %v2400_v52 = vadd.f32 %v9185_v5, %v2299_v32  ;;  %v2401_v43 = vadd.f32 %v9190_v30, %v2300_v28  ;;  %v2557_v25 = vpop.permute.xlu0 %2556 }
 0xcf4   : >> { %v2402_v26 = vadd.f32 %v9204_v36, %v2301_v24  ;;  %v2593_v62 = vadd.f32 %v2569_v7, %v2492_v50  ;;  %v2594_v10 = vadd.f32 %v2570_v35, %v2493_v31  ;;  %v2494_v8 = vadd.f32 %v9220_v58, %v2393_v0 }
 0xcf5   : >> { %v2395_v12 = vadd.f32 %v9141_v51, %v2294_v57  ;;  %v2571_v19 = vsel %vm11335_vm0, %v2545_v4, %v2547_v18  ;;  %v2495_v29 = vadd.f32 %v2471_v33, %v2394_v3  ;;  %v2498_v59 = vadd.f32 %v2474_v47, %v2397_v9 }
 0xcf6   : >> { %v2499_v17 = vadd.f32 %v2475_v48, %v2398_v21  ;;  %v2572_v20 = vsel %vm11335_vm0, %v2547_v18, %v2549_v56  ;;  %v2396_v5 = vadd.f32 %v9149_v13, %v2295_v40  ;;  %v2575_v30 = vsel %vm11335_vm0, %v2555_v1, %v2557_v25  ;;  %v2563_v4 = vpop.permute.xlu1 %2562 }
 0xcf7   : >> { %v2576_v36 = vsel %vm11335_vm0, %v2557_v25, %v2559_v37  ;;  %v2500_v34 = vadd.f32 %v2476_v61, %v2399_v6  ;;  %v2501_v42 = vadd.f32 %v2477_v63, %v2400_v52  ;;  %v2599_v58 = vadd.f32 %v2575_v30, %v2498_v59  ;;  %v2561_v13 = vpop.permute.xlu0 %2560 }
 0xcf8   : >> { %v2600_v44 = vadd.f32 %v2576_v36, %v2499_v17  ;;  %v2605_v51 = vmax.f32 %v2593_v62, 0.0  ;;  %v2606_v22 = vmax.f32 %v2594_v10, 0.0  ;;  %v2595_v46 = vadd.f32 %v2571_v19, %v2494_v8 }
 0xcf9   : >> { %v2496_v33 = vadd.f32 %v9238_v14, %v2395_v12  ;;  %v2596_v47 = vadd.f32 %v2572_v20, %v2495_v29  ;;  %v2573_v48 = vsel %vm11335_vm0, %v2549_v56, %v2551_v53  ;;  %v2611_v18 = vmax.f32 %v2599_v58, 0.0 }
 0xcfa   : >> { %v2612_v54 = vmax.f32 %v2600_v44, 0.0  ;;  %v2497_v2 = vadd.f32 %v9243_v23, %v2396_v5  ;;  %v2574_v27 = vsel %vm11335_vm0, %v2551_v53, %v2553_v41  ;;  %v2577_v61 = vsel %vm11335_vm0, %v2559_v37, %v2561_v13  ;;  %v2567_v28 = vpop.permute.xlu1 %2566 }
 0xcfb   : >> { %v2578_v63 = vsel %vm11335_vm0, %v2561_v13, %v2563_v4  ;;  %v9309_v45 = vpack.c.bf16 %v2611_v18, %v2605_v51  ;;  %v2601_v14 = vadd.f32 %v2577_v61, %v2500_v34  ;;  %v2502_v16 = vadd.f32 %v2478_v49, %v2401_v43  ;;  %v2565_v3 = vpop.permute.xlu0 %2564  ;;  %v6265_v13 = vld [vmem:[%s11105_s3 + $0x4] ss:$16 sps:$4 sm:$0xff]  }
 0xcfc   : >> { %v9311_v55 = vpack.c.bf16 %v2612_v54, %v2606_v22  ;;  %v2602_v39 = vadd.f32 %v2578_v63, %v2501_v42  ;;  %v2503_v32 = vadd.f32 %v2479_v15, %v2402_v26  ;;  %v2607_v56 = vmax.f32 %v2595_v46, 0.0  ;;  %3806 = vmatprep.mubr.bf16.mxu0 %v6265_v13  ;;  %3952 = vmatprep.mubr.bf16.mxu1 %v6265_v13 }
 0xcfd   : >> { %v2597_v38 = vadd.f32 %v2573_v48, %v2496_v33  ;;  %v2608_v24 = vmax.f32 %v2596_v47, 0.0  ;;  %v2598_v0 = vadd.f32 %v2574_v27, %v2497_v2  ;;  %2623 = vst [vmem:[#allocation2] sm:$0xff] %v9309_v45  ;;  %v2613_v23 = vmax.f32 %v2601_v14, 0.0  ;;  %2650 = vrot.lane.b32.xlu0 %v9309_v45, %s6332_s7 }
 0xcfe   : >> { %v2614_v53 = vmax.f32 %v2602_v39, 0.0  ;;  %2652 = vrot.lane.b32.xlu1 %v9311_v55, %s6332_s7  ;;  %v2579_v11 = vsel %vm11335_vm0, %v2563_v4, %v2565_v3  ;;  %v2580_v49 = vsel %vm11335_vm0, %v2565_v3, %v2567_v28  ;;  %3774 = vmatprep.subr.bf16.mxu0 %v9311_v55  ;;  %vm2628_vm0 = vcmask 228352  }
 0xcff   : >> { %v9321_v57 = vpack.c.bf16 %v2613_v23, %v2607_v56  ;;  %v2603_v7 = vadd.f32 %v2579_v11, %v2502_v16  ;;  %v2604_v35 = vadd.f32 %v2580_v49, %v2503_v32  ;;  %3775 = vmatpush1.bf16.msra.mxu0 %v9309_v45  ;;  %v2609_v41 = vmax.f32 %v2597_v38, 0.0 }
 0xd00   : >> { %v9323_v1 = vpack.c.bf16 %v2614_v53, %v2608_v24  ;;  %v2610_v9 = vmax.f32 %v2598_v0, 0.0 }
 0xd01   : >> { %2625 = vst [vmem:[#allocation2 + $0x10] sm:$0xff] %v9321_v57  ;;  %v2615_v21 = vmax.f32 %v2603_v7, 0.0  ;;  %v2616_v15 = vmax.f32 %v2604_v35, 0.0  ;;  %2654 = vrot.lane.b32.xlu0 %v9321_v57, %s6332_s7 }
 0xd02   : >> { %2626 = vst [vmem:[#allocation2 + $0x18] sm:$0xff] %v9323_v1  ;;  %2656 = vrot.lane.b32.xlu1 %v9323_v1, %s6332_s7  ;;  %3920 = vmatprep.subr.bf16.mxu1 %v9323_v1 }
 0xd03   : >> { %v9333_v50 = vpack.c.bf16 %v2615_v21, %v2609_v41  ;;  %v2622_v31 = vpack.c.bf16 %v2616_v15, %v2610_v9  ;;  %3921 = vmatpush1.bf16.msra.mxu1 %v9321_v57 }
 0xd05   : >> { %2627 = vst [vmem:[#allocation2 + $0x20] sm:$0xff] %v9333_v50  ;;  %2629 = vst.msk [vmem:[#allocation2 + $0x28] sm:$0xff] %vm2628_vm0, %v2622_v31  ;;  %2658 = vrot.lane.b32.xlu0 %v9333_v50, %s6332_s7  ;;  %vm12196_vm0 = vcmask 556032  }
 0xd06   : >> { %2685 = vrot.lane.b32.xlu1 %v9309_v45, %s6334_s8 }
 0xd09   : >> { %2687 = vrot.lane.b32.xlu0 %v9311_v55, %s6334_s8 }
 0xd0a   : >> { %2689 = vrot.lane.b32.xlu1 %v9321_v57, %s6334_s8 }
 0xd0c   : >> { %v9345_v60 = vld [vmem:[#allocation2 + $0x20] sm:$0xff] }
 0xd0d   : >> { %2691 = vrot.lane.b32.xlu0 %v9323_v1, %s6334_s8  ;;  %2639 = vst.msk [vmem:[#allocation3 + $0x20] sm:$0xff] %vm2060_vm1, %v9345_v60 }
 0xd0e   : >> { %2693 = vrot.lane.b32.xlu1 %v9333_v50, %s6334_s8 }
 0xd11   : >> { %2720 = vrot.lane.b32.xlu0 %v9309_v45, %s6335_s9 }
 0xd12   : >> { %2722 = vrot.lane.b32.xlu1 %v9311_v55, %s6335_s9 }
 0xd15   : >> { %2724 = vrot.lane.b32.xlu0 %v9321_v57, %s6335_s9 }
 0xd16   : >> { %2726 = vrot.lane.b32.xlu1 %v9323_v1, %s6335_s9 }
 0xd19   : >> { %2728 = vrot.lane.b32.xlu0 %v9333_v50, %s6335_s9  ;;  %s12193_s9 = smov 15  }
 0xd1a   : >> { %2755 = vrot.lane.b32.xlu1 %v9309_v45, %s6336_s10 }
 0xd1d   : >> { %2757 = vrot.lane.b32.xlu0 %v9311_v55, %s6336_s10 }
 0xd1e   : >> { %2759 = vrot.lane.b32.xlu1 %v9321_v57, %s6336_s10 }
 0xd21   : >> { %2761 = vrot.lane.b32.xlu0 %v9323_v1, %s6336_s10 }
 0xd22   : >> { %2763 = vrot.lane.b32.xlu1 %v9333_v50, %s6336_s10  ;;  %s12194_s10 = smov 14  }
 0xd25   : >> { %2790 = vrot.lane.b32.xlu0 %v9309_v45, %s6337_s11 }
 0xd26   : >> { %2792 = vrot.lane.b32.xlu1 %v9311_v55, %s6337_s11 }
 0xd29   : >> { %2794 = vrot.lane.b32.xlu0 %v9321_v57, %s6337_s11 }
 0xd2a   : >> { %2796 = vrot.lane.b32.xlu1 %v9323_v1, %s6337_s11 }
 0xd2d   : >> { %2798 = vrot.lane.b32.xlu0 %v9333_v50, %s6337_s11 }
 0xd2e   : >> { %2825 = vrot.lane.b32.xlu1 %v9309_v45, %s6339_s12 }
 0xd31   : >> { %2827 = vrot.lane.b32.xlu0 %v9311_v55, %s6339_s12 }
 0xd32   : >> { %2829 = vrot.lane.b32.xlu1 %v9321_v57, %s6339_s12 }
 0xd35   : >> { %2831 = vrot.lane.b32.xlu0 %v9323_v1, %s6339_s12 }
 0xd36   : >> { %2833 = vrot.lane.b32.xlu1 %v9333_v50, %s6339_s12  ;;  %s12195_s12 = smov 13  }
 0xd39   : >> { %2860 = vrot.lane.b32.xlu0 %v9309_v45, %s6341_s13 }
 0xd3a   : >> { %2862 = vrot.lane.b32.xlu1 %v9311_v55, %s6341_s13 }
 0xd3d   : >> { %2864 = vrot.lane.b32.xlu0 %v9321_v57, %s6341_s13 }
 0xd3e   : >> { %2866 = vrot.lane.b32.xlu1 %v9323_v1, %s6341_s13 }
 0xd41   : >> { %2868 = vrot.lane.b32.xlu0 %v9333_v50, %s6341_s13 }
 0xd42   : >> { %2895 = vrot.lane.b32.xlu1 %v9309_v45, %s6343_s14 }
 0xd45   : >> { %2897 = vrot.lane.b32.xlu0 %v9311_v55, %s6343_s14 }
 0xd46   : >> { %2899 = vrot.lane.b32.xlu1 %v9321_v57, %s6343_s14 }
 0xd49   : >> { %2901 = vrot.lane.b32.xlu0 %v9323_v1, %s6343_s14 }
 0xd4a   : >> { %2903 = vrot.lane.b32.xlu1 %v9333_v50, %s6343_s14 }
 0xd4d   : >> { %2930 = vrot.lane.b32.xlu0 %v9309_v45, %s6345_s15 }
 0xd4e   : >> { %2932 = vrot.lane.b32.xlu1 %v9311_v55, %s6345_s15 }
 0xd51   : >> { %2934 = vrot.lane.b32.xlu0 %v9321_v57, %s6345_s15 }
 0xd52   : >> { %2936 = vrot.lane.b32.xlu1 %v9323_v1, %s6345_s15 }
 0xd55   : >> { %2938 = vrot.lane.b32.xlu0 %v9333_v50, %s6345_s15 }
 0xd56   : >> { %2965 = vrot.lane.b32.xlu1 %v9309_v45, %s6347_s16 }
 0xd59   : >> { %2967 = vrot.lane.b32.xlu0 %v9311_v55, %s6347_s16 }
 0xd5a   : >> { %2969 = vrot.lane.b32.xlu1 %v9321_v57, %s6347_s16 }
 0xd5d   : >> { %2971 = vrot.lane.b32.xlu0 %v9323_v1, %s6347_s16 }
 0xd5e   : >> { %2973 = vrot.lane.b32.xlu1 %v9333_v50, %s6347_s16 }
 0xd61   : >> { %3000 = vrot.lane.b32.xlu0 %v9309_v45, %s6349_s17 }
 0xd62   : >> { %3002 = vrot.lane.b32.xlu1 %v9311_v55, %s6349_s17 }
 0xd65   : >> { %3004 = vrot.lane.b32.xlu0 %v9321_v57, %s6349_s17 }
 0xd66   : >> { %3006 = vrot.lane.b32.xlu1 %v9323_v1, %s6349_s17 }
 0xd69   : >> { %3008 = vrot.lane.b32.xlu0 %v9333_v50, %s6349_s17 }
 0xd6a   : >> { %3035 = vrot.lane.b32.xlu1 %v9309_v45, %s6351_s19 }
 0xd6d   : >> { %3037 = vrot.lane.b32.xlu0 %v9311_v55, %s6351_s19 }
 0xd6e   : >> { %3039 = vrot.lane.b32.xlu1 %v9321_v57, %s6351_s19 }
 0xd6f   : >> { %v2651_v6 = vpop.permute.xlu0 %2650 }
 0xd70   : >> { %v2653_v40 = vpop.permute.xlu1 %2652 }
 0xd71   : >> { %v2661_v52 = vsel %vm422_vm8, %v2651_v6, %v2653_v40  ;;  %3041 = vrot.lane.b32.xlu0 %v9323_v1, %s6351_s19 }
 0xd72   : >> { %3043 = vrot.lane.b32.xlu1 %v9333_v50, %s6351_s19 }
 0xd73   : >> { %v2655_v26 = vpop.permute.xlu0 %2654 }
 0xd74   : >> { %v2657_v43 = vpop.permute.xlu1 %2656  ;;  %v2662_v62 = vsel %vm422_vm8, %v2653_v40, %v2655_v26 }
 0xd75   : >> { %v2663_v10 = vsel %vm422_vm8, %v2655_v26, %v2657_v43  ;;  %3070 = vrot.lane.b32.xlu0 %v9309_v45, %s6353_s21  ;;  %3776 = vmatprep.subr.bf16.mxu0 %v2662_v62 }
 0xd76   : >> { %3072 = vrot.lane.b32.xlu1 %v9311_v55, %s6353_s21  ;;  %3777 = vmatpush1.bf16.msra.mxu0 %v2661_v52 }
 0xd77   : >> { %v2659_v12 = vpop.permute.xlu0 %2658 }
 0xd78   : >> { %v2686_v8 = vpop.permute.xlu1 %2685  ;;  %v2664_v37 = vsel %vm422_vm8, %v2657_v43, %v2659_v12  ;;  %2674 = vst.msk [vmem:[#allocation3 + $0x48] sm:$0xff] %vm2060_vm1, %v2659_v12 }
 0xd79   : >> { %3074 = vrot.lane.b32.xlu0 %v9321_v57, %s6353_s21  ;;  %3922 = vmatprep.subr.bf16.mxu1 %v2664_v37 }
 0xd7a   : >> { %3076 = vrot.lane.b32.xlu1 %v9323_v1, %s6353_s21  ;;  %3923 = vmatpush1.bf16.msra.mxu1 %v2663_v10 }
 0xd7b   : >> { %v2688_v29 = vpop.permute.xlu0 %2687 }
 0xd7c   : >> { %v2690_v19 = vpop.permute.xlu1 %2689  ;;  %v2696_v25 = vsel %vm513_vm9, %v2686_v8, %v2688_v29 }
 0xd7d   : >> { %v2697_v59 = vsel %vm513_vm9, %v2688_v29, %v2690_v19  ;;  %3078 = vrot.lane.b32.xlu0 %v9333_v50, %s6353_s21 }
 0xd7e   : >> { %3105 = vrot.lane.b32.xlu1 %v9309_v45, %s6355_s22  ;;  %3778 = vmatprep.subr.bf16.mxu0 %v2697_v59 }
 0xd7f   : >> { %v2692_v20 = vpop.permute.xlu0 %2691  ;;  %3779 = vmatpush1.bf16.msra.mxu0 %v2696_v25 }
 0xd80   : >> { %v2694_v17 = vpop.permute.xlu1 %2693  ;;  %v2698_v5 = vsel %vm513_vm9, %v2690_v19, %v2692_v20 }
 0xd81   : >> { %2709 = vst.msk [vmem:[#allocation3 + $0x70] sm:$0xff] %vm2060_vm1, %v2694_v17  ;;  %v2699_v30 = vsel %vm513_vm9, %v2692_v20, %v2694_v17  ;;  %3107 = vrot.lane.b32.xlu0 %v9311_v55, %s6355_s22 }
 0xd82   : >> { %3109 = vrot.lane.b32.xlu1 %v9321_v57, %s6355_s22  ;;  %3924 = vmatprep.subr.bf16.mxu1 %v2699_v30 }
 0xd83   : >> { %v2721_v34 = vpop.permute.xlu0 %2720  ;;  %3925 = vmatpush1.bf16.msra.mxu1 %v2698_v5 }
 0xd84   : >> { %v2723_v36 = vpop.permute.xlu1 %2722 }
 0xd85   : >> { %v2731_v42 = vsel %vm604_vm10, %v2721_v34, %v2723_v36  ;;  %3111 = vrot.lane.b32.xlu0 %v9323_v1, %s6355_s22 }
 0xd86   : >> { %3113 = vrot.lane.b32.xlu1 %v9333_v50, %s6355_s22 }
 0xd87   : >> { %v2725_v44 = vpop.permute.xlu0 %2724 }
 0xd88   : >> { %v2727_v58 = vpop.permute.xlu1 %2726  ;;  %v2732_v51 = vsel %vm604_vm10, %v2723_v36, %v2725_v44 }
 0xd89   : >> { %v2733_v22 = vsel %vm604_vm10, %v2725_v44, %v2727_v58  ;;  %3140 = vrot.lane.b32.xlu0 %v9309_v45, %s6357_s23  ;;  %3780 = vmatprep.subr.bf16.mxu0 %v2732_v51 }
 0xd8a   : >> { %3142 = vrot.lane.b32.xlu1 %v9311_v55, %s6357_s23  ;;  %3781 = vmatpush1.bf16.msra.mxu0 %v2731_v42 }
 0xd8b   : >> { %v2729_v33 = vpop.permute.xlu0 %2728 }
 0xd8c   : >> { %v2756_v46 = vpop.permute.xlu1 %2755  ;;  %v2734_v4 = vsel %vm604_vm10, %v2727_v58, %v2729_v33  ;;  %2744 = vst.msk [vmem:[#allocation3 + $0x98] sm:$0xff] %vm2060_vm1, %v2729_v33  ;;  %vm12212_vm10 = vcmask 351232  }
 0xd8d   : >> { %3144 = vrot.lane.b32.xlu0 %v9321_v57, %s6357_s23  ;;  %3926 = vmatprep.subr.bf16.mxu1 %v2734_v4 }
 0xd8e   : >> { %3146 = vrot.lane.b32.xlu1 %v9323_v1, %s6357_s23  ;;  %3927 = vmatpush1.bf16.msra.mxu1 %v2733_v22 }
 0xd8f   : >> { %v2758_v48 = vpop.permute.xlu0 %2757 }
 0xd90   : >> { %v2760_v47 = vpop.permute.xlu1 %2759  ;;  %v2766_v18 = vsel %vm695_vm11, %v2756_v46, %v2758_v48 }
 0xd91   : >> { %v2767_v54 = vsel %vm695_vm11, %v2758_v48, %v2760_v47  ;;  %3148 = vrot.lane.b32.xlu0 %v9333_v50, %s6357_s23 }
 0xd92   : >> { %3175 = vrot.lane.b32.xlu1 %v9309_v45, %s6359_s24  ;;  %3782 = vmatprep.subr.bf16.mxu0 %v2767_v54 }
 0xd93   : >> { %v2762_v27 = vpop.permute.xlu0 %2761  ;;  %3783 = vmatpush1.bf16.msra.mxu0 %v2766_v18 }
 0xd94   : >> { %v2764_v2 = vpop.permute.xlu1 %2763  ;;  %v2768_v61 = vsel %vm695_vm11, %v2760_v47, %v2762_v27 }
 0xd95   : >> { %2779 = vst.msk [vmem:[#allocation3 + $0xc0] sm:$0xff] %vm2060_vm1, %v2764_v2  ;;  %v2769_v63 = vsel %vm695_vm11, %v2762_v27, %v2764_v2  ;;  %3177 = vrot.lane.b32.xlu0 %v9311_v55, %s6359_s24  ;;  %vm12213_vm11 = vmmov %vm12212_vm10 }
 0xd96   : >> { %3179 = vrot.lane.b32.xlu1 %v9321_v57, %s6359_s24  ;;  %3928 = vmatprep.subr.bf16.mxu1 %v2769_v63 }
 0xd97   : >> { %v2791_v39 = vpop.permute.xlu0 %2790  ;;  %3929 = vmatpush1.bf16.msra.mxu1 %v2768_v61 }
 0xd98   : >> { %v2793_v14 = vpop.permute.xlu1 %2792 }
 0xd99   : >> { %v2801_v16 = vsel %vm786_vm12, %v2791_v39, %v2793_v14  ;;  %3181 = vrot.lane.b32.xlu0 %v9323_v1, %s6359_s24 }
 0xd9a   : >> { %3183 = vrot.lane.b32.xlu1 %v9333_v50, %s6359_s24 }
 0xd9b   : >> { %v2795_v56 = vpop.permute.xlu0 %2794 }
 0xd9c   : >> { %v2797_v32 = vpop.permute.xlu1 %2796  ;;  %v2802_v38 = vsel %vm786_vm12, %v2793_v14, %v2795_v56 }
 0xd9d   : >> { %v2803_v28 = vsel %vm786_vm12, %v2795_v56, %v2797_v32  ;;  %3212 = vrot.lane.b32.xlu0 %v9311_v55, %s6361_s25  ;;  %3784 = vmatprep.subr.bf16.mxu0 %v2802_v38  ;;  %v3425_v38 = vld [vmem:[#allocation2] sm:$0xff] }
 0xd9e   : >> { %3214 = vrot.lane.b32.xlu1 %v9321_v57, %s6361_s25  ;;  %3785 = vmatpush1.bf16.msra.mxu0 %v2801_v16 }
 0xd9f   : >> { %v2799_v0 = vpop.permute.xlu0 %2798 }
 0xda0   : >> { %v2826_v24 = vpop.permute.xlu1 %2825  ;;  %v2804_v23 = vsel %vm786_vm12, %v2797_v32, %v2799_v0  ;;  %2814 = vst.msk [vmem:[#allocation3 + $0xe8] sm:$0xff] %vm2060_vm1, %v2799_v0  ;;  %vm12214_vm12 = vmmov %vm12212_vm10 }
 0xda1   : >> { %3210 = vrot.lane.b32.xlu0 %v9309_v45, %s6361_s25  ;;  %3930 = vmatprep.subr.bf16.mxu1 %v2804_v23 }
 0xda2   : >> { %3216 = vrot.lane.b32.xlu1 %v9323_v1, %s6361_s25  ;;  %3931 = vmatpush1.bf16.msra.mxu1 %v2803_v28 }
 0xda3   : >> { %v2828_v3 = vpop.permute.xlu0 %2827 }
 0xda4   : >> { %v2830_v53 = vpop.permute.xlu1 %2829  ;;  %v2836_v11 = vsel %vm877_vm13, %v2826_v24, %v2828_v3 }
 0xda5   : >> { %v2837_v49 = vsel %vm877_vm13, %v2828_v3, %v2830_v53  ;;  %3218 = vrot.lane.b32.xlu0 %v9333_v50, %s6361_s25 }
 0xda6   : >> { %3247 = vrot.lane.b32.xlu1 %v9311_v55, %s6363_s20  ;;  %3786 = vmatprep.subr.bf16.mxu0 %v2837_v49 }
 0xda7   : >> { %v2832_v35 = vpop.permute.xlu0 %2831  ;;  %3787 = vmatpush1.bf16.msra.mxu0 %v2836_v11  ;;  %v3467_v11 = vld [vmem:[#allocation2 + $0x10] sm:$0xff] }
 0xda8   : >> { %v2834_v7 = vpop.permute.xlu1 %2833  ;;  %v2838_v41 = vsel %vm877_vm13, %v2830_v53, %v2832_v35 }
 0xda9   : >> { %2849 = vst.msk [vmem:[#allocation3 + $0x110] sm:$0xff] %vm2060_vm1, %v2834_v7  ;;  %v2839_v9 = vsel %vm877_vm13, %v2832_v35, %v2834_v7  ;;  %3249 = vrot.lane.b32.xlu0 %v9321_v57, %s6363_s20  ;;  %v3468_v7 = vld [vmem:[#allocation2 + $0x18] sm:$0xff]  ;;  %vm12215_vm13 = vmmov %vm12212_vm10 }
 0xdaa   : >> { %3245 = vrot.lane.b32.xlu1 %v9309_v45, %s6363_s20  ;;  %3932 = vmatprep.subr.bf16.mxu1 %v2839_v9 }
 0xdab   : >> { %v2861_v15 = vpop.permute.xlu0 %2860  ;;  %3933 = vmatpush1.bf16.msra.mxu1 %v2838_v41 }
 0xdac   : >> { %v2863_v21 = vpop.permute.xlu1 %2862 }
 0xdad   : >> { %v2871_v31 = vsel %vm968_vm14, %v2861_v15, %v2863_v21  ;;  %3251 = vrot.lane.b32.xlu0 %v9323_v1, %s6363_s20  ;;  %v3350_v15 = vld [vmem:[#allocation2 + $0x28] sm:$0xff] }
 0xdae   : >> { %3253 = vrot.lane.b32.xlu1 %v9333_v50, %s6363_s20 }
 0xdaf   : >> { %v2865_v6 = vpop.permute.xlu0 %2864 }
 0xdb0   : >> { %v2867_v40 = vpop.permute.xlu1 %2866  ;;  %v2872_v52 = vsel %vm968_vm14, %v2863_v21, %v2865_v6 }
 0xdb1   : >> { %v2873_v43 = vsel %vm968_vm14, %v2865_v6, %v2867_v40  ;;  %3282 = vrot.lane.b32.xlu0 %v9311_v55, %s6365_s27  ;;  %3788 = vmatprep.subr.bf16.mxu0 %v2872_v52 }
 0xdb2   : >> { %3284 = vrot.lane.b32.xlu1 %v9321_v57, %s6365_s27  ;;  %3789 = vmatpush1.bf16.msra.mxu0 %v2871_v31 }
 0xdb3   : >> { %v2869_v62 = vpop.permute.xlu0 %2868 }
 0xdb4   : >> { %v2896_v26 = vpop.permute.xlu1 %2895  ;;  %v2874_v10 = vsel %vm968_vm14, %v2867_v40, %v2869_v62  ;;  %2884 = vst.msk [vmem:[#allocation3 + $0x138] sm:$0xff] %vm2060_vm1, %v2869_v62  ;;  %v12198_v62 = vld [vmem:[#allocation9_spill] sm:$0xff]  ;;  %vm12216_vm14 = vcmask 343040  }
 0xdb5   : >> { %3280 = vrot.lane.b32.xlu0 %v9309_v45, %s6365_s27  ;;  %3934 = vmatprep.subr.bf16.mxu1 %v2874_v10 }
 0xdb6   : >> { %3286 = vrot.lane.b32.xlu1 %v9323_v1, %s6365_s27  ;;  %3935 = vmatpush1.bf16.msra.mxu1 %v2873_v43 }
 0xdb7   : >> { %v2898_v12 = vpop.permute.xlu0 %2897 }
 0xdb8   : >> { %v2900_v8 = vpop.permute.xlu1 %2899  ;;  %v2906_v37 = vsel %vm1059_vm15, %v2896_v26, %v2898_v12 }
 0xdb9   : >> { %v2907_v19 = vsel %vm1059_vm15, %v2898_v12, %v2900_v8  ;;  %3288 = vrot.lane.b32.xlu0 %v9333_v50, %s6365_s27 }
 0xdba   : >> { %3319 = vrot.lane.b32.xlu1 %v9311_v55, %s6367_s30  ;;  %3790 = vmatprep.subr.bf16.mxu0 %v2907_v19  ;;  %v12201_v19 = vld [vmem:[#allocation10_spill] sm:$0xff] }
 0xdbb   : >> { %v2902_v25 = vpop.permute.xlu0 %2901  ;;  %3791 = vmatpush1.bf16.msra.mxu0 %v2906_v37 }
 0xdbc   : >> { %v2904_v29 = vpop.permute.xlu1 %2903  ;;  %v2908_v59 = vsel %vm1059_vm15, %v2900_v8, %v2902_v25 }
 0xdbd   : >> { %2919 = vst.msk [vmem:[#allocation3 + $0x160] sm:$0xff] %vm2060_vm1, %v2904_v29  ;;  %v2909_v17 = vsel %vm1059_vm15, %v2902_v25, %v2904_v29  ;;  %3321 = vrot.lane.b32.xlu0 %v9321_v57, %s6367_s30  ;;  %v12202_v29 = vld [vmem:[#allocation11_spill] sm:$0xff]  ;;  %vm12217_vm15 = vmmov %vm12216_vm14 }
 0xdbe   : >> { %3317 = vrot.lane.b32.xlu1 %v9309_v45, %s6367_s30  ;;  %3936 = vmatprep.subr.bf16.mxu1 %v2909_v17 }
 0xdbf   : >> { %v2931_v5 = vpop.permute.xlu0 %2930  ;;  %3937 = vmatpush1.bf16.msra.mxu1 %v2908_v59 }
 0xdc0   : >> { %v2933_v20 = vpop.permute.xlu1 %2932 }
 0xdc1   : >> { %v2941_v30 = vsel %vm1150_vm7, %v2931_v5, %v2933_v20  ;;  %3323 = vrot.lane.b32.xlu0 %v9323_v1, %s6367_s30  ;;  %v12205_v5 = vld [vmem:[#allocation12_spill] sm:$0xff] }
 0xdc2   : >> { %3325 = vrot.lane.b32.xlu1 %v9333_v50, %s6367_s30 }
 0xdc3   : >> { %v2935_v34 = vpop.permute.xlu0 %2934 }
 0xdc4   : >> { %v2937_v36 = vpop.permute.xlu1 %2936  ;;  %v2942_v42 = vsel %vm1150_vm7, %v2933_v20, %v2935_v34  ;;  %v12204_v20 = vld [vmem:[#allocation13_spill] sm:$0xff] }
 0xdc5   : >> { %v2943_v58 = vsel %vm1150_vm7, %v2935_v34, %v2937_v36  ;;  %3359 = vrot.lane.b32.xlu0 %v9311_v55, %s12193_s9  ;;  %3792 = vmatprep.subr.bf16.mxu0 %v2942_v42 }
 0xdc6   : >> { %3361 = vrot.lane.b32.xlu1 %v9321_v57, %s12193_s9  ;;  %3793 = vmatpush1.bf16.msra.mxu0 %v2941_v30 }
 0xdc7   : >> { %v2939_v51 = vpop.permute.xlu0 %2938 }
 0xdc8   : >> { %v2966_v44 = vpop.permute.xlu1 %2965  ;;  %v2944_v22 = vsel %vm1150_vm7, %v2937_v36, %v2939_v51  ;;  %2954 = vst.msk [vmem:[#allocation3 + $0x188] sm:$0xff] %vm2060_vm1, %v2939_v51  ;;  %v9664_v51 = vld [vmem:[%s11105_s3 + $0x24] ss:$16 sps:$4 sm:$0xff]  }
 0xdc9   : >> { %3357 = vrot.lane.b32.xlu0 %v9309_v45, %s12193_s9  ;;  %3938 = vmatprep.subr.bf16.mxu1 %v2944_v22  ;;  %v12209_v22 = vld [vmem:[#allocation16_spill] sm:$0xff] }
 0xdca   : >> { %3363 = vrot.lane.b32.xlu1 %v9323_v1, %s12193_s9  ;;  %3939 = vmatpush1.bf16.msra.mxu1 %v2943_v58  ;;  %v12208_v58 = vld [vmem:[#allocation17_spill] sm:$0xff] }
 0xdcb   : >> { %v2968_v33 = vpop.permute.xlu0 %2967 }
 0xdcc   : >> { %v2970_v46 = vpop.permute.xlu1 %2969  ;;  %v2976_v4 = vsel %vm1241_vm6, %v2966_v44, %v2968_v33  ;;  %v9659_v44 = vld [vmem:[%s11105_s3] ss:$16 sps:$4 sm:$0xff]  }
 0xdcd   : >> { %v2977_v47 = vsel %vm1241_vm6, %v2968_v33, %v2970_v46  ;;  %3365 = vrot.lane.b32.xlu0 %v9333_v50, %s12193_s9 }
 0xdce   : >> { %3399 = vrot.lane.b32.xlu1 %v9311_v55, %s12194_s10  ;;  %3794 = vmatprep.subr.bf16.mxu0 %v2977_v47 }
 0xdcf   : >> { %v2972_v18 = vpop.permute.xlu0 %2971  ;;  %3795 = vmatpush1.bf16.msra.mxu0 %v2976_v4 }
 0xdd0   : >> { %v2974_v48 = vpop.permute.xlu1 %2973  ;;  %v2978_v54 = vsel %vm1241_vm6, %v2970_v46, %v2972_v18 }
 0xdd1   : >> { %2989 = vst.msk [vmem:[#allocation3 + $0x1b0] sm:$0xff] %vm2060_vm1, %v2974_v48  ;;  %v2979_v13 = vsel %vm1241_vm6, %v2972_v18, %v2974_v48  ;;  %3401 = vrot.lane.b32.xlu0 %v9321_v57, %s12194_s10  ;;  %vm12203_vm6 = vcmask 359424   ;;  %v12211_v18 = vld [vmem:[#allocation18_spill] sm:$0xff] }
 0xdd2   : >> { %3397 = vrot.lane.b32.xlu1 %v9309_v45, %s12194_s10  ;;  %3940 = vmatprep.subr.bf16.mxu1 %v2979_v13  ;;  %vm12206_vm7 = vmmov %vm12203_vm6 }
 0xdd3   : >> { %v3001_v27 = vpop.permute.xlu0 %3000  ;;  %3941 = vmatpush1.bf16.msra.mxu1 %v2978_v54  ;;  %vm12207_vm8 = vmmov %vm12203_vm6 }
 0xdd4   : >> { %v3003_v2 = vpop.permute.xlu1 %3002  ;;  %vm12210_vm9 = vmmov %vm12203_vm6 }
 0xdd5   : >> { %v3011_v61 = vsel %vm1332_vm5, %v3001_v27, %v3003_v2  ;;  %3403 = vrot.lane.b32.xlu0 %v9323_v1, %s12194_s10  ;;  %v9684_v27 = vld [vmem:[%s11105_s3 + $0x44] ss:$16 sps:$4 sm:$0xff]  }
 0xdd6   : >> { %3405 = vrot.lane.b32.xlu1 %v9333_v50, %s12194_s10 }
 0xdd7   : >> { %v3005_v14 = vpop.permute.xlu0 %3004 }
 0xdd8   : >> { %v3007_v63 = vpop.permute.xlu1 %3006  ;;  %v3012_v39 = vsel %vm1332_vm5, %v3003_v2, %v3005_v14  ;;  %v9678_v2 = vld [vmem:[%s11105_s3 + $0x20] ss:$16 sps:$4 sm:$0xff]  }
 0xdd9   : >> { %v3013_v45 = vsel %vm1332_vm5, %v3005_v14, %v3007_v63  ;;  %3439 = vrot.lane.b32.xlu0 %v9311_v55, %s12195_s12  ;;  %3796 = vmatprep.subr.bf16.mxu0 %v3012_v39 }
 0xdda   : >> { %3441 = vrot.lane.b32.xlu1 %v9321_v57, %s12195_s12  ;;  %3797 = vmatpush1.bf16.msra.mxu0 %v3011_v61 }
 0xddb   : >> { %v3009_v32 = vpop.permute.xlu0 %3008 }
 0xddc   : >> { %v3036_v16 = vpop.permute.xlu1 %3035  ;;  %v3014_v56 = vsel %vm1332_vm5, %v3007_v63, %v3009_v32  ;;  %3024 = vst.msk [vmem:[#allocation3 + $0x1d8] sm:$0xff] %vm2060_vm1, %v3009_v32  ;;  %vm12200_vm5 = vmmov %vm12196_vm0 }
 0xddd   : >> { %3437 = vrot.lane.b32.xlu0 %v3425_v38, %s12195_s12  ;;  %3942 = vmatprep.subr.bf16.mxu1 %v3014_v56  ;;  %v9696_v56 = vld [vmem:[%s11105_s3 + $0x40] ss:$16 sps:$4 sm:$0xff]  }
 0xdde   : >> { %3443 = vrot.lane.b32.xlu1 %v9323_v1, %s12195_s12  ;;  %3943 = vmatpush1.bf16.msra.mxu1 %v3013_v45 }
 0xddf   : >> { %v3038_v57 = vpop.permute.xlu0 %3037 }
 0xde0   : >> { %v3040_v28 = vpop.permute.xlu1 %3039  ;;  %v3046_v24 = vsel %vm1423_vm4, %v3036_v16, %v3038_v57 }
 0xde1   : >> { %v3047_v0 = vsel %vm1423_vm4, %v3038_v57, %v3040_v28  ;;  %3445 = vrot.lane.b32.xlu0 %v9333_v50, %s12195_s12  ;;  %v9702_v57 = vld [vmem:[%s11105_s3 + $0x64] ss:$16 sps:$4 sm:$0xff]  }
 0xde2   : >> { %3479 = vrot.lane.b32.xlu1 %v9311_v55, %s6374_s6  ;;  %3798 = vmatprep.subr.bf16.mxu0 %v3047_v0 }
 0xde3   : >> { %v3042_v53 = vpop.permute.xlu0 %3041  ;;  %3799 = vmatpush1.bf16.msra.mxu0 %v3046_v24 }
 0xde4   : >> { %v3044_v23 = vpop.permute.xlu1 %3043  ;;  %v3048_v1 = vsel %vm1423_vm4, %v3040_v28, %v3042_v53 }
 0xde5   : >> { %3059 = vst.msk [vmem:[#allocation3 + $0x200] sm:$0xff] %vm2060_vm1, %v3044_v23  ;;  %v3049_v3 = vsel %vm1423_vm4, %v3042_v53, %v3044_v23  ;;  %3481 = vrot.lane.b32.xlu0 %v3467_v11, %s6374_s6  ;;  %vm12197_vm4 = vmmov %vm12196_vm0 }
 0xde6   : >> { %3477 = vrot.lane.b32.xlu1 %v3425_v38, %s6374_s6  ;;  %3944 = vmatprep.subr.bf16.mxu1 %v3049_v3 }
 0xde7   : >> { %v3071_v49 = vpop.permute.xlu0 %3070  ;;  %3945 = vmatpush1.bf16.msra.mxu1 %v3048_v1 }
 0xde8   : >> { %v3073_v55 = vpop.permute.xlu1 %3072 }
 0xde9   : >> { %v3081_v50 = vsel %vm1514_vm3, %v3071_v49, %v3073_v55  ;;  %3483 = vrot.lane.b32.xlu0 %v3468_v7, %s6374_s6  ;;  %v9722_v7 = vld [vmem:[%s11105_s3 + $0xc] ss:$16 sps:$4 sm:$0xff]  }
 0xdea   : >> { %3485 = vrot.lane.b32.xlu1 %v9345_v60, %s6374_s6 }
 0xdeb   : >> { %v3075_v41 = vpop.permute.xlu0 %3074 }
 0xdec   : >> { %v3077_v35 = vpop.permute.xlu1 %3076  ;;  %v3082_v9 = vsel %vm1514_vm3, %v3073_v55, %v3075_v41  ;;  %v9715_v55 = vld [vmem:[%s11105_s3 + $0x60] ss:$16 sps:$4 sm:$0xff]  }
 0xded   : >> { %v3083_v21 = vsel %vm1514_vm3, %v3075_v41, %v3077_v35  ;;  %3327 = vrot.lane.b32.xlu0 %v3350_v15, %s6367_s30  ;;  %3800 = vmatprep.subr.bf16.mxu0 %v3082_v9 }
 0xdee   : >> { %3367 = vrot.lane.b32.xlu1 %v3350_v15, %s12193_s9  ;;  %3801 = vmatpush1.bf16.msra.mxu0 %v3081_v50 }
 0xdef   : >> { %v3079_v40 = vpop.permute.xlu0 %3078 }
 0xdf0   : >> { %v3106_v31 = vpop.permute.xlu1 %3105  ;;  %v3084_v6 = vsel %vm1514_vm3, %v3077_v35, %v3079_v40  ;;  %3094 = vst.msk [vmem:[#allocation3 + $0x228] sm:$0xff] %vm2060_vm1, %v3079_v40  ;;  %vm12199_vm3 = vmmov %vm12196_vm0 }
 0xdf1   : >> { %3407 = vrot.lane.b32.xlu0 %v3350_v15, %s12194_s10  ;;  %3946 = vmatprep.subr.bf16.mxu1 %v3084_v6 }
 0xdf2   : >> { %3447 = vrot.lane.b32.xlu1 %v3350_v15, %s12195_s12  ;;  %3947 = vmatpush1.bf16.msra.mxu1 %v3083_v21 }
 0xdf3   : >> { %v3108_v52 = vpop.permute.xlu0 %3107 }
 0xdf4   : >> { %v3110_v60 = vpop.permute.xlu1 %3109  ;;  %v3116_v43 = vsel %vm12196_vm0, %v3106_v31, %v3108_v52  ;;  %vm12218_vm0 = vmmov %vm12216_vm14 }
 0xdf5   : >> { %v3117_v26 = vsel %vm12197_vm4, %v3108_v52, %v3110_v60  ;;  %3487 = vrot.lane.b32.xlu0 %v3350_v15, %s6374_s6  ;;  %vm12219_vm4 = vmmov %vm12218_vm0 }
 0xdf6   : >> { %3802 = vmatprep.subr.bf16.mxu0 %v3117_v26  ;;  %3648 = vperm.xlu1 %5904, %v12198_v62  }
 0xdf7   : >> { %3803 = vmatpush1.bf16.msra.mxu0 %v3116_v43  ;;  %v3112_v8 = vpop.permute.xlu0 %3111 }
 0xdf8   : >> { %v3114_v10 = vpop.permute.xlu1 %3113  ;;  %v3118_v12 = vsel %vm12199_vm3, %v3110_v60, %v3112_v8  ;;  %vm12220_vm3 = vcmask 334848  }
 0xdf9   : >> { %3129 = vst.msk [vmem:[#allocation3 + $0x250] sm:$0xff] %vm2060_vm1, %v3114_v10  ;;  %v3119_v37 = vsel %vm12200_vm5, %v3112_v8, %v3114_v10  ;;  %3653 = vperm.xlu0 %5903, %v12201_v19   ;;  %vm12221_vm5 = vmmov %vm12220_vm3 }
 0xdfa   : >> { %3948 = vmatprep.subr.bf16.mxu1 %v3119_v37  ;;  %3658 = vperm.xlu1 %5904, %v12202_v29  }
 0xdfb   : >> { %3949 = vmatpush1.bf16.msra.mxu1 %v3118_v12  ;;  %v3141_v59 = vpop.permute.xlu0 %3140 }
 0xdfc   : >> { %v3143_v25 = vpop.permute.xlu1 %3142 }
 0xdfd   : >> { %v3151_v17 = vsel %vm12203_vm6, %v3141_v59, %v3143_v25  ;;  %3668 = vperm.xlu0 %5903, %v12204_v20   ;;  %vm12222_vm6 = vmmov %vm12220_vm3 }
 0xdfe   : >> { %3663 = vperm.xlu1 %5904, %v12205_v5  }
 0xdff   : >> { %v3145_v36 = vpop.permute.xlu0 %3144 }
 0xe00   : >> { %v3147_v30 = vpop.permute.xlu1 %3146  ;;  %v3152_v34 = vsel %vm12206_vm7, %v3143_v25, %v3145_v36  ;;  %vm12223_vm7 = vmmov %vm12220_vm3 }
 0xe01   : >> { %v3153_v42 = vsel %vm12207_vm8, %v3145_v36, %v3147_v30  ;;  %3678 = vperm.xlu0 %5903, %v12208_v58   ;;  %3804 = vmatprep.subr.bf16.mxu0 %v3152_v34  ;;  %vm12224_vm8 = vcmask 130048  }
 0xe02   : >> { %3805 = vmatpush1.bf16.msra.mxu0 %v3151_v17  ;;  %3673 = vperm.xlu1 %5904, %v12209_v22  }
 0xe03   : >> { %v3149_v33 = vpop.permute.xlu0 %3148 }
 0xe04   : >> { %v3176_v46 = vpop.permute.xlu1 %3175  ;;  %v3154_v4 = vsel %vm12210_vm9, %v3147_v30, %v3149_v33  ;;  %3164 = vst.msk [vmem:[#allocation3 + $0x278] sm:$0xff] %vm2060_vm1, %v3149_v33  ;;  %vm12225_vm9 = vmmov %vm12224_vm8 }
 0xe05   : >> { %3950 = vmatprep.subr.bf16.mxu1 %v3154_v4  ;;  %3807 = vmatmul.mubr.bf16.vlgmr.msra.gmra.mrb[0].mxu0 %v9659_v44 }
 0xe06   : >> { %3951 = vmatpush1.bf16.msra.mxu1 %v3153_v42  ;;  %3816 = vmatprep.mubr.bf16.mxu0 %v9664_v51 }
 0xe07   : >> { %v3178_v48 = vpop.permute.xlu0 %3177  ;;  %3683 = vperm.xlu1 %5904, %v12211_v18  }
 0xe08   : >> { %v3180_v47 = vpop.permute.xlu1 %3179  ;;  %v3186_v54 = vsel %vm12212_vm10, %v3176_v46, %v3178_v48  ;;  %vm12226_vm10 = vmmov %vm12224_vm8 }
 0xe09   : >> { %v3187_v13 = vsel %vm12213_vm11, %v3178_v48, %v3180_v47  ;;  %3953 = vmatmul.mubr.bf16.vlgmr.msra.gmra.mrb[0].mxu1 %v9659_v44  ;;  %vm12227_vm11 = vmmov %vm12224_vm8 }
 0xe0a   : >> { %3847 = vmatprep.subr.bf16.mxu0 %v3187_v13  ;;  %3962 = vmatprep.mubr.bf16.mxu1 %v9664_v51 }
 0xe0b   : >> { %3848 = vmatpush1.bf16.msra.mxu0 %v3186_v54  ;;  %v3182_v63 = vpop.permute.xlu0 %3181 }
 0xe0c   : >> { %v3184_v61 = vpop.permute.xlu1 %3183  ;;  %v3188_v14 = vsel %vm12214_vm12, %v3180_v47, %v3182_v63  ;;  %vm12228_vm12 = vmmov %vm12224_vm8 }
 0xe0d   : >> { %3199 = vst.msk [vmem:[#allocation3 + $0x2a0] sm:$0xff] %vm2060_vm1, %v3184_v61  ;;  %v3189_v39 = vsel %vm12215_vm13, %v3182_v63, %v3184_v61  ;;  %3817 = vmatmul.mubr.bf16.gmra.mrb[4].mxu0 %v9678_v2  ;;  %vm12229_vm13 = vmmov %vm12224_vm8 }
 0xe0e   : >> { %3993 = vmatprep.subr.bf16.mxu1 %v3189_v39  ;;  %3826 = vmatprep.mubr.bf16.mxu0 %v9684_v27 }
 0xe0f   : >> { %3994 = vmatpush1.bf16.msra.mxu1 %v3188_v14  ;;  %v3213_v16 = vpop.permute.xlu0 %3212 }
 0xe10   : >> { %v3215_v45 = vpop.permute.xlu1 %3214 }
 0xe11   : >> { %v3222_v32 = vsel %vm12216_vm14, %v3213_v16, %v3215_v45  ;;  %3963 = vmatmul.mubr.bf16.gmra.mrb[4].mxu1 %v9678_v2  ;;  %vm12230_vm14 = vcmask 121856  }
 0xe12   : >> { %3849 = vmatprep.subr.bf16.mxu0 %v3222_v32  ;;  %3972 = vmatprep.mubr.bf16.mxu1 %v9684_v27 }
 0xe13   : >> { %v3211_v28 = vpop.permute.xlu0 %3210 }
 0xe14   : >> { %v3217_v38 = vpop.permute.xlu1 %3216  ;;  %v3221_v0 = vsel %vm12218_vm0, %v3211_v28, %v3213_v16  ;;  %vm12232_vm0 = vmmov %vm12230_vm14 }
 0xe15   : >> { %v3223_v24 = vsel %vm12217_vm15, %v3215_v45, %v3217_v38  ;;  %3850 = vmatpush1.bf16.msra.mxu0 %v3221_v0  ;;  %vm12231_vm15 = vmmov %vm12230_vm14 }
 0xe16   : >> { %3827 = vmatmul.mubr.bf16.gmra.mrb[8].mxu0 %v9696_v56 }
 0xe17   : >> { %v3219_v53 = vpop.permute.xlu0 %3218  ;;  %3836 = vmatprep.mubr.bf16.mxu0 %v9702_v57 }
 0xe18   : >> { %v3248_v23 = vpop.permute.xlu1 %3247  ;;  %v3224_v1 = vsel %vm12219_vm4, %v3217_v38, %v3219_v53  ;;  %3234 = vst.msk [vmem:[#allocation3 + $0x2c8] sm:$0xff] %vm2060_vm1, %v3219_v53  ;;  %vm12233_vm4 = vmmov %vm12232_vm0 }
 0xe19   : >> { %3995 = vmatprep.subr.bf16.mxu1 %v3224_v1  ;;  %3973 = vmatmul.mubr.bf16.gmra.mrb[8].mxu1 %v9696_v56 }
 0xe1a   : >> { %3996 = vmatpush1.bf16.msra.mxu1 %v3223_v24  ;;  %3982 = vmatprep.mubr.bf16.mxu1 %v9702_v57 }
 0xe1b   : >> { %v3250_v11 = vpop.permute.xlu0 %3249 }
 0xe1c   : >> { %v3246_v3 = vpop.permute.xlu1 %3245  ;;  %v3257_v50 = vsel %vm12221_vm5, %v3248_v23, %v3250_v11 }
 0xe1d   : >> { %v3256_v49 = vsel %vm12220_vm3, %v3246_v3, %v3248_v23  ;;  %3851 = vmatprep.subr.bf16.mxu0 %v3257_v50  ;;  %vm12234_vm3 = vcmask 113664   ;;  %v3565_v50 = vld [vmem:[#allocation3 + $0x160] sm:$0xff] }
 0xe1e   : >> { %3852 = vmatpush1.bf16.msra.mxu0 %v3256_v49  ;;  %vm12235_vm5 = vmmov %vm12234_vm3  ;;  %v9762_v49 = vld [vmem:[%s11105_s3 + $0x8] ss:$16 sps:$4 sm:$0xff]  }
 0xe1f   : >> { %v3252_v41 = vpop.permute.xlu0 %3251  ;;  %3837 = vmatmul.mubr.bf16.gmra.mrb[12].mxu0 %v9715_v55 }
 0xe20   : >> { %v3254_v35 = vpop.permute.xlu1 %3253  ;;  %v3258_v9 = vsel %vm12222_vm6, %v3250_v11, %v3252_v41  ;;  %5633 = vmatprep.mubr.msk.bf16.mxu0 %vm12224_vm8, %v9722_v7  ;;  %vm12236_vm6 = vmmov %vm12234_vm3  ;;  %vm12238_vm8 = vcmask 97280  }
 0xe21   : >> { %3269 = vst.msk [vmem:[#allocation3 + $0x2f0] sm:$0xff] %vm2060_vm1, %v3254_v35  ;;  %v3259_v21 = vsel %vm12223_vm7, %v3252_v41, %v3254_v35  ;;  %3983 = vmatmul.mubr.bf16.gmra.mrb[12].mxu1 %v9715_v55  ;;  %vm12237_vm7 = vmmov %vm12234_vm3 }
 0xe22   : >> { %3997 = vmatprep.subr.bf16.mxu1 %v3259_v21  ;;  %5637 = vmatprep.mubr.msk.bf16.mxu1 %vm12225_vm9, %v9722_v7  ;;  %vm12239_vm9 = vmmov %vm12238_vm8 }
 0xe23   : >> { %3998 = vmatpush1.bf16.msra.mxu1 %v3258_v9  ;;  %v3283_v31 = vpop.permute.xlu0 %3282 }
 0xe24   : >> { %v3285_v15 = vpop.permute.xlu1 %3284 }
 0xe25   : >> { %v3292_v40 = vsel %vm2060_vm1, %v3283_v31, %v3285_v15 }
 0xe26   : >> { %3853 = vmatprep.subr.bf16.mxu0 %v3292_v40  ;;  %v3570_v40 = vld [vmem:[#allocation3 + $0x188] sm:$0xff] }
 0xe27   : >> { %v3281_v60 = vpop.permute.xlu0 %3280 }
 0xe28   : >> { %v3287_v6 = vpop.permute.xlu1 %3286  ;;  %v3291_v43 = vsel %vm2060_vm1, %v3281_v60, %v3283_v31  ;;  %v3525_v31 = vld [vmem:[#allocation3 + $0x20] sm:$0xff] }
 0xe29   : >> { %v3293_v52 = vsel %vm2060_vm1, %v3285_v15, %v3287_v6  ;;  %3854 = vmatpush1.bf16.msra.mxu0 %v3291_v43  ;;  %v9769_v15 = vld [vmem:[%s11105_s3 + $0x2c] ss:$16 sps:$4 sm:$0xff]  }
 0xe2b   : >> { %v3289_v62 = vpop.permute.xlu0 %3288 }
 0xe2c   : >> { %v3320_v26 = vpop.permute.xlu1 %3319  ;;  %v3294_v10 = vsel %vm2060_vm1, %v3287_v6, %v3289_v62  ;;  %3304 = vst.msk [vmem:[#allocation3 + $0x318] sm:$0xff] %vm2060_vm1, %v3289_v62  ;;  %v3530_v62 = vld [vmem:[#allocation3 + $0x48] sm:$0xff] }
 0xe2d   : >> { %3999 = vmatprep.subr.bf16.mxu1 %v3294_v10  ;;  %v3605_v10 = vld [vmem:[#allocation3 + $0x2a0] sm:$0xff] }
 0xe2e   : >> { %4000 = vmatpush1.bf16.msra.mxu1 %v3293_v52  ;;  %v12242_v52 = vmov 0  }
 0xe2f   : >> { %v3322_v12 = vpop.permute.xlu0 %3321 }
 0xe30   : >> { %v3318_v8 = vpop.permute.xlu1 %3317  ;;  %v3331_v19 = vsel %vm12227_vm11, %v3320_v26, %v3322_v12  ;;  %vm12241_vm11 = vmmov %vm12238_vm8 }
 0xe31   : >> { %v3330_v37 = vsel %vm12226_vm10, %v3318_v8, %v3320_v26  ;;  %3855 = vmatprep.subr.bf16.mxu0 %v3331_v19  ;;  %vm12240_vm10 = vmmov %vm12238_vm8  ;;  %v9784_v8 = vld [vmem:[%s11105_s3 + $0x28] ss:$16 sps:$4 sm:$0xff]  }
 0xe32   : >> { %3856 = vmatpush1.bf16.msra.mxu0 %v3330_v37 }
 0xe33   : >> { %v3324_v25 = vpop.permute.xlu0 %3323 }
 0xe34   : >> { %v9740_v29 = vpop.permute.xlu1 %3325  ;;  %v3332_v59 = vsel %vm12228_vm12, %v3322_v12, %v3324_v25  ;;  %vm12243_vm12 = vmmov %vm12232_vm0  ;;  %v3575_v12 = vld [vmem:[#allocation3 + $0x1b0] sm:$0xff] }
 0xe35   : >> { %v3333_v17 = vsel %vm12229_vm13, %v3324_v25, %v9740_v29 }
 0xe36   : >> { %4001 = vmatprep.subr.bf16.mxu1 %v3333_v17  ;;  %v3535_v17 = vld [vmem:[#allocation3 + $0x70] sm:$0xff] }
 0xe37   : >> { %4002 = vmatpush1.bf16.msra.mxu1 %v3332_v59  ;;  %v3360_v5 = vpop.permute.xlu0 %3359  ;;  %v9794_v59 = vld [vmem:[%s11105_s3 + $0x4c] ss:$16 sps:$4 sm:$0xff]  }
 0xe38   : >> { %v3362_v20 = vpop.permute.xlu1 %3361 }
 0xe39   : >> { %v3371_v30 = vsel %vm12230_vm14, %v3360_v5, %v3362_v20  ;;  %vm12244_vm14 = vmmov %vm12229_vm13 }
 0xe3a   : >> { %3857 = vmatprep.subr.bf16.mxu0 %v3371_v30 }
 0xe3b   : >> { %v3358_v34 = vpop.permute.xlu0 %3357 }
 0xe3c   : >> { %v3364_v36 = vpop.permute.xlu1 %3363  ;;  %v3370_v58 = vsel %vm12232_vm0, %v3358_v34, %v3360_v5  ;;  %vm12246_vm0 = vmmov %vm12229_vm13  ;;  %v3580_v5 = vld [vmem:[#allocation3 + $0x1d8] sm:$0xff] }
 0xe3d   : >> { %v3372_v42 = vsel %vm12231_vm15, %v3362_v20, %v3364_v36  ;;  %3858 = vmatpush1.bf16.msra.mxu0 %v3370_v58  ;;  %vm12245_vm15 = vmmov %vm12234_vm3  ;;  %v3610_v20 = vld [vmem:[#allocation3 + $0x2c8] sm:$0xff]  ;;  %v3540_v34 = vld [vmem:[#allocation3 + $0x98] sm:$0xff] }
 0xe3e   : >> { %v6285_v58 = vld [vmem:[%s11105_s3 + $0x48] ss:$16 sps:$4 sm:$0xff]  }
 0xe3f   : >> { %v3366_v46 = vpop.permute.xlu0 %3365 }
 0xe40   : >> { %v3400_v22 = vpop.permute.xlu1 %3399  ;;  %v3373_v33 = vsel %vm12233_vm4, %v3364_v36, %v3366_v46  ;;  %vm12247_vm4 = vmmov %vm12238_vm8 }
 0xe41   : >> { %4003 = vmatprep.subr.bf16.mxu1 %v3373_v33  ;;  %v3545_v33 = vld [vmem:[#allocation3 + $0xc0] sm:$0xff] }
 0xe42   : >> { %4004 = vmatpush1.bf16.msra.mxu1 %v3372_v42  ;;  %v3615_v42 = vld [vmem:[#allocation3 + $0x2f0] sm:$0xff] }
 0xe43   : >> { %v3402_v47 = vpop.permute.xlu0 %3401 }
 0xe44   : >> { %v3398_v4 = vpop.permute.xlu1 %3397  ;;  %v3411_v18 = vsel %vm12235_vm5, %v3400_v22, %v3402_v47  ;;  %vm12249_vm5 = vmmov %vm12246_vm0 }
 0xe45   : >> { %v3410_v48 = vsel %vm12234_vm3, %v3398_v4, %v3400_v22  ;;  %3859 = vmatprep.subr.bf16.mxu0 %v3411_v18  ;;  %vm12248_vm3 = vmmov %vm12246_vm0  ;;  %v3585_v22 = vld [vmem:[#allocation3 + $0x200] sm:$0xff]  ;;  %v3620_v4 = vld [vmem:[#allocation3 + $0x318] sm:$0xff] }
 0xe46   : >> { %3860 = vmatpush1.bf16.msra.mxu0 %v3410_v48  ;;  %v3550_v48 = vld [vmem:[#allocation3 + $0xe8] sm:$0xff] }
 0xe47   : >> { %v3404_v13 = vpop.permute.xlu0 %3403 }
 0xe48   : >> { %v3406_v54 = vpop.permute.xlu1 %3405  ;;  %v3412_v61 = vsel %vm12236_vm6, %v3402_v47, %v3404_v13  ;;  %v3590_v47 = vld [vmem:[#allocation3 + $0x228] sm:$0xff]  ;;  %vm12250_vm6 = vmmov %vm12246_vm0 }
 0xe49   : >> { %v3413_v63 = vsel %vm12237_vm7, %v3404_v13, %v3406_v54  ;;  %v3595_v13 = vld [vmem:[#allocation3 + $0x250] sm:$0xff]  ;;  %vm12251_vm7 = vmmov %vm12246_vm0 }
 0xe4a   : >> { %4005 = vmatprep.subr.bf16.mxu1 %v3413_v63 }
 0xe4b   : >> { %4006 = vmatpush1.bf16.msra.mxu1 %v3412_v61  ;;  %v3440_v39 = vpop.permute.xlu0 %3439  ;;  %v3555_v61 = vld [vmem:[#allocation3 + $0x110] sm:$0xff] }
 0xe4c   : >> { %v3442_v14 = vpop.permute.xlu1 %3441 }
 0xe4d   : >> { %v3451_v45 = vsel %vm11351_vm2, %v3440_v39, %v3442_v14 }
 0xe4e   : >> { %3861 = vmatprep.subr.bf16.mxu0 %v3451_v45  ;;  %v3560_v45 = vld [vmem:[#allocation3 + $0x138] sm:$0xff] }
 0xe4f   : >> { %v3438_v32 = vpop.permute.xlu0 %3437 }
 0xe50   : >> { %v3444_v16 = vpop.permute.xlu1 %3443  ;;  %v3450_v28 = vsel %vm11351_vm2, %v3438_v32, %v3440_v39  ;;  %v6290_v39 = vld [vmem:[%s11105_s3 + $0x4] ss:$16 sps:$4 sm:$0xff]  }
 0xe51   : >> { %v3452_v38 = vsel %vm11351_vm2, %v3442_v14, %v3444_v16  ;;  %3862 = vmatpush1.bf16.msra.mxu0 %v3450_v28  ;;  %v3600_v14 = vld [vmem:[#allocation3 + $0x278] sm:$0xff] }
 0xe53   : >> { %v3446_v0 = vpop.permute.xlu0 %3445 }
 0xe54   : >> { %v3480_v24 = vpop.permute.xlu1 %3479  ;;  %v3453_v23 = vsel %vm11351_vm2, %v3444_v16, %v3446_v0 }
 0xe55   : >> { %4007 = vmatprep.subr.bf16.mxu1 %v3453_v23 }
 0xe56   : >> { %4008 = vmatpush1.bf16.msra.mxu1 %v3452_v38 }
 0xe57   : >> { %v3482_v1 = vpop.permute.xlu0 %3481 }
 0xe58   : >> { %v3478_v53 = vpop.permute.xlu1 %3477  ;;  %v3491_v11 = vsel %vm12239_vm9, %v3480_v24, %v3482_v1  ;;  %vm12253_vm9 = vmmov %vm12246_vm0 }
 0xe59   : >> { %v3490_v3 = vsel %vm12238_vm8, %v3478_v53, %v3480_v24  ;;  %3863 = vmatprep.subr.bf16.mxu0 %v3491_v11  ;;  %vm12252_vm8 = vmmov %vm12246_vm0 }
 0xe5a   : >> { %3864 = vmatpush1.bf16.msra.mxu0 %v3490_v3 }
 0xe5b   : >> { %v3484_v41 = vpop.permute.xlu0 %3483  ;;  %5664 = vmatprep.subr.bf16.mxu0 %v3565_v50 }
 0xe5c   : >> { %v3486_v35 = vpop.permute.xlu1 %3485  ;;  %v3492_v9 = vsel %vm12240_vm10, %v3482_v1, %v3484_v41  ;;  %vm12254_vm10 = vmmov %vm12246_vm0 }
 0xe5d   : >> { %v3493_v21 = vsel %vm12241_vm11, %v3484_v41, %v3486_v35  ;;  %3880 = vmatmul.mubr.bf16.vlgmr.msra.gmra.mrb[0].mxu0 %v9762_v49  ;;  %vm12255_vm11 = vmmov %vm12246_vm0 }
 0xe5e   : >> { %4009 = vmatprep.subr.bf16.mxu1 %v3493_v21  ;;  %5665 = vmatpush3.bf16.msra.mxu0 %v3525_v31 }
 0xe5f   : >> { %4010 = vmatpush1.bf16.msra.mxu1 %v3492_v9  ;;  %v3328_v60 = vpop.permute.xlu0 %3327  ;;  %5666 = vmatprep.subr.bf16.mxu0 %v3570_v40 }
 0xe60   : >> { %v3368_v6 = vpop.permute.xlu1 %3367  ;;  %4131 = vmatprep.subr.bf16.mxu1 %v12242_v52  ;;  %v3334_v26 = vsel %vm12229_vm13, %v9740_v29, %v3328_v60  ;;  %5634 = vmatprep.mubr.msk.bf16.mxu0 %vm12244_vm14, %v9769_v15  ;;  %vm12257_vm13 = vmmov %vm12246_vm0 }
 0xe61   : >> { %v3374_v43 = vsel %vm12243_vm12, %v3366_v46, %v3368_v6  ;;  %3344 = vst.msk [vmem:[#allocation3 + $0x340] sm:$0xff] %vm2060_vm1, %v3334_v26  ;;  %v6286_v46 = vld [vmem:[%s11105_s3 + $0x6c] ss:$16 sps:$4 sm:$0xff]   ;;  %vm4460_vm12 = vcmask 39936   ;;  %vm12258_vm14 = vmmov %vm12246_vm0 }
 0xe62   : >> { %3384 = vst.msk [vmem:[#allocation3 + $0x368] sm:$0xff] %vm2060_vm1, %v3374_v43  ;;  %4026 = vmatmul.mubr.bf16.vlgmr.msra.gmra.mrb[0].mxu1 %v9762_v49  ;;  %5667 = vmatpush3.bf16.msra.mxu0 %v3530_v62 }
 0xe63   : >> { %4132 = vmatpush1.bf16.msra.mxu1 %v3605_v10  ;;  %v3408_v19 = vpop.permute.xlu0 %3407  ;;  %5668 = vmatprep.subr.bf16.mxu0 %v3575_v12 }
 0xe64   : >> { %v3448_v37 = vpop.permute.xlu1 %3447  ;;  %4133 = vmatprep.subr.bf16.mxu1 %v12242_v52  ;;  %v3414_v25 = vsel %vm12245_vm15, %v3406_v54, %v3408_v19  ;;  %5638 = vmatprep.mubr.msk.bf16.mxu1 %vm12246_vm0, %v9769_v15  ;;  %v6288_v54 = vld [vmem:[%s11105_s3 + $0x68] ss:$16 sps:$4 sm:$0xff]   ;;  %vm12259_vm15 = vmmov %vm12246_vm0 }
 0xe65   : >> { %v3454_v29 = vsel %vm11351_vm2, %v3446_v0, %v3448_v37  ;;  %3424 = vst.msk [vmem:[#allocation3 + $0x390] sm:$0xff] %vm2060_vm1, %v3414_v25  ;;  %3890 = vmatmul.mubr.bf16.gmra.mrb[4].mxu0 %v9784_v8 }
 0xe66   : >> { %3464 = vst.msk [vmem:[#allocation3 + $0x3b8] sm:$0xff] %vm2060_vm1, %v3454_v29  ;;  %5669 = vmatpush3.bf16.msra.mxu0 %v3535_v17  ;;  %5635 = vmatprep.mubr.msk.bf16.mxu0 %vm12248_vm3, %v9794_v59  ;;  %vm12261_vm3 = vmmov %vm12246_vm0 }
 0xe67   : >> { %4134 = vmatpush1.bf16.msra.mxu1 %v3610_v20  ;;  %v3488_v30 = vpop.permute.xlu0 %3487  ;;  %5670 = vmatprep.subr.bf16.mxu0 %v3580_v5 }
 0xe68   : >> { %4135 = vmatprep.subr.bf16.mxu1 %v12242_v52  ;;  %v3494_v36 = vsel %vm12247_vm4, %v3486_v35, %v3488_v30  ;;  %v3625_v18 = vld [vmem:[#allocation3 + $0x340] sm:$0xff]  ;;  %vm12260_vm4 = vmmov %vm12246_vm0 }
 0xe69   : >> { %3504 = vst.msk [vmem:[#allocation3 + $0x3e0] sm:$0xff] %vm2060_vm1, %v3494_v36  ;;  %v3630_v63 = vld [vmem:[#allocation3 + $0x368] sm:$0xff] }
 0xe6a   : >> { %4036 = vmatmul.mubr.bf16.gmra.mrb[4].mxu1 %v9784_v8  ;;  %5671 = vmatpush3.bf16.msra.mxu0 %v3540_v34 }
 0xe6b   : >> { %4136 = vmatpush1.bf16.msra.mxu1 %v3615_v42  ;;  %5672 = vmatprep.subr.bf16.mxu0 %v3585_v22 }
 0xe6c   : >> { %4137 = vmatprep.subr.bf16.mxu1 %v12242_v52  ;;  %5639 = vmatprep.mubr.msk.bf16.mxu1 %vm12249_vm5, %v9794_v59  ;;  %v3635_v16 = vld [vmem:[#allocation3 + $0x390] sm:$0xff]  ;;  %vm12262_vm5 = vmmov %vm12246_vm0 }
 0xe6d   : >> { %3900 = vmatmul.mubr.bf16.gmra.mrb[8].mxu0 %v6285_v58  ;;  %v3640_v32 = vld [vmem:[#allocation3 + $0x3b8] sm:$0xff] }
 0xe6e   : >> { %5673 = vmatpush3.bf16.msra.mxu0 %v3545_v33  ;;  %5636 = vmatprep.mubr.msk.bf16.mxu0 %vm12250_vm6, %v6286_v46  ;;  %vm4485_vm6 = vcmask 80936  }
 0xe6f   : >> { %4138 = vmatpush1.bf16.msra.mxu1 %v3620_v4  ;;  %5674 = vmatprep.subr.bf16.mxu0 %v3590_v47 }
 0xe70   : >> { %4139 = vmatprep.subr.bf16.mxu1 %v12242_v52  ;;  %v3645_v38 = vld [vmem:[#allocation3 + $0x3e0] sm:$0xff] }
 0xe72   : >> { %4046 = vmatmul.mubr.bf16.gmra.mrb[8].mxu1 %v6285_v58  ;;  %5675 = vmatpush3.bf16.msra.mxu0 %v3550_v48 }
 0xe73   : >> { %4140 = vmatpush1.bf16.msra.mxu1 %v3625_v18  ;;  %5676 = vmatprep.subr.bf16.mxu0 %v3595_v13 }
 0xe74   : >> { %4141 = vmatprep.subr.bf16.mxu1 %v12242_v52  ;;  %5640 = vmatprep.mubr.msk.bf16.mxu1 %vm12251_vm7, %v6286_v46  ;;  %vm4510_vm7 = vcmask 121936  }
 0xe75   : >> { %3910 = vmatmul.mubr.bf16.gmra.mrb[12].mxu0 %v6288_v54 }
 0xe76   : >> { %5677 = vmatpush3.bf16.msra.mxu0 %v3555_v61  ;;  %4098 = vmatprep.mubr.bf16.mxu0 %v6290_v39 }
 0xe77   : >> { %4142 = vmatpush1.bf16.msra.mxu1 %v3630_v63  ;;  %5678 = vmatprep.subr.bf16.mxu0 %v3600_v14 }
 0xe78   : >> { %4143 = vmatprep.subr.bf16.mxu1 %v12242_v52 }
 0xe7a   : >> { %4056 = vmatmul.mubr.bf16.gmra.mrb[12].mxu1 %v6288_v54  ;;  %5679 = vmatpush3.bf16.msra.mxu0 %v3560_v45 }
 0xe7b   : >> { %4144 = vmatpush1.bf16.msra.mxu1 %v3635_v16  ;;  %5641 = vmatprep.mubr.msk.bf16.mxu1 %vm12252_vm8, %v9722_v7  ;;  %vm4535_vm8 = vcmask 162936  }
 0xe7c   : >> { %4145 = vmatprep.subr.bf16.mxu1 %v12242_v52 }
 0xe7d   : >> { %4099 = vmatmul.mubr.bf16.vlgmr.msra.gmra.mrb[16].mxu0 %v9659_v44  ;;  %v9843_v44 = vpop.permute.xlu1 %3648 }
 0xe7e   : >> { %4106 = vmatprep.mubr.bf16.mxu0 %v9664_v51 }
 0xe7f   : >> { %4146 = vmatpush1.bf16.msra.mxu1 %v3640_v32 }
 0xe80   : >> { %4147 = vmatprep.subr.bf16.mxu1 %v12242_v52 }
 0xe81   : >> { %v9852_v0 = vpop.permute.xlu1 %3658 }
 0xe83   : >> { %4148 = vmatpush1.bf16.msra.mxu1 %v3645_v38 }
 0xe85   : >> { %4107 = vmatmul.mubr.bf16.gmra.mrb[20].mxu0 %v9678_v2  ;;  %v9882_v62 = vpop.permute.xlu1 %3663 }
 0xe86   : >> { %4164 = vmatmul.mubr.bf16.vlgmr.msra.gmra.mrb[16].mxu1 %v9762_v49  ;;  %4114 = vmatprep.mubr.bf16.mxu0 %v9684_v27 }
 0xe87   : >> { %5642 = vmatprep.mubr.msk.bf16.mxu1 %vm12253_vm9, %v9769_v15  ;;  %vm4712_vm9 = vcmask 138336  }
 0xe89   : >> { %v9927_v63 = vpop.permute.xlu1 %3673 }
 0xe8d   : >> { %4115 = vmatmul.mubr.bf16.gmra.mrb[24].mxu0 %v9696_v56  ;;  %v9846_v56 = vpop.permute.xlu0 %3653 }
 0xe8e   : >> { %4172 = vmatmul.mubr.bf16.gmra.mrb[20].mxu1 %v9784_v8  ;;  %4122 = vmatprep.mubr.bf16.mxu0 %v9702_v57 }
 0xe8f   : >> { %5643 = vmatprep.mubr.msk.bf16.mxu1 %vm12254_vm10, %v9794_v59  ;;  %vm4737_vm10 = vcmask 179336  }
 0xe91   : >> { %v9914_v4 = vpop.permute.xlu0 %3668 }
 0xe95   : >> { %4123 = vmatmul.mubr.bf16.gmra.mrb[28].mxu0 %v9715_v55 }
 0xe96   : >> { %4180 = vmatmul.mubr.bf16.gmra.mrb[24].mxu1 %v6285_v58 }
 0xe97   : >> { %5644 = vmatprep.mubr.msk.bf16.mxu1 %vm12255_vm11, %v6286_v46  ;;  %vm12293_vm11 = vmmov %vm12246_vm0 }
 0xe9e   : >> { %4188 = vmatmul.mubr.bf16.gmra.mrb[28].mxu1 %v6288_v54 }
 0xf30   : >> { %v3881_v51 = vpop.f32.mrb[0].mxu0 }
 0xf31   : >> { %v5721_v2 = vadd.f32 %v3881_v51, %v9843_v44  ;;  %v3883_v27 = vpop.f32.mrb[1].mxu0 }
 0xf32   : >> { %v5722_v7 = vadd.f32 %v3883_v27, %v9843_v44  ;;  %v3885_v57 = vpop.f32.mrb[2].mxu0 }
 0xf33   : >> { %v9849_v28 = vmax.f32 %v5721_v2, 0.0  ;;  %v5723_v24 = vadd.f32 %v3885_v57, %v9846_v56  ;;  %v3887_v55 = vpop.f32.mrb[3].mxu0 }
 0xf34   : >> { %v9854_v23 = vmax.f32 %v5722_v7, 0.0  ;;  %v5724_v53 = vadd.f32 %v3887_v55, %v9846_v56 }
 0xf35   : >> { %v4027_v1 = vpop.f32.mrb[0].mxu1  ;;  %v9857_v3 = vmax.f32 %v5723_v24, 0.0 }
 0xf36   : >> { %v9860_v11 = vadd.f32 %v4027_v1, %v9843_v44  ;;  %v4029_v49 = vpop.f32.mrb[1].mxu1  ;;  %v9862_v50 = vmax.f32 %v5724_v53, 0.0 }
 0xf37   : >> { %v5738_v35 = vadd.f32 %v4029_v49, %v9843_v44  ;;  %v4031_v41 = vpop.f32.mrb[2].mxu1  ;;  %v9871_v31 = vpack.i.bf16 %v9857_v3, %v9849_v28 }
 0xf38   : >> { %v4198_v9 = vmax.f32 %v9860_v11, 0.0  ;;  %v9867_v21 = vadd.f32 %v4031_v41, %v9846_v56  ;;  %v4033_v15 = vpop.f32.mrb[3].mxu1  ;;  %v3891_v60 = vpop.f32.mrb[4].mxu0 }
 0xf39   : >> { %v9873_v40 = vmax.f32 %v5738_v35, 0.0  ;;  %v5740_v6 = vadd.f32 %v4033_v15, %v9846_v56  ;;  %v5725_v43 = vadd.f32 %v3891_v60, %v9852_v0  ;;  %v3893_v26 = vpop.f32.mrb[5].mxu0  ;;  %5906 = vrot.lane.b32.xlu0 %v9871_v31, %s6337_s11 }
 0xf3a   : >> { %4238 = vst [vmem:[#allocation4 + $0x10] sm:$0xff] %v4198_v9  ;;  %v11342_v52 = vmax.f32 %v9867_v21, 0.0  ;;  %v5726_v8 = vadd.f32 %v3893_v26, %v9852_v0  ;;  %v3895_v12 = vpop.f32.mrb[6].mxu0 }
 0xf3b   : >> { %4239 = vst [vmem:[#allocation4 + $0x18] sm:$0xff] %v9873_v40  ;;  %v9885_v10 = vmax.f32 %v5740_v6, 0.0  ;;  %v9890_v37 = vmax.f32 %v5725_v43, 0.0  ;;  %v5727_v19 = vadd.f32 %v3895_v12, %v9882_v62  ;;  %v3897_v29 = vpop.f32.mrb[7].mxu0  ;;  %v9959_v6 = vpop.permute.xlu0 %3678 }
 0xf3c   : >> { %4243 = vst [vmem:[#allocation4 + $0x38] sm:$0xff] %v11342_v52  ;;  %v9894_v25 = vmax.f32 %v5726_v8, 0.0  ;;  %v5728_v59 = vadd.f32 %v3897_v29, %v9882_v62  ;;  %v9968_v29 = vpop.permute.xlu1 %3683 }
 0xf3d   : >> { %4244 = vst [vmem:[#allocation4 + $0x40] sm:$0xff] %v9885_v10  ;;  %v4037_v17 = vpop.f32.mrb[4].mxu1  ;;  %v9897_v20 = vmax.f32 %v5727_v19, 0.0  ;;  %v6115_v11 = vpack.i.bf16 %v9885_v10, %v9873_v40 }
 0xf3e   : >> { %v9900_v5 = vadd.f32 %v4037_v17, %v9852_v0  ;;  %v4039_v30 = vpop.f32.mrb[5].mxu1  ;;  %4247 = vst [vmem:[#allocation4 + $0x58] sm:$0xff] %v9894_v25  ;;  %v9903_v36 = vmax.f32 %v5728_v59, 0.0 }
 0xf3f   : >> { %v5742_v34 = vadd.f32 %v4039_v30, %v9852_v0  ;;  %v4041_v42 = vpop.f32.mrb[6].mxu1  ;;  %v9912_v33 = vpack.i.bf16 %v9897_v20, %v9890_v37 }
 0xf40   : >> { %v4208_v58 = vmax.f32 %v9900_v5, 0.0  ;;  %v9908_v22 = vadd.f32 %v4041_v42, %v9882_v62  ;;  %v4043_v46 = vpop.f32.mrb[7].mxu1  ;;  %v3901_v18 = vpop.f32.mrb[8].mxu0 }
 0xf41   : >> { %v9916_v47 = vmax.f32 %v5742_v34, 0.0  ;;  %v9919_v48 = vadd.f32 %v4043_v46, %v9882_v62  ;;  %v5729_v13 = vadd.f32 %v3901_v18, %v9914_v4  ;;  %v3903_v61 = vpop.f32.mrb[9].mxu0  ;;  %5911 = vrot.lane.b32.xlu1 %v9912_v33, %s6337_s11 }
 0xf42   : >> { %4248 = vst [vmem:[#allocation4 + $0x60] sm:$0xff] %v4208_v58  ;;  %v4213_v54 = vmax.f32 %v9908_v22, 0.0  ;;  %v5730_v39 = vadd.f32 %v3903_v61, %v9914_v4  ;;  %v3905_v45 = vpop.f32.mrb[10].mxu0 }
 0xf43   : >> { %4249 = vst [vmem:[#allocation4 + $0x68] sm:$0xff] %v9916_v47  ;;  %v11337_v14 = vmax.f32 %v9919_v48, 0.0  ;;  %v9934_v16 = vmax.f32 %v5729_v13, 0.0  ;;  %v5731_v32 = vadd.f32 %v3905_v45, %v9927_v63  ;;  %v3907_v38 = vpop.f32.mrb[11].mxu0 }
 0xf44   : >> { %4253 = vst [vmem:[#allocation4 + $0x88] sm:$0xff] %v4213_v54  ;;  %v9939_v51 = vmax.f32 %v5730_v39, 0.0  ;;  %v5732_v2 = vadd.f32 %v3907_v38, %v9927_v63 }
 0xf45   : >> { %4254 = vst [vmem:[#allocation4 + $0x90] sm:$0xff] %v11337_v14  ;;  %v4047_v27 = vpop.f32.mrb[8].mxu1  ;;  %v9942_v7 = vmax.f32 %v5731_v32, 0.0 }
 0xf46   : >> { %v9945_v57 = vadd.f32 %v4047_v27, %v9914_v4  ;;  %v4049_v24 = vpop.f32.mrb[9].mxu1  ;;  %4257 = vst [vmem:[#allocation4 + $0xa8] sm:$0xff] %v9939_v51  ;;  %v9948_v55 = vmax.f32 %v5732_v2, 0.0 }
 0xf47   : >> { %v9951_v53 = vadd.f32 %v4049_v24, %v9914_v4  ;;  %v4051_v1 = vpop.f32.mrb[10].mxu1  ;;  %v5915_v15 = vpack.i.bf16 %v9942_v7, %v9934_v16 }
 0xf48   : >> { %v11339_v49 = vmax.f32 %v9945_v57, 0.0  ;;  %v9955_v35 = vadd.f32 %v4051_v1, %v9927_v63  ;;  %v4053_v41 = vpop.f32.mrb[11].mxu1  ;;  %v3911_v26 = vpop.f32.mrb[12].mxu0  ;;  %v12266_v5 = vmax.f32 %v9945_v57, 0.0 }
 0xf49   : >> { %v11336_v60 = vmax.f32 %v9951_v53, 0.0  ;;  %v5748_v43 = vadd.f32 %v4053_v41, %v9927_v63  ;;  %v5733_v12 = vadd.f32 %v3911_v26, %v9959_v6  ;;  %v3913_v19 = vpop.f32.mrb[13].mxu0  ;;  %5916 = vrot.lane.b32.xlu0 %v5915_v15, %s6337_s11 }
 0xf4a   : >> { %4258 = vst [vmem:[#allocation4 + $0xb0] sm:$0xff] %v11339_v49  ;;  %v11338_v8 = vmax.f32 %v9955_v35, 0.0  ;;  %v5734_v17 = vadd.f32 %v3913_v19, %v9959_v6  ;;  %v3915_v30 = vpop.f32.mrb[14].mxu0  ;;  %v12267_v22 = vmax.f32 %v9955_v35, 0.0 }
 0xf4b   : >> { %4259 = vst [vmem:[#allocation4 + $0xb8] sm:$0xff] %v11336_v60  ;;  %v9972_v59 = vmax.f32 %v5748_v43, 0.0  ;;  %v9977_v34 = vmax.f32 %v5733_v12, 0.0  ;;  %v5735_v42 = vadd.f32 %v3915_v30, %v9968_v29  ;;  %v3917_v46 = vpop.f32.mrb[15].mxu0 }
 0xf4c   : >> { %4263 = vst [vmem:[#allocation4 + $0xd8] sm:$0xff] %v11338_v8  ;;  %v9981_v18 = vmax.f32 %v5734_v17, 0.0  ;;  %v5736_v13 = vadd.f32 %v3917_v46, %v9968_v29 }
 0xf4d   : >> { %4264 = vst [vmem:[#allocation4 + $0xe0] sm:$0xff] %v9972_v59  ;;  %v4057_v61 = vpop.f32.mrb[12].mxu1  ;;  %v9984_v39 = vmax.f32 %v5735_v42, 0.0  ;;  %5926 = vrot.lane.b32.xlu0 %v9871_v31, %s6347_s16 }
 0xf4e   : >> { %v9987_v45 = vadd.f32 %v4057_v61, %v9959_v6  ;;  %v4059_v32 = vpop.f32.mrb[13].mxu1  ;;  %4267 = vst [vmem:[#allocation4 + $0xf8] sm:$0xff] %v9981_v18  ;;  %v9992_v38 = vmax.f32 %v5736_v13, 0.0 }
 0xf4f   : >> { %v5750_v2 = vadd.f32 %v4059_v32, %v9959_v6  ;;  %v4061_v27 = vpop.f32.mrb[14].mxu1  ;;  %v5920_v43 = vpack.i.bf16 %v9984_v39, %v9977_v34 }
 0xf50   : >> { %v11341_v24 = vmax.f32 %v9987_v45, 0.0  ;;  %v9997_v1 = vadd.f32 %v4061_v27, %v9968_v29  ;;  %v4063_v41 = vpop.f32.mrb[15].mxu1  ;;  %v5680_v19 = vpop.f32.mrb[16].mxu0 }
 0xf51   : >> { %v10001_v26 = vmax.f32 %v5750_v2, 0.0  ;;  %v5752_v12 = vadd.f32 %v4063_v41, %v9968_v29  ;;  %v5681_v30 = vpop.f32.mrb[17].mxu0  ;;  %5921 = vrot.lane.b32.xlu1 %v5920_v43, %s6337_s11  ;;  %5936 = vrot.lane.b32.xlu0 %v5915_v15, %s6347_s16 }
 0xf52   : >> { %4268 = vst [vmem:[#allocation4 + $0x100] sm:$0xff] %v11341_v24  ;;  %v11340_v17 = vmax.f32 %v9997_v1, 0.0  ;;  %v5682_v46 = vadd.f32 %v5681_v30, %v5680_v19  ;;  %v5683_v13 = vpop.f32.mrb[18].mxu0 }
 0xf53   : >> { %4269 = vst [vmem:[#allocation4 + $0x108] sm:$0xff] %v10001_v26  ;;  %v10010_v42 = vmax.f32 %v5752_v12, 0.0  ;;  %v5684_v61 = vpop.f32.mrb[19].mxu0 }
 0xf54   : >> { %4273 = vst [vmem:[#allocation4 + $0x128] sm:$0xff] %v11340_v17  ;;  %v5685_v32 = vadd.f32 %v5684_v61, %v5683_v13  ;;  %v4101_v2 = vadd.f32 %v5682_v46, %v9843_v44  ;;  %v5965_v44 = vpack.i.bf16 %v9854_v23, %v9849_v28 }
 0xf55   : >> { %4274 = vst [vmem:[#allocation4 + $0x130] sm:$0xff] %v10010_v42  ;;  %5931 = vrot.lane.b32.xlu1 %v9912_v33, %s6347_s16  ;;  %5946 = vrot.lane.b32.xlu0 %v9871_v31, %s6357_s23 }
 0xf56   : >> { %v4104_v60 = vadd.f32 %v5685_v32, %v9846_v56 }
 0xf58   : >> { %v5686_v27 = vpop.f32.mrb[20].mxu0 }
 0xf59   : >> { %v4165_v41 = vpop.f32.mrb[16].mxu1  ;;  %v5687_v19 = vpop.f32.mrb[21].mxu0  ;;  %5941 = vrot.lane.b32.xlu1 %v5920_v43, %s6347_s16  ;;  %5956 = vrot.lane.b32.xlu0 %v5915_v15, %s6357_s23 }
 0xf5a   : >> { %v4166_v12 = vadd.f32 %v4165_v41, %v4101_v2  ;;  %v4167_v30 = vpop.f32.mrb[17].mxu1  ;;  %v5688_v13 = vadd.f32 %v5687_v19, %v5686_v27  ;;  %v5689_v61 = vpop.f32.mrb[22].mxu0 }
 0xf5b   : >> { %v4168_v14 = vpop.f32.mrb[18].mxu1  ;;  %v5690_v17 = vpop.f32.mrb[23].mxu0 }
 0xf5c   : >> { %v4200_v8 = vmax.f32 %v4166_v12, 0.0  ;;  %v4169_v49 = vadd.f32 %v4168_v14, %v4104_v60  ;;  %v4170_v31 = vpop.f32.mrb[19].mxu1  ;;  %v5691_v46 = vadd.f32 %v5690_v17, %v5689_v61  ;;  %v4109_v56 = vadd.f32 %v5688_v13, %v9852_v0 }
 0xf5d   : >> { %5951 = vrot.lane.b32.xlu1 %v9912_v33, %s6357_s23  ;;  %5966 = vrot.lane.b32.xlu0 %v5965_v44, %s6367_s30  ;;  %v5975_v14 = vpack.i.bf16 %v9894_v25, %v9890_v37  ;;  %v5970_v13 = vpack.i.bf16 %v9862_v50, %v9857_v3  ;;  %v5985_v61 = vpack.i.bf16 %v9939_v51, %v9934_v16 }
 0xf5e   : >> { %4240 = vst.msk [vmem:[#allocation4 + $0x20] sm:$0xff] %vm2060_vm1, %v4200_v8  ;;  %v4205_v2 = vmax.f32 %v4169_v49, 0.0  ;;  %v4112_v8 = vadd.f32 %v5691_v46, %v9882_v62  ;;  %v5980_v44 = vpack.i.bf16 %v9903_v36, %v9897_v20  ;;  %v5995_v46 = vpack.i.bf16 %v9981_v18, %v9977_v34 }
 0xf60   : >> { %4245 = vst.msk [vmem:[#allocation4 + $0x48] sm:$0xff] %vm2060_vm1, %v4205_v2  ;;  %v5692_v15 = vpop.f32.mrb[24].mxu0 }
 0xf61   : >> { %v4173_v60 = vpop.f32.mrb[20].mxu1  ;;  %v5693_v27 = vpop.f32.mrb[25].mxu0  ;;  %5961 = vrot.lane.b32.xlu1 %v5920_v43, %s6357_s23  ;;  %5976 = vrot.lane.b32.xlu0 %v5975_v14, %s6367_s30 }
 0xf62   : >> { %v4174_v32 = vadd.f32 %v4173_v60, %v4109_v56  ;;  %v4175_v17 = vpop.f32.mrb[21].mxu1  ;;  %v5694_v33 = vadd.f32 %v5693_v27, %v5692_v15  ;;  %v5695_v49 = vpop.f32.mrb[26].mxu0 }
 0xf63   : >> { %v4176_v41 = vpop.f32.mrb[22].mxu1  ;;  %v5696_v0 = vpop.f32.mrb[27].mxu0 }
 0xf64   : >> { %v4210_v12 = vmax.f32 %v4174_v32, 0.0  ;;  %v4177_v19 = vadd.f32 %v4176_v41, %v4112_v8  ;;  %v4178_v30 = vpop.f32.mrb[23].mxu1  ;;  %v5697_v31 = vadd.f32 %v5696_v0, %v5695_v49  ;;  %v4117_v43 = vadd.f32 %v5694_v33, %v9914_v4 }
 0xf65   : >> { %5971 = vrot.lane.b32.xlu1 %v5970_v13, %s6367_s30  ;;  %5986 = vrot.lane.b32.xlu0 %v5985_v61, %s6367_s30  ;;  %v6000_v30 = vpack.i.bf16 %v9992_v38, %v9984_v39 }
 0xf66   : >> { %4250 = vst.msk [vmem:[#allocation4 + $0x70] sm:$0xff] %vm2060_vm1, %v4210_v12  ;;  %v4215_v62 = vmax.f32 %v4177_v19, 0.0  ;;  %v4120_v32 = vadd.f32 %v5697_v31, %v9927_v63  ;;  %v5990_v12 = vpack.i.bf16 %v9948_v55, %v9942_v7 }
 0xf68   : >> { %4255 = vst.msk [vmem:[#allocation4 + $0x98] sm:$0xff] %vm2060_vm1, %v4215_v62  ;;  %v5698_v2 = vpop.f32.mrb[28].mxu0 }
 0xf69   : >> { %v4181_v56 = vpop.f32.mrb[24].mxu1  ;;  %v5699_v15 = vpop.f32.mrb[29].mxu0  ;;  %5981 = vrot.lane.b32.xlu1 %v5980_v44, %s6367_s30  ;;  %5996 = vrot.lane.b32.xlu0 %v5995_v46, %s6367_s30 }
 0xf6a   : >> { %v4182_v14 = vadd.f32 %v4181_v56, %v4117_v43  ;;  %v4183_v60 = vpop.f32.mrb[25].mxu1  ;;  %v5700_v27 = vadd.f32 %v5699_v15, %v5698_v2  ;;  %v5701_v17 = vpop.f32.mrb[30].mxu0 }
 0xf6b   : >> { %v4184_v4 = vpop.f32.mrb[26].mxu1  ;;  %v5702_v49 = vpop.f32.mrb[31].mxu0 }
 0xf6c   : >> { %v4220_v8 = vmax.f32 %v4182_v14, 0.0  ;;  %v4185_v33 = vadd.f32 %v4184_v4, %v4120_v32  ;;  %v4186_v41 = vpop.f32.mrb[27].mxu1  ;;  %v5703_v19 = vadd.f32 %v5702_v49, %v5701_v17  ;;  %v4125_v63 = vadd.f32 %v5700_v27, %v9959_v6 }
 0xf6d   : >> { %5991 = vrot.lane.b32.xlu1 %v5990_v12, %s6367_s30 }
 0xf6e   : >> { %4260 = vst.msk [vmem:[#allocation4 + $0xc0] sm:$0xff] %vm2060_vm1, %v4220_v8  ;;  %v4225_v0 = vmax.f32 %v4185_v33, 0.0  ;;  %v4128_v62 = vadd.f32 %v5703_v19, %v9968_v29 }
 0xf70   : >> { %4265 = vst.msk [vmem:[#allocation4 + $0xe8] sm:$0xff] %vm2060_vm1, %v4225_v0 }
 0xf71   : >> { %v4189_v13 = vpop.f32.mrb[28].mxu1  ;;  %6001 = vrot.lane.b32.xlu1 %v6000_v30, %s6367_s30 }
 0xf72   : >> { %v4190_v61 = vadd.f32 %v4189_v13, %v4125_v63  ;;  %v4191_v31 = vpop.f32.mrb[29].mxu1 }
 0xf73   : >> { %v4192_v43 = vpop.f32.mrb[30].mxu1 }
 0xf74   : >> { %v4230_v44 = vmax.f32 %v4190_v61, 0.0  ;;  %v4193_v46 = vadd.f32 %v4192_v43, %v4128_v62  ;;  %v4194_v2 = vpop.f32.mrb[31].mxu1 }
 0xf76   : >> { %4270 = vst.msk [vmem:[#allocation4 + $0x110] sm:$0xff] %vm2060_vm1, %v4230_v44  ;;  %v4235_v56 = vmax.f32 %v4193_v46, 0.0 }
 0xf78   : >> { %4275 = vst.msk [vmem:[#allocation4 + $0x138] sm:$0xff] %vm2060_vm1, %v4235_v56  ;;  %vm12256_vm1 = vmmov %vm12246_vm0 }
 0xfab   : >> { %v5907_v6 = vpop.permute.xlu0 %5906 }
 0xfac   : >> { %v5908_v4 = vunpack.i.l.bf16 %v5907_v6  ;;  %v5909_v0 = vunpack.i.h.bf16 %v5907_v6 }
 0xfae   : >> { %v4316_v41 = vmax.f32 %v9849_v28, %v5908_v4  ;;  %v4317_v6 = vmax.f32 %v9857_v3, %v5909_v0 }
 0xfb3   : >> { %v5912_v15 = vpop.permute.xlu1 %5911 }
 0xfb4   : >> { %v5913_v12 = vunpack.i.l.bf16 %v5912_v15  ;;  %v5914_v63 = vunpack.i.h.bf16 %v5912_v15 }
 0xfb6   : >> { %v4318_v2 = vmax.f32 %v9890_v37, %v5913_v12 }
 0xfbb   : >> { %v5917_v14 = vpop.permute.xlu0 %5916 }
 0xfbc   : >> { %v5919_v62 = vunpack.i.h.bf16 %v5917_v14  ;;  %v5918_v43 = vunpack.i.l.bf16 %v5917_v14 }
 0xfbe   : >> { %v4320_v3 = vmax.f32 %v9934_v16, %v5918_v43 }
 0xfbf   : >> { %v5927_v60 = vpop.permute.xlu0 %5926 }
 0xfc0   : >> { %v5928_v8 = vunpack.i.l.bf16 %v5927_v60  ;;  %v5929_v56 = vunpack.i.h.bf16 %v5927_v60  ;;  %v4321_v60 = vmax.f32 %v9942_v7, %v5919_v62 }
 0xfc2   : >> { %v4348_v30 = vmax.f32 %v4316_v41, %v5928_v8  ;;  %v4319_v8 = vmax.f32 %v9897_v20, %v5914_v63  ;;  %v4349_v0 = vmax.f32 %v4317_v6, %v5929_v56 }
 0xfc3   : >> { %v10064_v32 = vpop.permute.xlu1 %5921  ;;  %v10066_v27 = vpop.permute.xlu0 %5936 }
 0xfc4   : >> { %v5938_v14 = vunpack.i.l.bf16 %v10066_v27  ;;  %v5939_v16 = vunpack.i.h.bf16 %v10066_v27 }
 0xfc6   : >> { %v4352_v62 = vmax.f32 %v4320_v3, %v5938_v14 }
 0xfc7   : >> { %v5932_v29 = vpop.permute.xlu1 %5931  ;;  %v5947_v17 = vpop.permute.xlu0 %5946 }
 0xfc8   : >> { %v5948_v19 = vunpack.i.l.bf16 %v5947_v17  ;;  %v5933_v13 = vunpack.i.l.bf16 %v5932_v29 }
 0xfca   : >> { %v4380_v28 = vmax.f32 %v4348_v30, %v5948_v19  ;;  %v4350_v41 = vmax.f32 %v4318_v2, %v5933_v13  ;;  %v5949_v30 = vunpack.i.h.bf16 %v5947_v17  ;;  %v5924_v13 = vunpack.i.h.bf16 %v10064_v32 }
 0xfcb   : >> { %v10068_v33 = vpop.permute.xlu1 %5941  ;;  %v10070_v49 = vpop.permute.xlu0 %5956  ;;  %v5934_v2 = vunpack.i.h.bf16 %v5932_v29 }
 0xfcc   : >> { %v5958_v43 = vunpack.i.l.bf16 %v10070_v49  ;;  %v5943_v27 = vunpack.i.l.bf16 %v10068_v33 }
 0xfcf   : >> { %v10073_v61 = vpop.permute.xlu1 %5951  ;;  %v10075_v31 = vpop.permute.xlu0 %5966 }
 0xfd0   : >> { %v11345_v44 = vunpack.i.h.bf16 %v10075_v31  ;;  %v5968_v46 = vunpack.i.l.bf16 %v10075_v31  ;;  %v5953_v4 = vunpack.i.l.bf16 %v10073_v61  ;;  %v5954_v14 = vunpack.i.h.bf16 %v10073_v61 }
 0xfd2   : >> { %v4436_v15 = vsel %vm12256_vm1, %v5968_v46, %v11345_v44  ;;  %v4382_v20 = vmax.f32 %v4350_v41, %v5953_v4  ;;  %v5923_v46 = vunpack.i.l.bf16 %v10064_v32  ;;  %vm12295_vm1 = vmmov %vm12246_vm0 }
 0xfd3   : >> { %v10087_v24 = vmax.f32 %v4380_v28, %v4436_v15  ;;  %v10089_v52 = vpop.permute.xlu1 %5961  ;;  %v10091_v37 = vpop.permute.xlu0 %5976  ;;  %v4381_v15 = vmax.f32 %v4349_v0, %v5949_v30  ;;  %v5959_v0 = vunpack.i.h.bf16 %v10070_v49  ;;  %v4384_v30 = vmax.f32 %v4352_v62, %v5958_v43 }
 0xfd4   : >> { %v11343_v12 = vunpack.i.h.bf16 %v10091_v37  ;;  %v5978_v19 = vunpack.i.l.bf16 %v10091_v37  ;;  %v4322_v3 = vmax.f32 %v9977_v34, %v5923_v46  ;;  %v5963_v61 = vunpack.i.l.bf16 %v10089_v52 }
 0xfd5   : >> { %v4461_v63 = vsel %vm4460_vm12, %v10087_v24, -inf  ;;  %v4353_v43 = vmax.f32 %v4321_v60, %v5939_v16 }
 0xfd6   : >> { %v4438_v7 = vsel %vm12257_vm13, %v5978_v19, %v11343_v12  ;;  %4462 = vmax.xlane.f32.xlu0 %v4461_v63  ;;  %v4351_v19 = vmax.f32 %v4319_v8, %v5934_v2  ;;  %vm12297_vm13 = vmmov %vm12246_vm0 }
 0xfd7   : >> { %v10106_v17 = vmax.f32 %v4382_v20, %v4438_v7  ;;  %v10108_v56 = vpop.permute.xlu1 %5971  ;;  %v10110_v28 = vpop.permute.xlu0 %5986 }
 0xfd8   : >> { %v11350_v4 = vunpack.i.h.bf16 %v10108_v56  ;;  %v5973_v32 = vunpack.i.l.bf16 %v10108_v56  ;;  %v11344_v29 = vunpack.i.h.bf16 %v10110_v28  ;;  %v5988_v6 = vunpack.i.l.bf16 %v10110_v28 }
 0xfd9   : >> { %v4467_v41 = vsel %vm4460_vm12, %v10106_v17, -inf }
 0xfda   : >> { %v4437_v20 = vsel %vm12258_vm14, %v5973_v32, %v11350_v4  ;;  %v4440_v63 = vsel %vm12259_vm15, %v5988_v6, %v11344_v29  ;;  %4468 = vmax.xlane.f32.xlu0 %v4467_v41  ;;  %v4354_v6 = vmax.f32 %v4322_v3, %v5943_v27  ;;  %v4383_v41 = vmax.f32 %v4351_v19, %v5954_v14  ;;  %vm12299_vm14 = vmmov %vm12246_vm0 }
 0xfdb   : >> { %v10129_v7 = vmax.f32 %v4381_v15, %v4437_v20  ;;  %v10131_v12 = vpop.permute.xlu1 %5981  ;;  %v10133_v34 = vpop.permute.xlu0 %5996  ;;  %v10139_v49 = vmax.f32 %v4384_v30, %v4440_v63  ;;  %v5944_v29 = vunpack.i.h.bf16 %v10068_v33  ;;  %v4323_v3 = vmax.f32 %v9984_v39, %v5924_v13 }
 0xfdc   : >> { %v11349_v8 = vunpack.i.h.bf16 %v10131_v12  ;;  %v5983_v46 = vunpack.i.l.bf16 %v10131_v12  ;;  %v11346_v2 = vunpack.i.h.bf16 %v10133_v34  ;;  %v5998_v32 = vunpack.i.l.bf16 %v10133_v34 }
 0xfdd   : >> { %v4464_v62 = vsel %vm4460_vm12, %v10129_v7, -inf  ;;  %v4386_v44 = vmax.f32 %v4354_v6, %v5963_v61  ;;  %v4385_v19 = vmax.f32 %v4353_v43, %v5959_v0  ;;  %v5964_v63 = vunpack.i.h.bf16 %v10089_v52 }
 0xfde   : >> { %v4439_v15 = vsel %vm12246_vm0, %v5983_v46, %v11349_v8  ;;  %v4442_v20 = vsel %vm12260_vm4, %v5998_v32, %v11346_v2  ;;  %4465 = vmax.xlane.f32.xlu1 %v4464_v62  ;;  %v4473_v46 = vsel %vm4460_vm12, %v10139_v49, -inf  ;;  %v4355_v39 = vmax.f32 %v4323_v3, %v5944_v29  ;;  %vm12301_vm4 = vmmov %vm12295_vm1 }
 0xfdf   : >> { %v10150_v27 = vmax.f32 %v4383_v41, %v4439_v15  ;;  %v10152_v14 = vpop.permute.xlu1 %5991  ;;  %v10158_v30 = vmax.f32 %v4386_v44, %v4442_v20  ;;  %v4486_v43 = vsel %vm4485_vm6, %v10087_v24, -inf  ;;  %v4492_v20 = vsel %vm4485_vm6, %v10106_v17, -inf }
 0xfe0   : >> { %v11348_v60 = vunpack.i.h.bf16 %v10152_v14  ;;  %v5993_v16 = vunpack.i.l.bf16 %v10152_v14  ;;  %v4387_v32 = vmax.f32 %v4355_v39, %v5964_v63  ;;  %v4489_v3 = vsel %vm4485_vm6, %v10129_v7, -inf }
 0xfe1   : >> { %v4470_v33 = vsel %vm4460_vm12, %v10150_v27, -inf  ;;  %v4479_v6 = vsel %vm4460_vm12, %v10158_v30, -inf  ;;  %v4504_v63 = vsel %vm4485_vm6, %v10158_v30, -inf  ;;  %v4517_v39 = vsel %vm4510_vm7, %v10106_v17, -inf }
 0xfe2   : >> { %v4441_v61 = vsel %vm12261_vm3, %v5993_v16, %v11348_v60  ;;  %4474 = vmax.xlane.f32.xlu1 %v4473_v46  ;;  %4471 = vmax.xlane.f32.xlu0 %v4470_v33  ;;  %v4495_v16 = vsel %vm4485_vm6, %v10150_v27, -inf  ;;  %v4511_v33 = vsel %vm4510_vm7, %v10087_v24, -inf  ;;  %vm4762_vm15 = vcmask 220336  }
 0xfe3   : >> { %v4457_v13 = vmax.f32 %v4385_v19, %v4441_v61  ;;  %v10167_v0 = vpop.permute.xlu1 %6001  ;;  %v4498_v19 = vsel %vm4485_vm6, %v10139_v49, -inf  ;;  %vm4787_vm0 = vcmask 261336   ;;  %vm4956_vm3 = vcmask 236736  }
 0xfe4   : >> { %v11347_v52 = vunpack.i.h.bf16 %v10167_v0  ;;  %v6003_v44 = vunpack.i.l.bf16 %v10167_v0 }
 0xfe5   : >> { %v4476_v41 = vsel %vm4460_vm12, %v4457_v13, -inf  ;;  %v4501_v46 = vsel %vm4485_vm6, %v4457_v13, -inf }
 0xfe6   : >> { %v4443_v62 = vsel %vm12262_vm5, %v6003_v44, %v11347_v52  ;;  %4480 = vmax.xlane.f32.xlu1 %v4479_v6  ;;  %4477 = vmax.xlane.f32.xlu0 %v4476_v41  ;;  %v4514_v44 = vsel %vm4510_vm7, %v10129_v7, -inf  ;;  %v4520_v6 = vsel %vm4510_vm7, %v10150_v27, -inf  ;;  %v4529_v41 = vsel %vm4510_vm7, %v10158_v30, -inf }
 0xfe7   : >> { %v4459_v29 = vmax.f32 %v4387_v32, %v4443_v62  ;;  %v4523_v32 = vsel %vm4510_vm7, %v10139_v49, -inf  ;;  %v4526_v62 = vsel %vm4510_vm7, %v4457_v13, -inf  ;;  %vm4981_vm5 = vcmask 277736  }
 0xfe9   : >> { %v4482_v15 = vsel %vm4460_vm12, %v4459_v29, -inf  ;;  %v4507_v61 = vsel %vm4485_vm6, %v4459_v29, -inf  ;;  %vm12303_vm6 = vmmov %vm12295_vm1 }
 0xfea   : >> { %4487 = vmax.xlane.f32.xlu1 %v4486_v43  ;;  %4483 = vmax.xlane.f32.xlu0 %v4482_v15  ;;  %v4536_v43 = vsel %vm4535_vm8, %v10087_v24, -inf  ;;  %v4532_v15 = vsel %vm4510_vm7, %v4459_v29, -inf  ;;  %v4554_v24 = vsel %vm4535_vm8, %v10158_v30, -inf  ;;  %v6010_v30 = vpack.i.bf16 %v9903_v36, %v9894_v25  ;;  %vm12305_vm7 = vmmov %vm12295_vm1 }
 0xfeb   : >> { %v6070_v25 = vpack.i.bf16 %v4213_v54, %v4208_v58  ;;  %v10260_v58 = vpack.i.bf16 %v12267_v22, %v12266_v5 }
 0xfee   : >> { %4493 = vmax.xlane.f32.xlu1 %v4492_v20  ;;  %4490 = vmax.xlane.f32.xlu0 %v4489_v3  ;;  %v4542_v20 = vsel %vm4535_vm8, %v10106_v17, -inf  ;;  %v4539_v3 = vsel %vm4535_vm8, %v10129_v7, -inf  ;;  %v4557_v17 = vsel %vm4535_vm8, %v4459_v29, -inf  ;;  %v6005_v7 = vpack.i.bf16 %v9862_v50, %v9854_v23 }
 0xfef   : >> { %v12265_v29 = vmax.f32 %v9997_v1, 0.0 }
 0xff2   : >> { %4499 = vmax.xlane.f32.xlu1 %v4498_v19  ;;  %4496 = vmax.xlane.f32.xlu0 %v4495_v16  ;;  %v4548_v19 = vsel %vm4535_vm8, %v10139_v49, -inf  ;;  %v4545_v16 = vsel %vm4535_vm8, %v10150_v27, -inf  ;;  %v6015_v49 = vpack.i.bf16 %v9948_v55, %v9939_v51  ;;  %v6020_v27 = vpack.i.bf16 %v9992_v38, %v9981_v18 }
 0xff3   : >> { %v12263_v51 = vmax.f32 %v9867_v21, 0.0 }
 0xff5   : >> { %v6065_v18 = vpack.i.bf16 %v12263_v51, %v4198_v9 }
 0xff6   : >> { %4505 = vmax.xlane.f32.xlu1 %v4504_v63  ;;  %4502 = vmax.xlane.f32.xlu0 %v4501_v46  ;;  %v4551_v63 = vsel %vm4535_vm8, %v4457_v13, -inf  ;;  %v12264_v13 = vmax.f32 %v9987_v45, 0.0  ;;  %v12271_v45 = vmax.f32 %v9919_v48, 0.0  ;;  %vm12307_vm8 = vmmov %vm12295_vm1 }
 0xff8   : >> { %v10254_v46 = vpack.i.bf16 %v12265_v29, %v12264_v13  ;;  %v10293_v1 = vpack.i.bf16 %v12271_v45, %v9916_v47  ;;  %v10371_v45 = vld [vmem:[#allocation4 + $0x110] sm:$0xff] }
 0xffa   : >> { %4512 = vmax.xlane.f32.xlu1 %v4511_v33  ;;  %4508 = vmax.xlane.f32.xlu0 %v4507_v61 }
 0xffe   : >> { %4518 = vmax.xlane.f32.xlu1 %v4517_v39  ;;  %4515 = vmax.xlane.f32.xlu0 %v4514_v44  ;;  %v5120_v39 = vld [vmem:[#allocation4 + $0x20] sm:$0xff] }
0x1002   : >> { %4524 = vmax.xlane.f32.xlu1 %v4523_v32  ;;  %4521 = vmax.xlane.f32.xlu0 %v4520_v6  ;;  %v6150_v6 = vpack.i.bf16 %v5120_v39, %v9873_v40 }
0x1006   : >> { %4530 = vmax.xlane.f32.xlu1 %v4529_v41  ;;  %4527 = vmax.xlane.f32.xlu0 %v4526_v62  ;;  %v5121_v41 = vld [vmem:[#allocation4 + $0x48] sm:$0xff] }
0x1007   : >> { %v6215_v51 = vpack.i.bf16 %v5121_v41, %v5120_v39 }
0x100a   : >> { %4537 = vmax.xlane.f32.xlu1 %v4536_v43  ;;  %4533 = vmax.xlane.f32.xlu0 %v4532_v15  ;;  %v6155_v43 = vpack.i.bf16 %v5121_v41, %v9885_v10  ;;  %v6245_v41 = vpack.i.bf16 %v10371_v45, %v10001_v26 }
0x100e   : >> { %4543 = vmax.xlane.f32.xlu1 %v4542_v20  ;;  %4540 = vmax.xlane.f32.xlu0 %v4539_v3 }
0x1012   : >> { %4549 = vmax.xlane.f32.xlu1 %v4548_v19  ;;  %4546 = vmax.xlane.f32.xlu0 %v4545_v16  ;;  %v12278_v19 = vmax.f32 %v9951_v53, 0.0 }
0x1014   : >> { %v10327_v16 = vpack.i.bf16 %v9972_v59, %v12278_v19  ;;  %v10386_v19 = vld [vmem:[#allocation4 + $0xc0] sm:$0xff] }
0x1016   : >> { %4555 = vmax.xlane.f32.xlu1 %v4554_v24  ;;  %4552 = vmax.xlane.f32.xlu0 %v4551_v63  ;;  %v10329_v24 = vld [vmem:[#allocation4 + $0x70] sm:$0xff] }
0x101a   : >> { %4558 = vmax.xlane.f32.xlu0 %v4557_v17  ;;  %v6185_v17 = vpack.i.bf16 %v10329_v24, %v9916_v47 }
0x1027   : >> { %6006 = vrot.lane.b32.xlu1 %v6005_v7, %s6337_s11 }
0x102b   : >> { %6016 = vrot.lane.b32.xlu1 %v6015_v49, %s6337_s11 }
0x102f   : >> { %6021 = vrot.lane.b32.xlu1 %v6020_v27, %s6337_s11 }
0x1030   : >> { %6011 = vrot.lane.b32.xlu0 %v6010_v30, %s6337_s11 }
0x1033   : >> { %6031 = vrot.lane.b32.xlu1 %v6010_v30, %s6347_s16 }
0x1034   : >> { %6026 = vrot.lane.b32.xlu0 %v6005_v7, %s6347_s16 }
0x1037   : >> { %6041 = vrot.lane.b32.xlu1 %v6020_v27, %s6347_s16 }
0x1038   : >> { %6036 = vrot.lane.b32.xlu0 %v6015_v49, %s6347_s16 }
0x103b   : >> { %6051 = vrot.lane.b32.xlu1 %v6010_v30, %s6357_s23  ;;  %v10352_v30 = vpack.i.bf16 %v10010_v42, %v10001_v26 }
0x103c   : >> { %6046 = vrot.lane.b32.xlu0 %v6005_v7, %s6357_s23 }
0x103f   : >> { %6061 = vrot.lane.b32.xlu1 %v6020_v27, %s6357_s23 }
0x1040   : >> { %6056 = vrot.lane.b32.xlu0 %v6015_v49, %s6357_s23 }
0x1043   : >> { %6071 = vrot.lane.b32.xlu1 %v6070_v25, %s6367_s30 }
0x1044   : >> { %6066 = vrot.lane.b32.xlu0 %v6065_v18, %s6367_s30 }
0x1047   : >> { %6081 = vrot.lane.b32.xlu1 %v10254_v46, %s6367_s30 }
0x1048   : >> { %6076 = vrot.lane.b32.xlu0 %v10260_v58, %s6367_s30 }
0x104b   : >> { %6086 = vrot.lane.b32.xlu1 %v6065_v18, %s6337_s11 }
0x104f   : >> { %6091 = vrot.lane.b32.xlu1 %v6070_v25, %s6337_s11 }
0x1053   : >> { %6096 = vrot.lane.b32.xlu1 %v6065_v18, %s6347_s16 }
0x1057   : >> { %6101 = vrot.lane.b32.xlu1 %v10260_v58, %s6337_s11 }
0x105b   : >> { %6106 = vrot.lane.b32.xlu1 %v6070_v25, %s6347_s16 }
0x105f   : >> { %6111 = vrot.lane.b32.xlu1 %v6065_v18, %s6357_s23  ;;  %v5125_v18 = vld [vmem:[#allocation4 + $0xe8] sm:$0xff] }
0x1060   : >> { %v6225_v5 = vpack.i.bf16 %v5125_v18, %v9972_v59 }
0x1063   : >> { %6116 = vrot.lane.b32.xlu1 %v6115_v11, %s6337_s11  ;;  %v10276_v9 = vpop.xlane.xlu0 %4462 }
0x1064   : >> { %12268 = vst [vmem:[#allocation266_spill] sm:$0xff] %v10276_v9 }
0x1067   : >> { %6121 = vrot.lane.b32.xlu1 %v10254_v46, %s6337_s11  ;;  %v10280_v21 = vpop.xlane.xlu0 %4468 }
0x1068   : >> { %12269 = vst [vmem:[#allocation270_spill] sm:$0xff] %v10280_v21 }
0x106b   : >> { %v10282_v54 = vpop.xlane.xlu1 %4465  ;;  %6131 = vrot.lane.b32.xlu1 %v6070_v25, %s6357_s23 }
0x106f   : >> { %v10285_v57 = vpop.xlane.xlu1 %4474  ;;  %6136 = vrot.lane.b32.xlu1 %v6115_v11, %s6367_s30  ;;  %v10288_v35 = vpop.xlane.xlu0 %4471 }
0x1070   : >> { %12270 = vst [vmem:[#allocation30_spill] sm:$0xff] %v10285_v57 }
0x1073   : >> { %v10295_v33 = vpop.xlane.xlu1 %4480  ;;  %6141 = vrot.lane.b32.xlu1 %v10293_v1, %s6337_s11  ;;  %v10299_v61 = vpop.xlane.xlu0 %4477 }
0x1074   : >> { %12272 = vst [vmem:[#allocation194_spill] sm:$0xff] %v10295_v33 }
0x1077   : >> { %6146 = vrot.lane.b32.xlu1 %v6115_v11, %s6347_s16  ;;  %v10302_v44 = vpop.xlane.xlu1 %4487  ;;  %v10304_v32 = vpop.xlane.xlu0 %4483 }
0x1078   : >> { %12273 = vst [vmem:[#allocation197_spill] sm:$0xff] %v10302_v44  ;;  %12274 = vst [vmem:[#allocation31_spill] sm:$0xff] %v10304_v32 }
0x107b   : >> { %6151 = vrot.lane.b32.xlu1 %v6150_v6, %s6357_s23  ;;  %v10308_v48 = vpop.xlane.xlu1 %4493  ;;  %v10310_v62 = vpop.xlane.xlu0 %4490 }
0x107c   : >> { %12275 = vst [vmem:[#allocation34_spill] sm:$0xff] %v10308_v48 }
0x107f   : >> { %6156 = vrot.lane.b32.xlu1 %v6155_v43, %s6357_s23  ;;  %v10314_v15 = vpop.xlane.xlu1 %4499  ;;  %v10316_v20 = vpop.xlane.xlu0 %4496 }
0x1080   : >> { %12276 = vst [vmem:[#allocation196_spill] sm:$0xff] %v10314_v15 }
0x1083   : >> { %6166 = vrot.lane.b32.xlu1 %v10260_v58, %s6357_s23  ;;  %v10320_v3 = vpop.xlane.xlu1 %4505  ;;  %v10322_v40 = vpop.xlane.xlu0 %4502 }
0x1084   : >> { %12277 = vst [vmem:[#allocation27_spill] sm:$0xff] %v10320_v3 }
0x1087   : >> { %6176 = vrot.lane.b32.xlu1 %v10327_v16, %s6337_s11  ;;  %v10333_v10 = vpop.xlane.xlu1 %4512  ;;  %v10335_v63 = vpop.xlane.xlu0 %4508 }
0x1088   : >> { %12279 = vst [vmem:[#allocation38_spill] sm:$0xff] %v10333_v10  ;;  %12280 = vst [vmem:[#allocation37_spill] sm:$0xff] %v10335_v63 }
0x108b   : >> { %6186 = vrot.lane.b32.xlu1 %v6185_v17, %s6357_s23  ;;  %v10340_v7 = vpop.xlane.xlu1 %4518  ;;  %v10342_v53 = vpop.xlane.xlu0 %4515  ;;  %v6255_v17 = vpack.i.bf16 %v5125_v18, %v10386_v19 }
0x108c   : >> { %12281 = vst [vmem:[#allocation33_spill] sm:$0xff] %v10340_v7  ;;  %12282 = vst [vmem:[#allocation36_spill] sm:$0xff] %v10342_v53 }
0x108f   : >> { %6196 = vrot.lane.b32.xlu1 %v10254_v46, %s6357_s23  ;;  %v10346_v49 = vpop.xlane.xlu1 %4524  ;;  %v10348_v27 = vpop.xlane.xlu0 %4521 }
0x1090   : >> { %12283 = vst [vmem:[#allocation272_spill] sm:$0xff] %v10346_v49 }
0x1093   : >> { %6206 = vrot.lane.b32.xlu1 %v10352_v30, %s6337_s11  ;;  %v10356_v47 = vpop.xlane.xlu1 %4530  ;;  %v10358_v25 = vpop.xlane.xlu0 %4527  ;;  %s5663_s11 = sshll.u32 %s6324_s29, 3  ;;  %s287_s29 = sadd.s32 1, %s6324_s29  }
0x1094   : >> { %12284 = vst [vmem:[#allocation35_spill] sm:$0xff] %v10356_v47  ;;  %p284_p4 = scmp.ge.s32.totalorder %s287_s29, 8  }
0x1097   : >> { %6216 = vrot.lane.b32.xlu1 %v6215_v51, %s6367_s30  ;;  %v10361_v13 = vpop.xlane.xlu1 %4537  ;;  %v10363_v29 = vpop.xlane.xlu0 %4533 }
0x1098   : >> { %12285 = vst [vmem:[#allocation271_spill] sm:$0xff] %v10361_v13  ;;  %12286 = vst [vmem:[#allocation39_spill] sm:$0xff] %v10363_v29 }
0x109b   : >> { %6226 = vrot.lane.b32.xlu1 %v6225_v5, %s6357_s23  ;;  %v10367_v22 = vpop.xlane.xlu1 %4543  ;;  %v10369_v11 = vpop.xlane.xlu0 %4540 }
0x109c   : >> { %12287 = vst [vmem:[#allocation40_spill] sm:$0xff] %v10367_v22  ;;  %12288 = vst [vmem:[#allocation201_spill] sm:$0xff] %v10369_v11 }
0x109f   : >> { %6236 = vrot.lane.b32.xlu1 %v10352_v30, %s6347_s16  ;;  %v10375_v39 = vpop.xlane.xlu1 %4549  ;;  %v10377_v6 = vpop.xlane.xlu0 %4546 }
0x10a0   : >> { %12289 = vst [vmem:[#allocation198_spill] sm:$0xff] %v10375_v39 }
0x10a3   : >> { %6246 = vrot.lane.b32.xlu1 %v6245_v41, %s6357_s23  ;;  %v10382_v59 = vpop.xlane.xlu1 %4555  ;;  %v10384_v43 = vpop.xlane.xlu0 %4552 }
0x10a4   : >> { %12290 = vst [vmem:[#allocation200_spill] sm:$0xff] %v10382_v59 }
0x10a7   : >> { %6256 = vrot.lane.b32.xlu1 %v6255_v17, %s6367_s30  ;;  %v6007_v51 = vpop.permute.xlu1 %6006  ;;  %v10390_v5 = vpop.xlane.xlu0 %4558 }
0x10a8   : >> { %12291 = vst [vmem:[#allocation44_spill] sm:$0xff] %v10390_v5  ;;  %v6008_v18 = vunpack.i.l.bf16 %v6007_v51  ;;  %v6009_v47 = vunpack.i.h.bf16 %v6007_v51 }
0x10aa   : >> { %v4584_v3 = vmax.f32 %v9854_v23, %v6008_v18  ;;  %v4585_v63 = vmax.f32 %v9862_v50, %v6009_v47  ;;  %v12292_v47 = vunpack.i.h.bf16 %v10108_v56 }
0x10ab   : >> { %v10392_v2 = vpop.permute.xlu1 %6016  ;;  %v10394_v52 = vpop.permute.xlu0 %6011 }
0x10ac   : >> { %v6019_v49 = vunpack.i.h.bf16 %v10392_v2  ;;  %v6014_v51 = vunpack.i.h.bf16 %v10394_v52 }
0x10af   : >> { %v10396_v26 = vpop.permute.xlu1 %6021  ;;  %v6027_v41 = vpop.permute.xlu0 %6026 }
0x10b0   : >> { %v6028_v17 = vunpack.i.l.bf16 %v6027_v41  ;;  %v6029_v33 = vunpack.i.h.bf16 %v6027_v41  ;;  %v6024_v13 = vunpack.i.h.bf16 %v10396_v26 }
0x10b2   : >> { %v4616_v57 = vmax.f32 %v4584_v3, %v6028_v17  ;;  %v4617_v7 = vmax.f32 %v4585_v63, %v6029_v33  ;;  %v4589_v33 = vmax.f32 %v9948_v55, %v6019_v49 }
0x10b3   : >> { %v10398_v60 = vpop.permute.xlu1 %6031  ;;  %v10400_v8 = vpop.permute.xlu0 %6036 }
0x10b4   : >> { %v6034_v23 = vunpack.i.h.bf16 %v10398_v60  ;;  %v6039_v63 = vunpack.i.h.bf16 %v10400_v8 }
0x10b7   : >> { %v10402_v4 = vpop.permute.xlu1 %6041  ;;  %v6047_v59 = vpop.permute.xlu0 %6046 }
0x10b8   : >> { %v6048_v32 = vunpack.i.l.bf16 %v6047_v59  ;;  %v6049_v39 = vunpack.i.h.bf16 %v6047_v59  ;;  %v12294_v59 = vunpack.i.h.bf16 %v10075_v31 }
0x10ba   : >> { %v4648_v41 = vmax.f32 %v4616_v57, %v6048_v32  ;;  %v4649_v50 = vmax.f32 %v4617_v7, %v6049_v39  ;;  %v4587_v7 = vmax.f32 %v9903_v36, %v6014_v51  ;;  %v12296_v36 = vunpack.i.h.bf16 %v10131_v12 }
0x10bb   : >> { %v10404_v29 = vpop.permute.xlu1 %6051  ;;  %v10406_v5 = vpop.permute.xlu0 %6056 }
0x10bc   : >> { %v6054_v56 = vunpack.i.h.bf16 %v10404_v29 }
0x10bf   : >> { %v10411_v15 = vpop.permute.xlu1 %6061  ;;  %v6067_v22 = vpop.permute.xlu0 %6066 }
0x10c0   : >> { %v6069_v21 = vunpack.i.h.bf16 %v6067_v22  ;;  %v6068_v48 = vunpack.i.l.bf16 %v6067_v22  ;;  %v6044_v22 = vunpack.i.h.bf16 %v10402_v4  ;;  %v6064_v55 = vunpack.i.h.bf16 %v10411_v15 }
0x10c2   : >> { %v4689_v3 = vsel %vm12293_vm11, %v12292_v47, %v6069_v21  ;;  %v4688_v18 = vsel %vm12295_vm1, %v12294_v59, %v6068_v48  ;;  %v4591_v48 = vmax.f32 %v9992_v38, %v6024_v13  ;;  %v6059_v47 = vunpack.i.h.bf16 %v10406_v5 }
0x10c3   : >> { %v4704_v57 = vmax.f32 %v4648_v41, %v4688_v18  ;;  %v10425_v32 = vpop.permute.xlu1 %6071  ;;  %v10427_v17 = vpop.permute.xlu0 %6076  ;;  %v4705_v21 = vmax.f32 %v4649_v50, %v4689_v3  ;;  %v4619_v41 = vmax.f32 %v4587_v7, %v6034_v23  ;;  %v4621_v59 = vmax.f32 %v4589_v33, %v6039_v63 }
0x10c4   : >> { %v6074_v31 = vunpack.i.h.bf16 %v10425_v32  ;;  %v6079_v49 = vunpack.i.h.bf16 %v10427_v17  ;;  %v4623_v18 = vmax.f32 %v4591_v48, %v6044_v22  ;;  %v12298_v7 = vunpack.i.h.bf16 %v10152_v14 }
0x10c5   : >> { %v4713_v39 = vsel %vm4712_vm9, %v4704_v57, -inf  ;;  %v4651_v3 = vmax.f32 %v4619_v41, %v6054_v56  ;;  %v10444_v13 = vsel %vm4737_vm10, %v4704_v57, -inf  ;;  %v10447_v10 = vsel %vm4737_vm10, %v4705_v21, -inf }
0x10c6   : >> { %4714 = vmax.xlane.f32.xlu0 %v4713_v39  ;;  %v4691_v51 = vsel %vm12297_vm13, %v12296_v36, %v6074_v31  ;;  %v4655_v23 = vmax.f32 %v4623_v18, %v6064_v55  ;;  %v4693_v33 = vsel %vm12299_vm14, %v12298_v7, %v6079_v49  ;;  %v4653_v12 = vmax.f32 %v4621_v59, %v6059_v47 }
0x10c7   : >> { %v10440_v50 = vpop.permute.xlu1 %6081  ;;  %v4707_v63 = vmax.f32 %v4651_v3, %v4691_v51  ;;  %v12300_v22 = vunpack.i.h.bf16 %v10167_v0  ;;  %v4716_v31 = vsel %vm4712_vm9, %v4705_v21, -inf  ;;  %v10463_v14 = vsel %vm4762_vm15, %v4704_v57, -inf }
0x10c8   : >> { %v6084_v38 = vunpack.i.h.bf16 %v10440_v50  ;;  %v10460_v55 = vmax.f32 %v4653_v12, %v4693_v33  ;;  %v10466_v49 = vsel %vm4787_vm0, %v4704_v57, -inf  ;;  %v4766_v36 = vsel %vm4762_vm15, %v4705_v21, -inf }
0x10c9   : >> { %v4722_v41 = vsel %vm4712_vm9, %v4707_v63, -inf  ;;  %v4747_v3 = vsel %vm4737_vm10, %v4707_v63, -inf  ;;  %vm5333_vm11 = vcmask 15360   ;;  %vm5342_vm1 = vcmask 23552  }
0x10ca   : >> { %v4695_v56 = vsel %vm12301_vm4, %v12300_v22, %v6084_v38  ;;  %v10477_v59 = vsel %vm4787_vm0, %v10460_v55, -inf  ;;  %v4728_v33 = vsel %vm4712_vm9, %v10460_v55, -inf  ;;  %v4772_v22 = vsel %vm4762_vm15, %v4707_v63, -inf }
0x10cb   : >> { %v10456_v48 = vmax.f32 %v4655_v23, %v4695_v56  ;;  %v10458_v39 = vpop.permute.xlu1 %6086  ;;  %4717 = vmax.xlane.f32.xlu1 %v4716_v31  ;;  %v4791_v23 = vsel %vm4787_vm0, %v4705_v21, -inf  ;;  %vm5351_vm13 = vcmask 31744   ;;  %vm5006_vm14 = vcmask 318736  }
0x10cc   : >> { %v6089_v31 = vunpack.i.h.bf16 %v10458_v39  ;;  %vm5368_vm4 = vcmask 48128  }
0x10cd   : >> { %v10473_v47 = vsel %vm4737_vm10, %v10456_v48, -inf  ;;  %v10481_v18 = vsel %vm4762_vm15, %v10456_v48, -inf  ;;  %v10485_v57 = vsel %vm4787_vm0, %v10456_v48, -inf }
0x10cf   : >> { %v10469_v0 = vpop.permute.xlu1 %6091  ;;  %4723 = vmax.xlane.f32.xlu1 %v4722_v41 }
0x10d3   : >> { %v10488_v51 = vpop.permute.xlu1 %6096  ;;  %4767 = vmax.xlane.f32.xlu1 %v4766_v36  ;;  %v10515_v36 = vld [vmem:[#allocation4 + $0x90] sm:$0xff] }
0x10d4   : >> { %v6099_v41 = vunpack.i.h.bf16 %v10488_v51 }
0x10d7   : >> { %v10491_v38 = vpop.permute.xlu1 %6101  ;;  %4748 = vmax.xlane.f32.xlu1 %v4747_v3 }
0x10db   : >> { %v10494_v7 = vpop.permute.xlu1 %6106  ;;  %4792 = vmax.xlane.f32.xlu1 %v4791_v23  ;;  %v6292_v23 = vld [vmem:[#allocation4 + $0x38] sm:$0xff] }
0x10dc   : >> { %6126 = vrot.lane.b32.xlu0 %v10260_v58, %s6347_s16  ;;  %v5123_v58 = vld [vmem:[#allocation4 + $0x98] sm:$0xff] }
0x10df   : >> { %v10500_v12 = vpop.permute.xlu1 %6111  ;;  %4729 = vmax.xlane.f32.xlu1 %v4728_v33  ;;  %v4837_v33 = vmax.f32 %v6292_v23, %v6089_v31  ;;  %v5127_v23 = vld [vmem:[#allocation4 + $0x138] sm:$0xff] }
0x10e0   : >> { %6161 = vrot.lane.b32.xlu0 %v10254_v46, %s6347_s16  ;;  %v6190_v46 = vpack.i.bf16 %v5123_v58, %v10515_v36 }
0x10e1   : >> { %v4869_v9 = vmax.f32 %v4837_v33, %v6099_v41  ;;  %v4753_v41 = vsel %vm4737_vm10, %v10460_v55, -inf  ;;  %v6250_v33 = vpack.i.bf16 %v5127_v23, %v10010_v42 }
0x10e3   : >> { %v10505_v56 = vpop.permute.xlu1 %6116  ;;  %4773 = vmax.xlane.f32.xlu1 %v4772_v22  ;;  %v6114_v22 = vunpack.i.h.bf16 %v10500_v12 }
0x10e4   : >> { %6171 = vrot.lane.b32.xlu0 %v10293_v1, %s6367_s30 }
0x10e5   : >> { %v4901_v11 = vmax.f32 %v4869_v9, %v6114_v22  ;;  %v6260_v22 = vpack.i.bf16 %v5127_v23, %v10371_v45  ;;  %v6073_v45 = vunpack.i.l.bf16 %v10425_v32 }
0x10e7   : >> { %v10509_v21 = vpop.permute.xlu1 %6121 }
0x10e8   : >> { %6181 = vrot.lane.b32.xlu0 %v10293_v1, %s6347_s16 }
0x10eb   : >> { %v10518_v3 = vpop.permute.xlu1 %6131 }
0x10ec   : >> { %6191 = vrot.lane.b32.xlu0 %v6190_v46, %s6357_s23  ;;  %v10533_v46 = vld [vmem:[#allocation4 + $0xb8] sm:$0xff] }
0x10ed   : >> { %v6220_v9 = vpack.i.bf16 %v10386_v19, %v10533_v46 }
0x10ef   : >> { %v10522_v44 = vpop.permute.xlu1 %6136 }
0x10f0   : >> { %v6139_v1 = vunpack.i.h.bf16 %v10522_v44  ;;  %6201 = vrot.lane.b32.xlu0 %v10327_v16, %s6367_s30 }
0x10f2   : >> { %v10527_v53 = vmax.f32 %v4901_v11, %v6139_v1  ;;  %v6240_v11 = vpack.i.bf16 %v5123_v58, %v10329_v24  ;;  %v4778_v24 = vsel %vm4762_vm15, %v10460_v55, -inf }
0x10f4   : >> { %6211 = vrot.lane.b32.xlu0 %v10327_v16, %s6347_s16  ;;  %v4960_v31 = vsel %vm4956_vm3, %v10527_v53, -inf  ;;  %v4797_v16 = vsel %vm4787_vm0, %v4707_v63, -inf  ;;  %v4985_v19 = vsel %vm4981_vm5, %v10527_v53, -inf  ;;  %v10551_v63 = vpop.permute.xlu1 %6141  ;;  %s5529_s16 = scalar_lea.vmem %s6506_s26, %s5663_s11 }
0x10f5   : >> { %4961 = vmax.xlane.f32.xlu1 %v4960_v31 }
0x10f8   : >> { %6221 = vrot.lane.b32.xlu0 %v6220_v9, %s6357_s23  ;;  %v10557_v58 = vpop.permute.xlu1 %6146  ;;  %v6033_v9 = vunpack.i.l.bf16 %v10398_v60 }
0x10f9   : >> { %4754 = vmax.xlane.f32.xlu1 %v4753_v41  ;;  %v6294_v41 = vld [vmem:[#allocation4 + $0x58] sm:$0xff] }
0x10fc   : >> { %6231 = vrot.lane.b32.xlu0 %v10352_v30, %s6367_s30  ;;  %v4734_v30 = vsel %vm4712_vm9, %v10456_v48, -inf  ;;  %v10559_v1 = vpop.permute.xlu1 %6151  ;;  %v6013_v48 = vunpack.i.l.bf16 %v10394_v52 }
0x10fd   : >> { %4798 = vmax.xlane.f32.xlu1 %v4797_v16 }
0x10fe   : >> { %v4586_v16 = vmax.f32 %v6294_v41, %v6013_v48 }
0x1100   : >> { %6241 = vrot.lane.b32.xlu0 %v6240_v11, %s6367_s30  ;;  %v10561_v42 = vpop.permute.xlu1 %6156  ;;  %v6053_v11 = vunpack.i.l.bf16 %v10404_v29  ;;  %v4618_v23 = vmax.f32 %v4586_v16, %v6033_v9  ;;  %v6018_v29 = vunpack.i.l.bf16 %v10392_v2  ;;  %v6058_v9 = vunpack.i.l.bf16 %v10406_v5  ;;  %v6296_v5 = vld [vmem:[#allocation4 + $0x10] sm:$0xff] }
0x1101   : >> { %4986 = vmax.xlane.f32.xlu1 %v4985_v19  ;;  %v12302_v19 = vunpack.i.h.bf16 %v10091_v37  ;;  %v6078_v37 = vunpack.i.l.bf16 %v10427_v17  ;;  %v12304_v16 = vunpack.i.h.bf16 %v10110_v28  ;;  %v6138_v28 = vunpack.i.l.bf16 %v10522_v44 }
0x1102   : >> { %v6043_v44 = vunpack.i.l.bf16 %v10402_v4 }
0x1103   : >> { %v4692_v2 = vsel %vm12305_vm7, %v12304_v16, %v6078_v37 }
0x1104   : >> { %6251 = vrot.lane.b32.xlu0 %v6250_v33, %s6357_s23  ;;  %v10563_v31 = vpop.permute.xlu1 %6166  ;;  %v4690_v33 = vsel %vm12303_vm6, %v12302_v19, %v6073_v45  ;;  %v6113_v19 = vunpack.i.l.bf16 %v10500_v12  ;;  %v6023_v12 = vunpack.i.l.bf16 %v10396_v26  ;;  %v12306_v26 = vunpack.i.h.bf16 %v10133_v34 }
0x1105   : >> { %4735 = vmax.xlane.f32.xlu1 %v4734_v30  ;;  %v4650_v30 = vmax.f32 %v4618_v23, %v6053_v11  ;;  %v6094_v34 = vunpack.i.h.bf16 %v10469_v0  ;;  %vm12308_vm6 = vcmask 359424  }
0x1106   : >> { %vm12309_vm7 = vmmov %vm12308_vm6 }
0x1108   : >> { %6261 = vrot.lane.b32.xlu0 %v6260_v22, %s6367_s30  ;;  %v10569_v55 = vpop.permute.xlu1 %6176  ;;  %v4706_v22 = vmax.f32 %v4650_v30, %v4690_v33 }
0x1109   : >> { %4779 = vmax.xlane.f32.xlu1 %v4778_v24  ;;  %v6038_v24 = vunpack.i.l.bf16 %v10400_v8  ;;  %v6088_v8 = vunpack.i.l.bf16 %v10458_v39 }
0x110a   : >> { %v4719_v60 = vsel %vm4712_vm9, %v4706_v22, -inf }
0x110b   : >> { %v4836_v23 = vmax.f32 %v6296_v5, %v6088_v8 }
0x110c   : >> { %v10575_v52 = vpop.permute.xlu1 %6186 }
0x1110   : >> { %v10580_v32 = vpop.permute.xlu1 %6196 }
0x1114   : >> { %v10586_v41 = vpop.permute.xlu1 %6206 }
0x1118   : >> { %v10598_v33 = vpop.permute.xlu1 %6216 }
0x1127   : >> { %4739 = vmax.xlane.f32.xlu0 %v10444_v13  ;;  %v6295_v13 = vld [vmem:[#allocation4 + $0xa8] sm:$0xff] }
0x1128   : >> { %v4588_v48 = vmax.f32 %v6295_v13, %v6018_v29 }
0x112a   : >> { %v4620_v45 = vmax.f32 %v4588_v48, %v6038_v24  ;;  %v10605_v24 = vpop.permute.xlu1 %6226  ;;  %v6083_v48 = vunpack.i.l.bf16 %v10440_v50 }
0x112b   : >> { %4742 = vmax.xlane.f32.xlu0 %v10447_v10  ;;  %v4744_v10 = vsel %vm4737_vm10, %v4706_v22, -inf }
0x112c   : >> { %v4652_v11 = vmax.f32 %v4620_v45, %v6058_v9  ;;  %v6297_v9 = vld [vmem:[#allocation4 + $0xf8] sm:$0xff]  ;;  %v4694_v8 = vsel %vm12307_vm8, %v12306_v26, %v6083_v48  ;;  %v6134_v48 = vunpack.i.h.bf16 %v10518_v3  ;;  %vm5377_vm8 = vcmask 56320  }
0x112d   : >> { %v4590_v45 = vmax.f32 %v6297_v9, %v6023_v12 }
0x112e   : >> { %v10593_v17 = vmax.f32 %v4652_v11, %v4692_v2  ;;  %v10611_v37 = vpop.permute.xlu1 %6236  ;;  %v4794_v11 = vsel %vm4787_vm0, %v4706_v22, -inf }
0x112f   : >> { %4720 = vmax.xlane.f32.xlu0 %v4719_v60  ;;  %v4622_v16 = vmax.f32 %v4590_v45, %v6043_v44  ;;  %v6299_v44 = vld [vmem:[#allocation4 + $0x60] sm:$0xff] }
0x1130   : >> { %v4725_v60 = vsel %vm4712_vm9, %v10593_v17, -inf  ;;  %v4750_v13 = vsel %vm4737_vm10, %v10593_v17, -inf }
0x1132   : >> { %v10618_v2 = vpop.permute.xlu1 %6246 }
0x1133   : >> { %4764 = vmax.xlane.f32.xlu0 %v10463_v14  ;;  %v6098_v14 = vunpack.i.l.bf16 %v10488_v51 }
0x1135   : >> { %v4868_v30 = vmax.f32 %v4836_v23, %v6098_v14 }
0x1137   : >> { %4745 = vmax.xlane.f32.xlu0 %v4744_v10  ;;  %v4900_v39 = vmax.f32 %v4868_v30, %v6113_v19  ;;  %v6063_v10 = vunpack.i.l.bf16 %v10411_v15  ;;  %v10630_v15 = vpop.permute.xlu1 %6256  ;;  %v6093_v19 = vunpack.i.l.bf16 %v10469_v0  ;;  %v6133_v0 = vunpack.i.l.bf16 %v10518_v3 }
0x1139   : >> { %v10603_v29 = vmax.f32 %v4900_v39, %v6138_v28  ;;  %v4654_v4 = vmax.f32 %v4622_v16, %v6063_v10  ;;  %v6109_v28 = vunpack.i.h.bf16 %v10494_v7  ;;  %v4775_v39 = vsel %vm4762_vm15, %v10593_v17, -inf }
0x113b   : >> { %4789 = vmax.xlane.f32.xlu0 %v10466_v49  ;;  %v4769_v49 = vsel %vm4762_vm15, %v4706_v22, -inf  ;;  %v4957_v51 = vsel %vm4956_vm3, %v10603_v29, -inf  ;;  %v10624_v14 = vmax.f32 %v4654_v4, %v4694_v8  ;;  %v4982_v50 = vsel %vm4981_vm5, %v10603_v29, -inf }
0x113d   : >> { %v4731_v23 = vsel %vm4712_vm9, %v10624_v14, -inf  ;;  %vm5324_vm9 = vcmask 7168  }
0x113f   : >> { %4726 = vmax.xlane.f32.xlu0 %v4725_v60  ;;  %v6108_v60 = vunpack.i.l.bf16 %v10494_v7 }
0x1143   : >> { %4770 = vmax.xlane.f32.xlu0 %v4769_v49 }
0x1147   : >> { %4958 = vmax.xlane.f32.xlu0 %v4957_v51  ;;  %v6298_v51 = vld [vmem:[#allocation4 + $0x88] sm:$0xff] }
0x1148   : >> { %v4839_v12 = vmax.f32 %v6298_v51, %v6094_v34  ;;  %v5007_v51 = vsel %vm5006_vm14, %v10603_v29, -inf }
0x114a   : >> { %v4871_v10 = vmax.f32 %v4839_v12, %v6109_v28 }
0x114b   : >> { %4751 = vmax.xlane.f32.xlu0 %v4750_v13  ;;  %v4838_v13 = vmax.f32 %v6299_v44, %v6093_v19 }
0x114d   : >> { %v4870_v45 = vmax.f32 %v4838_v13, %v6108_v60  ;;  %v4756_v13 = vsel %vm4737_vm10, %v10624_v14, -inf  ;;  %vm5031_vm10 = vcmask 359736  }
0x114f   : >> { %4795 = vmax.xlane.f32.xlu0 %v4794_v11  ;;  %v4902_v7 = vmax.f32 %v4870_v45, %v6133_v0  ;;  %v4903_v11 = vmax.f32 %v4871_v10, %v6134_v48  ;;  %v6104_v0 = vunpack.i.h.bf16 %v10491_v38  ;;  %v4800_v10 = vsel %vm4787_vm0, %v10593_v17, -inf }
0x1153   : >> { %v10628_v5 = vpop.xlane.xlu0 %4714  ;;  %4983 = vmax.xlane.f32.xlu0 %v4982_v50  ;;  %v5328_v50 = vsel %vm5324_vm9, %v10288_v35, %v10316_v20 }
0x1157   : >> { %v10634_v22 = vpop.permute.xlu0 %6126  ;;  %4732 = vmax.xlane.f32.xlu0 %v4731_v23  ;;  %v5337_v23 = vsel %vm5333_vm11, %v5328_v50, %v10348_v27 }
0x1158   : >> { %v10638_v30 = vpop.xlane.xlu1 %4717  ;;  %v5346_v19 = vsel %vm5342_vm1, %v5337_v23, %v10377_v6  ;;  %v5010_v6 = vsel %vm5006_vm14, %v10527_v53, -inf }
0x115b   : >> { %v10644_v49 = vpop.permute.xlu0 %6161  ;;  %4776 = vmax.xlane.f32.xlu0 %v4775_v39 }
0x115c   : >> { %v4724_v9 = vpop.xlane.xlu1 %4723 }
0x115d   : >> { %v5355_v28 = vsel %vm5351_vm13, %v5346_v19, %v4724_v9  ;;  %v6103_v9 = vunpack.i.l.bf16 %v10491_v38 }
0x115f   : >> { %v6172_v16 = vpop.permute.xlu0 %6171 }
0x1160   : >> { %v6174_v26 = vunpack.i.h.bf16 %v6172_v16  ;;  %v6173_v8 = vunpack.i.l.bf16 %v6172_v16  ;;  %v10648_v4 = vpop.xlane.xlu1 %4767 }
0x1162   : >> { %v10655_v3 = vmax.f32 %v4903_v11, %v6174_v26  ;;  %v10657_v34 = vmax.f32 %v4902_v7, %v6173_v8  ;;  %v6128_v7 = vunpack.i.l.bf16 %v10634_v22  ;;  %v6300_v11 = vld [vmem:[#allocation4 + $0xd8] sm:$0xff]  ;;  %v6301_v8 = vld [vmem:[#allocation4 + $0xb0] sm:$0xff] }
0x1163   : >> { %v10673_v12 = vpop.permute.xlu0 %6181  ;;  %v4841_v26 = vmax.f32 %v6300_v11, %v6104_v0  ;;  %v4840_v50 = vmax.f32 %v6301_v8, %v6103_v9  ;;  %v6148_v0 = vunpack.i.l.bf16 %v10557_v58  ;;  %v6302_v11 = vld [vmem:[#allocation4 + $0x40] sm:$0xff] }
0x1164   : >> { %v4749_v60 = vpop.xlane.xlu1 %4748  ;;  %v4966_v39 = vsel %vm4956_vm3, %v10655_v3, -inf  ;;  %v4963_v35 = vsel %vm4956_vm3, %v10657_v34, -inf  ;;  %v4991_v38 = vsel %vm4981_vm5, %v10655_v3, -inf  ;;  %v4988_v17 = vsel %vm4981_vm5, %v10657_v34, -inf }
0x1165   : >> { %v5363_v20 = vsel %vm4460_vm12, %v5355_v28, %v4749_v60  ;;  %4967 = vmax.xlane.f32.xlu1 %v4966_v39  ;;  %4964 = vmax.xlane.f32.xlu0 %v4963_v35  ;;  %v4872_v19 = vmax.f32 %v4840_v50, %v6128_v7  ;;  %v5035_v28 = vsel %vm5031_vm10, %v10527_v53, -inf  ;;  %v6169_v60 = vunpack.i.h.bf16 %v10563_v31 }
0x1166   : >> { %v6168_v39 = vunpack.i.l.bf16 %v10563_v31  ;;  %v6159_v31 = vunpack.i.h.bf16 %v10561_v42 }
0x1167   : >> { %v10680_v48 = vpop.permute.xlu0 %6191 }
0x1168   : >> { %v10667_v27 = vpop.xlane.xlu1 %4792  ;;  %v4904_v53 = vmax.f32 %v4872_v19, %v6168_v39 }
0x1169   : >> { %5011 = vmax.xlane.f32.xlu1 %v5010_v6  ;;  %5008 = vmax.xlane.f32.xlu0 %v5007_v51  ;;  %v6119_v6 = vunpack.i.h.bf16 %v10505_v56  ;;  %v6118_v51 = vunpack.i.l.bf16 %v10505_v56  ;;  %v4781_v56 = vsel %vm4762_vm15, %v10624_v14, -inf  ;;  %vm5224_vm15 = vcmask 335136  }
0x116b   : >> { %v6202_v23 = vpop.permute.xlu0 %6201 }
0x116c   : >> { %v10675_v44 = vpop.xlane.xlu1 %4729  ;;  %v6204_v35 = vunpack.i.h.bf16 %v6202_v23 }
0x116d   : >> { %4760 = vmax.xlane.f32.xlu1 %v10473_v47  ;;  %4757 = vmax.xlane.f32.xlu0 %v4756_v13  ;;  %v6129_v47 = vunpack.i.h.bf16 %v10634_v22  ;;  %v5032_v22 = vsel %vm5031_vm10, %v10603_v29, -inf  ;;  %v6149_v13 = vunpack.i.h.bf16 %v10557_v58  ;;  %v6154_v29 = vunpack.i.h.bf16 %v10559_v1  ;;  %v6303_v58 = vld [vmem:[#allocation4 + $0x18] sm:$0xff] }
0x116e   : >> { %v5080_v8 = vmax.f32 %v6303_v58, %v6118_v51  ;;  %v6305_v58 = vld [vmem:[#allocation4 + $0x100] sm:$0xff] }
0x1170   : >> { %v4774_v45 = vpop.xlane.xlu1 %4773  ;;  %v5112_v50 = vmax.f32 %v5080_v8, %v6148_v0 }
0x1171   : >> { %v10687_v16 = vsel %vm5368_vm4, %v5363_v20, %v4774_v45  ;;  %4804 = vmax.xlane.f32.xlu1 %v10477_v59  ;;  %4801 = vmax.xlane.f32.xlu0 %v4800_v10  ;;  %v4873_v59 = vmax.f32 %v4841_v26, %v6129_v47  ;;  %v6203_v20 = vunpack.i.l.bf16 %v6202_v23  ;;  %v6153_v45 = vunpack.i.l.bf16 %v10559_v1 }
0x1172   : >> { %v6158_v10 = vunpack.i.l.bf16 %v10561_v42  ;;  %v5081_v26 = vmax.f32 %v6302_v11, %v6119_v6  ;;  %v6218_v23 = vunpack.i.l.bf16 %v10598_v33  ;;  %v5013_v6 = vsel %vm5006_vm14, %v10657_v34, -inf  ;;  %v6304_v11 = vld [vmem:[#allocation4 + $0x128] sm:$0xff] }
0x1173   : >> { %v4905_v9 = vmax.f32 %v4873_v59, %v6169_v60  ;;  %v10710_v47 = vmax.f32 %v4904_v53, %v6203_v20  ;;  %v5016_v20 = vsel %vm5006_vm14, %v10655_v3, -inf }
0x1174   : >> { %v5113_v1 = vmax.f32 %v5081_v26, %v6149_v13  ;;  %v5169_v42 = vsel %vm12309_vm7, %v6158_v10, %v6159_v31  ;;  %v4806_v31 = vsel %vm4787_vm0, %v10624_v14, -inf  ;;  %v6164_v10 = vunpack.i.h.bf16 %v10644_v49  ;;  %vm12310_vm7 = vmmov %vm12308_vm6 }
0x1175   : >> { %4992 = vmax.xlane.f32.xlu1 %v4991_v38  ;;  %4989 = vmax.xlane.f32.xlu0 %v4988_v17  ;;  %v10712_v7 = vmax.f32 %v4905_v9, %v6204_v35  ;;  %v5168_v38 = vsel %vm12308_vm6, %v6153_v45, %v6154_v29  ;;  %v6219_v17 = vunpack.i.h.bf16 %v10598_v33  ;;  %v4969_v19 = vsel %vm4956_vm3, %v10710_v47, -inf }
0x1176   : >> { %v6123_v45 = vunpack.i.l.bf16 %v10509_v21  ;;  %vm5249_vm0 = vcmask 376136  }
0x1177   : >> { %v4972_v59 = vsel %vm4956_vm3, %v10712_v7, -inf }
0x1178   : >> { %v4842_v8 = vmax.f32 %v6305_v58, %v6123_v45 }
0x1179   : >> { %5036 = vmax.xlane.f32.xlu1 %v5035_v28  ;;  %5033 = vmax.xlane.f32.xlu0 %v5032_v22  ;;  %v5184_v28 = vmax.f32 %v5112_v50, %v5168_v38  ;;  %v5185_v22 = vmax.f32 %v5113_v1, %v5169_v42  ;;  %v6143_v1 = vunpack.i.l.bf16 %v10551_v63  ;;  %v6199_v38 = vunpack.i.h.bf16 %v10580_v32 }
0x117b   : >> { %v10732_v33 = vmax.f32 %v5184_v28, %v6218_v23  ;;  %v10734_v35 = vmax.f32 %v5185_v22, %v6219_v17  ;;  %v5041_v23 = vsel %vm5031_vm10, %v10655_v3, -inf  ;;  %v6193_v3 = vunpack.i.l.bf16 %v10680_v48 }
0x117d   : >> { %4785 = vmax.xlane.f32.xlu1 %v10481_v18  ;;  %4782 = vmax.xlane.f32.xlu0 %v4781_v56  ;;  %v5330_v18 = vsel %vm5324_vm9, %v10299_v61, %v10322_v40  ;;  %v10742_v40 = vpop.permute.xlu0 %6211  ;;  %v5228_v0 = vsel %vm5224_vm15, %v10734_v35, -inf  ;;  %v5225_v53 = vsel %vm5224_vm15, %v10732_v33, -inf  ;;  %v6163_v56 = vunpack.i.l.bf16 %v10644_v49 }
0x117e   : >> { %v5339_v39 = vsel %vm5333_vm11, %v5330_v18, %v10358_v25  ;;  %v6198_v49 = vunpack.i.l.bf16 %v10580_v32  ;;  %v6183_v18 = vunpack.i.l.bf16 %v10673_v12  ;;  %v6184_v32 = vunpack.i.h.bf16 %v10673_v12 }
0x117f   : >> { %v5348_v61 = vsel %vm5342_vm1, %v5339_v39, %v10384_v43  ;;  %v6306_v39 = vld [vmem:[#allocation4 + $0x68] sm:$0xff]  ;;  %v6188_v12 = vunpack.i.l.bf16 %v10575_v52 }
0x1180   : >> { %v5357_v25 = vsel %vm5351_vm13, %v5348_v61, %v10675_v44  ;;  %v6124_v44 = vunpack.i.h.bf16 %v10509_v21  ;;  %v4994_v21 = vsel %vm4981_vm5, %v10710_v47, -inf }
0x1181   : >> { %4973 = vmax.xlane.f32.xlu1 %v4972_v59  ;;  %4970 = vmax.xlane.f32.xlu0 %v4969_v19  ;;  %v10753_v9 = vpop.permute.xlu0 %6221  ;;  %v5038_v59 = vsel %vm5031_vm10, %v10657_v34, -inf  ;;  %v6144_v19 = vunpack.i.h.bf16 %v10551_v63  ;;  %v5253_v63 = vsel %vm5249_vm0, %v10734_v35, -inf }
0x1182   : >> { %v10728_v60 = vpop.xlane.xlu1 %4961  ;;  %v4843_v26 = vmax.f32 %v6304_v11, %v6124_v44 }
0x1184   : >> { %v4875_v14 = vmax.f32 %v4843_v26, %v6164_v10 }
0x1185   : >> { %5017 = vmax.xlane.f32.xlu1 %v5016_v20  ;;  %5014 = vmax.xlane.f32.xlu0 %v5013_v6  ;;  %v6232_v50 = vpop.permute.xlu0 %6231  ;;  %v5082_v20 = vmax.f32 %v6306_v39, %v6143_v1  ;;  %v6194_v6 = vunpack.i.h.bf16 %v10680_v48  ;;  %v6224_v39 = vunpack.i.h.bf16 %v10753_v9 }
0x1186   : >> { %v4755_v51 = vpop.xlane.xlu1 %4754  ;;  %v6234_v42 = vunpack.i.h.bf16 %v6232_v50  ;;  %v6233_v17 = vunpack.i.l.bf16 %v6232_v50  ;;  %v4907_v22 = vmax.f32 %v4875_v14, %v6199_v38 }
0x1187   : >> { %v10747_v13 = vsel %vm4460_vm12, %v5357_v25, %v4755_v51  ;;  %v5250_v25 = vsel %vm5249_vm0, %v10732_v33, -inf  ;;  %v5083_v51 = vmax.f32 %v10515_v36, %v6144_v19  ;;  %v5114_v48 = vmax.f32 %v5082_v20, %v6183_v18 }
0x1188   : >> { %v10784_v34 = vmax.f32 %v4907_v22, %v6234_v42  ;;  %v5171_v44 = vsel %vm12308_vm6, %v6193_v3, %v6194_v6  ;;  %v6179_v42 = vunpack.i.h.bf16 %v10569_v55  ;;  %v5047_v19 = vsel %vm5031_vm10, %v10712_v7, -inf }
0x1189   : >> { %5229 = vmax.xlane.f32.xlu1 %v5228_v0  ;;  %5226 = vmax.xlane.f32.xlu0 %v5225_v53  ;;  %v6189_v0 = vunpack.i.h.bf16 %v10575_v52  ;;  %v6242_v53 = vpop.permute.xlu0 %6241  ;;  %v5044_v18 = vsel %vm5031_vm10, %v10710_v47, -inf  ;;  %v6223_v20 = vunpack.i.l.bf16 %v10753_v9  ;;  %v6213_v6 = vunpack.i.l.bf16 %v10742_v40 }
0x118a   : >> { %v4799_v43 = vpop.xlane.xlu1 %4798  ;;  %v6244_v45 = vunpack.i.h.bf16 %v6242_v53  ;;  %v4978_v10 = vsel %vm4956_vm3, %v10784_v34, -inf  ;;  %v5003_v38 = vsel %vm4981_vm5, %v10784_v34, -inf  ;;  %v5326_v9 = vsel %vm5324_vm9, %v10282_v54, %v10310_v62 }
0x118b   : >> { %v10757_v29 = vsel %vm5377_vm8, %v10687_v16, %v4799_v43  ;;  %v4997_v16 = vsel %vm4981_vm5, %v10712_v7, -inf  ;;  %v5115_v43 = vmax.f32 %v5083_v51, %v6184_v32  ;;  %v5170_v36 = vsel %vm12310_vm7, %v6188_v12, %v6189_v0  ;;  %v12314_v12 = vld [vmem:[#allocation201_spill] sm:$0xff] }
0x118c   : >> { %v5186_v52 = vmax.f32 %v5114_v48, %v5170_v36  ;;  %v6229_v32 = vunpack.i.h.bf16 %v10605_v24  ;;  %v12315_v36 = vld [vmem:[#allocation197_spill] sm:$0xff] }
0x118d   : >> { %4810 = vmax.xlane.f32.xlu1 %v10485_v57  ;;  %4807 = vmax.xlane.f32.xlu0 %v4806_v31  ;;  %v4874_v57 = vmax.f32 %v4842_v8, %v6163_v56  ;;  %v6243_v31 = vunpack.i.l.bf16 %v6242_v53  ;;  %v5187_v11 = vmax.f32 %v5115_v43, %v5171_v44  ;;  %v5022_v8 = vsel %vm5006_vm14, %v10712_v7, -inf  ;;  %v10815_v1 = vpop.permute.xlu0 %6251 }
0x118f   : >> { %v4906_v28 = vmax.f32 %v4874_v57, %v6198_v49  ;;  %v10799_v26 = vmax.f32 %v5186_v52, %v6243_v31  ;;  %v10801_v58 = vmax.f32 %v5187_v11, %v6244_v45  ;;  %v6259_v31 = vunpack.i.h.bf16 %v10630_v15  ;;  %v12316_v52 = vld [vmem:[#allocation266_spill] sm:$0xff] }
0x1191   : >> { %4998 = vmax.xlane.f32.xlu1 %v4997_v16  ;;  %4995 = vmax.xlane.f32.xlu0 %v4994_v21  ;;  %v10782_v61 = vmax.f32 %v4906_v28, %v6233_v17  ;;  %v5019_v16 = vsel %vm5006_vm14, %v10710_v47, -inf  ;;  %v5234_v21 = vsel %vm5224_vm15, %v10801_v58, -inf  ;;  %v5231_v50 = vsel %vm5224_vm15, %v10799_v26, -inf  ;;  %v6307_v28 = vld [vmem:[#allocation4 + $0xe0] sm:$0xff] }
0x1192   : >> { %v6214_v17 = vunpack.i.h.bf16 %v10742_v40  ;;  %v5085_v22 = vmax.f32 %v6307_v28, %v6179_v42  ;;  %v5259_v47 = vsel %vm5249_vm0, %v10801_v58, -inf  ;;  %v12320_v28 = vld [vmem:[#allocation270_spill] sm:$0xff] }
0x1193   : >> { %v4975_v56 = vsel %vm4956_vm3, %v10782_v61, -inf  ;;  %vm5274_vm3 = vcmask 417136   ;;  %v5000_v49 = vsel %vm4981_vm5, %v10782_v61, -inf  ;;  %vm12311_vm5 = vmmov %vm12308_vm6  ;;  %vm5299_vm6 = vcmask 458136  }
0x1194   : >> { %v5278_v14 = vsel %vm5274_vm3, %v10734_v35, -inf  ;;  %v5275_v57 = vsel %vm5274_vm3, %v10732_v33, -inf  ;;  %v5117_v3 = vmax.f32 %v5085_v22, %v6214_v17  ;;  %v5172_v51 = vsel %vm12311_vm5, %v6223_v20, %v6224_v39  ;;  %vm12313_vm7 = vmmov %vm12311_vm5  ;;  %v12321_v20 = vld [vmem:[#allocation33_spill] sm:$0xff] }
0x1195   : >> { %5042 = vmax.xlane.f32.xlu1 %v5041_v23  ;;  %5039 = vmax.xlane.f32.xlu0 %v5038_v59  ;;  %v6178_v23 = vunpack.i.l.bf16 %v10569_v55  ;;  %v10824_v59 = vpop.permute.xlu0 %6261  ;;  %v6228_v55 = vunpack.i.l.bf16 %v10605_v24  ;;  %v12312_v24 = vld [vmem:[#allocation36_spill] sm:$0xff]  ;;  %v5303_v62 = vsel %vm5299_vm6, %v10734_v35, -inf  ;;  %v5300_v45 = vsel %vm5299_vm6, %v10732_v33, -inf }
0x1196   : >> { %v5335_v40 = vsel %vm5333_vm11, %v5326_v9, %v12312_v24  ;;  %vm5386_vm5 = vcmask 64512   ;;  %v5325_v35 = vsel %vm5324_vm9, %v12316_v52, %v12315_v36  ;;  %v6254_v9 = vunpack.i.h.bf16 %v10815_v1 }
0x1197   : >> { %v5084_v7 = vmax.f32 %v10533_v46, %v6178_v23  ;;  %v5173_v46 = vsel %vm12313_vm7, %v6228_v55, %v6229_v32  ;;  %v5344_v53 = vsel %vm5342_vm1, %v5335_v40, %v12314_v12  ;;  %vm5395_vm7 = vcmask 72704   ;;  %v12322_v32 = vld [vmem:[#allocation40_spill] sm:$0xff] }
0x1198   : >> { %v5189_v48 = vmax.f32 %v5117_v3, %v5173_v46  ;;  %v5353_v43 = vsel %vm5351_vm13, %v5344_v53, %v10638_v30  ;;  %v6239_v40 = vunpack.i.h.bf16 %v10611_v37  ;;  %v6238_v46 = vunpack.i.l.bf16 %v10611_v37  ;;  %v6308_v53 = vld [vmem:[#allocation4 + $0x130] sm:$0xff] }
0x1199   : >> { %5254 = vmax.xlane.f32.xlu1 %v5253_v63  ;;  %5251 = vmax.xlane.f32.xlu0 %v5250_v25  ;;  %v5256_v25 = vsel %vm5249_vm0, %v10799_v26, -inf  ;;  %v5116_v0 = vmax.f32 %v5084_v7, %v6213_v6  ;;  %v6209_v6 = vunpack.i.h.bf16 %v10586_v41  ;;  %v6248_v12 = vunpack.i.l.bf16 %v10618_v2 }
0x119a   : >> { %v10863_v11 = vmax.f32 %v5189_v48, %v6259_v31 }
0x119b   : >> { %v5188_v44 = vmax.f32 %v5116_v0, %v5172_v51  ;;  %v6253_v51 = vunpack.i.l.bf16 %v10815_v1  ;;  %v6249_v0 = vunpack.i.h.bf16 %v10618_v2  ;;  %v5087_v48 = vmax.f32 %v6308_v53, %v6209_v6 }
0x119c   : >> { %v5050_v1 = vsel %vm5031_vm10, %v10782_v61, -inf  ;;  %v5315_v6 = vsel %vm5299_vm6, %v10863_v11, -inf }
0x119d   : >> { %4979 = vmax.xlane.f32.xlu1 %v4978_v10  ;;  %4976 = vmax.xlane.f32.xlu0 %v4975_v56  ;;  %v6258_v56 = vunpack.i.l.bf16 %v10630_v15  ;;  %v5025_v15 = vsel %vm5006_vm14, %v10782_v61, -inf  ;;  %v5119_v37 = vmax.f32 %v5087_v48, %v6239_v40  ;;  %v12329_v48 = vld [vmem:[#allocation37_spill] sm:$0xff] }
0x11a1   : >> { %5023 = vmax.xlane.f32.xlu1 %v5022_v8  ;;  %5020 = vmax.xlane.f32.xlu0 %v5019_v16  ;;  %v4987_v8 = vpop.xlane.xlu1 %4986 }
0x11a5   : >> { %5235 = vmax.xlane.f32.xlu1 %v5234_v21  ;;  %5232 = vmax.xlane.f32.xlu0 %v5231_v50  ;;  %v5028_v21 = vsel %vm5006_vm14, %v10784_v34, -inf  ;;  %v10871_v50 = vmax.f32 %v5188_v44, %v6258_v56  ;;  %v6309_v44 = vld [vmem:[#allocation4 + $0x108] sm:$0xff]  ;;  %vm12323_vm14 = vcmask 359424   ;;  %v6263_v56 = vunpack.i.l.bf16 %v10824_v59 }
0x11a6   : >> { %vm12324_vm2 = vmmov %vm12323_vm14 }
0x11a7   : >> { %v5174_v2 = vsel %vm12324_vm2, %v6248_v12, %v6249_v0  ;;  %v5262_v36 = vsel %vm5249_vm0, %v10871_v50, -inf  ;;  %vm5404_vm2 = vcmask 80896  }
0x11a9   : >> { %5279 = vmax.xlane.f32.xlu1 %v5278_v14  ;;  %5276 = vmax.xlane.f32.xlu0 %v5275_v57  ;;  %v12317_v14 = vld [vmem:[#allocation38_spill] sm:$0xff] }
0x11aa   : >> { %v5334_v57 = vsel %vm5333_vm11, %v5325_v35, %v12317_v14 }
0x11ad   : >> { %5004 = vmax.xlane.f32.xlu1 %v5003_v38  ;;  %5001 = vmax.xlane.f32.xlu0 %v5000_v49  ;;  %v12318_v38 = vld [vmem:[#allocation271_spill] sm:$0xff] }
0x11ae   : >> { %v5343_v49 = vsel %vm5342_vm1, %v5334_v57, %v12318_v38  ;;  %v12325_v57 = vld [vmem:[#allocation196_spill] sm:$0xff]  ;;  %v12326_v38 = vld [vmem:[#allocation30_spill] sm:$0xff] }
0x11af   : >> { %v5352_v42 = vsel %vm5351_vm13, %v5343_v49, %v10628_v5  ;;  %v5329_v49 = vsel %vm5324_vm9, %v12326_v38, %v12325_v57  ;;  %v12342_v57 = vld [vmem:[#allocation20_spill] sm:$0xff]  ;;  %v12344_v38 = vld [vmem:[#allocation21_spill] sm:$0xff] }
0x11b1   : >> { %5048 = vmax.xlane.f32.xlu1 %v5047_v19  ;;  %5045 = vmax.xlane.f32.xlu0 %v5044_v18  ;;  %v5237_v19 = vsel %vm5224_vm15, %v10871_v50, -inf  ;;  %v12319_v18 = vld [vmem:[#allocation34_spill] sm:$0xff] }
0x11b2   : >> { %v5327_v22 = vsel %vm5324_vm9, %v12320_v28, %v12319_v18  ;;  %v5290_v18 = vsel %vm5274_vm3, %v10863_v11, -inf  ;;  %v5287_v28 = vsel %vm5274_vm3, %v10871_v50, -inf }
0x11b3   : >> { %v5336_v5 = vsel %vm5333_vm11, %v5327_v22, %v12321_v20 }
0x11b4   : >> { %v4740_v63 = vpop.xlane.xlu0 %4739  ;;  %v5345_v55 = vsel %vm5342_vm1, %v5336_v5, %v12322_v32 }
0x11b5   : >> { %5260 = vmax.xlane.f32.xlu1 %v5259_v47  ;;  %5257 = vmax.xlane.f32.xlu0 %v5256_v25  ;;  %v5360_v17 = vsel %vm4460_vm12, %v5352_v42, %v4740_v63  ;;  %v5284_v63 = vsel %vm5274_vm3, %v10801_v58, -inf  ;;  %v5281_v47 = vsel %vm5274_vm3, %v10799_v26, -inf  ;;  %v6208_v25 = vunpack.i.l.bf16 %v10586_v41 }
0x11b6   : >> { %v5053_v41 = vsel %vm5031_vm10, %v10784_v34, -inf  ;;  %v6264_v34 = vunpack.i.h.bf16 %v10824_v59 }
0x11b8   : >> { %v4743_v54 = vpop.xlane.xlu0 %4742 }
0x11b9   : >> { %v5361_v10 = vsel %vm4460_vm12, %v5353_v43, %v4743_v54  ;;  %5304 = vmax.xlane.f32.xlu1 %v5303_v62  ;;  %5301 = vmax.xlane.f32.xlu0 %v5300_v45  ;;  %v5086_v54 = vmax.f32 %v6309_v44, %v6208_v25  ;;  %v5175_v62 = vsel %vm12323_vm14, %v6253_v51, %v6254_v9  ;;  %v4736_v9 = vpop.xlane.xlu1 %4735 }
0x11ba   : >> { %v5370_v30 = vsel %vm5368_vm4, %v5361_v10, %v10648_v4  ;;  %v5265_v10 = vsel %vm5249_vm0, %v10863_v11, -inf  ;;  %v5191_v61 = vmax.f32 %v5119_v37, %v5175_v62  ;;  %v12332_v62 = vld [vmem:[#allocation194_spill] sm:$0xff]  ;;  %v12333_v37 = vld [vmem:[#allocation39_spill] sm:$0xff] }
0x11bb   : >> { %v5379_v33 = vsel %vm5377_vm8, %v5370_v30, %v10667_v27  ;;  %v5118_v31 = vmax.f32 %v5086_v54, %v6238_v46  ;;  %v12331_v54 = vld [vmem:[#allocation27_spill] sm:$0xff] }
0x11bc   : >> { %v4721_v16 = vpop.xlane.xlu0 %4720  ;;  %v5388_v4 = vsel %vm5386_vm5, %v5379_v33, %v10728_v60  ;;  %v5240_v60 = vsel %vm5224_vm15, %v10863_v11, -inf  ;;  %v5223_v33 = vmax.f32 %v5191_v61, %v6264_v34 }
0x11bd   : >> { %5029 = vmax.xlane.f32.xlu1 %v5028_v21  ;;  %5026 = vmax.xlane.f32.xlu0 %v5025_v15  ;;  %v10878_v27 = vsel %vm5395_vm7, %v5388_v4, %v4987_v8  ;;  %v5354_v3 = vsel %vm5351_vm13, %v5345_v55, %v4721_v16  ;;  %v5190_v52 = vmax.f32 %v5118_v31, %v5174_v2  ;;  %v5309_v16 = vsel %vm5299_vm6, %v10801_v58, -inf  ;;  %v12327_v58 = vld [vmem:[#allocation272_spill] sm:$0xff] }
0x11be   : >> { %v5306_v21 = vsel %vm5299_vm6, %v10799_v26, -inf  ;;  %v5246_v4 = vsel %vm5224_vm15, %v5223_v33, -inf  ;;  %v5338_v26 = vsel %vm5333_vm11, %v5329_v49, %v12327_v58  ;;  %v5271_v20 = vsel %vm5249_vm0, %v5223_v33, -inf }
0x11bf   : >> { %v5222_v35 = vmax.f32 %v5190_v52, %v6263_v56  ;;  %v12335_v56 = vld [vmem:[#allocation44_spill] sm:$0xff] }
0x11c0   : >> { %v4765_v23 = vpop.xlane.xlu0 %4764 }
0x11c1   : >> { %v5369_v39 = vsel %vm5368_vm4, %v5360_v17, %v4765_v23  ;;  %5241 = vmax.xlane.f32.xlu1 %v5240_v60  ;;  %5238 = vmax.xlane.f32.xlu0 %v5237_v19  ;;  %v5243_v14 = vsel %vm5224_vm15, %v5222_v35, -inf  ;;  %v12328_v17 = vld [vmem:[#allocation198_spill] sm:$0xff]  ;;  %v5268_v5 = vsel %vm5249_vm0, %v5222_v35, -inf  ;;  %v5293_v25 = vsel %vm5274_vm3, %v5222_v35, -inf }
0x11c2   : >> { %v5347_v23 = vsel %vm5342_vm1, %v5338_v26, %v12328_v17  ;;  %v5318_v11 = vsel %vm5299_vm6, %v5222_v35, -inf }
0x11c4   : >> { %v4746_v7 = vpop.xlane.xlu0 %4745 }
0x11c5   : >> { %v5362_v24 = vsel %vm4460_vm12, %v5354_v3, %v4746_v7  ;;  %5285 = vmax.xlane.f32.xlu1 %v5284_v63  ;;  %5282 = vmax.xlane.f32.xlu0 %v5281_v47  ;;  %v5312_v3 = vsel %vm5299_vm6, %v10871_v50, -inf  ;;  %v5296_v47 = vsel %vm5274_vm3, %v5223_v33, -inf  ;;  %v4780_v50 = vpop.xlane.xlu1 %4779 }
0x11c6   : >> { %v5374_v49 = vsel %vm5368_vm4, %v10747_v13, %v4780_v50 }
0x11c8   : >> { %v4790_v43 = vpop.xlane.xlu0 %4789 }
0x11c9   : >> { %v5378_v45 = vsel %vm5377_vm8, %v5369_v39, %v4790_v43  ;;  %5054 = vmax.xlane.f32.xlu1 %v5053_v41  ;;  %5051 = vmax.xlane.f32.xlu0 %v5050_v1  ;;  %v12330_v43 = vld [vmem:[#allocation31_spill] sm:$0xff] }
0x11ca   : >> { %v5332_v41 = vsel %vm5324_vm9, %v12330_v43, %v12329_v48 }
0x11cb   : >> { %v5341_v31 = vsel %vm5333_vm11, %v5332_v41, %v12333_v37 }
0x11cc   : >> { %v4727_v30 = vpop.xlane.xlu0 %4726  ;;  %v5350_v61 = vsel %vm5342_vm1, %v5341_v31, %v12335_v56 }
0x11cd   : >> { %5266 = vmax.xlane.f32.xlu1 %v5265_v10  ;;  %5263 = vmax.xlane.f32.xlu0 %v5262_v36  ;;  %v5356_v60 = vsel %vm5351_vm13, %v5347_v23, %v4727_v30  ;;  %v12334_v10 = vld [vmem:[#allocation35_spill] sm:$0xff]  ;;  %v12336_v30 = vld [vmem:[#allocation200_spill] sm:$0xff]  ;;  %v5359_v52 = vsel %vm5351_vm13, %v5350_v61, %v4736_v9  ;;  %v12346_v23 = vld [vmem:[#allocation22_spill] sm:$0xff] }
0x11d0   : >> { %v4771_v8 = vpop.xlane.xlu0 %4770 }
0x11d1   : >> { %v5371_v15 = vsel %vm5368_vm4, %v5362_v24, %v4771_v8  ;;  %5310 = vmax.xlane.f32.xlu1 %v5309_v16  ;;  %5307 = vmax.xlane.f32.xlu0 %v5306_v21  ;;  %v5321_v24 = vsel %vm5299_vm6, %v5223_v33, -inf  ;;  %v12338_v16 = vld [vmem:[#allocation15_spill] sm:$0xff] }
0x11d2   : >> { %v12340_v21 = vld [vmem:[#allocation19_spill] sm:$0xff] }
0x11d3   : >> { %vm12341_vm10 = vcmp.eq.s32.totalorder %v12340_v21, %v12338_v16 }
0x11d4   : >> { %v4959_v59 = vpop.xlane.xlu0 %4958 }
0x11d5   : >> { %v5387_v42 = vsel %vm5386_vm5, %v5378_v45, %v4959_v59  ;;  %5247 = vmax.xlane.f32.xlu1 %v5246_v4  ;;  %5244 = vmax.xlane.f32.xlu0 %v5243_v14  ;;  %v5331_v45 = vsel %vm5324_vm9, %v12332_v62, %v12331_v54  ;;  %v6375_v4 = vmov 0.0   ;;  %v6377_v14 = vmov 1.0|1.0  }
0x11d6   : >> { %v5340_v34 = vsel %vm5333_vm11, %v5331_v45, %v12334_v10  ;;  %5709 = vmatprep.subr.bf16.mxu0 %v6375_v4  ;;  %vm6376_vm11 = vmmov 0  }
0x11d7   : >> { %v5349_v36 = vsel %vm5342_vm1, %v5340_v34, %v12336_v30  ;;  %5717 = vmatprep.mubr.msk.bf16.mxu0 %vm6376_vm11, %v6375_v4  ;;  %vm12343_vm1 = vcmp.eq.s32.totalorder %v12342_v57, %v12338_v16 }
0x11d8   : >> { %v4752_v19 = vpop.xlane.xlu0 %4751 }
0x11d9   : >> { %v5364_v22 = vsel %vm4460_vm12, %v5356_v60, %v4752_v19  ;;  %5291 = vmax.xlane.f32.xlu1 %v5290_v18  ;;  %5288 = vmax.xlane.f32.xlu0 %v5287_v28  ;;  %v12348_v60 = vld [vmem:[#allocation23_spill] sm:$0xff] }
0x11da   : >> { %vm12349_vm3 = vcmp.eq.s32.totalorder %v12348_v60, %v12338_v16 }
0x11dc   : >> { %v4796_v39 = vpop.xlane.xlu0 %4795 }
0x11dd   : >> { %v5380_v32 = vsel %vm5377_vm8, %v5371_v15, %v4796_v39  ;;  %5272 = vmax.xlane.f32.xlu1 %v5271_v20  ;;  %5269 = vmax.xlane.f32.xlu0 %v5268_v5  ;;  %v12352_v39 = vld [vmem:[#allocation25_spill] sm:$0xff] }
0x11e0   : >> { %v4984_v55 = vpop.xlane.xlu0 %4983 }
0x11e1   : >> { %v5396_v7 = vsel %vm5395_vm7, %v5387_v42, %v4984_v55  ;;  %5316 = vmax.xlane.f32.xlu1 %v5315_v6  ;;  %5313 = vmax.xlane.f32.xlu0 %v5312_v3 }
0x11e4   : >> { %v4733_v63 = vpop.xlane.xlu0 %4732 }
0x11e5   : >> { %5297 = vmax.xlane.f32.xlu1 %v5296_v47  ;;  %5294 = vmax.xlane.f32.xlu0 %v5293_v25  ;;  %v5358_v35 = vsel %vm5351_vm13, %v5349_v36, %v4733_v63  ;;  %vm12345_vm13 = vcmp.eq.s32.totalorder %v12344_v38, %v12338_v16 }
0x11e6   : >> { %vm5647_vm0 = vmpackc.low %vm12345_vm13, %vm12343_vm1  ;;  %vm12358_vm1 = vcmask 113664  }
0x11e7   : >> { %vm12359_vm13 = vmmov %vm12358_vm1 }
0x11e8   : >> { %v4777_v51 = vpop.xlane.xlu0 %4776 }
0x11e9   : >> { %v5373_v40 = vsel %vm5368_vm4, %v5364_v22, %v4777_v51  ;;  %5322 = vmax.xlane.f32.xlu1 %v5321_v24  ;;  %5319 = vmax.xlane.f32.xlu0 %v5318_v11  ;;  %v12350_v22 = vld [vmem:[#allocation24_spill] sm:$0xff] }
0x11ea   : >> { %vm12351_vm14 = vcmp.eq.s32.totalorder %v12350_v22, %v12338_v16 }
0x11f2   : >> { %v4968_v46 = vpop.xlane.xlu1 %4967  ;;  %v4965_v0 = vpop.xlane.xlu0 %4964 }
0x11f3   : >> { %v5390_v12 = vsel %vm5386_vm5, %v10757_v29, %v4968_v46  ;;  %v5389_v53 = vsel %vm5386_vm5, %v5380_v32, %v4965_v0 }
0x11f6   : >> { %v5012_v1 = vpop.xlane.xlu1 %5011  ;;  %v5009_v44 = vpop.xlane.xlu0 %5008 }
0x11f7   : >> { %v10971_v2 = vsel %vm5404_vm2, %v10878_v27, %v5012_v1  ;;  %v10974_v29 = vsel %vm5404_vm2, %v5396_v7, %v5009_v44  ;;  %v12337_v27 = vld [vmem:[#allocation14_spill] sm:$0xff] }
0x11f8   : >> { %vm12339_vm9 = vcmp.eq.s32.totalorder %v12337_v27, %v12338_v16 }
0x11f9   : >> { %vm5645_vm15 = vmpackc.low %vm12341_vm10, %vm12339_vm9  ;;  %vm12353_vm9 = vcmp.eq.s32.totalorder %v12352_v39, %v12338_v16 }
0x11fa   : >> { %v4761_v33 = vpop.xlane.xlu1 %4760  ;;  %v4758_v8 = vpop.xlane.xlu0 %4757  ;;  %5710 = vmatpush3.bf16.msk.msra.mxu0 %vm5645_vm15, %v6377_v14  ;;  %vm5651_vm10 = vmpackc.low %vm12353_vm9, %vm12351_vm14  ;;  %vm12356_vm15 = vcmask 105472  }
0x11fb   : >> { %v5367_v15 = vsel %vm4460_vm12, %v5359_v52, %v4761_v33  ;;  %v5366_v59 = vsel %vm4460_vm12, %v5358_v35, %v4758_v8  ;;  %5711 = vmatprep.subr.bf16.mxu0 %v6375_v4  ;;  %vm12347_vm12 = vcmp.eq.s32.totalorder %v12346_v23, %v12338_v16  ;;  %vm12357_vm11 = vmmov %vm12356_vm15 }
0x11fc   : >> { %vm5649_vm6 = vmpackc.low %vm12349_vm3, %vm12347_vm12 }
0x11fd   : >> { %vm12364_vm14 = vmmov %vm12357_vm11 }
0x11fe   : >> { %v4805_v42 = vpop.xlane.xlu1 %4804  ;;  %v4802_v58 = vpop.xlane.xlu0 %4801  ;;  %5712 = vmatpush3.bf16.msk.msra.mxu0 %vm5647_vm0, %v6377_v14  ;;  %vm12360_vm0 = vcmask 121856   ;;  %vm12365_vm9 = vmmov %vm12357_vm11 }
0x11ff   : >> { %v5383_v26 = vsel %vm5377_vm8, %v5374_v49, %v4805_v42  ;;  %v5382_v17 = vsel %vm5377_vm8, %v5373_v40, %v4802_v58  ;;  %5713 = vmatprep.subr.bf16.mxu0 %v6375_v4  ;;  %vm12361_vm12 = vmmov %vm12360_vm0 }
0x1202   : >> { %v4993_v19 = vpop.xlane.xlu1 %4992  ;;  %v4990_v18 = vpop.xlane.xlu0 %4989  ;;  %5714 = vmatpush3.bf16.msk.msra.mxu0 %vm5649_vm6, %v6377_v14 }
0x1203   : >> { %v5399_v28 = vsel %vm5395_vm7, %v5390_v12, %v4993_v19  ;;  %v5398_v13 = vsel %vm5395_vm7, %v5389_v53, %v4990_v18  ;;  %5715 = vmatprep.subr.bf16.mxu0 %v6375_v4 }
0x1206   : >> { %v5037_v20 = vpop.xlane.xlu1 %5036  ;;  %v5034_v5 = vpop.xlane.xlu0 %5033  ;;  %5716 = vmatpush3.bf16.msk.msra.mxu0 %vm5651_vm10, %v6377_v14  ;;  %vm12366_vm10 = vmmov %vm12358_vm1 }
0x120a   : >> { %v4786_v32 = vpop.xlane.xlu1 %4785  ;;  %v4783_v55 = vpop.xlane.xlu0 %4782 }
0x120b   : >> { %v5376_v6 = vsel %vm5368_vm4, %v5367_v15, %v4786_v32  ;;  %v5375_v3 = vsel %vm5368_vm4, %v5366_v59, %v4783_v55  ;;  %vm5413_vm4 = vcmask 89088  }
0x120c   : >> { %v5415_v4 = vsel %vm5413_vm4, %v10971_v2, %v5037_v20  ;;  %v5414_v14 = vsel %vm5413_vm4, %v10974_v29, %v5034_v5 }
0x120e   : >> { %v4974_v7 = vpop.xlane.xlu1 %4973  ;;  %v4971_v63 = vpop.xlane.xlu0 %4970 }
0x120f   : >> { %v5392_v47 = vsel %vm5386_vm5, %v5383_v26, %v4974_v7  ;;  %v5391_v25 = vsel %vm5386_vm5, %v5382_v17, %v4971_v63 }
0x1212   : >> { %v5018_v9 = vpop.xlane.xlu1 %5017  ;;  %v5015_v51 = vpop.xlane.xlu0 %5014 }
0x1213   : >> { %v5408_v24 = vsel %vm5404_vm2, %v5399_v28, %v5018_v9  ;;  %v5407_v11 = vsel %vm5404_vm2, %v5398_v13, %v5015_v51 }
0x1216   : >> { %v5230_v40 = vpop.xlane.xlu1 %5229  ;;  %v5227_v50 = vpop.xlane.xlu0 %5226 }
0x121a   : >> { %v4811_v46 = vpop.xlane.xlu1 %4810  ;;  %v4808_v0 = vpop.xlane.xlu0 %4807 }
0x121b   : >> { %v5385_v12 = vsel %vm5377_vm8, %v5376_v6, %v4811_v46  ;;  %v5384_v53 = vsel %vm5377_vm8, %v5375_v3, %v4808_v0  ;;  %vm12354_vm8 = vcmask 97280  }
0x121c   : >> { %v5423_v57 = vsel %vm12354_vm8, %v5415_v4, %v5230_v40 }
0x121e   : >> { %v4999_v48 = vpop.xlane.xlu1 %4998  ;;  %v4996_v43 = vpop.xlane.xlu0 %4995 }
0x121f   : >> { %v11025_v41 = vsel %vm5395_vm7, %v5392_v47, %v4999_v48  ;;  %v11028_v1 = vsel %vm5395_vm7, %v5391_v25, %v4996_v43 }
0x1222   : >> { %v5043_v44 = vpop.xlane.xlu1 %5042  ;;  %v5040_v54 = vpop.xlane.xlu0 %5039 }
0x1223   : >> { %v5417_v6 = vsel %vm5413_vm4, %v5408_v24, %v5043_v44  ;;  %v5416_v3 = vsel %vm5413_vm4, %v5407_v11, %v5040_v54 }
0x1226   : >> { %v5255_v62 = vpop.xlane.xlu1 %5254  ;;  %v5252_v45 = vpop.xlane.xlu0 %5251 }
0x1227   : >> { %v5431_v49 = vsel %vm12356_vm15, %v5423_v57, %v5255_v62  ;;  %vm12369_vm15 = vmmov %vm12360_vm0 }
0x122a   : >> { %v4980_v37 = vpop.xlane.xlu1 %4979  ;;  %v4977_v31 = vpop.xlane.xlu0 %4976 }
0x122b   : >> { %v11031_v10 = vsel %vm5386_vm5, %v5385_v12, %v4980_v37  ;;  %v11034_v34 = vsel %vm5386_vm5, %v5384_v53, %v4977_v31  ;;  %vm12355_vm5 = vmmov %vm12354_vm8 }
0x122c   : >> { %v5422_v38 = vsel %vm12355_vm5, %v5414_v14, %v5227_v50  ;;  %vm12362_vm3 = vmmov %vm12355_vm5 }
0x122d   : >> { %v5430_v42 = vsel %vm12357_vm11, %v5422_v38, %v5252_v45  ;;  %vm12363_vm6 = vmmov %vm12362_vm3 }
0x122e   : >> { %v5024_v56 = vpop.xlane.xlu1 %5023  ;;  %v5021_v61 = vpop.xlane.xlu0 %5020  ;;  %vm12367_vm8 = vmmov %vm12358_vm1 }
0x122f   : >> { %vm12368_vm5 = vmmov %vm12360_vm0  ;;  %v5410_v43 = vsel %vm5404_vm2, %v11025_v41, %v5024_v56  ;;  %v5409_v44 = vsel %vm5404_vm2, %v11028_v1, %v5021_v61 }
0x1230   : >> { %vm12370_vm11 = vmmov %vm12362_vm3 }
0x1232   : >> { %v5236_v30 = vpop.xlane.xlu1 %5235  ;;  %v5233_v36 = vpop.xlane.xlu0 %5232 }
0x1233   : >> { %v5425_v7 = vsel %vm12362_vm3, %v5417_v6, %v5236_v30  ;;  %v5424_v63 = vsel %vm12363_vm6, %v5416_v3, %v5233_v36  ;;  %vm12376_vm6 = vmmov %vm12368_vm5 }
0x1236   : >> { %v5280_v52 = vpop.xlane.xlu1 %5279  ;;  %v5277_v35 = vpop.xlane.xlu0 %5276 }
0x1237   : >> { %v5439_v58 = vsel %vm12358_vm1, %v5431_v49, %v5280_v52  ;;  %v5438_v26 = vsel %vm12359_vm13, %v5430_v42, %v5277_v35  ;;  %vm12371_vm1 = vmmov %vm12362_vm3 }
0x1238   : >> { %vm12372_vm13 = vmmov %vm12365_vm9 }
0x1239   : >> { %vm12375_vm3 = vmmov %vm12367_vm8 }
0x123a   : >> { %v11036_v33 = vpop.xlane.xlu1 %5004  ;;  %v11038_v8 = vpop.xlane.xlu0 %5001 }
0x123e   : >> { %v5049_v27 = vpop.xlane.xlu1 %5048  ;;  %v5046_v21 = vpop.xlane.xlu0 %5045 }
0x123f   : >> { %v5419_v45 = vsel %vm5413_vm4, %v5410_v43, %v5049_v27  ;;  %v5418_v37 = vsel %vm5413_vm4, %v5409_v44, %v5046_v21  ;;  %v5403_v21 = vsel %vm5395_vm7, %v11031_v10, %v11036_v33 }
0x1242   : >> { %v5261_v15 = vpop.xlane.xlu1 %5260  ;;  %v5258_v59 = vpop.xlane.xlu0 %5257 }
0x1243   : >> { %v5433_v47 = vsel %vm12364_vm14, %v5425_v7, %v5261_v15  ;;  %v5432_v25 = vsel %vm12365_vm9, %v5424_v63, %v5258_v59  ;;  %vm12377_vm14 = vmmov %vm12368_vm5  ;;  %v5402_v59 = vsel %vm5395_vm7, %v11034_v34, %v11038_v8 }
0x1246   : >> { %v5305_v17 = vpop.xlane.xlu1 %5304  ;;  %v5302_v23 = vpop.xlane.xlu0 %5301 }
0x1247   : >> { %v5447_v60 = vsel %vm12360_vm0, %v5439_v58, %v5305_v17  ;;  %v5446_v2 = vsel %vm12361_vm12, %v5438_v26, %v5302_v23  ;;  %vm12373_vm0 = vmmov %vm12365_vm9 }
0x1248   : >> { %v5454_v19 = vpack.c.bf16 %v5447_v60, %v5446_v2  ;;  %vm12374_vm12 = vmmov %vm12367_vm8 }
0x1249   : >> { %vm12378_vm9 = vmmov %vm12371_vm1 }
0x124a   : >> { %v5030_v29 = vpop.xlane.xlu1 %5029  ;;  %5458 = vxpose.xlu0.c.b16.start [1/4] (short) (narrow) %v5454_v19, 16  ;;  %v5027_v18 = vpop.xlane.xlu0 %5026  ;;  %vm12381_vm7 = vmmov %vm12373_vm0 }
0x124b   : >> { %v5412_v4 = vsel %vm5404_vm2, %v5403_v21, %v5030_v29  ;;  %v5411_v14 = vsel %vm5404_vm2, %v5402_v59, %v5027_v18  ;;  %vm12383_vm2 = vmmov %vm12375_vm3 }
0x124e   : >> { %v5242_v28 = vpop.xlane.xlu1 %5241  ;;  %v5239_v13 = vpop.xlane.xlu0 %5238 }
0x124f   : >> { %v5427_v31 = vsel %vm12370_vm11, %v5419_v45, %v5242_v28  ;;  %v5426_v30 = vsel %vm12371_vm1, %v5418_v37, %v5239_v13  ;;  %vm12385_vm11 = vmmov %vm12376_vm6 }
0x1252   : >> { %v5286_v22 = vpop.xlane.xlu1 %5285  ;;  %v5283_v39 = vpop.xlane.xlu0 %5282 }
0x1253   : >> { %v5441_v9 = vsel %vm12366_vm10, %v5433_v47, %v5286_v22  ;;  %v5440_v51 = vsel %vm12367_vm8, %v5432_v25, %v5283_v39  ;;  %vm12379_vm10 = vmmov %vm12371_vm1  ;;  %vm5530_vm1 = vcmask 519168  }
0x1254   : >> { %vm12380_vm8 = vmmov %vm12373_vm0 }
0x1256   : >> { %v5055_v20 = vpop.xlane.xlu1 %5054  ;;  %v5052_v5 = vpop.xlane.xlu0 %5051 }
0x1257   : >> { %v5421_v49 = vsel %vm5413_vm4, %v5412_v4, %v5055_v20  ;;  %v5420_v42 = vsel %vm5413_vm4, %v5411_v14, %v5052_v5  ;;  %vm5474_vm4 = vcmask 523264  }
0x125a   : >> { %v5267_v32 = vpop.xlane.xlu1 %5266  ;;  %v5264_v55 = vpop.xlane.xlu0 %5263 }
0x125b   : >> { %v5435_v36 = vsel %vm12372_vm13, %v5427_v31, %v5267_v32  ;;  %v5434_v52 = vsel %vm12373_vm0, %v5426_v30, %v5264_v55 }
0x125e   : >> { %v5311_v40 = vpop.xlane.xlu1 %5310  ;;  %v5308_v50 = vpop.xlane.xlu0 %5307 }
0x125f   : >> { %v5449_v46 = vsel %vm12368_vm5, %v5441_v9, %v5311_v40  ;;  %v5448_v24 = vsel %vm12369_vm15, %v5440_v51, %v5308_v50  ;;  %vm12382_vm5 = vmmov %vm12375_vm3 }
0x1260   : >> { %v5455_v0 = vpack.c.bf16 %v5449_v46, %v5448_v24  ;;  %vm12384_vm15 = vmmov %vm12376_vm6 }
0x1262   : >> { %v5248_v11 = vpop.xlane.xlu1 %5247  ;;  %5459 = vxpose.xlu0.c.b16.cont [2/4] (short) (narrow) %v5455_v0, 16  ;;  %v5245_v12 = vpop.xlane.xlu0 %5244 }
0x1263   : >> { %v5429_v58 = vsel %vm12378_vm9, %v5421_v49, %v5248_v11  ;;  %v5428_v10 = vsel %vm12379_vm10, %v5420_v42, %v5245_v12 }
0x1266   : >> { %v5292_v53 = vpop.xlane.xlu1 %5291  ;;  %v5289_v48 = vpop.xlane.xlu0 %5288 }
0x1267   : >> { %v5443_v35 = vsel %vm12374_vm12, %v5435_v36, %v5292_v53  ;;  %v5442_v41 = vsel %vm12375_vm3, %v5434_v52, %v5289_v48 }
0x126a   : >> { %v5273_v54 = vpop.xlane.xlu1 %5272  ;;  %v5270_v62 = vpop.xlane.xlu0 %5269 }
0x126b   : >> { %v5437_v33 = vsel %vm12380_vm8, %v5429_v58, %v5273_v54  ;;  %v5436_v34 = vsel %vm12381_vm7, %v5428_v10, %v5270_v62 }
0x126e   : >> { %v5317_v56 = vpop.xlane.xlu1 %5316  ;;  %v5314_v1 = vpop.xlane.xlu0 %5313 }
0x126f   : >> { %v5451_v61 = vsel %vm12376_vm6, %v5443_v35, %v5317_v56  ;;  %v5450_v27 = vsel %vm12377_vm14, %v5442_v41, %v5314_v1 }
0x1270   : >> { %v5456_v15 = vpack.c.bf16 %v5451_v61, %v5450_v27 }
0x1272   : >> { %v5298_v57 = vpop.xlane.xlu1 %5297  ;;  %5460 = vxpose.xlu0.c.b16.cont [3/4] (short) (narrow) %v5456_v15, 16  ;;  %v5295_v38 = vpop.xlane.xlu0 %5294 }
0x1273   : >> { %v5445_v8 = vsel %vm12382_vm5, %v5437_v33, %v5298_v57  ;;  %v5444_v26 = vsel %vm12383_vm2, %v5436_v34, %v5295_v38 }
0x1276   : >> { %v5323_v17 = vpop.xlane.xlu1 %5322  ;;  %v5320_v23 = vpop.xlane.xlu0 %5319 }
0x1277   : >> { %v5453_v60 = vsel %vm12384_vm15, %v5445_v8, %v5323_v17  ;;  %v5452_v2 = vsel %vm12385_vm11, %v5444_v26, %v5320_v23 }
0x1278   : >> { %v5457_v19 = vpack.c.bf16 %v5453_v60, %v5452_v2 }
0x127a   : >> { %5461 = vxpose.xlu0.c.b16.end [4/4] (short) (narrow) %v5457_v19, 16 }
0x12d4   : >> { %v5466_v29 = vpop.trf.xlu0 }
0x12d5   : >> { %5718 = vmatmul.mubr.msk.bf16.vlgmr.msra.gmra.mrb[32].mxu0 %vm5474_vm4, %v5466_v29 }
0x13a7   : > { %286 = sbr.rel (!%p284_p4) target bundleno = 17 (0x11), region = 79 }
0x13a8   : >> { %v5512_v18 = vpop.f32.mrb[32].mxu0 }
0x13a9   : >> { %v5661_v28 = vpack.c.bf16 %v5512_v18, %v5512_v18  ;;  %v5719_v13 = vpop.f32.mrb[33].mxu0 }
0x13aa   : >> { %v5515_v22 = vpop.f32.mrb[34].mxu0 }
0x13ab   : >> { %5531 = vst.msk [vmem:[%s5529_s16] sm:$0xf] %vm5530_vm1, %v5661_v28  ;;  %v5662_v39 = vpack.c.bf16 %v5515_v22, %v5515_v22  ;;  %v5720_v20 = vpop.f32.mrb[35].mxu0 }
0x13ad   : >> { %5532 = vst.msk [vmem:[%s5529_s16 + $0x4] sm:$0xf] %vm5530_vm1, %v5662_v39 }
0x13ae PF: > { %s15_s18 = sadd.s32 1, %s6320_s18  }
0x13af   : > { %p12_p5 = scmp.ge.s32.totalorder %s15_s18, 4  }
0x13b1   :  { %14 = sbr.rel (!%p12_p5) target bundleno = 1 (0x1), region = 90 }

</bundles_post_ra>
